<compile_context>
chip_gen: v5e
topology: v5e:2x2
jax: 0.10.0
libtpu: 0.0.40
codegen_flags: <defaults>
</compile_context>

<pallas_src>
import functools
import math

import jax
import jax.numpy as jnp
from jax import lax
from jax.experimental import pallas as pl
from jax.experimental.pallas import tpu as pltpu

LN_EPS = 1e-5
NEG_INF = -1e9


# --------------------------------------------------------------------------------------
# Fused Pallas kernel: embedding output -> 5 encoder layers -> LM head log-softmax
# --------------------------------------------------------------------------------------
def _prolm_fused_kernel(x_ref, pe_g_ref,
                        wqkv_ref, bqkv_ref, wo_ref, w1_ref, b1_ref, w2_ref,
                        vec_ref, hw_ref, hb_ref,
                        o_ref, *, n_layers, n_batch, seq_len, attn_span, d_model):
    N, S, E, L = n_batch, seq_len, d_model, attn_span
    NS = N * S
    f32 = jnp.float32
    inv_sqrt_dk = 1.0 / math.sqrt(E)        # num_heads == 1  ->  d_k == d_model

    # Layer- and batch-invariant masks, built once (hoisted out of the layer loop).
    rr = lax.broadcasted_iota(jnp.int32, (S, S), 0)
    cc = lax.broadcasted_iota(jnp.int32, (S, S), 1)
    causal = (cc <= rr)[None]                              # (1, S, S)
    in_band = causal & ((cc >= rr + 1 - L)[None])          # (1, S, S)

    pe_g = pe_g_ref[...]                                   # (S, S, E) pre-skewed rel. emb.

    xf = x_ref[...].reshape(NS, E)                         # batch-flattened activations

    def layer_norm(y, g, b):
        mu = jnp.mean(y, axis=-1, keepdims=True)
        d = y - mu
        var = jnp.mean(d * d, axis=-1, keepdims=True)
        return d * lax.rsqrt(var + LN_EPS) * g + b

    for li in range(n_layers):                             # static unroll; weights in VMEM
        vec = vec_ref[li]                                  # (6, E): bo, g1, be1, b2, g2, be2

        # ---- relative self-attention (merged QKV, batch-flattened matmul) ----
        qkv = jnp.dot(xf, wqkv_ref[li], preferred_element_type=f32) + bqkv_ref[li]  # (NS,3E)
        qb = qkv[:, 0 * E:1 * E].reshape(N, S, E)
        kb = qkv[:, 1 * E:2 * E].reshape(N, S, E)
        vb = qkv[:, 2 * E:3 * E].reshape(N, S, E)

        # content scores, causal-zeroed exactly like masked_fill(mask == 0, 0)
        cont = jnp.einsum('nqe,nke->nqk', qb, kb, preferred_element_type=f32)   # (N,S,S)
        cont = jnp.where(causal, cont, 0.0)

        # positional scores: q[r] . key_pe[c - r + L - 1]  (pre-skewed table, no loop)
        pos = jnp.sum(qb[:, :, None, :] * pe_g[None, :, :, :], axis=-1)         # (N,S,S)

        # reproduces the reference masked_fill(attn_cont == 0, -1e9) quirk
        keep = in_band & (cont != 0.0)
        logits = jnp.where(keep, (cont + pos) * inv_sqrt_dk, NEG_INF)

        m = jnp.max(logits, axis=-1, keepdims=True)
        e = jnp.exp(logits - m)
        attn = e * pl.reciprocal(jnp.sum(e, axis=-1, keepdims=True), approx=True)

        xv = jnp.einsum('nqk,nke->nqe', attn, vb, preferred_element_type=f32)   # (N,S,E)
        xa = jnp.dot(xv.reshape(NS, E), wo_ref[li],
                     preferred_element_type=f32) + vec[0:1]                     # + bo

        x1 = layer_norm(xf + xa, vec[1:2], vec[2:3])                            # norm1

        # ---- feed-forward ----
        h = jnp.maximum(jnp.dot(x1, w1_ref[li], preferred_element_type=f32) + b1_ref[li],
                        0.0)
        ff = jnp.dot(h, w2_ref[li], preferred_element_type=f32) + vec[3:4]      # + b2
        xf = layer_norm(x1 + ff, vec[4:5], vec[5:6])                            # norm2

    # ---- LM head: Linear -> LogSoftmax (vocab padded to lane-dense 128; exact) ----
    Vp = hw_ref.shape[1]
    logits = jnp.dot(xf, hw_ref[...], preferred_element_type=f32) + hb_ref[...]  # (NS,Vp)
    m = jnp.max(logits, axis=-1, keepdims=True)
    lse = jnp.log(jnp.sum(jnp.exp(logits - m), axis=-1, keepdims=True)) + m
    o_ref[...] = (logits - lse).reshape(N, S, Vp)


# --------------------------------------------------------------------------------------
# Wrapper: embedding gathers, weight packing, single pallas_call
# --------------------------------------------------------------------------------------
def prolm_forward(tokens, params, attn_span_list, max_rel_pos):
    f32 = jnp.float32
    N, S = tokens.shape
    E = params["tok_emb"].shape[1]
    V = params["head_w"].shape[1]
    n_layers = len(params["layers"])

    x = jnp.take(params["tok_emb"], tokens, axis=0).astype(f32)      # (N, S, E)

    # Reference bug reproduced: `i` never increments -> all layers use span_list[0].
    attn_span = attn_span_list[0]
    assert attn_span < S, "only the attn_span < seq_len branch is implemented"
    # TODO(synk): attn_span >= seq_len branch of RelativeAttention not implemented.

    rel_idx = jnp.clip(attn_span - 1 - jnp.arange(attn_span), 0, max_rel_pos)
    key_pe = jnp.take(params["rel_emb"], rel_idx, axis=0)            # (L, E)
    # Pre-skewed positional table (layer/batch invariant):
    #   pe_g[r, c] = key_pe[c - r + L - 1]; out-of-band entries are clipped (masked in-kernel)
    r = jnp.arange(S)[:, None]
    c = jnp.arange(S)[None, :]
    shift = jnp.clip(c - r + (attn_span - 1), 0, attn_span - 1)      # (S, S)
    pe_g = jnp.take(key_pe, shift, axis=0)                           # (S, S, E)

    # Stack / pack per-layer weights so ONE pallas_call keeps everything resident in VMEM.
    ls = params["layers"]
    wqkv = jnp.stack([jnp.concatenate([l["wq"], l["wk"], l["wv"]], axis=1) for l in ls])
    bqkv = jnp.stack([jnp.concatenate([l["bq"], l["bk"], l["bv"]], axis=1) for l in ls])
    wo = jnp.stack([l["wo"] for l in ls])
    w1 = jnp.stack([l["w1"] for l in ls])
    b1 = jnp.stack([l["b1"] for l in ls])
    w2 = jnp.stack([l["w2"] for l in ls])
    vec = jnp.stack([jnp.concatenate([l["bo"], l["g1"], l["be1"],
                                      l["b2"], l["g2"], l["be2"]], axis=0) for l in ls])

    # Lane-dense LM head: pad vocab -> 128 (zero weight cols, -1e9 bias keeps log-softmax exact)
    Vp = max(128, ((V + 127) // 128) * 128)
    hw = jnp.zeros((E, Vp), f32).at[:, :V].set(params["head_w"])
    hb = jnp.full((1, Vp), NEG_INF, dtype=f32).at[:, :V].set(params["head_b"])

    kern = functools.partial(_prolm_fused_kernel, n_layers=n_layers, n_batch=N,
                             seq_len=S, attn_span=attn_span, d_model=E)
    vmem = pl.BlockSpec(memory_space=pltpu.MemorySpace.VMEM)
    out = pl.pallas_call(
        kern,
        in_specs=[vmem] * 11,
        out_specs=vmem,
        out_shape=jax.ShapeDtypeStruct((N, S, Vp), f32),
    )(x, pe_g, wqkv, bqkv, wo, w1, b1, w2, vec, hw, hb)

    return out[:, :, :V]


# --------------------------------------------------------------------------------------
# Deterministic parameter init (mirrors the PyTorch module's parameter set)
# --------------------------------------------------------------------------------------
def init_params(key, vocab_size, hidden, n_layers, ffn_hidden, max_rel_pos):
    def nrm(k, shape, scale=0.02):
        return (scale * jax.random.normal(k, shape)).astype(jnp.float32)

    keys = jax.random.split(key, 3 + n_layers)
    params = {
        "tok_emb": nrm(keys[0], (vocab_size, hidden)),
        "rel_emb": nrm(keys[1], (max_rel_pos + 1, hidden)),
        "layers": [],
        "head_w": nrm(jax.random.fold_in(keys[2], 0), (hidden, vocab_size)),
        "head_b": nrm(jax.random.fold_in(keys[2], 1), (1, vocab_size)),
    }
    for li in range(n_layers):
        lk = jax.random.split(keys[3 + li], 12)
        params["layers"].append({
            "wq": nrm(lk[0], (hidden, hidden)), "bq": nrm(lk[1], (1, hidden)),
            "wk": nrm(lk[2], (hidden, hidden)), "bk": nrm(lk[3], (1, hidden)),
            "wv": nrm(lk[4], (hidden, hidden)), "bv": nrm(lk[5], (1, hidden)),
            "wo": nrm(lk[6], (hidden, hidden)), "bo": nrm(lk[7], (1, hidden)),
            "g1": jnp.ones((1, hidden), jnp.float32), "be1": jnp.zeros((1, hidden), jnp.float32),
            "w1": nrm(lk[8], (hidden, ffn_hidden)), "b1": nrm(lk[9], (1, ffn_hidden)),
            "w2": nrm(lk[10], (ffn_hidden, hidden)), "b2": nrm(lk[11], (1, hidden)),
            "g2": jnp.ones((1, hidden), jnp.float32), "be2": jnp.zeros((1, hidden), jnp.float32),
        })
    return params


# --------------------------------------------------------------------------------------
if __name__ == "__main__":
    VOCAB = 23
    HIDDEN = 32          # d_model
    N_LAYERS = 5         # default attn_span_list has 5 entries
    ATTN_HEADS = 1       # reference relative attention requires 1 head
    MAX_REL_POS = 300
    ATTN_SPAN_LIST = [10, 30, 100, 300, 1000]
    BATCH, SEQ = 2, 16

    key = jax.random.PRNGKey(0)
    k_par, k_tok = jax.random.split(key)
    params = init_params(k_par, VOCAB, HIDDEN, N_LAYERS, 2 * HIDDEN, MAX_REL_POS)
    tokens = jax.random.randint(k_tok, (BATCH, SEQ), 0, VOCAB, dtype=jnp.int32)

    fwd = jax.jit(functools.partial(prolm_forward,
                                    attn_span_list=ATTN_SPAN_LIST,
                                    max_rel_pos=MAX_REL_POS))
    log_probs = jax.block_until_ready(fwd(tokens, params))

    assert log_probs.shape == (BATCH, SEQ, VOCAB)
    assert bool(jnp.all(jnp.isfinite(log_probs)))
    # log-softmax sanity: probs sum to ~1
    assert bool(jnp.allclose(jnp.exp(log_probs).sum(-1), 1.0, atol=1e-4))
    print("KERNEL_OK")
</pallas_src>

<mosaic_0001>
module attributes {stable_mosaic.version = 11 : i64} {
  func.func @_prolm_fused_kernel(%arg0: memref<2x16x32xf32, #tpu.memory_space<vmem>>, %arg1: memref<16x16x32xf32, #tpu.memory_space<vmem>>, %arg2: memref<5x32x96xf32, #tpu.memory_space<vmem>>, %arg3: memref<5x1x96xf32, #tpu.memory_space<vmem>>, %arg4: memref<5x32x32xf32, #tpu.memory_space<vmem>>, %arg5: memref<5x32x64xf32, #tpu.memory_space<vmem>>, %arg6: memref<5x1x64xf32, #tpu.memory_space<vmem>>, %arg7: memref<5x64x32xf32, #tpu.memory_space<vmem>>, %arg8: memref<5x6x32xf32, #tpu.memory_space<vmem>>, %arg9: memref<32x128xf32, #tpu.memory_space<vmem>>, %arg10: memref<1x128xf32, #tpu.memory_space<vmem>>, %arg11: memref<2x16x128xf32, #tpu.memory_space<vmem>>) attributes {dimension_semantics = [], scalar_prefetch = 0 : i64, scratch_operands = 0 : i64, tpu.core_type = #tpu.core_type<tc>} {
    %0 = tpu.iota {dimensions = array<i32: 0>} : vector<16x16xi32>
    %1 = tpu.iota {dimensions = array<i32: 1>} : vector<16x16xi32>
    %2 = arith.cmpi sle, %1, %0 : vector<16x16xi32>
    %3 = vector.shape_cast %2 : vector<16x16xi1> to vector<1x16x16xi1>
    %c1_i32 = arith.constant 1 : i32
    %4 = vector.broadcast %c1_i32 : i32 to vector<16x16xi32>
    %5 = arith.addi %0, %4 : vector<16x16xi32>
    %c10_i32 = arith.constant 10 : i32
    %6 = vector.broadcast %c10_i32 : i32 to vector<16x16xi32>
    %7 = arith.subi %5, %6 : vector<16x16xi32>
    %8 = arith.cmpi sge, %1, %7 : vector<16x16xi32>
    %9 = vector.shape_cast %8 : vector<16x16xi1> to vector<1x16x16xi1>
    %10 = arith.andi %3, %9 : vector<1x16x16xi1>
    %c0 = arith.constant 0 : index
    %c0_0 = arith.constant 0 : index
    %c0_1 = arith.constant 0 : index
    %11 = vector.load %arg1[%c0, %c0_0, %c0_1] : memref<16x16x32xf32, #tpu.memory_space<vmem>>, vector<16x16x32xf32>
    %c0_2 = arith.constant 0 : index
    %c0_3 = arith.constant 0 : index
    %c0_4 = arith.constant 0 : index
    %12 = vector.load %arg0[%c0_2, %c0_3, %c0_4] : memref<2x16x32xf32, #tpu.memory_space<vmem>>, vector<2x16x32xf32>
    %13 = vector.shape_cast %12 : vector<2x16x32xf32> to vector<32x32xf32>
    %c0_5 = arith.constant 0 : index
    %c0_6 = arith.constant 0 : index
    %c0_7 = arith.constant 0 : index
    %14 = vector.load %arg8[%c0_5, %c0_6, %c0_7] : memref<5x6x32xf32, #tpu.memory_space<vmem>>, vector<1x6x32xf32>
    %15 = vector.shape_cast %14 : vector<1x6x32xf32> to vector<6x32xf32>
    %c0_8 = arith.constant 0 : index
    %c0_9 = arith.constant 0 : index
    %c0_10 = arith.constant 0 : index
    %16 = vector.load %arg2[%c0_8, %c0_9, %c0_10] : memref<5x32x96xf32, #tpu.memory_space<vmem>>, vector<1x32x96xf32>
    %17 = vector.shape_cast %16 : vector<1x32x96xf32> to vector<32x96xf32>
    %cst = arith.constant dense<0.000000e+00> : vector<32x96xf32>
    %18 = tpu.matmul %13, %17, %cst {dimension_numbers = #tpu.dot_dimension_numbers<[1], [0], [0], [1], [0, 0, 1, 1], [], []>} : vector<32x32xf32>, vector<32x96xf32>, vector<32x96xf32> -> vector<32x96xf32>
    %c0_11 = arith.constant 0 : index
    %c0_12 = arith.constant 0 : index
    %c0_13 = arith.constant 0 : index
    %19 = vector.load %arg3[%c0_11, %c0_12, %c0_13] : memref<5x1x96xf32, #tpu.memory_space<vmem>>, vector<1x1x96xf32>
    %20 = vector.shape_cast %19 : vector<1x1x96xf32> to vector<1x96xf32>
    %21 = vector.broadcast %20 : vector<1x96xf32> to vector<32x96xf32>
    %22 = arith.addf %18, %21 : vector<32x96xf32>
    %23 = vector.extract_strided_slice %22 {offsets = [0, 0], sizes = [32, 32], strides = [1, 1]} : vector<32x96xf32> to vector<32x32xf32>
    %24 = vector.shape_cast %23 : vector<32x32xf32> to vector<2x16x32xf32>
    %25 = vector.extract_strided_slice %22 {offsets = [0, 32], sizes = [32, 32], strides = [1, 1]} : vector<32x96xf32> to vector<32x32xf32>
    %26 = vector.shape_cast %25 : vector<32x32xf32> to vector<2x16x32xf32>
    %27 = vector.extract_strided_slice %22 {offsets = [0, 64], sizes = [32, 32], strides = [1, 1]} : vector<32x96xf32> to vector<32x32xf32>
    %28 = vector.shape_cast %27 : vector<32x32xf32> to vector<2x16x32xf32>
    "tpu.trace_start"() <{level = 10 : i32, message = "nqe,nke->nqk"}> : () -> ()
    %cst_14 = arith.constant dense<0.000000e+00> : vector<2x16x16xf32>
    %29 = tpu.matmul %24, %26, %cst_14 {dimension_numbers = #tpu.dot_dimension_numbers<[2], [2], [1], [1], [0, 0, 0, 1, 1, 1], [0], [0]>} : vector<2x16x32xf32>, vector<2x16x32xf32>, vector<2x16x16xf32> -> vector<2x16x16xf32>
    %cst_15 = arith.constant 0.000000e+00 : f32
    "tpu.trace_stop"() : () -> ()
    %30 = vector.shape_cast %3 : vector<1x16x16xi1> to vector<1x16x16xi1>
    %31 = vector.broadcast %30 : vector<1x16x16xi1> to vector<2x16x16xi1>
    %32 = vector.broadcast %cst_15 : f32 to vector<2x16x16xf32>
    %33 = arith.select %31, %29, %32 : vector<2x16x16xi1>, vector<2x16x16xf32>
    %34 = vector.shape_cast %24 : vector<2x16x32xf32> to vector<2x16x1x32xf32>
    %35 = vector.shape_cast %11 : vector<16x16x32xf32> to vector<1x16x16x32xf32>
    %36 = vector.broadcast %34 : vector<2x16x1x32xf32> to vector<2x16x16x32xf32>
    %37 = vector.broadcast %35 : vector<1x16x16x32xf32> to vector<2x16x16x32xf32>
    %38 = arith.mulf %36, %37 : vector<2x16x16x32xf32>
    %cst_16 = arith.constant dense<0.000000e+00> : vector<2x16x16xf32>
    %39 = vector.multi_reduction <add>, %38, %cst_16 [3] : vector<2x16x16x32xf32> to vector<2x16x16xf32>
    %cst_17 = arith.constant 0.000000e+00 : f32
    %40 = vector.broadcast %cst_17 : f32 to vector<2x16x16xf32>
    %41 = arith.cmpf one, %33, %40 : vector<2x16x16xf32>
    %42 = vector.broadcast %10 : vector<1x16x16xi1> to vector<2x16x16xi1>
    %43 = arith.andi %42, %41 : vector<2x16x16xi1>
    %44 = arith.addf %33, %39 : vector<2x16x16xf32>
    %cst_18 = arith.constant 0.176776692 : f32
    %45 = vector.broadcast %cst_18 : f32 to vector<2x16x16xf32>
    %46 = arith.mulf %44, %45 : vector<2x16x16xf32>
    %cst_19 = arith.constant -1.000000e+09 : f32
    %47 = vector.broadcast %cst_19 : f32 to vector<2x16x16xf32>
    %48 = arith.select %43, %46, %47 : vector<2x16x16xi1>, vector<2x16x16xf32>
    %cst_20 = arith.constant dense<0xFF800000> : vector<2x16xf32>
    %49 = vector.multi_reduction <maximumf>, %48, %cst_20 [2] : vector<2x16x16xf32> to vector<2x16xf32>
    %50 = vector.shape_cast %49 : vector<2x16xf32> to vector<2x16x1xf32>
    %51 = vector.broadcast %50 : vector<2x16x1xf32> to vector<2x16x16xf32>
    %52 = arith.subf %48, %51 : vector<2x16x16xf32>
    %53 = math.exp %52 : vector<2x16x16xf32>
    %cst_21 = arith.constant dense<0.000000e+00> : vector<2x16xf32>
    %54 = vector.multi_reduction <add>, %53, %cst_21 [2] : vector<2x16x16xf32> to vector<2x16xf32>
    %55 = vector.shape_cast %54 : vector<2x16xf32> to vector<2x16x1xf32>
    %56 = tpu.reciprocal %55 {approx = true} : vector<2x16x1xf32> -> vector<2x16x1xf32>
    %57 = vector.broadcast %56 : vector<2x16x1xf32> to vector<2x16x16xf32>
    %58 = arith.mulf %53, %57 : vector<2x16x16xf32>
    "tpu.trace_start"() <{level = 10 : i32, message = "nqk,nke->nqe"}> : () -> ()
    %cst_22 = arith.constant dense<0.000000e+00> : vector<2x16x32xf32>
    %59 = tpu.matmul %58, %28, %cst_22 {dimension_numbers = #tpu.dot_dimension_numbers<[2], [1], [1], [2], [0, 0, 0, 1, 1, 2], [0], [0]>} : vector<2x16x16xf32>, vector<2x16x32xf32>, vector<2x16x32xf32> -> vector<2x16x32xf32>
    "tpu.trace_stop"() : () -> ()
    %60 = vector.shape_cast %59 : vector<2x16x32xf32> to vector<32x32xf32>
    %c0_23 = arith.constant 0 : index
    %c0_24 = arith.constant 0 : index
    %c0_25 = arith.constant 0 : index
    %61 = vector.load %arg4[%c0_23, %c0_24, %c0_25] : memref<5x32x32xf32, #tpu.memory_space<vmem>>, vector<1x32x32xf32>
    %62 = vector.shape_cast %61 : vector<1x32x32xf32> to vector<32x32xf32>
    %cst_26 = arith.constant dense<0.000000e+00> : vector<32x32xf32>
    %63 = tpu.matmul %60, %62, %cst_26 {dimension_numbers = #tpu.dot_dimension_numbers<[1], [0], [0], [1], [0, 0, 1, 1], [], []>} : vector<32x32xf32>, vector<32x32xf32>, vector<32x32xf32> -> vector<32x32xf32>
    %64 = vector.extract_strided_slice %15 {offsets = [0, 0], sizes = [1, 32], strides = [1, 1]} : vector<6x32xf32> to vector<1x32xf32>
    %65 = vector.broadcast %64 : vector<1x32xf32> to vector<32x32xf32>
    %66 = arith.addf %63, %65 : vector<32x32xf32>
    %67 = arith.addf %13, %66 : vector<32x32xf32>
    %68 = vector.extract_strided_slice %15 {offsets = [1, 0], sizes = [1, 32], strides = [1, 1]} : vector<6x32xf32> to vector<1x32xf32>
    %69 = vector.extract_strided_slice %15 {offsets = [2, 0], sizes = [1, 32], strides = [1, 1]} : vector<6x32xf32> to vector<1x32xf32>
    %cst_27 = arith.constant dense<0.000000e+00> : vector<32xf32>
    %70 = vector.multi_reduction <add>, %67, %cst_27 [1] : vector<32x32xf32> to vector<32xf32>
    %71 = vector.shape_cast %70 : vector<32xf32> to vector<32x1xf32>
    %cst_28 = arith.constant 3.200000e+01 : f32
    %72 = vector.broadcast %cst_28 : f32 to vector<32x1xf32>
    %73 = arith.divf %71, %72 : vector<32x1xf32>
    %74 = vector.broadcast %73 : vector<32x1xf32> to vector<32x32xf32>
    %75 = arith.subf %67, %74 : vector<32x32xf32>
    %76 = arith.mulf %75, %75 : vector<32x32xf32>
    %cst_29 = arith.constant dense<0.000000e+00> : vector<32xf32>
    %77 = vector.multi_reduction <add>, %76, %cst_29 [1] : vector<32x32xf32> to vector<32xf32>
    %78 = vector.shape_cast %77 : vector<32xf32> to vector<32x1xf32>
    %cst_30 = arith.constant 3.200000e+01 : f32
    %79 = vector.broadcast %cst_30 : f32 to vector<32x1xf32>
    %80 = arith.divf %78, %79 : vector<32x1xf32>
    %cst_31 = arith.constant 9.99999974E-6 : f32
    %81 = vector.broadcast %cst_31 : f32 to vector<32x1xf32>
    %82 = arith.addf %80, %81 : vector<32x1xf32>
    %83 = math.rsqrt %82 : vector<32x1xf32>
    %84 = vector.broadcast %83 : vector<32x1xf32> to vector<32x32xf32>
    %85 = arith.mulf %75, %84 : vector<32x32xf32>
    %86 = vector.broadcast %68 : vector<1x32xf32> to vector<32x32xf32>
    %87 = arith.mulf %85, %86 : vector<32x32xf32>
    %88 = vector.broadcast %69 : vector<1x32xf32> to vector<32x32xf32>
    %89 = arith.addf %87, %88 : vector<32x32xf32>
    %c0_32 = arith.constant 0 : index
    %c0_33 = arith.constant 0 : index
    %c0_34 = arith.constant 0 : index
    %90 = vector.load %arg5[%c0_32, %c0_33, %c0_34] : memref<5x32x64xf32, #tpu.memory_space<vmem>>, vector<1x32x64xf32>
    %91 = vector.shape_cast %90 : vector<1x32x64xf32> to vector<32x64xf32>
    %cst_35 = arith.constant dense<0.000000e+00> : vector<32x64xf32>
    %92 = tpu.matmul %89, %91, %cst_35 {dimension_numbers = #tpu.dot_dimension_numbers<[1], [0], [0], [1], [0, 0, 1, 1], [], []>} : vector<32x32xf32>, vector<32x64xf32>, vector<32x64xf32> -> vector<32x64xf32>
    %c0_36 = arith.constant 0 : index
    %c0_37 = arith.constant 0 : index
    %c0_38 = arith.constant 0 : index
    %93 = vector.load %arg6[%c0_36, %c0_37, %c0_38] : memref<5x1x64xf32, #tpu.memory_space<vmem>>, vector<1x1x64xf32>
    %94 = vector.shape_cast %93 : vector<1x1x64xf32> to vector<1x64xf32>
    %95 = vector.broadcast %94 : vector<1x64xf32> to vector<32x64xf32>
    %96 = arith.addf %92, %95 : vector<32x64xf32>
    %cst_39 = arith.constant 0.000000e+00 : f32
    %97 = vector.broadcast %cst_39 : f32 to vector<32x64xf32>
    %98 = arith.maximumf %96, %97 : vector<32x64xf32>
    %c0_40 = arith.constant 0 : index
    %c0_41 = arith.constant 0 : index
    %c0_42 = arith.constant 0 : index
    %99 = vector.load %arg7[%c0_40, %c0_41, %c0_42] : memref<5x64x32xf32, #tpu.memory_space<vmem>>, vector<1x64x32xf32>
    %100 = vector.shape_cast %99 : vector<1x64x32xf32> to vector<64x32xf32>
    %cst_43 = arith.constant dense<0.000000e+00> : vector<32x32xf32>
    %101 = tpu.matmul %98, %100, %cst_43 {dimension_numbers = #tpu.dot_dimension_numbers<[1], [0], [0], [1], [0, 0, 1, 1], [], []>} : vector<32x64xf32>, vector<64x32xf32>, vector<32x32xf32> -> vector<32x32xf32>
    %102 = vector.extract_strided_slice %15 {offsets = [3, 0], sizes = [1, 32], strides = [1, 1]} : vector<6x32xf32> to vector<1x32xf32>
    %103 = vector.broadcast %102 : vector<1x32xf32> to vector<32x32xf32>
    %104 = arith.addf %101, %103 : vector<32x32xf32>
    %105 = arith.addf %89, %104 : vector<32x32xf32>
    %106 = vector.extract_strided_slice %15 {offsets = [4, 0], sizes = [1, 32], strides = [1, 1]} : vector<6x32xf32> to vector<1x32xf32>
    %107 = vector.extract_strided_slice %15 {offsets = [5, 0], sizes = [1, 32], strides = [1, 1]} : vector<6x32xf32> to vector<1x32xf32>
    %cst_44 = arith.constant dense<0.000000e+00> : vector<32xf32>
    %108 = vector.multi_reduction <add>, %105, %cst_44 [1] : vector<32x32xf32> to vector<32xf32>
    %109 = vector.shape_cast %108 : vector<32xf32> to vector<32x1xf32>
    %cst_45 = arith.constant 3.200000e+01 : f32
    %110 = vector.broadcast %cst_45 : f32 to vector<32x1xf32>
    %111 = arith.divf %109, %110 : vector<32x1xf32>
    %112 = vector.broadcast %111 : vector<32x1xf32> to vector<32x32xf32>
    %113 = arith.subf %105, %112 : vector<32x32xf32>
    %114 = arith.mulf %113, %113 : vector<32x32xf32>
    %cst_46 = arith.constant dense<0.000000e+00> : vector<32xf32>
    %115 = vector.multi_reduction <add>, %114, %cst_46 [1] : vector<32x32xf32> to vector<32xf32>
    %116 = vector.shape_cast %115 : vector<32xf32> to vector<32x1xf32>
    %cst_47 = arith.constant 3.200000e+01 : f32
    %117 = vector.broadcast %cst_47 : f32 to vector<32x1xf32>
    %118 = arith.divf %116, %117 : vector<32x1xf32>
    %cst_48 = arith.constant 9.99999974E-6 : f32
    %119 = vector.broadcast %cst_48 : f32 to vector<32x1xf32>
    %120 = arith.addf %118, %119 : vector<32x1xf32>
    %121 = math.rsqrt %120 : vector<32x1xf32>
    %122 = vector.broadcast %121 : vector<32x1xf32> to vector<32x32xf32>
    %123 = arith.mulf %113, %122 : vector<32x32xf32>
    %124 = vector.broadcast %106 : vector<1x32xf32> to vector<32x32xf32>
    %125 = arith.mulf %123, %124 : vector<32x32xf32>
    %126 = vector.broadcast %107 : vector<1x32xf32> to vector<32x32xf32>
    %127 = arith.addf %125, %126 : vector<32x32xf32>
    %c1 = arith.constant 1 : index
    %c0_49 = arith.constant 0 : index
    %c0_50 = arith.constant 0 : index
    %128 = vector.load %arg8[%c1, %c0_49, %c0_50] : memref<5x6x32xf32, #tpu.memory_space<vmem>>, vector<1x6x32xf32>
    %129 = vector.shape_cast %128 : vector<1x6x32xf32> to vector<6x32xf32>
    %c1_51 = arith.constant 1 : index
    %c0_52 = arith.constant 0 : index
    %c0_53 = arith.constant 0 : index
    %130 = vector.load %arg2[%c1_51, %c0_52, %c0_53] : memref<5x32x96xf32, #tpu.memory_space<vmem>>, vector<1x32x96xf32>
    %131 = vector.shape_cast %130 : vector<1x32x96xf32> to vector<32x96xf32>
    %cst_54 = arith.constant dense<0.000000e+00> : vector<32x96xf32>
    %132 = tpu.matmul %127, %131, %cst_54 {dimension_numbers = #tpu.dot_dimension_numbers<[1], [0], [0], [1], [0, 0, 1, 1], [], []>} : vector<32x32xf32>, vector<32x96xf32>, vector<32x96xf32> -> vector<32x96xf32>
    %c1_55 = arith.constant 1 : index
    %c0_56 = arith.constant 0 : index
    %c0_57 = arith.constant 0 : index
    %133 = vector.load %arg3[%c1_55, %c0_56, %c0_57] : memref<5x1x96xf32, #tpu.memory_space<vmem>>, vector<1x1x96xf32>
    %134 = vector.shape_cast %133 : vector<1x1x96xf32> to vector<1x96xf32>
    %135 = vector.broadcast %134 : vector<1x96xf32> to vector<32x96xf32>
    %136 = arith.addf %132, %135 : vector<32x96xf32>
    %137 = vector.extract_strided_slice %136 {offsets = [0, 0], sizes = [32, 32], strides = [1, 1]} : vector<32x96xf32> to vector<32x32xf32>
    %138 = vector.shape_cast %137 : vector<32x32xf32> to vector<2x16x32xf32>
    %139 = vector.extract_strided_slice %136 {offsets = [0, 32], sizes = [32, 32], strides = [1, 1]} : vector<32x96xf32> to vector<32x32xf32>
    %140 = vector.shape_cast %139 : vector<32x32xf32> to vector<2x16x32xf32>
    %141 = vector.extract_strided_slice %136 {offsets = [0, 64], sizes = [32, 32], strides = [1, 1]} : vector<32x96xf32> to vector<32x32xf32>
    %142 = vector.shape_cast %141 : vector<32x32xf32> to vector<2x16x32xf32>
    "tpu.trace_start"() <{level = 10 : i32, message = "nqe,nke->nqk"}> : () -> ()
    %cst_58 = arith.constant dense<0.000000e+00> : vector<2x16x16xf32>
    %143 = tpu.matmul %138, %140, %cst_58 {dimension_numbers = #tpu.dot_dimension_numbers<[2], [2], [1], [1], [0, 0, 0, 1, 1, 1], [0], [0]>} : vector<2x16x32xf32>, vector<2x16x32xf32>, vector<2x16x16xf32> -> vector<2x16x16xf32>
    %cst_59 = arith.constant 0.000000e+00 : f32
    "tpu.trace_stop"() : () -> ()
    %144 = vector.shape_cast %3 : vector<1x16x16xi1> to vector<1x16x16xi1>
    %145 = vector.broadcast %144 : vector<1x16x16xi1> to vector<2x16x16xi1>
    %146 = vector.broadcast %cst_59 : f32 to vector<2x16x16xf32>
    %147 = arith.select %145, %143, %146 : vector<2x16x16xi1>, vector<2x16x16xf32>
    %148 = vector.shape_cast %138 : vector<2x16x32xf32> to vector<2x16x1x32xf32>
    %149 = vector.shape_cast %11 : vector<16x16x32xf32> to vector<1x16x16x32xf32>
    %150 = vector.broadcast %148 : vector<2x16x1x32xf32> to vector<2x16x16x32xf32>
    %151 = vector.broadcast %149 : vector<1x16x16x32xf32> to vector<2x16x16x32xf32>
    %152 = arith.mulf %150, %151 : vector<2x16x16x32xf32>
    %cst_60 = arith.constant dense<0.000000e+00> : vector<2x16x16xf32>
    %153 = vector.multi_reduction <add>, %152, %cst_60 [3] : vector<2x16x16x32xf32> to vector<2x16x16xf32>
    %cst_61 = arith.constant 0.000000e+00 : f32
    %154 = vector.broadcast %cst_61 : f32 to vector<2x16x16xf32>
    %155 = arith.cmpf one, %147, %154 : vector<2x16x16xf32>
    %156 = vector.broadcast %10 : vector<1x16x16xi1> to vector<2x16x16xi1>
    %157 = arith.andi %156, %155 : vector<2x16x16xi1>
    %158 = arith.addf %147, %153 : vector<2x16x16xf32>
    %cst_62 = arith.constant 0.176776692 : f32
    %159 = vector.broadcast %cst_62 : f32 to vector<2x16x16xf32>
    %160 = arith.mulf %158, %159 : vector<2x16x16xf32>
    %cst_63 = arith.constant -1.000000e+09 : f32
    %161 = vector.broadcast %cst_63 : f32 to vector<2x16x16xf32>
    %162 = arith.select %157, %160, %161 : vector<2x16x16xi1>, vector<2x16x16xf32>
    %cst_64 = arith.constant dense<0xFF800000> : vector<2x16xf32>
    %163 = vector.multi_reduction <maximumf>, %162, %cst_64 [2] : vector<2x16x16xf32> to vector<2x16xf32>
    %164 = vector.shape_cast %163 : vector<2x16xf32> to vector<2x16x1xf32>
    %165 = vector.broadcast %164 : vector<2x16x1xf32> to vector<2x16x16xf32>
    %166 = arith.subf %162, %165 : vector<2x16x16xf32>
    %167 = math.exp %166 : vector<2x16x16xf32>
    %cst_65 = arith.constant dense<0.000000e+00> : vector<2x16xf32>
    %168 = vector.multi_reduction <add>, %167, %cst_65 [2] : vector<2x16x16xf32> to vector<2x16xf32>
    %169 = vector.shape_cast %168 : vector<2x16xf32> to vector<2x16x1xf32>
    %170 = tpu.reciprocal %169 {approx = true} : vector<2x16x1xf32> -> vector<2x16x1xf32>
    %171 = vector.broadcast %170 : vector<2x16x1xf32> to vector<2x16x16xf32>
    %172 = arith.mulf %167, %171 : vector<2x16x16xf32>
    "tpu.trace_start"() <{level = 10 : i32, message = "nqk,nke->nqe"}> : () -> ()
    %cst_66 = arith.constant dense<0.000000e+00> : vector<2x16x32xf32>
    %173 = tpu.matmul %172, %142, %cst_66 {dimension_numbers = #tpu.dot_dimension_numbers<[2], [1], [1], [2], [0, 0, 0, 1, 1, 2], [0], [0]>} : vector<2x16x16xf32>, vector<2x16x32xf32>, vector<2x16x32xf32> -> vector<2x16x32xf32>
    "tpu.trace_stop"() : () -> ()
    %174 = vector.shape_cast %173 : vector<2x16x32xf32> to vector<32x32xf32>
    %c1_67 = arith.constant 1 : index
    %c0_68 = arith.constant 0 : index
    %c0_69 = arith.constant 0 : index
    %175 = vector.load %arg4[%c1_67, %c0_68, %c0_69] : memref<5x32x32xf32, #tpu.memory_space<vmem>>, vector<1x32x32xf32>
    %176 = vector.shape_cast %175 : vector<1x32x32xf32> to vector<32x32xf32>
    %cst_70 = arith.constant dense<0.000000e+00> : vector<32x32xf32>
    %177 = tpu.matmul %174, %176, %cst_70 {dimension_numbers = #tpu.dot_dimension_numbers<[1], [0], [0], [1], [0, 0, 1, 1], [], []>} : vector<32x32xf32>, vector<32x32xf32>, vector<32x32xf32> -> vector<32x32xf32>
    %178 = vector.extract_strided_slice %129 {offsets = [0, 0], sizes = [1, 32], strides = [1, 1]} : vector<6x32xf32> to vector<1x32xf32>
    %179 = vector.broadcast %178 : vector<1x32xf32> to vector<32x32xf32>
    %180 = arith.addf %177, %179 : vector<32x32xf32>
    %181 = arith.addf %127, %180 : vector<32x32xf32>
    %182 = vector.extract_strided_slice %129 {offsets = [1, 0], sizes = [1, 32], strides = [1, 1]} : vector<6x32xf32> to vector<1x32xf32>
    %183 = vector.extract_strided_slice %129 {offsets = [2, 0], sizes = [1, 32], strides = [1, 1]} : vector<6x32xf32> to vector<1x32xf32>
    %cst_71 = arith.constant dense<0.000000e+00> : vector<32xf32>
    %184 = vector.multi_reduction <add>, %181, %cst_71 [1] : vector<32x32xf32> to vector<32xf32>
    %185 = vector.shape_cast %184 : vector<32xf32> to vector<32x1xf32>
    %cst_72 = arith.constant 3.200000e+01 : f32
    %186 = vector.broadcast %cst_72 : f32 to vector<32x1xf32>
    %187 = arith.divf %185, %186 : vector<32x1xf32>
    %188 = vector.broadcast %187 : vector<32x1xf32> to vector<32x32xf32>
    %189 = arith.subf %181, %188 : vector<32x32xf32>
    %190 = arith.mulf %189, %189 : vector<32x32xf32>
    %cst_73 = arith.constant dense<0.000000e+00> : vector<32xf32>
    %191 = vector.multi_reduction <add>, %190, %cst_73 [1] : vector<32x32xf32> to vector<32xf32>
    %192 = vector.shape_cast %191 : vector<32xf32> to vector<32x1xf32>
    %cst_74 = arith.constant 3.200000e+01 : f32
    %193 = vector.broadcast %cst_74 : f32 to vector<32x1xf32>
    %194 = arith.divf %192, %193 : vector<32x1xf32>
    %cst_75 = arith.constant 9.99999974E-6 : f32
    %195 = vector.broadcast %cst_75 : f32 to vector<32x1xf32>
    %196 = arith.addf %194, %195 : vector<32x1xf32>
    %197 = math.rsqrt %196 : vector<32x1xf32>
    %198 = vector.broadcast %197 : vector<32x1xf32> to vector<32x32xf32>
    %199 = arith.mulf %189, %198 : vector<32x32xf32>
    %200 = vector.broadcast %182 : vector<1x32xf32> to vector<32x32xf32>
    %201 = arith.mulf %199, %200 : vector<32x32xf32>
    %202 = vector.broadcast %183 : vector<1x32xf32> to vector<32x32xf32>
    %203 = arith.addf %201, %202 : vector<32x32xf32>
    %c1_76 = arith.constant 1 : index
    %c0_77 = arith.constant 0 : index
    %c0_78 = arith.constant 0 : index
    %204 = vector.load %arg5[%c1_76, %c0_77, %c0_78] : memref<5x32x64xf32, #tpu.memory_space<vmem>>, vector<1x32x64xf32>
    %205 = vector.shape_cast %204 : vector<1x32x64xf32> to vector<32x64xf32>
    %cst_79 = arith.constant dense<0.000000e+00> : vector<32x64xf32>
    %206 = tpu.matmul %203, %205, %cst_79 {dimension_numbers = #tpu.dot_dimension_numbers<[1], [0], [0], [1], [0, 0, 1, 1], [], []>} : vector<32x32xf32>, vector<32x64xf32>, vector<32x64xf32> -> vector<32x64xf32>
    %c1_80 = arith.constant 1 : index
    %c0_81 = arith.constant 0 : index
    %c0_82 = arith.constant 0 : index
    %207 = vector.load %arg6[%c1_80, %c0_81, %c0_82] : memref<5x1x64xf32, #tpu.memory_space<vmem>>, vector<1x1x64xf32>
    %208 = vector.shape_cast %207 : vector<1x1x64xf32> to vector<1x64xf32>
    %209 = vector.broadcast %208 : vector<1x64xf32> to vector<32x64xf32>
    %210 = arith.addf %206, %209 : vector<32x64xf32>
    %cst_83 = arith.constant 0.000000e+00 : f32
    %211 = vector.broadcast %cst_83 : f32 to vector<32x64xf32>
    %212 = arith.maximumf %210, %211 : vector<32x64xf32>
    %c1_84 = arith.constant 1 : index
    %c0_85 = arith.constant 0 : index
    %c0_86 = arith.constant 0 : index
    %213 = vector.load %arg7[%c1_84, %c0_85, %c0_86] : memref<5x64x32xf32, #tpu.memory_space<vmem>>, vector<1x64x32xf32>
    %214 = vector.shape_cast %213 : vector<1x64x32xf32> to vector<64x32xf32>
    %cst_87 = arith.constant dense<0.000000e+00> : vector<32x32xf32>
    %215 = tpu.matmul %212, %214, %cst_87 {dimension_numbers = #tpu.dot_dimension_numbers<[1], [0], [0], [1], [0, 0, 1, 1], [], []>} : vector<32x64xf32>, vector<64x32xf32>, vector<32x32xf32> -> vector<32x32xf32>
    %216 = vector.extract_strided_slice %129 {offsets = [3, 0], sizes = [1, 32], strides = [1, 1]} : vector<6x32xf32> to vector<1x32xf32>
    %217 = vector.broadcast %216 : vector<1x32xf32> to vector<32x32xf32>
    %218 = arith.addf %215, %217 : vector<32x32xf32>
    %219 = arith.addf %203, %218 : vector<32x32xf32>
    %220 = vector.extract_strided_slice %129 {offsets = [4, 0], sizes = [1, 32], strides = [1, 1]} : vector<6x32xf32> to vector<1x32xf32>
    %221 = vector.extract_strided_slice %129 {offsets = [5, 0], sizes = [1, 32], strides = [1, 1]} : vector<6x32xf32> to vector<1x32xf32>
    %cst_88 = arith.constant dense<0.000000e+00> : vector<32xf32>
    %222 = vector.multi_reduction <add>, %219, %cst_88 [1] : vector<32x32xf32> to vector<32xf32>
    %223 = vector.shape_cast %222 : vector<32xf32> to vector<32x1xf32>
    %cst_89 = arith.constant 3.200000e+01 : f32
    %224 = vector.broadcast %cst_89 : f32 to vector<32x1xf32>
    %225 = arith.divf %223, %224 : vector<32x1xf32>
    %226 = vector.broadcast %225 : vector<32x1xf32> to vector<32x32xf32>
    %227 = arith.subf %219, %226 : vector<32x32xf32>
    %228 = arith.mulf %227, %227 : vector<32x32xf32>
    %cst_90 = arith.constant dense<0.000000e+00> : vector<32xf32>
    %229 = vector.multi_reduction <add>, %228, %cst_90 [1] : vector<32x32xf32> to vector<32xf32>
    %230 = vector.shape_cast %229 : vector<32xf32> to vector<32x1xf32>
    %cst_91 = arith.constant 3.200000e+01 : f32
    %231 = vector.broadcast %cst_91 : f32 to vector<32x1xf32>
    %232 = arith.divf %230, %231 : vector<32x1xf32>
    %cst_92 = arith.constant 9.99999974E-6 : f32
    %233 = vector.broadcast %cst_92 : f32 to vector<32x1xf32>
    %234 = arith.addf %232, %233 : vector<32x1xf32>
    %235 = math.rsqrt %234 : vector<32x1xf32>
    %236 = vector.broadcast %235 : vector<32x1xf32> to vector<32x32xf32>
    %237 = arith.mulf %227, %236 : vector<32x32xf32>
    %238 = vector.broadcast %220 : vector<1x32xf32> to vector<32x32xf32>
    %239 = arith.mulf %237, %238 : vector<32x32xf32>
    %240 = vector.broadcast %221 : vector<1x32xf32> to vector<32x32xf32>
    %241 = arith.addf %239, %240 : vector<32x32xf32>
    %c2 = arith.constant 2 : index
    %c0_93 = arith.constant 0 : index
    %c0_94 = arith.constant 0 : index
    %242 = vector.load %arg8[%c2, %c0_93, %c0_94] : memref<5x6x32xf32, #tpu.memory_space<vmem>>, vector<1x6x32xf32>
    %243 = vector.shape_cast %242 : vector<1x6x32xf32> to vector<6x32xf32>
    %c2_95 = arith.constant 2 : index
    %c0_96 = arith.constant 0 : index
    %c0_97 = arith.constant 0 : index
    %244 = vector.load %arg2[%c2_95, %c0_96, %c0_97] : memref<5x32x96xf32, #tpu.memory_space<vmem>>, vector<1x32x96xf32>
    %245 = vector.shape_cast %244 : vector<1x32x96xf32> to vector<32x96xf32>
    %cst_98 = arith.constant dense<0.000000e+00> : vector<32x96xf32>
    %246 = tpu.matmul %241, %245, %cst_98 {dimension_numbers = #tpu.dot_dimension_numbers<[1], [0], [0], [1], [0, 0, 1, 1], [], []>} : vector<32x32xf32>, vector<32x96xf32>, vector<32x96xf32> -> vector<32x96xf32>
    %c2_99 = arith.constant 2 : index
    %c0_100 = arith.constant 0 : index
    %c0_101 = arith.constant 0 : index
    %247 = vector.load %arg3[%c2_99, %c0_100, %c0_101] : memref<5x1x96xf32, #tpu.memory_space<vmem>>, vector<1x1x96xf32>
    %248 = vector.shape_cast %247 : vector<1x1x96xf32> to vector<1x96xf32>
    %249 = vector.broadcast %248 : vector<1x96xf32> to vector<32x96xf32>
    %250 = arith.addf %246, %249 : vector<32x96xf32>
    %251 = vector.extract_strided_slice %250 {offsets = [0, 0], sizes = [32, 32], strides = [1, 1]} : vector<32x96xf32> to vector<32x32xf32>
    %252 = vector.shape_cast %251 : vector<32x32xf32> to vector<2x16x32xf32>
    %253 = vector.extract_strided_slice %250 {offsets = [0, 32], sizes = [32, 32], strides = [1, 1]} : vector<32x96xf32> to vector<32x32xf32>
    %254 = vector.shape_cast %253 : vector<32x32xf32> to vector<2x16x32xf32>
    %255 = vector.extract_strided_slice %250 {offsets = [0, 64], sizes = [32, 32], strides = [1, 1]} : vector<32x96xf32> to vector<32x32xf32>
    %256 = vector.shape_cast %255 : vector<32x32xf32> to vector<2x16x32xf32>
    "tpu.trace_start"() <{level = 10 : i32, message = "nqe,nke->nqk"}> : () -> ()
    %cst_102 = arith.constant dense<0.000000e+00> : vector<2x16x16xf32>
    %257 = tpu.matmul %252, %254, %cst_102 {dimension_numbers = #tpu.dot_dimension_numbers<[2], [2], [1], [1], [0, 0, 0, 1, 1, 1], [0], [0]>} : vector<2x16x32xf32>, vector<2x16x32xf32>, vector<2x16x16xf32> -> vector<2x16x16xf32>
    %cst_103 = arith.constant 0.000000e+00 : f32
    "tpu.trace_stop"() : () -> ()
    %258 = vector.shape_cast %3 : vector<1x16x16xi1> to vector<1x16x16xi1>
    %259 = vector.broadcast %258 : vector<1x16x16xi1> to vector<2x16x16xi1>
    %260 = vector.broadcast %cst_103 : f32 to vector<2x16x16xf32>
    %261 = arith.select %259, %257, %260 : vector<2x16x16xi1>, vector<2x16x16xf32>
    %262 = vector.shape_cast %252 : vector<2x16x32xf32> to vector<2x16x1x32xf32>
    %263 = vector.shape_cast %11 : vector<16x16x32xf32> to vector<1x16x16x32xf32>
    %264 = vector.broadcast %262 : vector<2x16x1x32xf32> to vector<2x16x16x32xf32>
    %265 = vector.broadcast %263 : vector<1x16x16x32xf32> to vector<2x16x16x32xf32>
    %266 = arith.mulf %264, %265 : vector<2x16x16x32xf32>
    %cst_104 = arith.constant dense<0.000000e+00> : vector<2x16x16xf32>
    %267 = vector.multi_reduction <add>, %266, %cst_104 [3] : vector<2x16x16x32xf32> to vector<2x16x16xf32>
    %cst_105 = arith.constant 0.000000e+00 : f32
    %268 = vector.broadcast %cst_105 : f32 to vector<2x16x16xf32>
    %269 = arith.cmpf one, %261, %268 : vector<2x16x16xf32>
    %270 = vector.broadcast %10 : vector<1x16x16xi1> to vector<2x16x16xi1>
    %271 = arith.andi %270, %269 : vector<2x16x16xi1>
    %272 = arith.addf %261, %267 : vector<2x16x16xf32>
    %cst_106 = arith.constant 0.176776692 : f32
    %273 = vector.broadcast %cst_106 : f32 to vector<2x16x16xf32>
    %274 = arith.mulf %272, %273 : vector<2x16x16xf32>
    %cst_107 = arith.constant -1.000000e+09 : f32
    %275 = vector.broadcast %cst_107 : f32 to vector<2x16x16xf32>
    %276 = arith.select %271, %274, %275 : vector<2x16x16xi1>, vector<2x16x16xf32>
    %cst_108 = arith.constant dense<0xFF800000> : vector<2x16xf32>
    %277 = vector.multi_reduction <maximumf>, %276, %cst_108 [2] : vector<2x16x16xf32> to vector<2x16xf32>
    %278 = vector.shape_cast %277 : vector<2x16xf32> to vector<2x16x1xf32>
    %279 = vector.broadcast %278 : vector<2x16x1xf32> to vector<2x16x16xf32>
    %280 = arith.subf %276, %279 : vector<2x16x16xf32>
    %281 = math.exp %280 : vector<2x16x16xf32>
    %cst_109 = arith.constant dense<0.000000e+00> : vector<2x16xf32>
    %282 = vector.multi_reduction <add>, %281, %cst_109 [2] : vector<2x16x16xf32> to vector<2x16xf32>
    %283 = vector.shape_cast %282 : vector<2x16xf32> to vector<2x16x1xf32>
    %284 = tpu.reciprocal %283 {approx = true} : vector<2x16x1xf32> -> vector<2x16x1xf32>
    %285 = vector.broadcast %284 : vector<2x16x1xf32> to vector<2x16x16xf32>
    %286 = arith.mulf %281, %285 : vector<2x16x16xf32>
    "tpu.trace_start"() <{level = 10 : i32, message = "nqk,nke->nqe"}> : () -> ()
    %cst_110 = arith.constant dense<0.000000e+00> : vector<2x16x32xf32>
    %287 = tpu.matmul %286, %256, %cst_110 {dimension_numbers = #tpu.dot_dimension_numbers<[2], [1], [1], [2], [0, 0, 0, 1, 1, 2], [0], [0]>} : vector<2x16x16xf32>, vector<2x16x32xf32>, vector<2x16x32xf32> -> vector<2x16x32xf32>
    "tpu.trace_stop"() : () -> ()
    %288 = vector.shape_cast %287 : vector<2x16x32xf32> to vector<32x32xf32>
    %c2_111 = arith.constant 2 : index
    %c0_112 = arith.constant 0 : index
    %c0_113 = arith.constant 0 : index
    %289 = vector.load %arg4[%c2_111, %c0_112, %c0_113] : memref<5x32x32xf32, #tpu.memory_space<vmem>>, vector<1x32x32xf32>
    %290 = vector.shape_cast %289 : vector<1x32x32xf32> to vector<32x32xf32>
    %cst_114 = arith.constant dense<0.000000e+00> : vector<32x32xf32>
    %291 = tpu.matmul %288, %290, %cst_114 {dimension_numbers = #tpu.dot_dimension_numbers<[1], [0], [0], [1], [0, 0, 1, 1], [], []>} : vector<32x32xf32>, vector<32x32xf32>, vector<32x32xf32> -> vector<32x32xf32>
    %292 = vector.extract_strided_slice %243 {offsets = [0, 0], sizes = [1, 32], strides = [1, 1]} : vector<6x32xf32> to vector<1x32xf32>
    %293 = vector.broadcast %292 : vector<1x32xf32> to vector<32x32xf32>
    %294 = arith.addf %291, %293 : vector<32x32xf32>
    %295 = arith.addf %241, %294 : vector<32x32xf32>
    %296 = vector.extract_strided_slice %243 {offsets = [1, 0], sizes = [1, 32], strides = [1, 1]} : vector<6x32xf32> to vector<1x32xf32>
    %297 = vector.extract_strided_slice %243 {offsets = [2, 0], sizes = [1, 32], strides = [1, 1]} : vector<6x32xf32> to vector<1x32xf32>
    %cst_115 = arith.constant dense<0.000000e+00> : vector<32xf32>
    %298 = vector.multi_reduction <add>, %295, %cst_115 [1] : vector<32x32xf32> to vector<32xf32>
    %299 = vector.shape_cast %298 : vector<32xf32> to vector<32x1xf32>
    %cst_116 = arith.constant 3.200000e+01 : f32
    %300 = vector.broadcast %cst_116 : f32 to vector<32x1xf32>
    %301 = arith.divf %299, %300 : vector<32x1xf32>
    %302 = vector.broadcast %301 : vector<32x1xf32> to vector<32x32xf32>
    %303 = arith.subf %295, %302 : vector<32x32xf32>
    %304 = arith.mulf %303, %303 : vector<32x32xf32>
    %cst_117 = arith.constant dense<0.000000e+00> : vector<32xf32>
    %305 = vector.multi_reduction <add>, %304, %cst_117 [1] : vector<32x32xf32> to vector<32xf32>
    %306 = vector.shape_cast %305 : vector<32xf32> to vector<32x1xf32>
    %cst_118 = arith.constant 3.200000e+01 : f32
    %307 = vector.broadcast %cst_118 : f32 to vector<32x1xf32>
    %308 = arith.divf %306, %307 : vector<32x1xf32>
    %cst_119 = arith.constant 9.99999974E-6 : f32
    %309 = vector.broadcast %cst_119 : f32 to vector<32x1xf32>
    %310 = arith.addf %308, %309 : vector<32x1xf32>
    %311 = math.rsqrt %310 : vector<32x1xf32>
    %312 = vector.broadcast %311 : vector<32x1xf32> to vector<32x32xf32>
    %313 = arith.mulf %303, %312 : vector<32x32xf32>
    %314 = vector.broadcast %296 : vector<1x32xf32> to vector<32x32xf32>
    %315 = arith.mulf %313, %314 : vector<32x32xf32>
    %316 = vector.broadcast %297 : vector<1x32xf32> to vector<32x32xf32>
    %317 = arith.addf %315, %316 : vector<32x32xf32>
    %c2_120 = arith.constant 2 : index
    %c0_121 = arith.constant 0 : index
    %c0_122 = arith.constant 0 : index
    %318 = vector.load %arg5[%c2_120, %c0_121, %c0_122] : memref<5x32x64xf32, #tpu.memory_space<vmem>>, vector<1x32x64xf32>
    %319 = vector.shape_cast %318 : vector<1x32x64xf32> to vector<32x64xf32>
    %cst_123 = arith.constant dense<0.000000e+00> : vector<32x64xf32>
    %320 = tpu.matmul %317, %319, %cst_123 {dimension_numbers = #tpu.dot_dimension_numbers<[1], [0], [0], [1], [0, 0, 1, 1], [], []>} : vector<32x32xf32>, vector<32x64xf32>, vector<32x64xf32> -> vector<32x64xf32>
    %c2_124 = arith.constant 2 : index
    %c0_125 = arith.constant 0 : index
    %c0_126 = arith.constant 0 : index
    %321 = vector.load %arg6[%c2_124, %c0_125, %c0_126] : memref<5x1x64xf32, #tpu.memory_space<vmem>>, vector<1x1x64xf32>
    %322 = vector.shape_cast %321 : vector<1x1x64xf32> to vector<1x64xf32>
    %323 = vector.broadcast %322 : vector<1x64xf32> to vector<32x64xf32>
    %324 = arith.addf %320, %323 : vector<32x64xf32>
    %cst_127 = arith.constant 0.000000e+00 : f32
    %325 = vector.broadcast %cst_127 : f32 to vector<32x64xf32>
    %326 = arith.maximumf %324, %325 : vector<32x64xf32>
    %c2_128 = arith.constant 2 : index
    %c0_129 = arith.constant 0 : index
    %c0_130 = arith.constant 0 : index
    %327 = vector.load %arg7[%c2_128, %c0_129, %c0_130] : memref<5x64x32xf32, #tpu.memory_space<vmem>>, vector<1x64x32xf32>
    %328 = vector.shape_cast %327 : vector<1x64x32xf32> to vector<64x32xf32>
    %cst_131 = arith.constant dense<0.000000e+00> : vector<32x32xf32>
    %329 = tpu.matmul %326, %328, %cst_131 {dimension_numbers = #tpu.dot_dimension_numbers<[1], [0], [0], [1], [0, 0, 1, 1], [], []>} : vector<32x64xf32>, vector<64x32xf32>, vector<32x32xf32> -> vector<32x32xf32>
    %330 = vector.extract_strided_slice %243 {offsets = [3, 0], sizes = [1, 32], strides = [1, 1]} : vector<6x32xf32> to vector<1x32xf32>
    %331 = vector.broadcast %330 : vector<1x32xf32> to vector<32x32xf32>
    %332 = arith.addf %329, %331 : vector<32x32xf32>
    %333 = arith.addf %317, %332 : vector<32x32xf32>
    %334 = vector.extract_strided_slice %243 {offsets = [4, 0], sizes = [1, 32], strides = [1, 1]} : vector<6x32xf32> to vector<1x32xf32>
    %335 = vector.extract_strided_slice %243 {offsets = [5, 0], sizes = [1, 32], strides = [1, 1]} : vector<6x32xf32> to vector<1x32xf32>
    %cst_132 = arith.constant dense<0.000000e+00> : vector<32xf32>
    %336 = vector.multi_reduction <add>, %333, %cst_132 [1] : vector<32x32xf32> to vector<32xf32>
    %337 = vector.shape_cast %336 : vector<32xf32> to vector<32x1xf32>
    %cst_133 = arith.constant 3.200000e+01 : f32
    %338 = vector.broadcast %cst_133 : f32 to vector<32x1xf32>
    %339 = arith.divf %337, %338 : vector<32x1xf32>
    %340 = vector.broadcast %339 : vector<32x1xf32> to vector<32x32xf32>
    %341 = arith.subf %333, %340 : vector<32x32xf32>
    %342 = arith.mulf %341, %341 : vector<32x32xf32>
    %cst_134 = arith.constant dense<0.000000e+00> : vector<32xf32>
    %343 = vector.multi_reduction <add>, %342, %cst_134 [1] : vector<32x32xf32> to vector<32xf32>
    %344 = vector.shape_cast %343 : vector<32xf32> to vector<32x1xf32>
    %cst_135 = arith.constant 3.200000e+01 : f32
    %345 = vector.broadcast %cst_135 : f32 to vector<32x1xf32>
    %346 = arith.divf %344, %345 : vector<32x1xf32>
    %cst_136 = arith.constant 9.99999974E-6 : f32
    %347 = vector.broadcast %cst_136 : f32 to vector<32x1xf32>
    %348 = arith.addf %346, %347 : vector<32x1xf32>
    %349 = math.rsqrt %348 : vector<32x1xf32>
    %350 = vector.broadcast %349 : vector<32x1xf32> to vector<32x32xf32>
    %351 = arith.mulf %341, %350 : vector<32x32xf32>
    %352 = vector.broadcast %334 : vector<1x32xf32> to vector<32x32xf32>
    %353 = arith.mulf %351, %352 : vector<32x32xf32>
    %354 = vector.broadcast %335 : vector<1x32xf32> to vector<32x32xf32>
    %355 = arith.addf %353, %354 : vector<32x32xf32>
    %c3 = arith.constant 3 : index
    %c0_137 = arith.constant 0 : index
    %c0_138 = arith.constant 0 : index
    %356 = vector.load %arg8[%c3, %c0_137, %c0_138] : memref<5x6x32xf32, #tpu.memory_space<vmem>>, vector<1x6x32xf32>
    %357 = vector.shape_cast %356 : vector<1x6x32xf32> to vector<6x32xf32>
    %c3_139 = arith.constant 3 : index
    %c0_140 = arith.constant 0 : index
    %c0_141 = arith.constant 0 : index
    %358 = vector.load %arg2[%c3_139, %c0_140, %c0_141] : memref<5x32x96xf32, #tpu.memory_space<vmem>>, vector<1x32x96xf32>
    %359 = vector.shape_cast %358 : vector<1x32x96xf32> to vector<32x96xf32>
    %cst_142 = arith.constant dense<0.000000e+00> : vector<32x96xf32>
    %360 = tpu.matmul %355, %359, %cst_142 {dimension_numbers = #tpu.dot_dimension_numbers<[1], [0], [0], [1], [0, 0, 1, 1], [], []>} : vector<32x32xf32>, vector<32x96xf32>, vector<32x96xf32> -> vector<32x96xf32>
    %c3_143 = arith.constant 3 : index
    %c0_144 = arith.constant 0 : index
    %c0_145 = arith.constant 0 : index
    %361 = vector.load %arg3[%c3_143, %c0_144, %c0_145] : memref<5x1x96xf32, #tpu.memory_space<vmem>>, vector<1x1x96xf32>
    %362 = vector.shape_cast %361 : vector<1x1x96xf32> to vector<1x96xf32>
    %363 = vector.broadcast %362 : vector<1x96xf32> to vector<32x96xf32>
    %364 = arith.addf %360, %363 : vector<32x96xf32>
    %365 = vector.extract_strided_slice %364 {offsets = [0, 0], sizes = [32, 32], strides = [1, 1]} : vector<32x96xf32> to vector<32x32xf32>
    %366 = vector.shape_cast %365 : vector<32x32xf32> to vector<2x16x32xf32>
    %367 = vector.extract_strided_slice %364 {offsets = [0, 32], sizes = [32, 32], strides = [1, 1]} : vector<32x96xf32> to vector<32x32xf32>
    %368 = vector.shape_cast %367 : vector<32x32xf32> to vector<2x16x32xf32>
    %369 = vector.extract_strided_slice %364 {offsets = [0, 64], sizes = [32, 32], strides = [1, 1]} : vector<32x96xf32> to vector<32x32xf32>
    %370 = vector.shape_cast %369 : vector<32x32xf32> to vector<2x16x32xf32>
    "tpu.trace_start"() <{level = 10 : i32, message = "nqe,nke->nqk"}> : () -> ()
    %cst_146 = arith.constant dense<0.000000e+00> : vector<2x16x16xf32>
    %371 = tpu.matmul %366, %368, %cst_146 {dimension_numbers = #tpu.dot_dimension_numbers<[2], [2], [1], [1], [0, 0, 0, 1, 1, 1], [0], [0]>} : vector<2x16x32xf32>, vector<2x16x32xf32>, vector<2x16x16xf32> -> vector<2x16x16xf32>
    %cst_147 = arith.constant 0.000000e+00 : f32
    "tpu.trace_stop"() : () -> ()
    %372 = vector.shape_cast %3 : vector<1x16x16xi1> to vector<1x16x16xi1>
    %373 = vector.broadcast %372 : vector<1x16x16xi1> to vector<2x16x16xi1>
    %374 = vector.broadcast %cst_147 : f32 to vector<2x16x16xf32>
    %375 = arith.select %373, %371, %374 : vector<2x16x16xi1>, vector<2x16x16xf32>
    %376 = vector.shape_cast %366 : vector<2x16x32xf32> to vector<2x16x1x32xf32>
    %377 = vector.shape_cast %11 : vector<16x16x32xf32> to vector<1x16x16x32xf32>
    %378 = vector.broadcast %376 : vector<2x16x1x32xf32> to vector<2x16x16x32xf32>
    %379 = vector.broadcast %377 : vector<1x16x16x32xf32> to vector<2x16x16x32xf32>
    %380 = arith.mulf %378, %379 : vector<2x16x16x32xf32>
    %cst_148 = arith.constant dense<0.000000e+00> : vector<2x16x16xf32>
    %381 = vector.multi_reduction <add>, %380, %cst_148 [3] : vector<2x16x16x32xf32> to vector<2x16x16xf32>
    %cst_149 = arith.constant 0.000000e+00 : f32
    %382 = vector.broadcast %cst_149 : f32 to vector<2x16x16xf32>
    %383 = arith.cmpf one, %375, %382 : vector<2x16x16xf32>
    %384 = vector.broadcast %10 : vector<1x16x16xi1> to vector<2x16x16xi1>
    %385 = arith.andi %384, %383 : vector<2x16x16xi1>
    %386 = arith.addf %375, %381 : vector<2x16x16xf32>
    %cst_150 = arith.constant 0.176776692 : f32
    %387 = vector.broadcast %cst_150 : f32 to vector<2x16x16xf32>
    %388 = arith.mulf %386, %387 : vector<2x16x16xf32>
    %cst_151 = arith.constant -1.000000e+09 : f32
    %389 = vector.broadcast %cst_151 : f32 to vector<2x16x16xf32>
    %390 = arith.select %385, %388, %389 : vector<2x16x16xi1>, vector<2x16x16xf32>
    %cst_152 = arith.constant dense<0xFF800000> : vector<2x16xf32>
    %391 = vector.multi_reduction <maximumf>, %390, %cst_152 [2] : vector<2x16x16xf32> to vector<2x16xf32>
    %392 = vector.shape_cast %391 : vector<2x16xf32> to vector<2x16x1xf32>
    %393 = vector.broadcast %392 : vector<2x16x1xf32> to vector<2x16x16xf32>
    %394 = arith.subf %390, %393 : vector<2x16x16xf32>
    %395 = math.exp %394 : vector<2x16x16xf32>
    %cst_153 = arith.constant dense<0.000000e+00> : vector<2x16xf32>
    %396 = vector.multi_reduction <add>, %395, %cst_153 [2] : vector<2x16x16xf32> to vector<2x16xf32>
    %397 = vector.shape_cast %396 : vector<2x16xf32> to vector<2x16x1xf32>
    %398 = tpu.reciprocal %397 {approx = true} : vector<2x16x1xf32> -> vector<2x16x1xf32>
    %399 = vector.broadcast %398 : vector<2x16x1xf32> to vector<2x16x16xf32>
    %400 = arith.mulf %395, %399 : vector<2x16x16xf32>
    "tpu.trace_start"() <{level = 10 : i32, message = "nqk,nke->nqe"}> : () -> ()
    %cst_154 = arith.constant dense<0.000000e+00> : vector<2x16x32xf32>
    %401 = tpu.matmul %400, %370, %cst_154 {dimension_numbers = #tpu.dot_dimension_numbers<[2], [1], [1], [2], [0, 0, 0, 1, 1, 2], [0], [0]>} : vector<2x16x16xf32>, vector<2x16x32xf32>, vector<2x16x32xf32> -> vector<2x16x32xf32>
    "tpu.trace_stop"() : () -> ()
    %402 = vector.shape_cast %401 : vector<2x16x32xf32> to vector<32x32xf32>
    %c3_155 = arith.constant 3 : index
    %c0_156 = arith.constant 0 : index
    %c0_157 = arith.constant 0 : index
    %403 = vector.load %arg4[%c3_155, %c0_156, %c0_157] : memref<5x32x32xf32, #tpu.memory_space<vmem>>, vector<1x32x32xf32>
    %404 = vector.shape_cast %403 : vector<1x32x32xf32> to vector<32x32xf32>
    %cst_158 = arith.constant dense<0.000000e+00> : vector<32x32xf32>
    %405 = tpu.matmul %402, %404, %cst_158 {dimension_numbers = #tpu.dot_dimension_numbers<[1], [0], [0], [1], [0, 0, 1, 1], [], []>} : vector<32x32xf32>, vector<32x32xf32>, vector<32x32xf32> -> vector<32x32xf32>
    %406 = vector.extract_strided_slice %357 {offsets = [0, 0], sizes = [1, 32], strides = [1, 1]} : vector<6x32xf32> to vector<1x32xf32>
    %407 = vector.broadcast %406 : vector<1x32xf32> to vector<32x32xf32>
    %408 = arith.addf %405, %407 : vector<32x32xf32>
    %409 = arith.addf %355, %408 : vector<32x32xf32>
    %410 = vector.extract_strided_slice %357 {offsets = [1, 0], sizes = [1, 32], strides = [1, 1]} : vector<6x32xf32> to vector<1x32xf32>
    %411 = vector.extract_strided_slice %357 {offsets = [2, 0], sizes = [1, 32], strides = [1, 1]} : vector<6x32xf32> to vector<1x32xf32>
    %cst_159 = arith.constant dense<0.000000e+00> : vector<32xf32>
    %412 = vector.multi_reduction <add>, %409, %cst_159 [1] : vector<32x32xf32> to vector<32xf32>
    %413 = vector.shape_cast %412 : vector<32xf32> to vector<32x1xf32>
    %cst_160 = arith.constant 3.200000e+01 : f32
    %414 = vector.broadcast %cst_160 : f32 to vector<32x1xf32>
    %415 = arith.divf %413, %414 : vector<32x1xf32>
    %416 = vector.broadcast %415 : vector<32x1xf32> to vector<32x32xf32>
    %417 = arith.subf %409, %416 : vector<32x32xf32>
    %418 = arith.mulf %417, %417 : vector<32x32xf32>
    %cst_161 = arith.constant dense<0.000000e+00> : vector<32xf32>
    %419 = vector.multi_reduction <add>, %418, %cst_161 [1] : vector<32x32xf32> to vector<32xf32>
    %420 = vector.shape_cast %419 : vector<32xf32> to vector<32x1xf32>
    %cst_162 = arith.constant 3.200000e+01 : f32
    %421 = vector.broadcast %cst_162 : f32 to vector<32x1xf32>
    %422 = arith.divf %420, %421 : vector<32x1xf32>
    %cst_163 = arith.constant 9.99999974E-6 : f32
    %423 = vector.broadcast %cst_163 : f32 to vector<32x1xf32>
    %424 = arith.addf %422, %423 : vector<32x1xf32>
    %425 = math.rsqrt %424 : vector<32x1xf32>
    %426 = vector.broadcast %425 : vector<32x1xf32> to vector<32x32xf32>
    %427 = arith.mulf %417, %426 : vector<32x32xf32>
    %428 = vector.broadcast %410 : vector<1x32xf32> to vector<32x32xf32>
    %429 = arith.mulf %427, %428 : vector<32x32xf32>
    %430 = vector.broadcast %411 : vector<1x32xf32> to vector<32x32xf32>
    %431 = arith.addf %429, %430 : vector<32x32xf32>
    %c3_164 = arith.constant 3 : index
    %c0_165 = arith.constant 0 : index
    %c0_166 = arith.constant 0 : index
    %432 = vector.load %arg5[%c3_164, %c0_165, %c0_166] : memref<5x32x64xf32, #tpu.memory_space<vmem>>, vector<1x32x64xf32>
    %433 = vector.shape_cast %432 : vector<1x32x64xf32> to vector<32x64xf32>
    %cst_167 = arith.constant dense<0.000000e+00> : vector<32x64xf32>
    %434 = tpu.matmul %431, %433, %cst_167 {dimension_numbers = #tpu.dot_dimension_numbers<[1], [0], [0], [1], [0, 0, 1, 1], [], []>} : vector<32x32xf32>, vector<32x64xf32>, vector<32x64xf32> -> vector<32x64xf32>
    %c3_168 = arith.constant 3 : index
    %c0_169 = arith.constant 0 : index
    %c0_170 = arith.constant 0 : index
    %435 = vector.load %arg6[%c3_168, %c0_169, %c0_170] : memref<5x1x64xf32, #tpu.memory_space<vmem>>, vector<1x1x64xf32>
    %436 = vector.shape_cast %435 : vector<1x1x64xf32> to vector<1x64xf32>
    %437 = vector.broadcast %436 : vector<1x64xf32> to vector<32x64xf32>
    %438 = arith.addf %434, %437 : vector<32x64xf32>
    %cst_171 = arith.constant 0.000000e+00 : f32
    %439 = vector.broadcast %cst_171 : f32 to vector<32x64xf32>
    %440 = arith.maximumf %438, %439 : vector<32x64xf32>
    %c3_172 = arith.constant 3 : index
    %c0_173 = arith.constant 0 : index
    %c0_174 = arith.constant 0 : index
    %441 = vector.load %arg7[%c3_172, %c0_173, %c0_174] : memref<5x64x32xf32, #tpu.memory_space<vmem>>, vector<1x64x32xf32>
    %442 = vector.shape_cast %441 : vector<1x64x32xf32> to vector<64x32xf32>
    %cst_175 = arith.constant dense<0.000000e+00> : vector<32x32xf32>
    %443 = tpu.matmul %440, %442, %cst_175 {dimension_numbers = #tpu.dot_dimension_numbers<[1], [0], [0], [1], [0, 0, 1, 1], [], []>} : vector<32x64xf32>, vector<64x32xf32>, vector<32x32xf32> -> vector<32x32xf32>
    %444 = vector.extract_strided_slice %357 {offsets = [3, 0], sizes = [1, 32], strides = [1, 1]} : vector<6x32xf32> to vector<1x32xf32>
    %445 = vector.broadcast %444 : vector<1x32xf32> to vector<32x32xf32>
    %446 = arith.addf %443, %445 : vector<32x32xf32>
    %447 = arith.addf %431, %446 : vector<32x32xf32>
    %448 = vector.extract_strided_slice %357 {offsets = [4, 0], sizes = [1, 32], strides = [1, 1]} : vector<6x32xf32> to vector<1x32xf32>
    %449 = vector.extract_strided_slice %357 {offsets = [5, 0], sizes = [1, 32], strides = [1, 1]} : vector<6x32xf32> to vector<1x32xf32>
    %cst_176 = arith.constant dense<0.000000e+00> : vector<32xf32>
    %450 = vector.multi_reduction <add>, %447, %cst_176 [1] : vector<32x32xf32> to vector<32xf32>
    %451 = vector.shape_cast %450 : vector<32xf32> to vector<32x1xf32>
    %cst_177 = arith.constant 3.200000e+01 : f32
    %452 = vector.broadcast %cst_177 : f32 to vector<32x1xf32>
    %453 = arith.divf %451, %452 : vector<32x1xf32>
    %454 = vector.broadcast %453 : vector<32x1xf32> to vector<32x32xf32>
    %455 = arith.subf %447, %454 : vector<32x32xf32>
    %456 = arith.mulf %455, %455 : vector<32x32xf32>
    %cst_178 = arith.constant dense<0.000000e+00> : vector<32xf32>
    %457 = vector.multi_reduction <add>, %456, %cst_178 [1] : vector<32x32xf32> to vector<32xf32>
    %458 = vector.shape_cast %457 : vector<32xf32> to vector<32x1xf32>
    %cst_179 = arith.constant 3.200000e+01 : f32
    %459 = vector.broadcast %cst_179 : f32 to vector<32x1xf32>
    %460 = arith.divf %458, %459 : vector<32x1xf32>
    %cst_180 = arith.constant 9.99999974E-6 : f32
    %461 = vector.broadcast %cst_180 : f32 to vector<32x1xf32>
    %462 = arith.addf %460, %461 : vector<32x1xf32>
    %463 = math.rsqrt %462 : vector<32x1xf32>
    %464 = vector.broadcast %463 : vector<32x1xf32> to vector<32x32xf32>
    %465 = arith.mulf %455, %464 : vector<32x32xf32>
    %466 = vector.broadcast %448 : vector<1x32xf32> to vector<32x32xf32>
    %467 = arith.mulf %465, %466 : vector<32x32xf32>
    %468 = vector.broadcast %449 : vector<1x32xf32> to vector<32x32xf32>
    %469 = arith.addf %467, %468 : vector<32x32xf32>
    %c4 = arith.constant 4 : index
    %c0_181 = arith.constant 0 : index
    %c0_182 = arith.constant 0 : index
    %470 = vector.load %arg8[%c4, %c0_181, %c0_182] : memref<5x6x32xf32, #tpu.memory_space<vmem>>, vector<1x6x32xf32>
    %471 = vector.shape_cast %470 : vector<1x6x32xf32> to vector<6x32xf32>
    %c4_183 = arith.constant 4 : index
    %c0_184 = arith.constant 0 : index
    %c0_185 = arith.constant 0 : index
    %472 = vector.load %arg2[%c4_183, %c0_184, %c0_185] : memref<5x32x96xf32, #tpu.memory_space<vmem>>, vector<1x32x96xf32>
    %473 = vector.shape_cast %472 : vector<1x32x96xf32> to vector<32x96xf32>
    %cst_186 = arith.constant dense<0.000000e+00> : vector<32x96xf32>
    %474 = tpu.matmul %469, %473, %cst_186 {dimension_numbers = #tpu.dot_dimension_numbers<[1], [0], [0], [1], [0, 0, 1, 1], [], []>} : vector<32x32xf32>, vector<32x96xf32>, vector<32x96xf32> -> vector<32x96xf32>
    %c4_187 = arith.constant 4 : index
    %c0_188 = arith.constant 0 : index
    %c0_189 = arith.constant 0 : index
    %475 = vector.load %arg3[%c4_187, %c0_188, %c0_189] : memref<5x1x96xf32, #tpu.memory_space<vmem>>, vector<1x1x96xf32>
    %476 = vector.shape_cast %475 : vector<1x1x96xf32> to vector<1x96xf32>
    %477 = vector.broadcast %476 : vector<1x96xf32> to vector<32x96xf32>
    %478 = arith.addf %474, %477 : vector<32x96xf32>
    %479 = vector.extract_strided_slice %478 {offsets = [0, 0], sizes = [32, 32], strides = [1, 1]} : vector<32x96xf32> to vector<32x32xf32>
    %480 = vector.shape_cast %479 : vector<32x32xf32> to vector<2x16x32xf32>
    %481 = vector.extract_strided_slice %478 {offsets = [0, 32], sizes = [32, 32], strides = [1, 1]} : vector<32x96xf32> to vector<32x32xf32>
    %482 = vector.shape_cast %481 : vector<32x32xf32> to vector<2x16x32xf32>
    %483 = vector.extract_strided_slice %478 {offsets = [0, 64], sizes = [32, 32], strides = [1, 1]} : vector<32x96xf32> to vector<32x32xf32>
    %484 = vector.shape_cast %483 : vector<32x32xf32> to vector<2x16x32xf32>
    "tpu.trace_start"() <{level = 10 : i32, message = "nqe,nke->nqk"}> : () -> ()
    %cst_190 = arith.constant dense<0.000000e+00> : vector<2x16x16xf32>
    %485 = tpu.matmul %480, %482, %cst_190 {dimension_numbers = #tpu.dot_dimension_numbers<[2], [2], [1], [1], [0, 0, 0, 1, 1, 1], [0], [0]>} : vector<2x16x32xf32>, vector<2x16x32xf32>, vector<2x16x16xf32> -> vector<2x16x16xf32>
    %cst_191 = arith.constant 0.000000e+00 : f32
    "tpu.trace_stop"() : () -> ()
    %486 = vector.shape_cast %3 : vector<1x16x16xi1> to vector<1x16x16xi1>
    %487 = vector.broadcast %486 : vector<1x16x16xi1> to vector<2x16x16xi1>
    %488 = vector.broadcast %cst_191 : f32 to vector<2x16x16xf32>
    %489 = arith.select %487, %485, %488 : vector<2x16x16xi1>, vector<2x16x16xf32>
    %490 = vector.shape_cast %480 : vector<2x16x32xf32> to vector<2x16x1x32xf32>
    %491 = vector.shape_cast %11 : vector<16x16x32xf32> to vector<1x16x16x32xf32>
    %492 = vector.broadcast %490 : vector<2x16x1x32xf32> to vector<2x16x16x32xf32>
    %493 = vector.broadcast %491 : vector<1x16x16x32xf32> to vector<2x16x16x32xf32>
    %494 = arith.mulf %492, %493 : vector<2x16x16x32xf32>
    %cst_192 = arith.constant dense<0.000000e+00> : vector<2x16x16xf32>
    %495 = vector.multi_reduction <add>, %494, %cst_192 [3] : vector<2x16x16x32xf32> to vector<2x16x16xf32>
    %cst_193 = arith.constant 0.000000e+00 : f32
    %496 = vector.broadcast %cst_193 : f32 to vector<2x16x16xf32>
    %497 = arith.cmpf one, %489, %496 : vector<2x16x16xf32>
    %498 = vector.broadcast %10 : vector<1x16x16xi1> to vector<2x16x16xi1>
    %499 = arith.andi %498, %497 : vector<2x16x16xi1>
    %500 = arith.addf %489, %495 : vector<2x16x16xf32>
    %cst_194 = arith.constant 0.176776692 : f32
    %501 = vector.broadcast %cst_194 : f32 to vector<2x16x16xf32>
    %502 = arith.mulf %500, %501 : vector<2x16x16xf32>
    %cst_195 = arith.constant -1.000000e+09 : f32
    %503 = vector.broadcast %cst_195 : f32 to vector<2x16x16xf32>
    %504 = arith.select %499, %502, %503 : vector<2x16x16xi1>, vector<2x16x16xf32>
    %cst_196 = arith.constant dense<0xFF800000> : vector<2x16xf32>
    %505 = vector.multi_reduction <maximumf>, %504, %cst_196 [2] : vector<2x16x16xf32> to vector<2x16xf32>
    %506 = vector.shape_cast %505 : vector<2x16xf32> to vector<2x16x1xf32>
    %507 = vector.broadcast %506 : vector<2x16x1xf32> to vector<2x16x16xf32>
    %508 = arith.subf %504, %507 : vector<2x16x16xf32>
    %509 = math.exp %508 : vector<2x16x16xf32>
    %cst_197 = arith.constant dense<0.000000e+00> : vector<2x16xf32>
    %510 = vector.multi_reduction <add>, %509, %cst_197 [2] : vector<2x16x16xf32> to vector<2x16xf32>
    %511 = vector.shape_cast %510 : vector<2x16xf32> to vector<2x16x1xf32>
    %512 = tpu.reciprocal %511 {approx = true} : vector<2x16x1xf32> -> vector<2x16x1xf32>
    %513 = vector.broadcast %512 : vector<2x16x1xf32> to vector<2x16x16xf32>
    %514 = arith.mulf %509, %513 : vector<2x16x16xf32>
    "tpu.trace_start"() <{level = 10 : i32, message = "nqk,nke->nqe"}> : () -> ()
    %cst_198 = arith.constant dense<0.000000e+00> : vector<2x16x32xf32>
    %515 = tpu.matmul %514, %484, %cst_198 {dimension_numbers = #tpu.dot_dimension_numbers<[2], [1], [1], [2], [0, 0, 0, 1, 1, 2], [0], [0]>} : vector<2x16x16xf32>, vector<2x16x32xf32>, vector<2x16x32xf32> -> vector<2x16x32xf32>
    "tpu.trace_stop"() : () -> ()
    %516 = vector.shape_cast %515 : vector<2x16x32xf32> to vector<32x32xf32>
    %c4_199 = arith.constant 4 : index
    %c0_200 = arith.constant 0 : index
    %c0_201 = arith.constant 0 : index
    %517 = vector.load %arg4[%c4_199, %c0_200, %c0_201] : memref<5x32x32xf32, #tpu.memory_space<vmem>>, vector<1x32x32xf32>
    %518 = vector.shape_cast %517 : vector<1x32x32xf32> to vector<32x32xf32>
    %cst_202 = arith.constant dense<0.000000e+00> : vector<32x32xf32>
    %519 = tpu.matmul %516, %518, %cst_202 {dimension_numbers = #tpu.dot_dimension_numbers<[1], [0], [0], [1], [0, 0, 1, 1], [], []>} : vector<32x32xf32>, vector<32x32xf32>, vector<32x32xf32> -> vector<32x32xf32>
    %520 = vector.extract_strided_slice %471 {offsets = [0, 0], sizes = [1, 32], strides = [1, 1]} : vector<6x32xf32> to vector<1x32xf32>
    %521 = vector.broadcast %520 : vector<1x32xf32> to vector<32x32xf32>
    %522 = arith.addf %519, %521 : vector<32x32xf32>
    %523 = arith.addf %469, %522 : vector<32x32xf32>
    %524 = vector.extract_strided_slice %471 {offsets = [1, 0], sizes = [1, 32], strides = [1, 1]} : vector<6x32xf32> to vector<1x32xf32>
    %525 = vector.extract_strided_slice %471 {offsets = [2, 0], sizes = [1, 32], strides = [1, 1]} : vector<6x32xf32> to vector<1x32xf32>
    %cst_203 = arith.constant dense<0.000000e+00> : vector<32xf32>
    %526 = vector.multi_reduction <add>, %523, %cst_203 [1] : vector<32x32xf32> to vector<32xf32>
    %527 = vector.shape_cast %526 : vector<32xf32> to vector<32x1xf32>
    %cst_204 = arith.constant 3.200000e+01 : f32
    %528 = vector.broadcast %cst_204 : f32 to vector<32x1xf32>
    %529 = arith.divf %527, %528 : vector<32x1xf32>
    %530 = vector.broadcast %529 : vector<32x1xf32> to vector<32x32xf32>
    %531 = arith.subf %523, %530 : vector<32x32xf32>
    %532 = arith.mulf %531, %531 : vector<32x32xf32>
    %cst_205 = arith.constant dense<0.000000e+00> : vector<32xf32>
    %533 = vector.multi_reduction <add>, %532, %cst_205 [1] : vector<32x32xf32> to vector<32xf32>
    %534 = vector.shape_cast %533 : vector<32xf32> to vector<32x1xf32>
    %cst_206 = arith.constant 3.200000e+01 : f32
    %535 = vector.broadcast %cst_206 : f32 to vector<32x1xf32>
    %536 = arith.divf %534, %535 : vector<32x1xf32>
    %cst_207 = arith.constant 9.99999974E-6 : f32
    %537 = vector.broadcast %cst_207 : f32 to vector<32x1xf32>
    %538 = arith.addf %536, %537 : vector<32x1xf32>
    %539 = math.rsqrt %538 : vector<32x1xf32>
    %540 = vector.broadcast %539 : vector<32x1xf32> to vector<32x32xf32>
    %541 = arith.mulf %531, %540 : vector<32x32xf32>
    %542 = vector.broadcast %524 : vector<1x32xf32> to vector<32x32xf32>
    %543 = arith.mulf %541, %542 : vector<32x32xf32>
    %544 = vector.broadcast %525 : vector<1x32xf32> to vector<32x32xf32>
    %545 = arith.addf %543, %544 : vector<32x32xf32>
    %c4_208 = arith.constant 4 : index
    %c0_209 = arith.constant 0 : index
    %c0_210 = arith.constant 0 : index
    %546 = vector.load %arg5[%c4_208, %c0_209, %c0_210] : memref<5x32x64xf32, #tpu.memory_space<vmem>>, vector<1x32x64xf32>
    %547 = vector.shape_cast %546 : vector<1x32x64xf32> to vector<32x64xf32>
    %cst_211 = arith.constant dense<0.000000e+00> : vector<32x64xf32>
    %548 = tpu.matmul %545, %547, %cst_211 {dimension_numbers = #tpu.dot_dimension_numbers<[1], [0], [0], [1], [0, 0, 1, 1], [], []>} : vector<32x32xf32>, vector<32x64xf32>, vector<32x64xf32> -> vector<32x64xf32>
    %c4_212 = arith.constant 4 : index
    %c0_213 = arith.constant 0 : index
    %c0_214 = arith.constant 0 : index
    %549 = vector.load %arg6[%c4_212, %c0_213, %c0_214] : memref<5x1x64xf32, #tpu.memory_space<vmem>>, vector<1x1x64xf32>
    %550 = vector.shape_cast %549 : vector<1x1x64xf32> to vector<1x64xf32>
    %551 = vector.broadcast %550 : vector<1x64xf32> to vector<32x64xf32>
    %552 = arith.addf %548, %551 : vector<32x64xf32>
    %cst_215 = arith.constant 0.000000e+00 : f32
    %553 = vector.broadcast %cst_215 : f32 to vector<32x64xf32>
    %554 = arith.maximumf %552, %553 : vector<32x64xf32>
    %c4_216 = arith.constant 4 : index
    %c0_217 = arith.constant 0 : index
    %c0_218 = arith.constant 0 : index
    %555 = vector.load %arg7[%c4_216, %c0_217, %c0_218] : memref<5x64x32xf32, #tpu.memory_space<vmem>>, vector<1x64x32xf32>
    %556 = vector.shape_cast %555 : vector<1x64x32xf32> to vector<64x32xf32>
    %cst_219 = arith.constant dense<0.000000e+00> : vector<32x32xf32>
    %557 = tpu.matmul %554, %556, %cst_219 {dimension_numbers = #tpu.dot_dimension_numbers<[1], [0], [0], [1], [0, 0, 1, 1], [], []>} : vector<32x64xf32>, vector<64x32xf32>, vector<32x32xf32> -> vector<32x32xf32>
    %558 = vector.extract_strided_slice %471 {offsets = [3, 0], sizes = [1, 32], strides = [1, 1]} : vector<6x32xf32> to vector<1x32xf32>
    %559 = vector.broadcast %558 : vector<1x32xf32> to vector<32x32xf32>
    %560 = arith.addf %557, %559 : vector<32x32xf32>
    %561 = arith.addf %545, %560 : vector<32x32xf32>
    %562 = vector.extract_strided_slice %471 {offsets = [4, 0], sizes = [1, 32], strides = [1, 1]} : vector<6x32xf32> to vector<1x32xf32>
    %563 = vector.extract_strided_slice %471 {offsets = [5, 0], sizes = [1, 32], strides = [1, 1]} : vector<6x32xf32> to vector<1x32xf32>
    %cst_220 = arith.constant dense<0.000000e+00> : vector<32xf32>
    %564 = vector.multi_reduction <add>, %561, %cst_220 [1] : vector<32x32xf32> to vector<32xf32>
    %565 = vector.shape_cast %564 : vector<32xf32> to vector<32x1xf32>
    %cst_221 = arith.constant 3.200000e+01 : f32
    %566 = vector.broadcast %cst_221 : f32 to vector<32x1xf32>
    %567 = arith.divf %565, %566 : vector<32x1xf32>
    %568 = vector.broadcast %567 : vector<32x1xf32> to vector<32x32xf32>
    %569 = arith.subf %561, %568 : vector<32x32xf32>
    %570 = arith.mulf %569, %569 : vector<32x32xf32>
    %cst_222 = arith.constant dense<0.000000e+00> : vector<32xf32>
    %571 = vector.multi_reduction <add>, %570, %cst_222 [1] : vector<32x32xf32> to vector<32xf32>
    %572 = vector.shape_cast %571 : vector<32xf32> to vector<32x1xf32>
    %cst_223 = arith.constant 3.200000e+01 : f32
    %573 = vector.broadcast %cst_223 : f32 to vector<32x1xf32>
    %574 = arith.divf %572, %573 : vector<32x1xf32>
    %cst_224 = arith.constant 9.99999974E-6 : f32
    %575 = vector.broadcast %cst_224 : f32 to vector<32x1xf32>
    %576 = arith.addf %574, %575 : vector<32x1xf32>
    %577 = math.rsqrt %576 : vector<32x1xf32>
    %578 = vector.broadcast %577 : vector<32x1xf32> to vector<32x32xf32>
    %579 = arith.mulf %569, %578 : vector<32x32xf32>
    %580 = vector.broadcast %562 : vector<1x32xf32> to vector<32x32xf32>
    %581 = arith.mulf %579, %580 : vector<32x32xf32>
    %582 = vector.broadcast %563 : vector<1x32xf32> to vector<32x32xf32>
    %583 = arith.addf %581, %582 : vector<32x32xf32>
    %c0_225 = arith.constant 0 : index
    %c0_226 = arith.constant 0 : index
    %584 = vector.load %arg9[%c0_225, %c0_226] : memref<32x128xf32, #tpu.memory_space<vmem>>, vector<32x128xf32>
    %cst_227 = arith.constant dense<0.000000e+00> : vector<32x128xf32>
    %585 = tpu.matmul %583, %584, %cst_227 {dimension_numbers = #tpu.dot_dimension_numbers<[1], [0], [0], [1], [0, 0, 1, 1], [], []>} : vector<32x32xf32>, vector<32x128xf32>, vector<32x128xf32> -> vector<32x128xf32>
    %c0_228 = arith.constant 0 : index
    %c0_229 = arith.constant 0 : index
    %586 = vector.load %arg10[%c0_228, %c0_229] : memref<1x128xf32, #tpu.memory_space<vmem>>, vector<1x128xf32>
    %587 = vector.broadcast %586 : vector<1x128xf32> to vector<32x128xf32>
    %588 = arith.addf %585, %587 : vector<32x128xf32>
    %cst_230 = arith.constant dense<0xFF800000> : vector<32xf32>
    %589 = vector.multi_reduction <maximumf>, %588, %cst_230 [1] : vector<32x128xf32> to vector<32xf32>
    %590 = vector.shape_cast %589 : vector<32xf32> to vector<32x1xf32>
    %591 = vector.broadcast %590 : vector<32x1xf32> to vector<32x128xf32>
    %592 = arith.subf %588, %591 : vector<32x128xf32>
    %593 = math.exp %592 : vector<32x128xf32>
    %cst_231 = arith.constant dense<0.000000e+00> : vector<32xf32>
    %594 = vector.multi_reduction <add>, %593, %cst_231 [1] : vector<32x128xf32> to vector<32xf32>
    %595 = vector.shape_cast %594 : vector<32xf32> to vector<32x1xf32>
    %596 = math.log %595 : vector<32x1xf32>
    %597 = arith.addf %596, %590 : vector<32x1xf32>
    %598 = vector.broadcast %597 : vector<32x1xf32> to vector<32x128xf32>
    %599 = arith.subf %588, %598 : vector<32x128xf32>
    %600 = vector.shape_cast %599 : vector<32x128xf32> to vector<2x16x128xf32>
    %c0_232 = arith.constant 0 : index
    %c0_233 = arith.constant 0 : index
    %c0_234 = arith.constant 0 : index
    %601 = vector.load %arg11[%c0_232, %c0_233, %c0_234] : memref<2x16x128xf32, #tpu.memory_space<vmem>>, vector<2x16x128xf32>
    tpu.vector_store %arg11[%c0_232, %c0_233, %c0_234], %600 {strides = array<i32>} : memref<2x16x128xf32, #tpu.memory_space<vmem>>, vector<2x16x128xf32>,
    return
  }
}

</mosaic_0001>

<bundles_post_ra>
// kernel: prolm_forward.1
= control target key start
LH: loop header
LB: loop body
LE: loop exit
PB: predicated region body
PF: predicated region fallthrough
CT: control target
= control target key end

     0   :  { %vm99_vm0 = vcmask 261120   ;;  %s10995_s0 = inlined_call_operand.vmem [shape: f32[2,16,32], index: 0, kind: input, shape index: {}]   ;;  %s10996_s1 = inlined_call_operand.vmem [shape: f32[16,16,32], index: 1, kind: input, shape index: {}]   ;;  %s10997_s2 = inlined_call_operand.vmem [shape: f32[5,32,96], index: 2, kind: input, shape index: {}]   ;;  %s10998_s3 = inlined_call_operand.vmem [shape: f32[5,1,96], index: 3, kind: input, shape index: {}]   ;;  %s10999_s4 = inlined_call_operand.vmem [shape: f32[5,32,32], index: 4, kind: input, shape index: {}]   ;;  %s11000_s5 = inlined_call_operand.vmem [shape: f32[5,32,64], index: 5, kind: input, shape index: {}]   ;;  %s11001_s6 = inlined_call_operand.vmem [shape: f32[5,1,64], index: 6, kind: input, shape index: {}]   ;;  %s11002_s7 = inlined_call_operand.vmem [shape: f32[5,64,32], index: 7, kind: input, shape index: {}]   ;;  %s11003_s8 = inlined_call_operand.vmem [shape: f32[5,6,32], index: 8, kind: input, shape index: {}]   ;;  %s11004_s9 = inlined_call_operand.vmem [shape: f32[32,128], index: 9, kind: input, shape index: {}]   ;;  %s11005_s10 = inlined_call_operand.vmem [shape: f32[1,128], index: 10, kind: input, shape index: {}]   ;;  %s11006_s11 = inlined_call_operand.hbm [shape: f32[2,16,128], index: 11, kind: output, shape index: {}]  }
   0x1   :  { %v94_v0 = vld [vmem:[%s10997_s2 + $0x18] sm:$0xff]  ;;  %v93_v1 = vld [vmem:[%s10997_s2 + $0x10] sm:$0xff]  ;;  %v92_v2 = vld [vmem:[%s10997_s2 + $0x8] sm:$0xff] }
   0x2   :  { %124 = vmatpush.msra.mxu0 %v94_v0  ;;  %6273 = vmatpush.msra.mxu1 %v94_v0  ;;  %v91_v3 = vld [vmem:[%s10997_s2] sm:$0xff]  ;;  %v89_v5 = vld [vmem:[%s10995_s0 + $0x18] sm:$0xff] }
   0x3   :  { %v86_v4 = vld [vmem:[%s10995_s0] sm:$0xff] }
   0x4   :  { %125 = vmatpush.msra.mxu0 %v93_v1  ;;  %6274 = vmatpush.msra.mxu1 %v93_v1 }
   0x6   :  { %126 = vmatpush.msra.mxu0 %v92_v2  ;;  %6275 = vmatpush.msra.mxu1 %v92_v2 }
   0x8   :  { %127 = vmatpush.msra.mxu0 %v91_v3  ;;  %6276 = vmatpush.msra.mxu1 %v91_v3 }
   0x9   :  { %16 = vsyncpa [#allocation3], 0  ;;  %6037 = vmatmul.msk.f32.vlgmr.msra.gmra.mxu0 %vm99_vm0, %v86_v4  ;;  %6040 = vmatmul.msk.f32.vlgmr.msra.gmra.mxu1 %vm99_vm0, %v89_v5  ;;  %v87_v6 = vld [vmem:[%s10995_s0 + $0x8] sm:$0xff]  ;;  %v88_v7 = vld [vmem:[%s10995_s0 + $0x10] sm:$0xff]  ;;  %s6682_s18 = smov 96   ;;  %vm650_vm1 = vcmask 130112  }
   0xa   :  { %v6779_v8 = vld [vmem:[%s10998_s3] ss:$0 sm:$0xff]  ;;  %v6802_v17 = vld [vmem:[%s10996_s1 + $0x8] sm:$0xff]  ;;  %v6825_v30 = vld [vmem:[%s10996_s1 + $0x30] sm:$0xff]  ;;  %vm745_vm2 = vcmask 1041409   ;;  %vm747_vm3 = vcmask 1042434  }
   0xb   :  { %v6790_v13 = vld [vmem:[%s10996_s1] sm:$0xff]  ;;  %v6817_v25 = vld [vmem:[%s10996_s1 + $0x28] sm:$0xff]  ;;  %v6832_v34 = vld [vmem:[%s10996_s1 + $0x18] sm:$0xff]  ;;  %vm749_vm4 = vcmask 1043459   ;;  %vm751_vm5 = vcmask 1044484   ;;  %vm11013_vm6 = vcmask 1045509  }
   0xc   :  { %v6810_v22 = vld [vmem:[%s10996_s1 + $0x20] sm:$0xff]  ;;  %v6837_v35 = vld [vmem:[%s10996_s1 + $0x10] sm:$0xff]  ;;  %v6845_v39 = vld [vmem:[%s10996_s1 + $0x38] sm:$0xff]  ;;  %vm11009_vm7 = vcmask 1046534   ;;  %vm11008_vm8 = vcmask 1047559   ;;  %vm11007_vm11 = vcmask 130048  }
   0xd   :  { %v6855_v46 = vld [vmem:[%s10996_s1 + $0x58] sm:$0xff]  ;;  %v6862_v50 = vld [vmem:[%s10996_s1 + $0x40] sm:$0xff]  ;;  %v6870_v55 = vld [vmem:[%s10996_s1 + $0x70] sm:$0xff]  ;;  %s6683_s27 = smov 64   ;;  %s6023_s12 = sshll.u32 %s11006_s11, 4  ;;  %s6024_s12 = int_to_ptr.hbm [resolvable:$true] %s6023_s12 }
   0xe   :  { %v6877_v58 = vld [vmem:[%s10996_s1 + $0x48] sm:$0xff]  ;;  %v6889_v2 = vld [vmem:[%s10996_s1 + $0x60] sm:$0xff]  ;;  %v6898_v5 = vld [vmem:[%s10996_s1 + $0x78] sm:$0xff]  ;;  %s6687_s13 = smov 8  }
  0x11   :  { %6038 = vmatmul.msk.f32.gmra.mxu0 %vm99_vm0, %v87_v6 }
  0x19   :  { %6039 = vmatmul.msk.f32.gmra.mxu0 %vm99_vm0, %v88_v7 }
  0x86   :  { %v129_v9 = vpop.f32.mrf.mxu0  ;;  %v138_v10 = vpop.f32.mrf.mxu1 }
  0x87   :  { %v6782_v11 = vadd.f32 %v6779_v8, %v129_v9  ;;  %v6785_v12 = vadd.f32 %v6779_v8, %v138_v10 }
  0x89   :  { %182 = vrot.lane.b32.xlu1 %v6785_v12, %s6682_s18  ;;  %143 = vrot.lane.b32.xlu0 %v6782_v11, %s6682_s18  ;;  %v251_v14 = vperm.slane %v6782_v11, 0  ;;  %v224_v19 = vrot.slane %v6782_v11, 2  ;;  %v225_v27 = vrot.slane %v6782_v11, 3  ;;  %v223_v31 = vrot.slane %v6782_v11, 1 }
  0x8a   :  { %v227_v40 = vrot.slane %v6782_v11, 5  ;;  %v226_v42 = vrot.slane %v6782_v11, 4  ;;  %v229_v51 = vrot.slane %v6782_v11, 7  ;;  %v228_v60 = vrot.slane %v6782_v11, 6 }
  0x8b   :  { %v315_v15 = vmul.f32 %v251_v14, %v6790_v13  ;;  %v316_v18 = vmul.f32 %v251_v14, %v6802_v17  ;;  %v253_v21 = vperm.slane %v224_v19, 0  ;;  %v254_v29 = vperm.slane %v225_v27, 0 }
  0x8c   :  { %v252_v33 = vperm.slane %v223_v31, 0  ;;  %v256_v45 = vperm.slane %v227_v40, 0  ;;  %v255_v48 = vperm.slane %v226_v42, 0  ;;  %v258_v54 = vperm.slane %v229_v51, 0  ;;  %v6936_v31 = vld [vmem:[%s10996_s1 + $0x50] sm:$0xff]  ;;  %v6954_v42 = vld [vmem:[%s10996_s1 + $0x68] sm:$0xff] }
  0x8d   :  { %v379_v16 = vsel %vm99_vm0, %v315_v15, 0.0  ;;  %v382_v20 = vsel %vm99_vm0, %v316_v18, 0.0  ;;  %v319_v23 = vmul.f32 %v253_v21, %v6810_v22  ;;  %v320_v26 = vmul.f32 %v253_v21, %v6817_v25  ;;  %v6906_v15 = vld [vmem:[%s10996_s1 + $0x90] sm:$0xff] }
  0x8e   :  { %380 = vadd.xlane.f32.xlu2 %v379_v16  ;;  %v321_v32 = vmul.f32 %v254_v29, %v6825_v30  ;;  %v318_v37 = vmul.f32 %v252_v33, %v6832_v34  ;;  %v317_v38 = vmul.f32 %v252_v33, %v6837_v35  ;;  %v322_v41 = vmul.f32 %v254_v29, %v6845_v39  ;;  %v132_v61 = vpop.f32.mrf.mxu0 }
  0x8f   :  { %v391_v24 = vsel %vm99_vm0, %v319_v23, 0.0  ;;  %v394_v28 = vsel %vm99_vm0, %v320_v26, 0.0  ;;  %v326_v49 = vmul.f32 %v256_v45, %v6855_v46  ;;  %v323_v52 = vmul.f32 %v255_v48, %v6862_v50  ;;  %v6919_v23 = vld [vmem:[%s10996_s1 + $0xa8] sm:$0xff] }
  0x90   :  { %v397_v36 = vsel %vm99_vm0, %v321_v32, 0.0  ;;  %v388_v43 = vsel %vm99_vm0, %v318_v37, 0.0  ;;  %v385_v44 = vsel %vm99_vm0, %v317_v38, 0.0  ;;  %v400_v47 = vsel %vm99_vm0, %v322_v41, 0.0  ;;  %v6946_v38 = vld [vmem:[%s10996_s1 + $0xd8] sm:$0xff] }
  0x91   :  { %v412_v53 = vsel %vm99_vm0, %v326_v49, 0.0  ;;  %v403_v56 = vsel %vm99_vm0, %v323_v52, 0.0  ;;  %v329_v57 = vmul.f32 %v258_v54, %v6870_v55  ;;  %v324_v59 = vmul.f32 %v255_v48, %v6877_v58  ;;  %v6964_v48 = vld [vmem:[%s10996_s1 + $0xf0] sm:$0xff] }
  0x92   :  { %v6883_v63 = vadd.f32 %v6779_v8, %v132_v61  ;;  %v257_v1 = vperm.slane %v228_v60, 0  ;;  %v330_v6 = vmul.f32 %v258_v54, %v6898_v5  ;;  %v325_v33 = vmul.f32 %v256_v45, %v6936_v31  ;;  %v6982_v60 = vld [vmem:[%s10996_s1 + $0x88] sm:$0xff] }
  0x93   :  { %v421_v62 = vsel %vm99_vm0, %v329_v57, 0.0  ;;  %v406_v0 = vsel %vm99_vm0, %v324_v59, 0.0 }
  0x94   :  { %v327_v3 = vmul.f32 %v257_v1, %v6889_v2  ;;  %v230_v7 = vrot.slane %v6883_v63, 1  ;;  %v424_v9 = vsel %vm99_vm0, %v330_v6, 0.0  ;;  %v231_v19 = vrot.slane %v6883_v63, 2 }
  0x95   :  { %v234_v32 = vrot.slane %v6883_v63, 5  ;;  %v409_v40 = vsel %vm99_vm0, %v325_v33, 0.0  ;;  %v259_v51 = vperm.slane %v6883_v63, 0 }
  0x96   :  { %383 = vadd.xlane.f32.xlu2 %v382_v20  ;;  %v415_v4 = vsel %vm99_vm0, %v327_v3, 0.0  ;;  %v135_v10 = vpop.f32.mrf.mxu0  ;;  %v260_v14 = vperm.slane %v230_v7, 0  ;;  %v261_v21 = vperm.slane %v231_v19, 0 }
  0x97   :  { %v6909_v16 = vadd.f32 %v6779_v8, %v135_v10  ;;  %v233_v8 = vrot.slane %v6883_v63, 4  ;;  %v6941_v37 = vperm.slane %v234_v32, 0  ;;  %v332_v3 = vmul.f32 %v259_v51, %v6982_v60 }
  0x98   :  { %v333_v18 = vmul.f32 %v260_v14, %v6906_v15 }
  0x99   :  { %v6924_v27 = vperm.slane %v233_v8, 0  ;;  %v342_v41 = vmul.f32 %v6941_v37, %v6946_v38  ;;  %v267_v54 = vperm.slane %v6909_v16, 0  ;;  %v430_v10 = vsel %vm99_vm0, %v332_v3, 0.0 }
  0x9a   :  { %v433_v20 = vsel %vm99_vm0, %v333_v18, 0.0  ;;  %v7006_v18 = vld [vmem:[%s10996_s1 + $0xa0] sm:$0xff] }
  0x9b   :  { %v460_v45 = vsel %vm99_vm0, %v342_v41, 0.0  ;;  %v348_v61 = vmul.f32 %v267_v54, %v6802_v17  ;;  %v241_v41 = vrot.slane %v6909_v16, 5 }
  0x9d   :  { %v478_v6 = vsel %vm99_vm0, %v348_v61, 0.0 }
  0x9e   :  { %392 = vadd.xlane.f32.xlu2 %v391_v24  ;;  %v336_v24 = vmul.f32 %v261_v21, %v6919_v23 }
  0xa0   :  { %v442_v26 = vsel %vm99_vm0, %v336_v24, 0.0 }
  0xa6   :  { %395 = vadd.xlane.f32.xlu2 %v394_v28  ;;  %v6929_v28 = vld [vmem:[%s10996_s1 + $0xc0] sm:$0xff] }
  0xa7   :  { %v339_v29 = vmul.f32 %v6924_v27, %v6929_v28 }
  0xae   :  { %398 = vadd.xlane.f32.xlu2 %v397_v36  ;;  %v451_v36 = vsel %vm99_vm0, %v339_v29, 0.0  ;;  %v7018_v29 = vld [vmem:[%s10996_s1 + $0xb0] sm:$0xff] }
  0xb3   :  { %389 = vadd.xlane.f32.xlu1 %v388_v43  ;;  %386 = vadd.xlane.f32.xlu0 %v385_v44  ;;  %v236_v43 = vrot.slane %v6883_v63, 7  ;;  %v328_v44 = vmul.f32 %v257_v1, %v6954_v42 }
  0xb5   :  { %v418_v49 = vsel %vm99_vm0, %v328_v44, 0.0 }
  0xb6   :  { %401 = vadd.xlane.f32.xlu2 %v400_v47  ;;  %v6959_v47 = vperm.slane %v236_v43, 0 }
  0xb8   :  { %v345_v52 = vmul.f32 %v6959_v47, %v6964_v48 }
  0xba   :  { %v469_v59 = vsel %vm99_vm0, %v345_v52, 0.0  ;;  %v7043_v52 = vperm.slane %v241_v41, 0  ;;  %v275_v41 = vperm.slane %v6785_v12, 0 }
  0xbb   :  { %413 = vadd.xlane.f32.xlu1 %v412_v53  ;;  %v6973_v53 = vld [vmem:[%s10996_s1 + $0x80] sm:$0xff] }
  0xbc   :  { %v357_v61 = vmul.f32 %v7043_v52, %v6936_v31 }
  0xbe   :  { %404 = vadd.xlane.f32.xlu2 %v403_v56  ;;  %v331_v56 = vmul.f32 %v259_v51, %v6973_v53 }
  0xc3   :  { %422 = vadd.xlane.f32.xlu1 %v421_v62  ;;  %v238_v62 = vrot.slane %v6909_v16, 2 }
  0xc5   :  { %v6998_v7 = vperm.slane %v238_v62, 0  ;;  %v242_v62 = vrot.slane %v6909_v16, 6 }
  0xc6   :  { %407 = vadd.xlane.f32.xlu2 %v406_v0  ;;  %v427_v0 = vsel %vm99_vm0, %v331_v56, 0.0  ;;  %v235_v56 = vrot.slane %v6883_v63, 6 }
  0xc7   :  { %145 = vrot.lane.b32.xlu0 %v6883_v63, %s6682_s18  ;;  %v351_v19 = vmul.f32 %v6998_v7, %v6810_v22 }
  0xc8   :  { %v265_v3 = vperm.slane %v235_v56, 0 }
  0xc9   :  { %v487_v32 = vsel %vm99_vm0, %v351_v19, 0.0 }
  0xce   :  { %416 = vadd.xlane.f32.xlu2 %v415_v4  ;;  %v6995_v4 = vld [vmem:[%s10996_s1 + $0x98] sm:$0xff] }
  0xcf   :  { %v334_v17 = vmul.f32 %v260_v14, %v6995_v4 }
  0xd1   :  { %v436_v24 = vsel %vm99_vm0, %v334_v17, 0.0  ;;  %v7065_v17 = vld [vmem:[%s10996_s1 + $0xe0] sm:$0xff] }
  0xd2   :  { %v343_v31 = vmul.f32 %v265_v3, %v7065_v17 }
  0xd6   :  { %425 = vadd.xlane.f32.xlu2 %v424_v9  ;;  %v232_v9 = vrot.slane %v6883_v63, 3 }
  0xd8   :  { %v262_v8 = vperm.slane %v232_v9, 0  ;;  %v505_v9 = vsel %vm99_vm0, %v357_v61, 0.0 }
  0xda   :  { %v337_v22 = vmul.f32 %v262_v8, %v7018_v29 }
  0xdc   :  { %180 = vrot.lane.b32.xlu1 %v6909_v16, %s6682_s18  ;;  %v445_v43 = vsel %vm99_vm0, %v337_v22, 0.0  ;;  %v237_v22 = vrot.slane %v6909_v16, 1 }
  0xde   :  { %434 = vadd.xlane.f32.xlu2 %v433_v20  ;;  %v239_v20 = vrot.slane %v6909_v16, 3 }
  0xe0   :  { %v7021_v33 = vperm.slane %v239_v20, 0  ;;  %v7075_v20 = vld [vmem:[%s10996_s1 + $0xe8] sm:$0xff] }
  0xe6   :  { %443 = vadd.xlane.f32.xlu2 %v442_v26  ;;  %v335_v26 = vmul.f32 %v261_v21, %v7006_v18  ;;  %v354_v21 = vmul.f32 %v7021_v33, %v6845_v39 }
  0xe8   :  { %v496_v51 = vsel %vm99_vm0, %v354_v21, 0.0 }
  0xee   :  { %452 = vadd.xlane.f32.xlu2 %v451_v36  ;;  %v439_v36 = vsel %vm99_vm0, %v335_v26, 0.0  ;;  %v344_v26 = vmul.f32 %v265_v3, %v7075_v20 }
  0xf1   :  { %410 = vadd.xlane.f32.xlu0 %v409_v40  ;;  %v7028_v40 = vld [vmem:[%s10996_s1 + $0xb8] sm:$0xff] }
  0xf6   :  { %461 = vadd.xlane.f32.xlu2 %v460_v45  ;;  %v338_v45 = vmul.f32 %v262_v8, %v7028_v40 }
  0xf9   :  { %419 = vadd.xlane.f32.xlu0 %v418_v49  ;;  %v7040_v49 = vld [vmem:[%s10996_s1 + $0xc8] sm:$0xff] }
  0xfa   :  { %v340_v39 = vmul.f32 %v6924_v27, %v7040_v49 }
  0xfb   :  { %v183_v57 = vpop.permute.xlu1 %182 }
  0xfc   :  { %6045 = vmatpush.xpose.msk.msra.mxu2 %vm99_vm0, %v183_v57  ;;  %v448_v57 = vsel %vm99_vm0, %v338_v45, 0.0  ;;  %v347_v45 = vmul.f32 %v267_v54, %v6790_v13 }
  0xfe   :  { %470 = vadd.xlane.f32.xlu2 %v469_v59  ;;  %v7052_v59 = vld [vmem:[%s10996_s1 + $0xd0] sm:$0xff] }
 0x101   :  { %428 = vadd.xlane.f32.xlu0 %v427_v0  ;;  %v6989_v1 = vpop.xlane.xlu2 %380  ;;  %v454_v0 = vsel %vm99_vm0, %v340_v39, 0.0  ;;  %v144_v39 = vpop.permute.xlu0 %143 }
 0x106   :  { %431 = vadd.xlane.f32.xlu1 %v430_v10  ;;  %479 = vadd.xlane.f32.xlu2 %v478_v6  ;;  %v341_v6 = vmul.f32 %v6941_v37, %v7052_v59  ;;  %v7068_v10 = vperm.slane %v242_v62, 0  ;;  %v475_v62 = vsel %vm99_vm0, %v347_v45, 0.0 }
 0x108   :  { %v457_v19 = vsel %vm99_vm0, %v341_v6, 0.0  ;;  %v360_v37 = vmul.f32 %v7068_v10, %v6954_v42  ;;  %v466_v42 = vsel %vm99_vm0, %v344_v26, 0.0 }
 0x109   :  { %437 = vadd.xlane.f32.xlu0 %v436_v24  ;;  %v7012_v14 = vpop.xlane.xlu2 %383  ;;  %v463_v24 = vsel %vm99_vm0, %v343_v31, 0.0  ;;  %v246_v31 = vrot.slane %v6785_v12, 3 }
 0x10b   :  { %v7125_v26 = vperm.slane %v246_v31, 0  ;;  %v250_v31 = vrot.slane %v6785_v12, 7 }
 0x10e   :  { %440 = vadd.xlane.f32.xlu1 %v439_v36  ;;  %488 = vadd.xlane.f32.xlu2 %v487_v32  ;;  %v7086_v32 = vld [vmem:[%s10996_s1 + $0xf8] sm:$0xff]  ;;  %v514_v36 = vsel %vm99_vm0, %v360_v37, 0.0  ;;  %v352_v37 = vmul.f32 %v6998_v7, %v6817_v25  ;;  %v369_v25 = vmul.f32 %v7125_v26, %v7018_v29  ;;  %v247_v7 = vrot.slane %v6785_v12, 4 }
 0x10f   :  { %v346_v21 = vmul.f32 %v6959_v47, %v7086_v32  ;;  %v363_v47 = vmul.f32 %v275_v41, %v6973_v53 }
 0x111   :  { %446 = vadd.xlane.f32.xlu0 %v445_v43  ;;  %v7034_v44 = vpop.xlane.xlu2 %392  ;;  %v268_v43 = vperm.slane %v237_v22, 0  ;;  %v490_v22 = vsel %vm99_vm0, %v352_v37, 0.0 }
 0x113   :  { %v349_v61 = vmul.f32 %v268_v43, %v6837_v35  ;;  %v350_v54 = vmul.f32 %v268_v43, %v6832_v34 }
 0x115   :  { %v481_v13 = vsel %vm99_vm0, %v349_v61, 0.0  ;;  %v243_v61 = vrot.slane %v6909_v16, 7 }
 0x116   :  { %449 = vadd.xlane.f32.xlu1 %v448_v57  ;;  %497 = vadd.xlane.f32.xlu2 %v496_v51  ;;  %v472_v51 = vsel %vm99_vm0, %v346_v21, 0.0  ;;  %v244_v57 = vrot.slane %v6785_v12, 1  ;;  %v353_v21 = vmul.f32 %v7021_v33, %v6825_v30  ;;  %v541_v30 = vsel %vm99_vm0, %v369_v25, 0.0 }
 0x117   :  { %v7142_v33 = vperm.slane %v247_v7, 0 }
 0x118   :  { %v7107_v3 = vperm.slane %v244_v57, 0  ;;  %v249_v57 = vrot.slane %v6785_v12, 6 }
 0x119   :  { %455 = vadd.xlane.f32.xlu0 %v454_v0  ;;  %v7058_v27 = vpop.xlane.xlu2 %395  ;;  %v523_v0 = vsel %vm99_vm0, %v363_v47, 0.0 }
 0x11a   :  { %v366_v35 = vmul.f32 %v7107_v3, %v6995_v4 }
 0x11c   :  { %v532_v34 = vsel %vm99_vm0, %v366_v35, 0.0  ;;  %v274_v35 = vperm.slane %v243_v61, 0 }
 0x11e   :  { %458 = vadd.xlane.f32.xlu1 %v457_v19  ;;  %506 = vadd.xlane.f32.xlu2 %v505_v9  ;;  %v484_v19 = vsel %vm99_vm0, %v350_v54, 0.0 }
 0x121   :  { %464 = vadd.xlane.f32.xlu0 %v463_v24  ;;  %v7080_v8 = vpop.xlane.xlu2 %398  ;;  %v240_v24 = vrot.slane %v6909_v16, 4 }
 0x123   :  { %v271_v4 = vperm.slane %v240_v24, 0 }
 0x125   :  { %v355_v45 = vmul.f32 %v271_v4, %v6862_v50  ;;  %v356_v47 = vmul.f32 %v271_v4, %v6877_v58  ;;  %v372_v50 = vmul.f32 %v7142_v33, %v7040_v49  ;;  %v281_v58 = vperm.slane %v249_v57, 0 }
 0x126   :  { %467 = vadd.xlane.f32.xlu1 %v466_v42  ;;  %515 = vadd.xlane.f32.xlu2 %v514_v36  ;;  %v7111_v6 = vpop.xlane.xlu0 %386  ;;  %v7117_v9 = vpop.xlane.xlu1 %389 }
 0x127   :  { %v499_v29 = vsel %vm99_vm0, %v355_v45, 0.0  ;;  %v550_v54 = vsel %vm99_vm0, %v372_v50, 0.0 }
 0x129   :  { %473 = vadd.xlane.f32.xlu0 %v472_v51  ;;  %v7098_v56 = vpop.xlane.xlu2 %401  ;;  %v493_v51 = vsel %vm99_vm0, %v353_v21, 0.0 }
 0x12e   :  { %476 = vadd.xlane.f32.xlu1 %v475_v62  ;;  %524 = vadd.xlane.f32.xlu2 %v523_v0  ;;  %v7136_v43 = vpop.xlane.xlu1 %413  ;;  %v502_v0 = vsel %vm99_vm0, %v356_v47, 0.0 }
 0x131   :  { %482 = vadd.xlane.f32.xlu0 %v481_v13  ;;  %v7113_v53 = vpop.xlane.xlu2 %404 }
 0x136   :  { %485 = vadd.xlane.f32.xlu1 %v484_v19  ;;  %533 = vadd.xlane.f32.xlu2 %v532_v34  ;;  %v7157_v13 = vpop.xlane.xlu1 %422  ;;  %v361_v19 = vmul.f32 %v274_v35, %v6870_v55 }
 0x139   :  { %491 = vadd.xlane.f32.xlu0 %v490_v22  ;;  %v146_v36 = vpop.permute.xlu0 %145  ;;  %v7134_v42 = vpop.xlane.xlu2 %407  ;;  %v282_v22 = vperm.slane %v250_v31, 0 }
 0x13a   :  { %6041 = vmatpush.xpose.msk.msrb.mxu1 %vm99_vm0, %v146_v36  ;;  %v245_v36 = vrot.slane %v6785_v12, 2 }
 0x13b   :  { %v378_v55 = vmul.f32 %v282_v22, %v7086_v32  ;;  %v365_v32 = vmul.f32 %v7107_v3, %v6906_v15  ;;  %v370_v15 = vmul.f32 %v7125_v26, %v7028_v40  ;;  %v248_v3 = vrot.slane %v6785_v12, 5 }
 0x13d   :  { %v568_v25 = vsel %vm99_vm0, %v378_v55, 0.0  ;;  %v280_v57 = vperm.slane %v248_v3, 0 }
 0x13e   :  { %6042 = vmatpush.xpose.msk.msrb.mxu1 %vm99_vm0, %v144_v39  ;;  %494 = vadd.xlane.f32.xlu1 %v493_v51  ;;  %v358_v39 = vmul.f32 %v7043_v52, %v6855_v46  ;;  %v359_v46 = vmul.f32 %v7068_v10, %v6889_v2  ;;  %v375_v52 = vmul.f32 %v281_v58, %v7065_v17  ;;  %v517_v2 = vsel %vm99_vm0, %v361_v19, 0.0 }
 0x13f   :  { %542 = vadd.xlane.f32.xlu2 %v541_v30  ;;  %v362_v17 = vmul.f32 %v274_v35, %v6898_v5  ;;  %v364_v10 = vmul.f32 %v275_v41, %v6982_v60  ;;  %v277_v5 = vperm.slane %v245_v36, 0  ;;  %v529_v41 = vsel %vm99_vm0, %v365_v32, 0.0 }
 0x140   :  { %v508_v49 = vsel %vm99_vm0, %v358_v39, 0.0  ;;  %v511_v37 = vsel %vm99_vm0, %v359_v46, 0.0  ;;  %v559_v34 = vsel %vm99_vm0, %v375_v52, 0.0  ;;  %v371_v39 = vmul.f32 %v7142_v33, %v6929_v28 }
 0x141   :  { %500 = vadd.xlane.f32.xlu0 %v499_v29  ;;  %6043 = vmatmul.msk.f32.vlgmr.msrb.gmra.mxu1 %vm99_vm0, %v6782_v11  ;;  %v7154_v62 = vpop.xlane.xlu2 %416  ;;  %v520_v21 = vsel %vm99_vm0, %v362_v17, 0.0  ;;  %v526_v7 = vsel %vm99_vm0, %v364_v10, 0.0  ;;  %v367_v60 = vmul.f32 %v277_v5, %v7006_v18  ;;  %v368_v30 = vmul.f32 %v277_v5, %v6919_v23 }
 0x142   :  { %v544_v18 = vsel %vm99_vm0, %v370_v15, 0.0  ;;  %v373_v61 = vmul.f32 %v280_v57, %v7052_v59  ;;  %v547_v40 = vsel %vm99_vm0, %v371_v39, 0.0  ;;  %v376_v35 = vmul.f32 %v281_v58, %v7075_v20 }
 0x143   :  { %v535_v51 = vsel %vm99_vm0, %v367_v60, 0.0  ;;  %v538_v50 = vsel %vm99_vm0, %v368_v30, 0.0  ;;  %v377_v52 = vmul.f32 %v282_v22, %v6964_v48 }
 0x144   :  { %v553_v26 = vsel %vm99_vm0, %v373_v61, 0.0  ;;  %v562_v59 = vsel %vm99_vm0, %v376_v35, 0.0 }
 0x146   :  { %503 = vadd.xlane.f32.xlu1 %v502_v0 }
 0x147   :  { %551 = vadd.xlane.f32.xlu2 %v550_v54  ;;  %v374_v54 = vmul.f32 %v280_v57, %v6946_v38  ;;  %v565_v38 = vsel %vm99_vm0, %v377_v52, 0.0 }
 0x149   :  { %509 = vadd.xlane.f32.xlu0 %v508_v49  ;;  %6044 = vmatmul.msk.f32.gmra.mxu1 %vm99_vm0, %v6883_v63  ;;  %v7170_v4 = vpop.xlane.xlu2 %425  ;;  %v556_v28 = vsel %vm99_vm0, %v374_v54, 0.0 }
 0x14e   :  { %v181_v24 = vpop.permute.xlu1 %180  ;;  %512 = vadd.xlane.f32.xlu1 %v511_v37 }
 0x14f   :  { %560 = vadd.xlane.f32.xlu2 %v559_v34  ;;  %6046 = vmatpush.xpose.msk.msra.mxu2 %vm99_vm0, %v181_v24 }
 0x151   :  { %518 = vadd.xlane.f32.xlu0 %v517_v2  ;;  %v7185_v45 = vpop.xlane.xlu2 %434 }
 0x152   :  { %6047 = vmatmul.msk.f32.vlgmr.msra.gmra.mxu2 %vm99_vm0, %v6909_v16 }
 0x156   :  { %521 = vadd.xlane.f32.xlu1 %v520_v21  ;;  %v39_v21 = vlaneseq }
 0x157   :  { %569 = vadd.xlane.f32.xlu2 %v568_v25 }
 0x159   :  { %527 = vadd.xlane.f32.xlu0 %v526_v7  ;;  %v7195_v29 = vpop.xlane.xlu2 %443  ;;  %v7255_v7 = vand.u32 127, %v39_v21 }
 0x15a   :  { %6048 = vmatmul.msk.f32.gmra.mxu2 %vm99_vm0, %v6785_v12 }
 0x15b   :  { %v7258_v5 = vadd.s32 4294967288, %v7255_v7  ;;  %v647_v3 = vperm.slane %v6989_v1, %v7255_v7  ;;  %v658_v61 = vperm.slane %v7080_v8, %v7255_v7 }
 0x15d   :  { %v649_v30 = vperm.slane %v7012_v14, %v7258_v5  ;;  %v655_v14 = vperm.slane %v7034_v44, %v7255_v7  ;;  %v662_v1 = vperm.slane %v7134_v42, %v7258_v5  ;;  %v665_v8 = vperm.slane %v7136_v43, %v7258_v5 }
 0x15e   :  { %530 = vadd.xlane.f32.xlu1 %v529_v41  ;;  %v653_v41 = vperm.slane %v7117_v9, %v7258_v5  ;;  %v670_v43 = vperm.slane %v7157_v13, %v7255_v7  ;;  %v680_v13 = vperm.slane %v7195_v29, %v7258_v5 }
 0x15f   :  { %v651_v9 = vsel %vm650_vm1, %v649_v30, %v647_v3 }
 0x161   :  { %536 = vadd.xlane.f32.xlu0 %v535_v51  ;;  %v7209_v0 = vpop.xlane.xlu2 %452  ;;  %v652_v51 = vperm.slane %v7111_v6, %v7255_v7  ;;  %v659_v6 = vperm.slane %v7098_v56, %v7258_v5  ;;  %v661_v56 = vperm.slane %v7113_v53, %v7255_v7  ;;  %v667_v53 = vperm.slane %v7154_v62, %v7255_v7 }
 0x163   :  { %v660_v42 = vsel %vm650_vm1, %v659_v6, %v658_v61 }
 0x164   :  { %v7197_v47 = vpop.xlane.xlu0 %410 }
 0x166   :  { %539 = vadd.xlane.f32.xlu1 %v538_v50  ;;  %v654_v50 = vsel %vm650_vm1, %v653_v41, %v652_v51 }
 0x167   :  { %v746_v57 = vsel %vm745_vm2, %v654_v50, %v651_v9 }
 0x169   :  { %545 = vadd.xlane.f32.xlu0 %v544_v18  ;;  %v7218_v33 = vpop.xlane.xlu2 %461  ;;  %v656_v18 = vperm.slane %v7058_v27, %v7258_v5  ;;  %v664_v27 = vperm.slane %v7197_v47, %v7255_v7  ;;  %v663_v47 = vsel %vm650_vm1, %v662_v1, %v661_v56 }
 0x16a   :  { %v689_v6 = vperm.slane %v7218_v33, %v7258_v5 }
 0x16c   :  { %v7206_v23 = vpop.xlane.xlu0 %419 }
 0x16d   :  { %v668_v44 = vperm.slane %v7206_v23, %v7258_v5  ;;  %v671_v23 = vperm.slane %v7170_v4, %v7258_v5 }
 0x16e   :  { %548 = vadd.xlane.f32.xlu1 %v547_v40  ;;  %v657_v40 = vsel %vm650_vm1, %v656_v18, %v655_v14 }
 0x16f   :  { %v748_v54 = vsel %vm747_vm3, %v657_v40, %v746_v57  ;;  %v669_v52 = vsel %vm650_vm1, %v668_v44, %v667_v53  ;;  %v672_v3 = vsel %vm650_vm1, %v671_v23, %v670_v43 }
 0x171   :  { %554 = vadd.xlane.f32.xlu0 %v553_v26  ;;  %v7227_v19 = vpop.xlane.xlu2 %470 }
 0x174   :  { %v7214_v49 = vpop.xlane.xlu0 %428 }
 0x175   :  { %v673_v29 = vperm.slane %v7214_v49, %v7255_v7 }
 0x176   :  { %557 = vadd.xlane.f32.xlu1 %v556_v28  ;;  %v666_v28 = vsel %vm650_vm1, %v665_v8, %v664_v27 }
 0x179   :  { %v7221_v46 = vpop.xlane.xlu1 %431  ;;  %563 = vadd.xlane.f32.xlu0 %v562_v59  ;;  %v7235_v24 = vpop.xlane.xlu2 %479  ;;  %v750_v59 = vsel %vm749_vm4, %v660_v42, %v748_v54 }
 0x17a   :  { %v752_v41 = vsel %vm751_vm5, %v663_v47, %v750_v59  ;;  %v674_v18 = vperm.slane %v7221_v46, %v7258_v5 }
 0x17b   :  { %v754_v62 = vsel %vm11013_vm6, %v666_v28, %v752_v41 }
 0x17c   :  { %v7224_v31 = vpop.xlane.xlu0 %437  ;;  %v756_v50 = vsel %vm11009_vm7, %v669_v52, %v754_v62  ;;  %v675_v40 = vsel %vm650_vm1, %v674_v18, %v673_v29 }
 0x17d   :  { %v677_v4 = vperm.slane %v7224_v31, %v7258_v5  ;;  %v685_v31 = vperm.slane %v7209_v0, %v7255_v7  ;;  %v758_v33 = vsel %vm11008_vm8, %v672_v3, %v756_v50 }
 0x17e   :  { %566 = vadd.xlane.f32.xlu1 %v565_v38  ;;  %v40_v38 = vshrl.u32 %v39_v21, 7  ;;  %v676_v21 = vperm.slane %v7185_v45, %v7255_v7 }
 0x180   :  { %v41_v30 = vadd.s32 8, %v40_v38  ;;  %vm7339_vm9 = vcmp.le.s32.totalorder %v7255_v7, %v40_v38  ;;  %v678_v1 = vsel %vm650_vm1, %v677_v4, %v676_v21 }
 0x181   :  { %v7229_v20 = vpop.xlane.xlu1 %440  ;;  %v7243_v22 = vpop.xlane.xlu2 %488 }
 0x182   :  { %v679_v9 = vperm.slane %v7229_v20, %v7255_v7  ;;  %v47_v20 = vadd.s32 1, %v41_v30  ;;  %vm7378_vm13 = vcmp.le.s32.totalorder %v7255_v7, %v41_v30 }
 0x184   :  { %v7231_v58 = vpop.xlane.xlu0 %446  ;;  %v6036_v53 = vadd.s32 4294967286, %v47_v20 }
 0x185   :  { %v682_v61 = vperm.slane %v7231_v58, %v7255_v7 }
 0x186   :  { %vm51_vm14 = vcmp.ge.s32.totalorder %v7255_v7, %v6036_v53 }
 0x189   :  { %v7233_v37 = vpop.xlane.xlu1 %449  ;;  %v7249_v10 = vpop.xlane.xlu2 %497 }
 0x18a   :  { %v683_v14 = vperm.slane %v7233_v37, %v7258_v5  ;;  %v694_v37 = vperm.slane %v7227_v19, %v7255_v7 }
 0x18c   :  { %v7237_v34 = vpop.xlane.xlu0 %455  ;;  %v684_v19 = vsel %vm650_vm1, %v683_v14, %v682_v61 }
 0x18d   :  { %v686_v46 = vperm.slane %v7237_v34, %v7258_v5  ;;  %v681_v34 = vsel %vm650_vm1, %v680_v13, %v679_v9 }
 0x18f   :  { %v687_v54 = vsel %vm650_vm1, %v686_v46, %v685_v31 }
 0x191   :  { %v7239_v2 = vpop.xlane.xlu1 %458  ;;  %v7260_v32 = vpop.xlane.xlu2 %506 }
 0x192   :  { %v688_v27 = vperm.slane %v7239_v2, %v7255_v7  ;;  %v759_v2 = vsel %vm745_vm2, %v678_v1, %v675_v40 }
 0x194   :  { %v7241_v48 = vpop.xlane.xlu0 %464  ;;  %v690_v23 = vsel %vm650_vm1, %v689_v6, %v688_v27 }
 0x195   :  { %v691_v8 = vperm.slane %v7241_v48, %v7255_v7 }
 0x199   :  { %v7245_v17 = vpop.xlane.xlu1 %467  ;;  %v7296_v26 = vpop.xlane.xlu2 %515 }
 0x19a   :  { %v692_v56 = vperm.slane %v7245_v17, %v7258_v5  ;;  %v760_v17 = vsel %vm747_vm3, %v681_v34, %v759_v2  ;;  %v716_v34 = vperm.slane %v7296_v26, %v7258_v5 }
 0x19b   :  { %v761_v59 = vsel %vm749_vm4, %v684_v19, %v760_v17 }
 0x19c   :  { %v7247_v55 = vpop.xlane.xlu0 %473  ;;  %v762_v52 = vsel %vm751_vm5, %v687_v54, %v761_v59 }
 0x19d   :  { %v695_v42 = vperm.slane %v7247_v55, %v7258_v5  ;;  %v693_v55 = vsel %vm650_vm1, %v692_v56, %v691_v8  ;;  %v763_v62 = vsel %vm11013_vm6, %v690_v23, %v762_v52 }
 0x19e   :  { %v764_v50 = vsel %vm11009_vm7, %v693_v55, %v763_v62 }
 0x19f   :  { %v696_v43 = vsel %vm650_vm1, %v695_v42, %v694_v37 }
 0x1a0   :  { %v765_v13 = vsel %vm11008_vm8, %v696_v43, %v764_v50 }
 0x1a1   :  { %v7251_v36 = vpop.xlane.xlu1 %476  ;;  %v7347_v0 = vpop.xlane.xlu2 %524 }
 0x1a2   :  { %v697_v20 = vperm.slane %v7251_v36, %v7255_v7 }
 0x1a4   :  { %v7253_v25 = vpop.xlane.xlu0 %482 }
 0x1a5   :  { %v700_v31 = vperm.slane %v7253_v25, %v7255_v7  ;;  %v703_v25 = vperm.slane %v7243_v22, %v7255_v7 }
 0x1a9   :  { %v7262_v60 = vpop.xlane.xlu1 %485  ;;  %v7390_v21 = vpop.xlane.xlu2 %533 }
 0x1aa   :  { %v701_v6 = vperm.slane %v7262_v60, %v7258_v5 }
 0x1ac   :  { %v7270_v15 = vpop.xlane.xlu0 %491  ;;  %v702_v36 = vsel %vm650_vm1, %v701_v6, %v700_v31 }
 0x1ad   :  { %v704_v29 = vperm.slane %v7270_v15, %v7258_v5 }
 0x1af   :  { %v705_v22 = vsel %vm650_vm1, %v704_v29, %v703_v25 }
 0x1b1   :  { %v7285_v39 = vpop.xlane.xlu1 %494 }
 0x1b2   :  { %v706_v37 = vperm.slane %v7285_v39, %v7255_v7  ;;  %v543_v19 = vpop.xlane.xlu2 %542 }
 0x1b3   :  { %v730_v25 = vperm.slane %v543_v19, %v7255_v7 }
 0x1b4   :  { %v7302_v35 = vpop.xlane.xlu0 %500 }
 0x1b9   :  { %v7315_v51 = vpop.xlane.xlu1 %503 }
 0x1ba   :  { %v710_v60 = vperm.slane %v7315_v51, %v7258_v5  ;;  %v709_v51 = vperm.slane %v7302_v35, %v7255_v7  ;;  %v552_v43 = vpop.xlane.xlu2 %551 }
 0x1bc   :  { %v7336_v57 = vpop.xlane.xlu0 %509 }
 0x1bd   :  { %v713_v39 = vperm.slane %v7336_v57, %v7258_v5 }
 0x1be   :  { %v172_v49 = vpop.f32.mrf.mxu1 }
 0x1bf   :  { %v219_v44 = vsel %vm7339_vm9, %v172_v49, 0.0  ;;  %v712_v49 = vperm.slane %v7260_v32, %v7255_v7 }
 0x1c0   :  { %vm571_vm10 = vcmp.ne.f32.partialorder %v219_v44, 0.0  ;;  %v784_v58 = vadd.f32 %v758_v33, %v219_v44  ;;  %v698_v33 = vperm.slane %v7235_v24, %v7258_v5  ;;  %v707_v24 = vperm.slane %v7249_v10, %v7258_v5 }
 0x1c1   :  { %v513_v47 = vpop.xlane.xlu1 %512  ;;  %vm579_vm12 = vmand %vm7339_vm9, %vm571_vm10  ;;  %v711_v44 = vsel %vm650_vm1, %v710_v60, %v709_v51  ;;  %v714_v42 = vsel %vm650_vm1, %v713_v39, %v712_v49 }
 0x1c2   :  { %v788_v28 = vmul.f32 0.17677669, %v784_v58  ;;  %vm7397_vm10 = vmand %vm7378_vm13, %vm51_vm14  ;;  %v715_v27 = vperm.slane %v513_v47, %v7255_v7  ;;  %v699_v10 = vsel %vm650_vm1, %v698_v33, %v697_v20  ;;  %v708_v40 = vsel %vm650_vm1, %v707_v24, %v706_v37 }
 0x1c3   :  { %v766_v56 = vsel %vm745_vm2, %v702_v36, %v699_v10  ;;  %v721_v37 = vperm.slane %v7347_v0, %v7255_v7 }
 0x1c4   :  { %v519_v38 = vpop.xlane.xlu0 %518  ;;  %v7383_v41 = vsel %vm579_vm12, %v788_v28, -1e+09  ;;  %v767_v35 = vsel %vm747_vm3, %v705_v22, %v766_v56  ;;  %v717_v54 = vsel %vm650_vm1, %v716_v34, %v715_v27 }
 0x1c5   :  { %v797_v4 = vsel %vm11007_vm11, %v7383_v41, -inf  ;;  %v718_v32 = vperm.slane %v519_v38, %v7255_v7  ;;  %v768_v2 = vsel %vm749_vm4, %v708_v40, %v767_v35 }
 0x1c6   :  { %v175_v3 = vpop.f32.mrf.mxu1  ;;  %798 = vmax.xlane.f32.xlu0 %v797_v4  ;;  %v769_v8 = vsel %vm751_vm5, %v711_v44, %v768_v2 }
 0x1c7   :  { %v220_v30 = vsel %vm7378_vm13, %v175_v3, 0.0  ;;  %v770_v53 = vsel %vm11013_vm6, %v714_v42, %v769_v8 }
 0x1c8   :  { %vm572_vm15 = vcmp.ne.f32.partialorder %v220_v30, 0.0  ;;  %v785_v18 = vadd.f32 %v765_v13, %v220_v30  ;;  %v771_v23 = vsel %vm11009_vm7, %v717_v54, %v770_v53  ;;  %v561_v13 = vpop.xlane.xlu2 %560  ;;  %v6285_v54 = vpack.i.bf16 %v6782_v11, %v6883_v63 }
 0x1c9   :  { %v522_v14 = vpop.xlane.xlu1 %521  ;;  %vm580_vm12 = vmand %vm7397_vm10, %vm572_vm15  ;;  %v739_v0 = vperm.slane %v561_v13, %v7255_v7 }
 0x1ca   :  { %v789_v46 = vmul.f32 0.17677669, %v785_v18  ;;  %v719_v57 = vperm.slane %v522_v14, %v7258_v5  ;;  %v725_v14 = vperm.slane %v7390_v21, %v7258_v5  ;;  %v734_v21 = vperm.slane %v552_v43, %v7258_v5 }
 0x1cc   :  { %v7419_v15 = vpop.xlane.xlu0 %527  ;;  %v7421_v1 = vsel %vm580_vm12, %v789_v46, -1e+09  ;;  %v720_v26 = vsel %vm650_vm1, %v719_v57, %v718_v32 }
 0x1cd   :  { %v800_v61 = vsel %vm11007_vm11, %v7421_v1, -inf  ;;  %v772_v59 = vsel %vm11008_vm8, %v720_v26, %v771_v23  ;;  %v722_v29 = vperm.slane %v7419_v15, %v7258_v5 }
 0x1ce   :  { %801 = vmax.xlane.f32.xlu1 %v800_v61 }
 0x1cf   :  { %v723_v61 = vsel %vm650_vm1, %v722_v29, %v721_v37  ;;  %v6290_v29 = vpack.i.bf16 %v6909_v16, %v6785_v12 }
 0x1d0   :  { %v570_v27 = vpop.xlane.xlu2 %569 }
 0x1d1   :  { %v531_v58 = vpop.xlane.xlu1 %530  ;;  %v743_v19 = vperm.slane %v570_v27, %v7258_v5  ;;  %v913_v27 = vld [vmem:[%s10999_s4 + $0x10] sm:$0xff] }
 0x1d2   :  { %v724_v18 = vperm.slane %v531_v58, %v7255_v7 }
 0x1d4   :  { %v537_v47 = vpop.xlane.xlu0 %536  ;;  %v726_v60 = vsel %vm650_vm1, %v725_v14, %v724_v18 }
 0x1d5   :  { %v209_v17 = vpop.f32.mrf.mxu2  ;;  %v727_v33 = vperm.slane %v537_v47, %v7255_v7  ;;  %v773_v49 = vsel %vm745_vm2, %v726_v60, %v723_v61 }
 0x1d6   :  { %v221_v28 = vsel %vm7339_vm9, %v209_v17, 0.0 }
 0x1d7   :  { %vm573_vm14 = vcmp.ne.f32.partialorder %v221_v28, 0.0  ;;  %v786_v55 = vadd.f32 %v772_v59, %v221_v28 }
 0x1d8   :  { %vm581_vm15 = vmand %vm7339_vm9, %vm573_vm14 }
 0x1d9   :  { %v790_v52 = vmul.f32 0.17677669, %v786_v55  ;;  %v540_v38 = vpop.xlane.xlu1 %539 }
 0x1da   :  { %v728_v31 = vperm.slane %v540_v38, %v7258_v5 }
 0x1db   :  { %v7457_v62 = vsel %vm581_vm15, %v790_v52, -1e+09 }
 0x1dc   :  { %v546_v4 = vpop.xlane.xlu0 %545  ;;  %v803_v3 = vsel %vm11007_vm11, %v7457_v62, -inf  ;;  %v729_v15 = vsel %vm650_vm1, %v728_v31, %v727_v33 }
 0x1dd   :  { %804 = vmax.xlane.f32.xlu2 %v803_v3  ;;  %v731_v46 = vperm.slane %v546_v4, %v7258_v5  ;;  %v774_v40 = vsel %vm747_vm3, %v729_v15, %v773_v49  ;;  %v212_v57 = vpop.f32.mrf.mxu2  ;;  %v912_v49 = vld [vmem:[%s10999_s4 + $0x8] sm:$0xff] }
 0x1de   :  { %v222_v58 = vsel %vm7378_vm13, %v212_v57, 0.0 }
 0x1df   :  { %v732_v22 = vsel %vm650_vm1, %v731_v46, %v730_v25  ;;  %vm574_vm12 = vcmp.ne.f32.partialorder %v222_v58, 0.0 }
 0x1e0   :  { %v775_v56 = vsel %vm749_vm4, %v732_v22, %v774_v40  ;;  %vm582_vm14 = vmand %vm7397_vm10, %vm574_vm12 }
 0x1e1   :  { %v549_v50 = vpop.xlane.xlu1 %548 }
 0x1e2   :  { %v733_v20 = vperm.slane %v549_v50, %v7255_v7 }
 0x1e4   :  { %v555_v30 = vpop.xlane.xlu0 %554  ;;  %v735_v10 = vsel %vm650_vm1, %v734_v21, %v733_v20 }
 0x1e5   :  { %v736_v51 = vperm.slane %v555_v30, %v7255_v7  ;;  %v776_v42 = vsel %vm751_vm5, %v735_v10, %v775_v56 }
 0x1e9   :  { %v558_v6 = vpop.xlane.xlu1 %557 }
 0x1ea   :  { %v737_v24 = vperm.slane %v558_v6, %v7258_v5 }
 0x1ec   :  { %v564_v36 = vpop.xlane.xlu0 %563  ;;  %v738_v34 = vsel %vm650_vm1, %v737_v24, %v736_v51 }
 0x1ed   :  { %v740_v39 = vperm.slane %v564_v36, %v7258_v5  ;;  %v777_v2 = vsel %vm11013_vm6, %v738_v34, %v776_v42  ;;  %v911_v34 = vld [vmem:[%s10999_s4] sm:$0xff] }
 0x1ee   :  { %v7536_v42 = vld [vmem:[%s11003_s8] sm:$0x3f] }
 0x1ef   :  { %v741_v44 = vsel %vm650_vm1, %v740_v39, %v739_v0  ;;  %v914_v0 = vld [vmem:[%s10999_s4 + $0x18] sm:$0xff] }
 0x1f0   :  { %v778_v26 = vsel %vm11009_vm7, %v741_v44, %v777_v2  ;;  %940 = vmatpush.msra.mxu1 %v914_v0 }
 0x1f1   :  { %v567_v35 = vpop.xlane.xlu1 %566 }
 0x1f2   :  { %v742_v32 = vperm.slane %v567_v35, %v7255_v7  ;;  %941 = vmatpush.msra.mxu1 %v913_v27  ;;  %v1069_v27 = vld [vmem:[%s11000_s5 + $0x18] sm:$0xff] }
 0x1f4   :  { %v744_v8 = vsel %vm650_vm1, %v743_v19, %v742_v32  ;;  %942 = vmatpush.msra.mxu1 %v912_v49  ;;  %v915_v32 = vperm.slane %v7536_v42, 0  ;;  %v1068_v49 = vld [vmem:[%s11000_s5 + $0x10] sm:$0xff] }
 0x1f5   :  { %6286 = vrot.lane.b32.xlu2 %v6285_v54, %s6683_s27  ;;  %v779_v47 = vsel %vm11008_vm8, %v744_v8, %v778_v26  ;;  %v6524_v54 = vld [vmem:[%s10995_s0] sm:$0xff] }
 0x1f6   :  { %v787_v53 = vadd.f32 %v779_v47, %v222_v58  ;;  %943 = vmatpush.msra.mxu1 %v911_v34  ;;  %v1066_v34 = vld [vmem:[%s11000_s5] sm:$0xff] }
 0x1f8   :  { %v791_v17 = vmul.f32 0.17677669, %v787_v53 }
 0x1fa   :  { %v795_v23 = vsel %vm582_vm14, %v791_v17, -1e+09  ;;  %v6525_v17 = vld [vmem:[%s10995_s0 + $0x8] sm:$0xff] }
 0x1fb   :  { %v806_v28 = vsel %vm11007_vm11, %v795_v23, -inf }
 0x1fc   :  { %807 = vmax.xlane.f32.xlu0 %v806_v28 }
 0x239   :  { %v799_v11 = vpop.xlane.xlu0 %798 }
 0x23a   :  { %v809_v63 = vsub.f32 %v7383_v41, %v799_v11 }
 0x23c   :  { %v813_v59 = vmul.f32 1.442695, %v809_v63 }
 0x23e   :  { %6346 = vpow2.f32 %v813_v59  ;;  %v6526_v59 = vld [vmem:[%s10995_s0 + $0x10] sm:$0xff] }
 0x241   :  { %v802_v55 = vpop.xlane.xlu1 %801 }
 0x242   :  { %v810_v52 = vsub.f32 %v7421_v1, %v802_v55 }
 0x244   :  { %v6347_v38 = vpop.eup %6346  ;;  %v815_v43 = vmul.f32 1.442695, %v810_v52 }
 0x245   :  { %v821_v4 = vsel %vm11007_vm11, %v6347_v38, 0.0 }
 0x246   :  { %6348 = vpow2.f32 %v815_v43  ;;  %822 = vadd.xlane.f32.xlu1 %v821_v4  ;;  %v6527_v4 = vld [vmem:[%s10995_s0 + $0x18] sm:$0xff] }
 0x24c   :  { %v6349_v3 = vpop.eup %6348 }
 0x24d   :  { %v824_v50 = vsel %vm11007_vm11, %v6349_v3, 0.0 }
 0x24e   :  { %825 = vadd.xlane.f32.xlu0 %v824_v50 }
 0x250   :  { %v805_v30 = vpop.xlane.xlu2 %804 }
 0x251   :  { %v811_v13 = vsub.f32 %v7457_v62, %v805_v30  ;;  %v6684_v30 = vmov 32.0  }
 0x253   :  { %v817_v18 = vmul.f32 1.442695, %v811_v13 }
 0x255   :  { %6350 = vpow2.f32 %v817_v18 }
 0x258   :  { %v6287_v41 = vpop.permute.xlu2 %6286 }
 0x259   :  { %v6288_v31 = vunpack.i.l.bf16 %v6287_v41  ;;  %v6289_v1 = vunpack.i.h.bf16 %v6287_v41 }
 0x25b   :  { %v6351_v6 = vpop.eup %6350  ;;  %867 = vmatpush.msrb.mxu2 %v6288_v31  ;;  %6277 = vmatpush.msra.mxu3 %v6288_v31 }
 0x25c   :  { %v827_v14 = vsel %vm11007_vm11, %v6351_v6, 0.0 }
 0x25d   :  { %868 = vmatpush.msrb.mxu2 %v6289_v1  ;;  %6278 = vmatpush.msra.mxu3 %v6289_v1 }
 0x25e   :  { %828 = vadd.xlane.f32.xlu1 %v827_v14 }
 0x25f   :  { %1098 = vmatpush.msra.mxu2 %v1069_v27 }
 0x261   :  { %1099 = vmatpush.msra.mxu2 %v1068_v49 }
 0x262   :  { %6291 = vrot.lane.b32.xlu0 %v6290_v29, %s6683_s27 }
 0x26f   :  { %v808_v46 = vpop.xlane.xlu0 %807 }
 0x270   :  { %v812_v62 = vsub.f32 %v795_v23, %v808_v46 }
 0x272   :  { %v819_v33 = vmul.f32 1.442695, %v812_v62 }
 0x274   :  { %6352 = vpow2.f32 %v819_v33 }
 0x27a   :  { %v6353_v20 = vpop.eup %6352 }
 0x27b   :  { %v830_v37 = vsel %vm11007_vm11, %v6353_v20, 0.0 }
 0x27c   :  { %831 = vadd.xlane.f32.xlu1 %v830_v37 }
 0x2b9   :  { %v823_v25 = vpop.xlane.xlu1 %822 }
 0x2ba   :  { %6354 = vrcp.f32 %v823_v25 }
 0x2c0   :  { %v6355_v60 = vpop.eup %6354 }
 0x2c1   :  { %v826_v24 = vpop.xlane.xlu0 %825  ;;  %v837_v36 = vmul.f32 %v6355_v60, %v6347_v38 }
 0x2c2   :  { %6356 = vrcp.f32 %v826_v24 }
 0x2c3   :  { %6049 = vmatmul.msk.f32.vlgmr.msrb.gmra.mxu2 %vm11007_vm11, %v837_v36 }
 0x2c8   :  { %v6357_v21 = vpop.eup %6356 }
 0x2c9   :  { %v838_v12 = vmul.f32 %v6357_v21, %v6349_v3 }
 0x2cb   :  { %6050 = vmatmul.msk.f32.vlgmr.msra.gmra.mxu3 %vm11007_vm11, %v838_v12 }
 0x2d1   :  { %v829_v16 = vpop.xlane.xlu1 %828 }
 0x2d2   :  { %6358 = vrcp.f32 %v829_v16 }
 0x2d4   :  { %v6292_v15 = vpop.permute.xlu0 %6291 }
 0x2d5   :  { %v6293_v39 = vunpack.i.l.bf16 %v6292_v15  ;;  %v6294_v61 = vunpack.i.h.bf16 %v6292_v15 }
 0x2d7   :  { %902 = vmatpush.msrb.mxu3 %v6293_v39 }
 0x2d8   :  { %v6359_v22 = vpop.eup %6358 }
 0x2d9   :  { %903 = vmatpush.msrb.mxu3 %v6294_v61  ;;  %v839_v51 = vmul.f32 %v6359_v22, %v6351_v6 }
 0x2db   :  { %6051 = vmatmul.msk.f32.vlgmr.msrb.gmra.mxu3 %vm11007_vm11, %v839_v51 }
 0x2ef   :  { %v832_v10 = vpop.xlane.xlu1 %831 }
 0x2f0   :  { %6360 = vrcp.f32 %v832_v10 }
 0x2f1   :  { %6362 = vrcp.f32 %v6684_v30 }
 0x2f6   :  { %v6361_v40 = vpop.eup %6360 }
 0x2f7   :  { %v840_v57 = vmul.f32 %v6361_v40, %v6353_v20  ;;  %v6363_v13 = vpop.eup %6362  ;;  %v1067_v40 = vld [vmem:[%s11000_s5 + $0x8] sm:$0xff] }
 0x2f8   :  { %v974_v18 = vmul.f32 32.0, %v6363_v13  ;;  %vm978_vm15 = vweird.f32 %v6363_v13  ;;  %1100 = vmatpush.msra.mxu2 %v1067_v40 }
 0x2f9   :  { %6052 = vmatmul.msk.f32.gmra.mxu3 %vm11007_vm11, %v840_v57 }
 0x2fa   :  { %v975_v41 = vsub.f32 1.0, %v974_v18  ;;  %1101 = vmatpush.msra.mxu2 %v1066_v34 }
 0x2fc   :  { %v976_v31 = vmul.f32 %v6363_v13, %v975_v41 }
 0x2fe   :  { %v977_v6 = vadd.f32 %v6363_v13, %v976_v31 }
 0x300   :  { %v7555_v1 = vsel %vm978_vm15, %v6363_v13, %v977_v6 }
 0x301   :  { %11029 = vst [vmem:[#allocation5_spill] sm:$0xff] %v7555_v1 }
 0x346   :  { %v870_v56 = vpop.f32.mrf.mxu2 }
 0x347   :  { %6053 = vmatmul.msk.f32.vlgmr.msra.gmra.mxu1 %vm99_vm0, %v870_v56 }
 0x34e   :  { %v873_v44 = vpop.f32.mrf.mxu3 }
 0x34f   :  { %6054 = vmatmul.msk.f32.gmra.mxu1 %vm99_vm0, %v873_v44 }
 0x35e   :  { %v905_v35 = vpop.f32.mrf.mxu3 }
 0x35f   :  { %6055 = vmatmul.msk.f32.gmra.mxu1 %vm99_vm0, %v905_v35 }
 0x37c   :  { %v908_v19 = vpop.f32.mrf.mxu3 }
 0x37d   :  { %6056 = vmatmul.msk.f32.gmra.mxu1 %vm99_vm0, %v908_v19 }
 0x3c4   :  { %v945_v58 = vpop.f32.mrf.mxu1 }
 0x3c5   :  { %v946_v2 = vadd.f32 %v945_v58, %v915_v32 }
 0x3c7   :  { %v957_v8 = vadd.f32 %v6524_v54, %v946_v2 }
 0x3c9   :  { %v961_v26 = vsel %vm99_vm0, %v957_v8, 0.0 }
 0x3ca   :  { %962 = vadd.xlane.f32.xlu1 %v961_v26 }
 0x3cc   :  { %v948_v47 = vpop.f32.mrf.mxu1 }
 0x3cd   :  { %v949_v53 = vadd.f32 %v948_v47, %v915_v32 }
 0x3cf   :  { %v958_v23 = vadd.f32 %v6525_v17, %v949_v53  ;;  %v7592_v17 = vperm.slane %v7536_v42, 1 }
 0x3d1   :  { %v964_v28 = vsel %vm99_vm0, %v958_v23, 0.0 }
 0x3d2   :  { %965 = vadd.xlane.f32.xlu2 %v964_v28 }
 0x3dc   :  { %v951_v11 = vpop.f32.mrf.mxu1 }
 0x3dd   :  { %v952_v63 = vadd.f32 %v951_v11, %v915_v32 }
 0x3df   :  { %v959_v55 = vadd.f32 %v6526_v59, %v952_v63  ;;  %v1061_v63 = vperm.slane %v7536_v42, 2 }
 0x3e1   :  { %v967_v52 = vsel %vm99_vm0, %v959_v55, 0.0 }
 0x3e2   :  { %968 = vadd.xlane.f32.xlu1 %v967_v52 }
 0x3fa   :  { %v954_v38 = vpop.f32.mrf.mxu1 }
 0x3fb   :  { %v955_v43 = vadd.f32 %v954_v38, %v915_v32 }
 0x3fd   :  { %v960_v3 = vadd.f32 %v6527_v4, %v955_v43 }
 0x3ff   :  { %v970_v50 = vsel %vm99_vm0, %v960_v3, 0.0 }
 0x400   :  { %971 = vadd.xlane.f32.xlu0 %v970_v50 }
 0x43d   :  { %v963_v14 = vpop.xlane.xlu1 %962 }
 0x43e   :  { %v980_v29 = vmul.f32 %v7555_v1, %v963_v14 }
 0x440   :  { %v984_v46 = vsub.f32 %v957_v8, %v980_v29 }
 0x442   :  { %v988_v62 = vmul.f32 %v984_v46, %v984_v46 }
 0x444   :  { %v992_v33 = vsel %vm99_vm0, %v988_v62, 0.0 }
 0x445   :  { %v966_v20 = vpop.xlane.xlu2 %965  ;;  %993 = vadd.xlane.f32.xlu1 %v992_v33 }
 0x446   :  { %v981_v37 = vmul.f32 %v7555_v1, %v966_v20 }
 0x448   :  { %v7560_v25 = vsub.f32 %v958_v23, %v981_v37 }
 0x44a   :  { %v989_v60 = vmul.f32 %v7560_v25, %v7560_v25 }
 0x44c   :  { %v995_v24 = vsel %vm99_vm0, %v989_v60, 0.0  ;;  %v1126_v60 = vld [vmem:[%s11002_s7 + $0x38] sm:$0xff] }
 0x44d   :  { %996 = vadd.xlane.f32.xlu1 %v995_v24  ;;  %v1125_v24 = vld [vmem:[%s11002_s7 + $0x30] sm:$0xff]  ;;  %1149 = vmatpush.msra.mxu3 %v1126_v60 }
 0x44f   :  { %1150 = vmatpush.msra.mxu3 %v1125_v24 }
 0x455   :  { %v969_v36 = vpop.xlane.xlu1 %968 }
 0x456   :  { %v982_v21 = vmul.f32 %v7555_v1, %v969_v36  ;;  %v1124_v36 = vld [vmem:[%s11002_s7 + $0x28] sm:$0xff] }
 0x457   :  { %1151 = vmatpush.msra.mxu3 %v1124_v36 }
 0x458   :  { %v7566_v12 = vsub.f32 %v959_v55, %v982_v21 }
 0x45a   :  { %v990_v16 = vmul.f32 %v7566_v12, %v7566_v12 }
 0x45c   :  { %v998_v15 = vsel %vm99_vm0, %v990_v16, 0.0  ;;  %v1123_v16 = vld [vmem:[%s11002_s7 + $0x20] sm:$0xff] }
 0x45d   :  { %999 = vadd.xlane.f32.xlu1 %v998_v15  ;;  %1152 = vmatpush.msra.mxu3 %v1123_v16 }
 0x473   :  { %v972_v39 = vpop.xlane.xlu0 %971 }
 0x474   :  { %v983_v61 = vmul.f32 %v7555_v1, %v972_v39  ;;  %v1122_v39 = vld [vmem:[%s11002_s7 + $0x18] sm:$0xff] }
 0x475   :  { %1153 = vmatpush.msra.mxu3 %v1122_v39 }
 0x476   :  { %v7572_v22 = vsub.f32 %v960_v3, %v983_v61 }
 0x478   :  { %v991_v51 = vmul.f32 %v7572_v22, %v7572_v22 }
 0x47a   :  { %v1001_v0 = vsel %vm99_vm0, %v991_v51, 0.0 }
 0x47b   :  { %1002 = vadd.xlane.f32.xlu1 %v1001_v0 }
 0x4b8   :  { %v994_v10 = vpop.xlane.xlu1 %993 }
 0x4b9   :  { %v1004_v57 = vmul.f32 %v994_v10, %v7555_v1 }
 0x4bb   :  { %v1008_v56 = vadd.f32 1e-05, %v1004_v57 }
 0x4bd   :  { %6364 = vrsqrt.f32 %v1008_v56  ;;  %vm1018_vm14 = vweird.f32 %v1008_v56 }
 0x4c0   :  { %v997_v44 = vpop.xlane.xlu1 %996 }
 0x4c1   :  { %v1005_v35 = vmul.f32 %v997_v44, %v7555_v1  ;;  %v1121_v44 = vld [vmem:[%s11002_s7 + $0x10] sm:$0xff] }
 0x4c2   :  { %1154 = vmatpush.msra.mxu3 %v1121_v44 }
 0x4c3   :  { %v6365_v19 = vpop.eup %6364  ;;  %v1009_v32 = vadd.f32 1e-05, %v1005_v35  ;;  %v1120_v35 = vld [vmem:[%s11002_s7 + $0x8] sm:$0xff] }
 0x4c4   :  { %v1013_v58 = vmul.f32 %v6365_v19, %v1008_v56  ;;  %vm1019_vm12 = vweird.f32 %v6365_v19  ;;  %1155 = vmatpush.msra.mxu3 %v1120_v35  ;;  %v6066_v35 = vld [vmem:[%s10997_s2 + $0x20] sm:$0xff] }
 0x4c5   :  { %6366 = vrsqrt.f32 %v1009_v32  ;;  %vm1020_vm15 = vmor %vm1018_vm14, %vm1019_vm12  ;;  %vm1028_vm8 = vweird.f32 %v1009_v32 }
 0x4c6   :  { %v1014_v2 = vmul.f32 %v6365_v19, %v1013_v58 }
 0x4c8   :  { %v1015_v54 = vmul.f32 0.5, %v1014_v2 }
 0x4ca   :  { %v1016_v8 = vsub.f32 1.5, %v1015_v54 }
 0x4cb   :  { %v6367_v26 = vpop.eup %6366 }
 0x4cc   :  { %v1017_v47 = vmul.f32 %v6365_v19, %v1016_v8  ;;  %v1023_v53 = vmul.f32 %v6367_v26, %v1009_v32  ;;  %vm1029_vm11 = vweird.f32 %v6367_v26 }
 0x4cd   :  { %vm1030_vm7 = vmor %vm1028_vm8, %vm1029_vm11 }
 0x4ce   :  { %v1021_v23 = vsel %vm1020_vm15, %v6365_v19, %v1017_v47  ;;  %v1024_v28 = vmul.f32 %v6367_v26, %v1023_v53  ;;  %v1119_v19 = vld [vmem:[%s11002_s7] sm:$0xff] }
 0x4cf   :  { %v1052_v11 = vmul.f32 %v1021_v23, %v984_v46  ;;  %1156 = vmatpush.msra.mxu3 %v1119_v19 }
 0x4d0   :  { %v1025_v59 = vmul.f32 0.5, %v1024_v28  ;;  %v1000_v55 = vpop.xlane.xlu1 %999 }
 0x4d1   :  { %v1057_v52 = vmul.f32 %v7592_v17, %v1052_v11  ;;  %v1006_v38 = vmul.f32 %v1000_v55, %v7555_v1 }
 0x4d2   :  { %v1026_v43 = vsub.f32 1.5, %v1025_v59 }
 0x4d3   :  { %v1010_v4 = vadd.f32 1e-05, %v1006_v38  ;;  %v7597_v3 = vadd.f32 %v1061_v63, %v1057_v52 }
 0x4d4   :  { %v1027_v50 = vmul.f32 %v6367_v26, %v1026_v43 }
 0x4d5   :  { %6368 = vrsqrt.f32 %v1010_v4  ;;  %6057 = vmatmul.msk.f32.vlgmr.msra.gmra.mxu2 %vm99_vm0, %v7597_v3  ;;  %vm1038_vm11 = vweird.f32 %v1010_v4 }
 0x4d6   :  { %v1031_v30 = vsel %vm1030_vm7, %v6367_v26, %v1027_v50 }
 0x4d7   :  { %v1053_v13 = vmul.f32 %v1031_v30, %v7560_v25 }
 0x4d9   :  { %v1058_v18 = vmul.f32 %v7592_v17, %v1053_v13 }
 0x4db   :  { %v6369_v41 = vpop.eup %6368  ;;  %v7603_v31 = vadd.f32 %v1061_v63, %v1058_v18 }
 0x4dc   :  { %v1033_v6 = vmul.f32 %v6369_v41, %v1010_v4  ;;  %vm1039_vm8 = vweird.f32 %v6369_v41 }
 0x4dd   :  { %6058 = vmatmul.msk.f32.gmra.mxu2 %vm99_vm0, %v7603_v31  ;;  %vm1040_vm12 = vmor %vm1038_vm11, %vm1039_vm8  ;;  %vm1128_vm8 = vcmask 523264  }
 0x4de   :  { %v1034_v14 = vmul.f32 %v6369_v41, %v1033_v6 }
 0x4e0   :  { %v1035_v29 = vmul.f32 0.5, %v1034_v14 }
 0x4e2   :  { %v1036_v46 = vsub.f32 1.5, %v1035_v29 }
 0x4e4   :  { %v1037_v62 = vmul.f32 %v6369_v41, %v1036_v46 }
 0x4e6   :  { %v1041_v33 = vsel %vm1040_vm12, %v6369_v41, %v1037_v62 }
 0x4e7   :  { %v1054_v20 = vmul.f32 %v1041_v33, %v7566_v12 }
 0x4e9   :  { %v1059_v37 = vmul.f32 %v7592_v17, %v1054_v20 }
 0x4eb   :  { %v7609_v25 = vadd.f32 %v1061_v63, %v1059_v37 }
 0x4ed   :  { %6059 = vmatmul.msk.f32.gmra.mxu2 %vm99_vm0, %v7609_v25 }
 0x4ee   :  { %v1003_v21 = vpop.xlane.xlu1 %1002 }
 0x4ef   :  { %v1007_v12 = vmul.f32 %v1003_v21, %v7555_v1 }
 0x4f1   :  { %v1011_v15 = vadd.f32 1e-05, %v1007_v12 }
 0x4f3   :  { %6370 = vrsqrt.f32 %v1011_v15  ;;  %vm1048_vm14 = vweird.f32 %v1011_v15 }
 0x4f9   :  { %v6371_v61 = vpop.eup %6370 }
 0x4fa   :  { %v1043_v51 = vmul.f32 %v6371_v61, %v1011_v15  ;;  %vm1049_vm7 = vweird.f32 %v6371_v61 }
 0x4fb   :  { %vm1050_vm15 = vmor %vm1048_vm14, %vm1049_vm7 }
 0x4fc   :  { %v1044_v0 = vmul.f32 %v6371_v61, %v1043_v51 }
 0x4fe   :  { %v1045_v27 = vmul.f32 0.5, %v1044_v0 }
 0x500   :  { %v1046_v49 = vsub.f32 1.5, %v1045_v27 }
 0x502   :  { %v1047_v10 = vmul.f32 %v6371_v61, %v1046_v49 }
 0x504   :  { %v1051_v40 = vsel %vm1050_vm15, %v6371_v61, %v1047_v10 }
 0x505   :  { %v1055_v57 = vmul.f32 %v1051_v40, %v7572_v22  ;;  %v6336_v22 = vld [vmem:[%s11001_s6] ss:$0 sm:$0xff]  ;;  %v6069_v40 = vld [vmem:[%s10997_s2 + $0x38] sm:$0xff] }
 0x506   :  { %1308 = vmatpush.msrb.mxu0 %v6069_v40 }
 0x507   :  { %v1060_v34 = vmul.f32 %v7592_v17, %v1055_v57  ;;  %v6068_v57 = vld [vmem:[%s10997_s2 + $0x30] sm:$0xff] }
 0x508   :  { %1309 = vmatpush.msrb.mxu0 %v6068_v57  ;;  %v7716_v57 = vld [vmem:[%s10998_s3 + $0x1] ss:$0 sm:$0xff] }
 0x509   :  { %v1065_v56 = vadd.f32 %v1061_v63, %v1060_v34  ;;  %v1127_v63 = vperm.slane %v7536_v42, 3 }
 0x50b   :  { %6060 = vmatmul.msk.f32.gmra.mxu2 %vm99_vm0, %v1065_v56 }
 0x558   :  { %v1103_v32 = vpop.f32.mrf.mxu2 }
 0x559   :  { %v1104_v58 = vadd.f32 %v6336_v22, %v1103_v32 }
 0x55b   :  { %v1115_v2 = vmax.f32 %v1104_v58, 0.0 }
 0x55d   :  { %6061 = vmatmul.msk.f32.vlgmr.msra.gmra.mxu3 %vm1128_vm8, %v1115_v2 }
 0x560   :  { %v1106_v54 = vpop.f32.mrf.mxu2 }
 0x561   :  { %v1107_v8 = vadd.f32 %v6336_v22, %v1106_v54 }
 0x563   :  { %v1116_v26 = vmax.f32 %v1107_v8, 0.0 }
 0x565   :  { %6062 = vmatmul.msk.f32.gmra.mxu3 %vm1128_vm8, %v1116_v26 }
 0x570   :  { %v1109_v47 = vpop.f32.mrf.mxu2 }
 0x571   :  { %v1110_v53 = vadd.f32 %v6336_v22, %v1109_v47 }
 0x573   :  { %v1117_v17 = vmax.f32 %v1110_v53, 0.0 }
 0x575   :  { %6063 = vmatmul.msk.f32.gmra.mxu3 %vm1128_vm8, %v1117_v17 }
 0x58e   :  { %v1112_v23 = vpop.f32.mrf.mxu2 }
 0x58f   :  { %v1113_v28 = vadd.f32 %v6336_v22, %v1112_v23 }
 0x591   :  { %v1118_v11 = vmax.f32 %v1113_v28, 0.0  ;;  %v1262_v28 = vperm.slane %v7536_v42, 4 }
 0x593   :  { %6064 = vmatmul.msk.f32.gmra.mxu3 %vm1128_vm8, %v1118_v11 }
 0x5e0   :  { %v1158_v59 = vpop.f32.mrf.mxu3 }
 0x5e1   :  { %v1159_v55 = vadd.f32 %v1158_v59, %v1127_v63 }
 0x5e3   :  { %v1170_v52 = vadd.f32 %v1159_v55, %v7597_v3  ;;  %v1267_v55 = vperm.slane %v7536_v42, 5 }
 0x5e5   :  { %v1174_v38 = vsel %vm99_vm0, %v1170_v52, 0.0 }
 0x5e6   :  { %1175 = vadd.xlane.f32.xlu2 %v1174_v38 }
 0x5e8   :  { %v1161_v43 = vpop.f32.mrf.mxu3 }
 0x5e9   :  { %v1162_v4 = vadd.f32 %v1161_v43, %v1127_v63 }
 0x5eb   :  { %v1171_v50 = vadd.f32 %v1162_v4, %v7603_v31 }
 0x5ed   :  { %v1177_v30 = vsel %vm99_vm0, %v1171_v50, 0.0 }
 0x5ee   :  { %1178 = vadd.xlane.f32.xlu1 %v1177_v30 }
 0x5f8   :  { %v1164_v13 = vpop.f32.mrf.mxu3 }
 0x5f9   :  { %v1165_v18 = vadd.f32 %v1164_v13, %v1127_v63 }
 0x5fb   :  { %v1172_v41 = vadd.f32 %v1165_v18, %v7609_v25 }
 0x5fd   :  { %v1180_v6 = vsel %vm99_vm0, %v1172_v41, 0.0 }
 0x5fe   :  { %1181 = vadd.xlane.f32.xlu0 %v1180_v6 }
 0x616   :  { %v1167_v14 = vpop.f32.mrf.mxu3 }
 0x617   :  { %v1168_v29 = vadd.f32 %v1167_v14, %v1127_v63 }
 0x619   :  { %v1173_v3 = vadd.f32 %v1168_v29, %v1065_v56  ;;  %v6067_v56 = vld [vmem:[%s10997_s2 + $0x28] sm:$0xff] }
 0x61a   :  { %1310 = vmatpush.msrb.mxu0 %v6067_v56 }
 0x61b   :  { %v1183_v46 = vsel %vm99_vm0, %v1173_v3, 0.0 }
 0x61c   :  { %1184 = vadd.xlane.f32.xlu2 %v1183_v46  ;;  %1311 = vmatpush.msrb.mxu0 %v6066_v35 }
 0x659   :  { %v1176_v62 = vpop.xlane.xlu2 %1175 }
 0x65a   :  { %v1186_v33 = vmul.f32 %v1176_v62, %v7555_v1 }
 0x65c   :  { %v1190_v31 = vsub.f32 %v1170_v52, %v1186_v33 }
 0x65e   :  { %v1194_v20 = vmul.f32 %v1190_v31, %v1190_v31 }
 0x660   :  { %v1198_v37 = vsel %vm99_vm0, %v1194_v20, 0.0 }
 0x661   :  { %1199 = vadd.xlane.f32.xlu1 %v1198_v37  ;;  %v1179_v60 = vpop.xlane.xlu1 %1178 }
 0x662   :  { %v1187_v25 = vmul.f32 %v1179_v60, %v7555_v1 }
 0x664   :  { %v7659_v24 = vsub.f32 %v1171_v50, %v1187_v25 }
 0x666   :  { %v1195_v36 = vmul.f32 %v7659_v24, %v7659_v24 }
 0x668   :  { %v1201_v21 = vsel %vm99_vm0, %v1195_v36, 0.0 }
 0x669   :  { %1202 = vadd.xlane.f32.xlu0 %v1201_v21 }
 0x671   :  { %v1182_v12 = vpop.xlane.xlu0 %1181 }
 0x672   :  { %v1188_v16 = vmul.f32 %v1182_v12, %v7555_v1 }
 0x674   :  { %v7665_v15 = vsub.f32 %v1172_v41, %v1188_v16 }
 0x676   :  { %v1196_v39 = vmul.f32 %v7665_v15, %v7665_v15 }
 0x678   :  { %v1204_v61 = vsel %vm99_vm0, %v1196_v39, 0.0 }
 0x679   :  { %1205 = vadd.xlane.f32.xlu2 %v1204_v61 }
 0x68f   :  { %v1185_v51 = vpop.xlane.xlu2 %1184 }
 0x690   :  { %v1189_v0 = vmul.f32 %v1185_v51, %v7555_v1 }
 0x692   :  { %v7671_v27 = vsub.f32 %v1173_v3, %v1189_v0 }
 0x694   :  { %v1197_v49 = vmul.f32 %v7671_v27, %v7671_v27 }
 0x696   :  { %v1207_v10 = vsel %vm99_vm0, %v1197_v49, 0.0 }
 0x697   :  { %1208 = vadd.xlane.f32.xlu1 %v1207_v10 }
 0x6d4   :  { %v1200_v34 = vpop.xlane.xlu1 %1199 }
 0x6d5   :  { %v1210_v44 = vmul.f32 %v1200_v34, %v7555_v1 }
 0x6d7   :  { %v1214_v19 = vadd.f32 1e-05, %v1210_v44 }
 0x6d9   :  { %6372 = vrsqrt.f32 %v1214_v19  ;;  %vm1224_vm12 = vweird.f32 %v1214_v19 }
 0x6dc   :  { %v1203_v22 = vpop.xlane.xlu0 %1202 }
 0x6dd   :  { %v1211_v32 = vmul.f32 %v1203_v22, %v7555_v1 }
 0x6df   :  { %v6373_v58 = vpop.eup %6372  ;;  %v1215_v2 = vadd.f32 1e-05, %v1211_v32 }
 0x6e0   :  { %v1219_v54 = vmul.f32 %v6373_v58, %v1214_v19  ;;  %vm1225_vm11 = vweird.f32 %v6373_v58  ;;  %v7729_v19 = vld [vmem:[%s10996_s1 + $0x8] sm:$0xff] }
 0x6e1   :  { %6374 = vrsqrt.f32 %v1215_v2  ;;  %vm1226_vm7 = vmor %vm1224_vm12, %vm1225_vm11  ;;  %vm1234_vm15 = vweird.f32 %v1215_v2 }
 0x6e2   :  { %v1220_v8 = vmul.f32 %v6373_v58, %v1219_v54 }
 0x6e4   :  { %v1221_v26 = vmul.f32 0.5, %v1220_v8 }
 0x6e6   :  { %v1222_v47 = vsub.f32 1.5, %v1221_v26 }
 0x6e7   :  { %v6375_v53 = vpop.eup %6374 }
 0x6e8   :  { %v1223_v17 = vmul.f32 %v6373_v58, %v1222_v47  ;;  %v1229_v23 = vmul.f32 %v6375_v53, %v1215_v2  ;;  %vm1235_vm14 = vweird.f32 %v6375_v53  ;;  %v7736_v2 = vld [vmem:[%s10996_s1 + $0x10] sm:$0xff]  ;;  %v7743_v47 = vld [vmem:[%s10996_s1 + $0x20] sm:$0xff] }
 0x6e9   :  { %vm1236_vm11 = vmor %vm1234_vm15, %vm1235_vm14 }
 0x6ea   :  { %v1227_v11 = vsel %vm1226_vm7, %v6373_v58, %v1223_v17  ;;  %v1230_v63 = vmul.f32 %v6375_v53, %v1229_v23  ;;  %v7750_v23 = vld [vmem:[%s10996_s1 + $0x28] sm:$0xff] }
 0x6eb   :  { %v1258_v59 = vmul.f32 %v1227_v11, %v1190_v31 }
 0x6ec   :  { %v1231_v52 = vmul.f32 0.5, %v1230_v63  ;;  %v1206_v38 = vpop.xlane.xlu2 %1205 }
 0x6ed   :  { %v1212_v43 = vmul.f32 %v1206_v38, %v7555_v1  ;;  %v1263_v4 = vmul.f32 %v1262_v28, %v1258_v59  ;;  %v7759_v38 = vld [vmem:[%s10996_s1 + $0x38] sm:$0xff] }
 0x6ee   :  { %v1232_v50 = vsub.f32 1.5, %v1231_v52 }
 0x6ef   :  { %v1216_v30 = vadd.f32 1e-05, %v1212_v43  ;;  %v7693_v13 = vadd.f32 %v1267_v55, %v1263_v4 }
 0x6f0   :  { %v1233_v18 = vmul.f32 %v6375_v53, %v1232_v50  ;;  %v7766_v50 = vld [vmem:[%s10996_s1 + $0x40] sm:$0xff] }
 0x6f1   :  { %6376 = vrsqrt.f32 %v1216_v30  ;;  %6071 = vmatmul.msk.f32.vlgmr.msrb.gmra.mxu0 %vm99_vm0, %v7693_v13  ;;  %vm1244_vm7 = vweird.f32 %v1216_v30 }
 0x6f2   :  { %v1237_v41 = vsel %vm1236_vm11, %v6375_v53, %v1233_v18 }
 0x6f3   :  { %v1259_v42 = vmul.f32 %v1237_v41, %v7659_v24 }
 0x6f5   :  { %v1264_v6 = vmul.f32 %v1262_v28, %v1259_v42 }
 0x6f7   :  { %v6377_v14 = vpop.eup %6376  ;;  %v7698_v29 = vadd.f32 %v1267_v55, %v1264_v6  ;;  %v7774_v6 = vld [vmem:[%s10996_s1 + $0x50] sm:$0xff] }
 0x6f8   :  { %v1239_v3 = vmul.f32 %v6377_v14, %v1216_v30  ;;  %vm1245_vm12 = vweird.f32 %v6377_v14 }
 0x6f9   :  { %6072 = vmatmul.msk.f32.gmra.mxu0 %vm99_vm0, %v7698_v29  ;;  %vm1246_vm14 = vmor %vm1244_vm7, %vm1245_vm12  ;;  %vm11031_vm7 = vcmask 1046534  }
 0x6fa   :  { %v1240_v46 = vmul.f32 %v6377_v14, %v1239_v3 }
 0x6fc   :  { %v1241_v62 = vmul.f32 0.5, %v1240_v46  ;;  %v7781_v46 = vld [vmem:[%s10996_s1 + $0x58] sm:$0xff] }
 0x6fe   :  { %v1242_v33 = vsub.f32 1.5, %v1241_v62 }
 0x700   :  { %v1243_v31 = vmul.f32 %v6377_v14, %v1242_v33 }
 0x702   :  { %v1247_v20 = vsel %vm1246_vm14, %v6377_v14, %v1243_v31  ;;  %vm11032_vm14 = vcmask 1047559  }
 0x703   :  { %v1260_v37 = vmul.f32 %v1247_v20, %v7665_v15 }
 0x705   :  { %v1265_v60 = vmul.f32 %v1262_v28, %v1260_v37  ;;  %v7789_v37 = vld [vmem:[%s10996_s1 + $0x68] sm:$0xff] }
 0x707   :  { %v7703_v25 = vadd.f32 %v1267_v55, %v1265_v60 }
 0x709   :  { %6073 = vmatmul.msk.f32.gmra.mxu0 %vm99_vm0, %v7703_v25 }
 0x70a   :  { %v1209_v24 = vpop.xlane.xlu1 %1208 }
 0x70b   :  { %v1213_v36 = vmul.f32 %v1209_v24, %v7555_v1 }
 0x70d   :  { %v1217_v21 = vadd.f32 1e-05, %v1213_v36  ;;  %v7796_v36 = vld [vmem:[%s10996_s1] sm:$0xff] }
 0x70f   :  { %6378 = vrsqrt.f32 %v1217_v21  ;;  %vm1254_vm11 = vweird.f32 %v1217_v21 }
 0x715   :  { %v6379_v12 = vpop.eup %6378 }
 0x716   :  { %v1249_v16 = vmul.f32 %v6379_v12, %v1217_v21  ;;  %vm1255_vm15 = vweird.f32 %v6379_v12 }
 0x717   :  { %vm1256_vm12 = vmor %vm1254_vm11, %vm1255_vm15 }
 0x718   :  { %v1250_v39 = vmul.f32 %v6379_v12, %v1249_v16 }
 0x71a   :  { %v1251_v61 = vmul.f32 0.5, %v1250_v39  ;;  %v7803_v39 = vld [vmem:[%s10996_s1 + $0x18] sm:$0xff] }
 0x71c   :  { %v1252_v51 = vsub.f32 1.5, %v1251_v61 }
 0x71e   :  { %v1253_v0 = vmul.f32 %v6379_v12, %v1252_v51 }
 0x720   :  { %v1257_v15 = vsel %vm1256_vm12, %v6379_v12, %v1253_v0  ;;  %vm11033_vm12 = vcmask 130048  }
 0x721   :  { %v1261_v49 = vmul.f32 %v1257_v15, %v7671_v27 }
 0x723   :  { %v1266_v10 = vmul.f32 %v1262_v28, %v1261_v49  ;;  %v7815_v49 = vld [vmem:[%s10996_s1 + $0x30] sm:$0xff] }
 0x725   :  { %v7709_v40 = vadd.f32 %v1267_v55, %v1266_v10 }
 0x727   :  { %6074 = vmatmul.msk.f32.gmra.mxu0 %vm99_vm0, %v7709_v40 }
 0x76e   :  { %v1313_v34 = vpop.f32.mrf.mxu0 }
 0x76f   :  { %v7719_v56 = vadd.f32 %v7716_v57, %v1313_v34 }
 0x771   :  { %1327 = vrot.lane.b32.xlu2 %v7719_v56, %s6682_s18  ;;  %v1431_v27 = vperm.slane %v7719_v56, 0  ;;  %v1403_v44 = vrot.slane %v7719_v56, 1  ;;  %v1404_v35 = vrot.slane %v7719_v56, 2  ;;  %v1405_v17 = vrot.slane %v7719_v56, 3 }
 0x772   :  { %v1406_v11 = vrot.slane %v7719_v56, 4  ;;  %v1407_v4 = vrot.slane %v7719_v56, 5  ;;  %v1408_v3 = vrot.slane %v7719_v56, 6 }
 0x773   :  { %v1496_v22 = vmul.f32 %v7729_v19, %v1431_v27  ;;  %v1432_v32 = vperm.slane %v1403_v44, 0  ;;  %v1433_v8 = vperm.slane %v1404_v35, 0  ;;  %v1434_v59 = vperm.slane %v1405_v17, 0  ;;  %v7825_v35 = vld [vmem:[%s10996_s1 + $0x48] sm:$0xff]  ;;  %v7842_v17 = vld [vmem:[%s10996_s1 + $0x78] sm:$0xff] }
 0x774   :  { %v1435_v52 = vperm.slane %v1406_v11, 0  ;;  %v1436_v41 = vperm.slane %v1407_v4, 0  ;;  %v1437_v31 = vperm.slane %v1408_v3, 0  ;;  %v1495_v21 = vmul.f32 %v7796_v36, %v1431_v27 }
 0x775   :  { %v1562_v58 = vsel %vm99_vm0, %v1496_v22, 0.0  ;;  %v1497_v54 = vmul.f32 %v7736_v2, %v1432_v32  ;;  %v1499_v53 = vmul.f32 %v7743_v47, %v1433_v8  ;;  %v1500_v28 = vmul.f32 %v7750_v23, %v1433_v8 }
 0x776   :  { %1563 = vadd.xlane.f32.xlu1 %v1562_v58  ;;  %v1502_v43 = vmul.f32 %v7759_v38, %v1434_v59  ;;  %v1503_v30 = vmul.f32 %v7766_v50, %v1435_v52  ;;  %v1505_v14 = vmul.f32 %v7774_v6, %v1436_v41  ;;  %v1506_v62 = vmul.f32 %v7781_v46, %v1436_v41  ;;  %v1316_v16 = vpop.f32.mrf.mxu0  ;;  %v7834_v58 = vld [vmem:[%s10996_s1 + $0x60] sm:$0xff] }
 0x777   :  { %v1565_v26 = vsel %vm99_vm0, %v1497_v54, 0.0  ;;  %v1571_v63 = vsel %vm99_vm0, %v1499_v53, 0.0  ;;  %v1574_v55 = vsel %vm99_vm0, %v1500_v28, 0.0  ;;  %v1508_v60 = vmul.f32 %v7789_v37, %v1437_v31 }
 0x778   :  { %1566 = vadd.xlane.f32.xlu0 %v1565_v26  ;;  %v1580_v18 = vsel %vm99_vm0, %v1502_v43, 0.0  ;;  %v1583_v42 = vsel %vm99_vm0, %v1503_v30, 0.0  ;;  %v1589_v33 = vsel %vm99_vm0, %v1505_v14, 0.0  ;;  %v1592_v20 = vsel %vm99_vm0, %v1506_v62, 0.0  ;;  %v7858_v30 = vld [vmem:[%s10996_s1 + $0x70] sm:$0xff]  ;;  %v7867_v14 = vld [vmem:[%s10996_s1 + $0xa8] sm:$0xff] }
 0x779   :  { %v1598_v24 = vsel %vm99_vm0, %v1508_v60, 0.0  ;;  %v1559_v12 = vsel %vm99_vm0, %v1495_v21, 0.0  ;;  %v1498_v61 = vmul.f32 %v7803_v39, %v1432_v32  ;;  %v7808_v0 = vadd.f32 %v7716_v57, %v1316_v16  ;;  %v7877_v60 = vld [vmem:[%s10996_s1 + $0x80] sm:$0xff] }
 0x77a   :  { %v1501_v10 = vmul.f32 %v7815_v49, %v1434_v59  ;;  %v1504_v22 = vmul.f32 %v7825_v35, %v1435_v52  ;;  %v1507_v54 = vmul.f32 %v7834_v58, %v1437_v31  ;;  %v1409_v8 = vrot.slane %v7719_v56, 7  ;;  %v7885_v21 = vld [vmem:[%s10996_s1 + $0xc0] sm:$0xff] }
 0x77b   :  { %v1568_v51 = vsel %vm99_vm0, %v1498_v61, 0.0  ;;  %v1410_v11 = vrot.slane %v7808_v0, 1  ;;  %v1411_v43 = vrot.slane %v7808_v0, 2  ;;  %v1413_v62 = vrot.slane %v7808_v0, 4 }
 0x77c   :  { %v1577_v34 = vsel %vm99_vm0, %v1501_v10, 0.0  ;;  %v1586_v32 = vsel %vm99_vm0, %v1504_v22, 0.0  ;;  %v1595_v26 = vsel %vm99_vm0, %v1507_v54, 0.0  ;;  %v1438_v53 = vperm.slane %v1409_v8, 0 }
 0x77d   :  { %v1440_v59 = vperm.slane %v1410_v11, 0  ;;  %v7861_v41 = vperm.slane %v1411_v43, 0  ;;  %v1414_v16 = vrot.slane %v7808_v0, 5  ;;  %v1412_v22 = vrot.slane %v7808_v0, 3 }
 0x77e   :  { %1572 = vadd.xlane.f32.xlu1 %v1571_v63  ;;  %v1510_v28 = vmul.f32 %v7842_v17, %v1438_v53  ;;  %v1416_v8 = vrot.slane %v7808_v0, 7 }
 0x77f   :  { %v1516_v3 = vmul.f32 %v7867_v14, %v7861_v41  ;;  %v7891_v10 = vperm.slane %v1414_v16, 0 }
 0x780   :  { %1575 = vadd.xlane.f32.xlu0 %v1574_v55  ;;  %v1604_v63 = vsel %vm99_vm0, %v1510_v28, 0.0  ;;  %v7850_v55 = vld [vmem:[%s10996_s1 + $0x90] sm:$0xff]  ;;  %v7912_v28 = vperm.slane %v1412_v22, 0  ;;  %v7955_v22 = vld [vmem:[%s10996_s1 + $0xe0] sm:$0xff] }
 0x781   :  { %v1513_v52 = vmul.f32 %v7850_v55, %v1440_v59  ;;  %v1622_v31 = vsel %vm99_vm0, %v1516_v3, 0.0 }
 0x783   :  { %v1613_v4 = vsel %vm99_vm0, %v1513_v52, 0.0 }
 0x786   :  { %1581 = vadd.xlane.f32.xlu1 %v1580_v18  ;;  %v1319_v15 = vpop.f32.mrf.mxu0  ;;  %v1509_v18 = vmul.f32 %v7858_v30, %v1438_v53 }
 0x788   :  { %1584 = vadd.xlane.f32.xlu0 %v1583_v42  ;;  %v1601_v42 = vsel %vm99_vm0, %v1509_v18, 0.0 }
 0x78e   :  { %1590 = vadd.xlane.f32.xlu1 %v1589_v33  ;;  %v1439_v33 = vperm.slane %v7808_v0, 0 }
 0x790   :  { %1593 = vadd.xlane.f32.xlu0 %v1592_v20  ;;  %v1443_v20 = vperm.slane %v1413_v62, 0  ;;  %v1415_v62 = vrot.slane %v7808_v0, 6 }
 0x796   :  { %1599 = vadd.xlane.f32.xlu1 %v1598_v24  ;;  %v1511_v24 = vmul.f32 %v7877_v60, %v1439_v33 }
 0x798   :  { %v1607_v61 = vsel %vm99_vm0, %v1511_v24, 0.0 }
 0x79a   :  { %1560 = vadd.xlane.f32.xlu2 %v1559_v12  ;;  %v1519_v12 = vmul.f32 %v7885_v21, %v1443_v20 }
 0x7a2   :  { %1569 = vadd.xlane.f32.xlu2 %v1568_v51  ;;  %v1631_v51 = vsel %vm99_vm0, %v1519_v12, 0.0 }
 0x7a4   :  { %1329 = vrot.lane.b32.xlu0 %v7808_v0, %s6682_s18  ;;  %v1322_v27 = vpop.f32.mrf.mxu0 }
 0x7a5   :  { %v7820_v44 = vadd.f32 %v7716_v57, %v1322_v27 }
 0x7aa   :  { %1578 = vadd.xlane.f32.xlu2 %v1577_v34  ;;  %v7896_v34 = vld [vmem:[%s10996_s1 + $0x98] sm:$0xff] }
 0x7ab   :  { %v1514_v27 = vmul.f32 %v7896_v34, %v1440_v59  ;;  %v7920_v59 = vld [vmem:[%s10996_s1 + $0xb0] sm:$0xff] }
 0x7ad   :  { %v1616_v53 = vsel %vm99_vm0, %v1514_v27, 0.0 }
 0x7af   :  { %1366 = vrot.lane.b32.xlu1 %v7820_v44, %s6682_s18 }
 0x7b2   :  { %1587 = vadd.xlane.f32.xlu2 %v1586_v32  ;;  %v7903_v32 = vld [vmem:[%s10996_s1 + $0xd8] sm:$0xff] }
 0x7b3   :  { %v1522_v54 = vmul.f32 %v7903_v32, %v7891_v10 }
 0x7b5   :  { %v1640_v11 = vsel %vm99_vm0, %v1522_v54, 0.0 }
 0x7ba   :  { %1596 = vadd.xlane.f32.xlu2 %v1595_v26  ;;  %v7909_v26 = vadd.f32 %v7716_v57, %v1319_v15  ;;  %v1517_v57 = vmul.f32 %v7920_v59, %v7912_v28  ;;  %v7927_v15 = vld [vmem:[%s10996_s1 + $0xf0] sm:$0xff] }
 0x7bc   :  { %v1625_v43 = vsel %vm99_vm0, %v1517_v57, 0.0  ;;  %v11010_v18 = vperm.slane %v7909_v26, 0  ;;  %v1418_v24 = vrot.slane %v7909_v26, 2 }
 0x7c2   :  { %1605 = vadd.xlane.f32.xlu2 %v1604_v63  ;;  %v1446_v63 = vperm.slane %v1416_v8, 0  ;;  %v1419_v8 = vrot.slane %v7909_v26, 3 }
 0x7c4   :  { %v1525_v52 = vmul.f32 %v7927_v15, %v1446_v63  ;;  %v7963_v57 = vperm.slane %v1419_v8, 0 }
 0x7ca   :  { %1614 = vadd.xlane.f32.xlu2 %v1613_v4  ;;  %v1649_v4 = vsel %vm99_vm0, %v1525_v52, 0.0 }
 0x7ce   :  { %1602 = vadd.xlane.f32.xlu0 %v1601_v42  ;;  %v7936_v42 = vld [vmem:[%s10996_s1 + $0xc8] sm:$0xff] }
 0x7cf   :  { %v1520_v3 = vmul.f32 %v7936_v42, %v1443_v20  ;;  %v1449_v20 = vperm.slane %v1418_v24, 0 }
 0x7d1   :  { %v1634_v16 = vsel %vm99_vm0, %v1520_v3, 0.0  ;;  %v1531_v54 = vmul.f32 %v7743_v47, %v1449_v20  ;;  %v1417_v3 = vrot.slane %v7909_v26, 1 }
 0x7d2   :  { %1623 = vadd.xlane.f32.xlu2 %v1622_v31  ;;  %v1528_v31 = vmul.f32 %v7729_v19, %v11010_v18 }
 0x7d4   :  { %v1658_v27 = vsel %vm99_vm0, %v1528_v31, 0.0  ;;  %v1421_v31 = vrot.slane %v7909_v26, 5 }
 0x7d9   :  { %1608 = vadd.xlane.f32.xlu1 %v1607_v61  ;;  %v7947_v61 = vperm.slane %v1415_v62, 0  ;;  %v1534_v62 = vmul.f32 %v7759_v38, %v7963_v57 }
 0x7da   :  { %1632 = vadd.xlane.f32.xlu2 %v1631_v51 }
 0x7db   :  { %v1523_v19 = vmul.f32 %v7955_v22, %v7947_v61 }
 0x7e1   :  { %1617 = vadd.xlane.f32.xlu1 %v1616_v53  ;;  %v1643_v53 = vsel %vm99_vm0, %v1523_v19, 0.0  ;;  %v1452_v19 = vperm.slane %v1421_v31, 0  ;;  %v1532_v31 = vmul.f32 %v7750_v23, %v1449_v20 }
 0x7e2   :  { %1641 = vadd.xlane.f32.xlu2 %v1640_v11  ;;  %1364 = vrot.lane.b32.xlu0 %v7909_v26, %s6682_s18  ;;  %v1667_v11 = vsel %vm99_vm0, %v1531_v54, 0.0 }
 0x7e3   :  { %v1537_v38 = vmul.f32 %v7774_v6, %v1452_v19 }
 0x7e9   :  { %1626 = vadd.xlane.f32.xlu1 %v1625_v43  ;;  %v7949_v51 = vpop.xlane.xlu1 %1563 }
 0x7ea   :  { %1650 = vadd.xlane.f32.xlu2 %v1649_v4  ;;  %v7972_v4 = vld [vmem:[%s10996_s1 + $0xf8] sm:$0xff] }
 0x7eb   :  { %v7944_v12 = vpop.xlane.xlu0 %1566  ;;  %v1526_v47 = vmul.f32 %v7972_v4, %v1446_v63 }
 0x7ed   :  { %v1652_v24 = vsel %vm99_vm0, %v1526_v47, 0.0 }
 0x7f1   :  { %1635 = vadd.xlane.f32.xlu1 %v1634_v16  ;;  %v7967_v43 = vpop.xlane.xlu1 %1572  ;;  %v7980_v16 = vperm.slane %v1417_v3, 0 }
 0x7f2   :  { %1659 = vadd.xlane.f32.xlu2 %v1658_v27  ;;  %v1676_v27 = vsel %vm99_vm0, %v1534_v62, 0.0 }
 0x7f3   :  { %v7965_v52 = vpop.xlane.xlu0 %1575  ;;  %v1529_v63 = vmul.f32 %v7736_v2, %v7980_v16  ;;  %v1685_v2 = vsel %vm99_vm0, %v1537_v38, 0.0 }
 0x7f5   :  { %v1661_v3 = vsel %vm99_vm0, %v1529_v63, 0.0  ;;  %v8015_v63 = vld [vmem:[%s10996_s1 + $0xa0] sm:$0xff] }
 0x7f6   :  { %v1515_v38 = vmul.f32 %v8015_v63, %v7861_v41  ;;  %v1424_v41 = vrot.slane %v7820_v44, 1 }
 0x7f9   :  { %1644 = vadd.xlane.f32.xlu1 %v1643_v53  ;;  %v7987_v8 = vpop.xlane.xlu1 %1581  ;;  %v1422_v53 = vrot.slane %v7909_v26, 6 }
 0x7fa   :  { %1668 = vadd.xlane.f32.xlu2 %v1667_v11  ;;  %v7994_v11 = vld [vmem:[%s10996_s1 + $0x88] sm:$0xff] }
 0x7fb   :  { %v7983_v54 = vpop.xlane.xlu0 %1584  ;;  %v1512_v47 = vmul.f32 %v7994_v11, %v1439_v33  ;;  %v8001_v62 = vperm.slane %v1422_v53, 0  ;;  %v1670_v53 = vsel %vm99_vm0, %v1532_v31, 0.0  ;;  %v8033_v31 = vld [vmem:[%s10996_s1 + $0xb8] sm:$0xff] }
 0x7fd   :  { %v1610_v6 = vsel %vm99_vm0, %v1512_v47, 0.0  ;;  %v1619_v47 = vsel %vm99_vm0, %v1515_v38, 0.0 }
 0x801   :  { %1653 = vadd.xlane.f32.xlu1 %v1652_v24  ;;  %v1420_v24 = vrot.slane %v7909_v26, 4  ;;  %v8010_v33 = vpop.xlane.xlu1 %1590 }
 0x802   :  { %1677 = vadd.xlane.f32.xlu2 %v1676_v27  ;;  %v1540_v27 = vmul.f32 %v7789_v37, %v8001_v62  ;;  %v1455_v37 = vperm.slane %v7820_v44, 0 }
 0x803   :  { %v8008_v18 = vpop.xlane.xlu0 %1593  ;;  %v8020_v23 = vperm.slane %v1420_v24, 0  ;;  %v1518_v24 = vmul.f32 %v8033_v31, %v7912_v28  ;;  %v1423_v28 = vrot.slane %v7909_v26, 7 }
 0x804   :  { %v1694_v20 = vsel %vm99_vm0, %v1540_v27, 0.0 }
 0x809   :  { %1662 = vadd.xlane.f32.xlu1 %v1661_v3  ;;  %v1535_v3 = vmul.f32 %v7766_v50, %v8020_v23  ;;  %v8038_v38 = vpop.xlane.xlu1 %1599 }
 0x80a   :  { %1686 = vadd.xlane.f32.xlu2 %v1685_v2  ;;  %v1543_v2 = vmul.f32 %v7877_v60, %v1455_v37  ;;  %v8041_v60 = vperm.slane %v1424_v41, 0 }
 0x80b   :  { %v1679_v27 = vsel %vm99_vm0, %v1535_v3, 0.0 }
 0x80c   :  { %1611 = vadd.xlane.f32.xlu0 %v1610_v6  ;;  %v1703_v50 = vsel %vm99_vm0, %v1543_v2, 0.0  ;;  %v1546_v3 = vmul.f32 %v7896_v34, %v8041_v60  ;;  %v8055_v2 = vld [vmem:[%s10996_s1 + $0xd0] sm:$0xff] }
 0x80d   :  { %v1521_v41 = vmul.f32 %v8055_v2, %v7891_v10 }
 0x80e   :  { %v1712_v34 = vsel %vm99_vm0, %v1546_v3, 0.0 }
 0x811   :  { %1671 = vadd.xlane.f32.xlu1 %v1670_v53  ;;  %v1328_v53 = vpop.permute.xlu2 %1327 }
 0x812   :  { %1695 = vadd.xlane.f32.xlu2 %v1694_v20  ;;  %v1628_v20 = vsel %vm99_vm0, %v1518_v24, 0.0 }
 0x814   :  { %1620 = vadd.xlane.f32.xlu0 %v1619_v47  ;;  %v1538_v47 = vmul.f32 %v7781_v46, %v1452_v19  ;;  %v8060_v19 = vperm.slane %v1423_v28, 0  ;;  %v6559_v28 = vld [vmem:[%s10996_s1 + $0xe8] sm:$0xff] }
 0x815   :  { %v1524_v3 = vmul.f32 %v6559_v28, %v7947_v61 }
 0x816   :  { %v1330_v6 = vpop.permute.xlu0 %1329  ;;  %v1688_v46 = vsel %vm99_vm0, %v1538_v47, 0.0  ;;  %v1541_v10 = vmul.f32 %v7858_v30, %v8060_v19  ;;  %v1427_v47 = vrot.slane %v7820_v44, 4 }
 0x817   :  { %6075 = vmatpush.xpose.msk.msrb.mxu1 %vm99_vm0, %v1330_v6  ;;  %v1426_v6 = vrot.slane %v7820_v44, 3  ;;  %v1646_v30 = vsel %vm99_vm0, %v1524_v3, 0.0 }
 0x819   :  { %1680 = vadd.xlane.f32.xlu1 %v1679_v27  ;;  %v1458_v27 = vperm.slane %v1426_v6, 0  ;;  %v1697_v6 = vsel %vm99_vm0, %v1541_v10, 0.0  ;;  %v11030_v10 = vperm.slane %v7909_v26, 0 }
 0x81a   :  { %1704 = vadd.xlane.f32.xlu2 %v1703_v50  ;;  %v8064_v50 = vpop.xlane.xlu2 %1560 }
 0x81b   :  { %6076 = vmatpush.xpose.msk.msrb.mxu1 %vm99_vm0, %v1328_v53  ;;  %v1637_v53 = vsel %vm99_vm0, %v1521_v41, 0.0 }
 0x81c   :  { %1629 = vadd.xlane.f32.xlu0 %v1628_v20  ;;  %v1549_v20 = vmul.f32 %v7920_v59, %v1458_v27  ;;  %v1544_v59 = vmul.f32 %v7994_v11, %v1455_v37 }
 0x81e   :  { %6077 = vmatmul.msk.f32.vlgmr.msrb.gmra.mxu1 %vm99_vm0, %v7719_v56  ;;  %v1721_v41 = vsel %vm99_vm0, %v1549_v20, 0.0  ;;  %v1527_v20 = vmul.f32 %v7796_v36, %v11030_v10  ;;  %v1530_v36 = vmul.f32 %v7803_v39, %v7980_v16 }
 0x820   :  { %v1655_v37 = vsel %vm99_vm0, %v1527_v20, 0.0  ;;  %v1533_v20 = vmul.f32 %v7815_v49, %v7963_v57 }
 0x821   :  { %1689 = vadd.xlane.f32.xlu1 %v1688_v46  ;;  %v1367_v24 = vpop.permute.xlu1 %1366  ;;  %v8079_v46 = vperm.slane %v1427_v47, 0  ;;  %v1706_v47 = vsel %vm99_vm0, %v1544_v59, 0.0 }
 0x822   :  { %1713 = vadd.xlane.f32.xlu2 %v1712_v34  ;;  %6079 = vmatpush.xpose.msk.msrb.mxu2 %vm99_vm0, %v1367_v24  ;;  %v1425_v24 = vrot.slane %v7820_v44, 2  ;;  %v8084_v34 = vpop.xlane.xlu2 %1569 }
 0x823   :  { %v1552_v61 = vmul.f32 %v7936_v42, %v8079_v46 }
 0x824   :  { %1638 = vadd.xlane.f32.xlu0 %v1637_v53  ;;  %v1429_v53 = vrot.slane %v7820_v44, 6 }
 0x825   :  { %v1730_v3 = vsel %vm99_vm0, %v1552_v61, 0.0 }
 0x826   :  { %6078 = vmatmul.msk.f32.gmra.mxu1 %vm99_vm0, %v7808_v0  ;;  %v1461_v11 = vperm.slane %v1429_v53, 0  ;;  %v1664_v53 = vsel %vm99_vm0, %v1530_v36, 0.0 }
 0x828   :  { %v1555_v42 = vmul.f32 %v7955_v22, %v1461_v11  ;;  %v1428_v22 = vrot.slane %v7820_v44, 5 }
 0x829   :  { %1698 = vadd.xlane.f32.xlu1 %v1697_v6  ;;  %v1457_v6 = vperm.slane %v1425_v24, 0 }
 0x82a   :  { %1722 = vadd.xlane.f32.xlu2 %v1721_v41  ;;  %v8098_v1 = vpop.xlane.xlu2 %1578  ;;  %v1739_v24 = vsel %vm99_vm0, %v1555_v42, 0.0  ;;  %v1460_v16 = vperm.slane %v1428_v22, 0  ;;  %v1556_v42 = vmul.f32 %v6559_v28, %v1461_v11  ;;  %v1545_v11 = vmul.f32 %v7850_v55, %v8041_v60 }
 0x82b   :  { %v1547_v41 = vmul.f32 %v8015_v63, %v1457_v6  ;;  %v1550_v63 = vmul.f32 %v8033_v31, %v1458_v27  ;;  %v1551_v22 = vmul.f32 %v7885_v21, %v8079_v46 }
 0x82c   :  { %1647 = vadd.xlane.f32.xlu0 %v1646_v30  ;;  %v1430_v30 = vrot.slane %v7820_v44, 7  ;;  %v1553_v31 = vmul.f32 %v8055_v2, %v1460_v16  ;;  %v1742_v36 = vsel %vm99_vm0, %v1556_v42, 0.0 }
 0x82d   :  { %v1715_v59 = vsel %vm99_vm0, %v1547_v41, 0.0  ;;  %v1724_v39 = vsel %vm99_vm0, %v1550_v63, 0.0  ;;  %v1727_v60 = vsel %vm99_vm0, %v1551_v22, 0.0 }
 0x82e   :  { %v1462_v61 = vperm.slane %v1430_v30, 0  ;;  %v1733_v27 = vsel %vm99_vm0, %v1553_v31, 0.0  ;;  %v1539_v30 = vmul.f32 %v7834_v58, %v8001_v62 }
 0x830   :  { %v1558_v10 = vmul.f32 %v7972_v4, %v1462_v61  ;;  %v1536_v4 = vmul.f32 %v7825_v35, %v8020_v23  ;;  %v1691_v2 = vsel %vm99_vm0, %v1539_v30, 0.0  ;;  %v1830_v30 = vperm.slane %v7965_v52, %v7258_v5 }
 0x831   :  { %1707 = vadd.xlane.f32.xlu1 %v1706_v47 }
 0x832   :  { %1731 = vadd.xlane.f32.xlu2 %v1730_v3  ;;  %v8111_v47 = vpop.xlane.xlu2 %1587  ;;  %v1748_v3 = vsel %vm99_vm0, %v1558_v10, 0.0  ;;  %v1682_v57 = vsel %vm99_vm0, %v1536_v4, 0.0 }
 0x834   :  { %1656 = vadd.xlane.f32.xlu0 %v1655_v37  ;;  %v1673_v37 = vsel %vm99_vm0, %v1533_v20, 0.0  ;;  %v1554_v20 = vmul.f32 %v7903_v32, %v1460_v16  ;;  %v1827_v32 = vperm.slane %v8084_v34, %v7258_v5  ;;  %v1826_v16 = vperm.slane %v7944_v12, %v7255_v7 }
 0x835   :  { %v1836_v34 = vperm.slane %v8111_v47, %v7258_v5 }
 0x839   :  { %1716 = vadd.xlane.f32.xlu1 %v1715_v59  ;;  %v1542_v59 = vmul.f32 %v7842_v17, %v8060_v19  ;;  %v1548_v19 = vmul.f32 %v7867_v14, %v1457_v6  ;;  %v1736_v14 = vsel %vm99_vm0, %v1554_v20, 0.0 }
 0x83a   :  { %1740 = vadd.xlane.f32.xlu2 %v1739_v24  ;;  %v8119_v49 = vpop.xlane.xlu2 %1596  ;;  %v1709_v24 = vsel %vm99_vm0, %v1545_v11, 0.0 }
 0x83b   :  { %v1700_v28 = vsel %vm99_vm0, %v1542_v59, 0.0  ;;  %v1718_v63 = vsel %vm99_vm0, %v1548_v19, 0.0  ;;  %v1838_v19 = vperm.slane %v8010_v33, %v7255_v7 }
 0x83c   :  { %1665 = vadd.xlane.f32.xlu0 %v1664_v53 }
 0x841   :  { %1725 = vadd.xlane.f32.xlu1 %v1724_v39  ;;  %v8122_v41 = vpop.xlane.xlu0 %1602 }
 0x842   :  { %1749 = vadd.xlane.f32.xlu2 %v1748_v3  ;;  %v8128_v23 = vpop.xlane.xlu2 %1605  ;;  %v1844_v11 = vperm.slane %v8122_v41, %v7255_v7 }
 0x844   :  { %1674 = vadd.xlane.f32.xlu0 %v1673_v37  ;;  %v1557_v37 = vmul.f32 %v7927_v15, %v1462_v61  ;;  %v1824_v15 = vperm.slane %v7949_v51, %v7258_v5  ;;  %v1828_v61 = vsel %vm650_vm1, %v1827_v32, %v1826_v16  ;;  %v1829_v51 = vperm.slane %v7967_v43, %v7255_v7 }
 0x845   :  { %v1841_v43 = vperm.slane %v8119_v49, %v7255_v7  ;;  %v1845_v49 = vperm.slane %v8128_v23, %v7258_v5 }
 0x846   :  { %v1745_v21 = vsel %vm99_vm0, %v1557_v37, 0.0  ;;  %v1831_v47 = vsel %vm650_vm1, %v1830_v30, %v1829_v51 }
 0x849   :  { %1734 = vadd.xlane.f32.xlu1 %v1733_v27  ;;  %v1823_v27 = vperm.slane %v8064_v50, %v7255_v7  ;;  %v1833_v50 = vperm.slane %v7987_v8, %v7258_v5  ;;  %v1839_v8 = vperm.slane %v8008_v18, %v7258_v5 }
 0x84a   :  { %v8138_v62 = vpop.xlane.xlu2 %1614 }
 0x84b   :  { %v1840_v33 = vsel %vm650_vm1, %v1839_v8, %v1838_v19  ;;  %v1850_v23 = vperm.slane %v8138_v62, %v7255_v7 }
 0x84c   :  { %1683 = vadd.xlane.f32.xlu0 %v1682_v57  ;;  %v8136_v58 = vpop.xlane.xlu1 %1608  ;;  %v1832_v57 = vperm.slane %v8098_v1, %v7255_v7  ;;  %v1835_v1 = vperm.slane %v7983_v54, %v7255_v7 }
 0x84e   :  { %v1834_v52 = vsel %vm650_vm1, %v1833_v50, %v1832_v57  ;;  %v1837_v59 = vsel %vm650_vm1, %v1836_v34, %v1835_v1 }
 0x851   :  { %1743 = vadd.xlane.f32.xlu1 %v1742_v36  ;;  %v1825_v36 = vsel %vm650_vm1, %v1824_v15, %v1823_v27 }
 0x852   :  { %v8148_v53 = vpop.xlane.xlu2 %1623 }
 0x854   :  { %1692 = vadd.xlane.f32.xlu0 %v1691_v2  ;;  %v1365_v35 = vpop.permute.xlu0 %1364  ;;  %v8145_v17 = vpop.xlane.xlu1 %1617  ;;  %v1919_v2 = vsel %vm745_vm2, %v1828_v61, %v1825_v36 }
 0x855   :  { %6080 = vmatpush.xpose.msk.msrb.mxu2 %vm99_vm0, %v1365_v35  ;;  %v1851_v41 = vperm.slane %v8145_v17, %v7258_v5 }
 0x857   :  { %v1852_v16 = vsel %vm650_vm1, %v1851_v41, %v1850_v23 }
 0x858   :  { %6081 = vmatmul.msk.f32.vlgmr.msrb.gmra.mxu2 %vm99_vm0, %v7909_v26 }
 0x85a   :  { %v8155_v55 = vpop.xlane.xlu2 %1632 }
 0x85b   :  { %v1859_v51 = vperm.slane %v8155_v55, %v7255_v7 }
 0x85c   :  { %1701 = vadd.xlane.f32.xlu0 %v1700_v28  ;;  %v8153_v10 = vpop.xlane.xlu1 %1626  ;;  %v1920_v28 = vsel %vm747_vm3, %v1831_v47, %v1919_v2 }
 0x85d   :  { %v1921_v54 = vsel %vm749_vm4, %v1834_v52, %v1920_v28 }
 0x85e   :  { %v1922_v18 = vsel %vm751_vm5, %v1837_v59, %v1921_v54 }
 0x85f   :  { %v1923_v32 = vsel %vm11013_vm6, %v1840_v33, %v1922_v18 }
 0x860   :  { %6082 = vmatmul.msk.f32.gmra.mxu2 %vm99_vm0, %v7820_v44 }
 0x862   :  { %v8162_v6 = vpop.xlane.xlu2 %1641 }
 0x864   :  { %1710 = vadd.xlane.f32.xlu0 %v1709_v24  ;;  %v8159_v39 = vpop.xlane.xlu1 %1635 }
 0x86a   :  { %v8168_v31 = vpop.xlane.xlu2 %1650 }
 0x86b   :  { %v1868_v55 = vperm.slane %v8168_v31, %v7255_v7 }
 0x86c   :  { %1719 = vadd.xlane.f32.xlu0 %v1718_v63  ;;  %v8166_v46 = vpop.xlane.xlu1 %1644  ;;  %v1842_v63 = vperm.slane %v8038_v38, %v7258_v5 }
 0x86e   :  { %v1843_v38 = vsel %vm650_vm1, %v1842_v63, %v1841_v43 }
 0x86f   :  { %v1924_v61 = vsel %vm11031_vm7, %v1843_v38, %v1923_v32 }
 0x872   :  { %v8195_v35 = vpop.xlane.xlu2 %1659 }
 0x874   :  { %1728 = vadd.xlane.f32.xlu0 %v1727_v60  ;;  %v8181_v42 = vpop.xlane.xlu1 %1653  ;;  %v1847_v60 = vperm.slane %v8136_v58, %v7255_v7  ;;  %v1856_v58 = vperm.slane %v8153_v10, %v7255_v7  ;;  %v1860_v10 = vperm.slane %v8159_v39, %v7258_v5 }
 0x875   :  { %v1869_v39 = vperm.slane %v8181_v42, %v7258_v5 }
 0x876   :  { %v1861_v59 = vsel %vm650_vm1, %v1860_v10, %v1859_v51 }
 0x877   :  { %v1870_v19 = vsel %vm650_vm1, %v1869_v39, %v1868_v55 }
 0x87a   :  { %v8237_v27 = vpop.xlane.xlu2 %1668 }
 0x87c   :  { %1737 = vadd.xlane.f32.xlu0 %v1736_v14  ;;  %v8226_v37 = vpop.xlane.xlu1 %1662 }
 0x87f   :  { %v1612_v3 = vpop.xlane.xlu0 %1611 }
 0x880   :  { %v1848_v24 = vperm.slane %v1612_v3, %v7258_v5  ;;  %v1854_v3 = vperm.slane %v8148_v53, %v7258_v5 }
 0x882   :  { %v1849_v17 = vsel %vm650_vm1, %v1848_v24, %v1847_v60 }
 0x883   :  { %v1926_v57 = vsel %vm745_vm2, %v1852_v16, %v1849_v17 }
 0x884   :  { %1746 = vadd.xlane.f32.xlu0 %v1745_v21  ;;  %v1846_v21 = vsel %vm650_vm1, %v1845_v49, %v1844_v11  ;;  %v1672_v43 = vpop.xlane.xlu1 %1671 }
 0x885   :  { %v1925_v34 = vsel %vm11032_vm14, %v1846_v21, %v1924_v61 }
 0x887   :  { %v1621_v4 = vpop.xlane.xlu0 %1620 }
 0x888   :  { %v1853_v22 = vperm.slane %v1621_v4, %v7255_v7 }
 0x88a   :  { %v1855_v4 = vsel %vm650_vm1, %v1854_v3, %v1853_v22  ;;  %v1678_v22 = vpop.xlane.xlu2 %1677 }
 0x88b   :  { %v1927_v50 = vsel %vm747_vm3, %v1855_v4, %v1926_v57  ;;  %v1872_v57 = vperm.slane %v8195_v35, %v7258_v5  ;;  %v1881_v51 = vperm.slane %v1678_v22, %v7258_v5 }
 0x88c   :  { %v1681_v33 = vpop.xlane.xlu1 %1680 }
 0x88d   :  { %v1883_v39 = vperm.slane %v1681_v33, %v7255_v7 }
 0x88f   :  { %v1630_v12 = vpop.xlane.xlu0 %1629 }
 0x890   :  { %v1857_v20 = vperm.slane %v1630_v12, %v7258_v5  ;;  %v1863_v12 = vperm.slane %v8162_v6, %v7258_v5  ;;  %v1865_v6 = vperm.slane %v8166_v46, %v7255_v7 }
 0x892   :  { %v1858_v53 = vsel %vm650_vm1, %v1857_v20, %v1856_v58  ;;  %v1687_v38 = vpop.xlane.xlu2 %1686 }
 0x893   :  { %v1928_v1 = vsel %vm749_vm4, %v1858_v53, %v1927_v50  ;;  %v1878_v50 = vperm.slane %v1672_v43, %v7258_v5 }
 0x894   :  { %v1929_v28 = vsel %vm751_vm5, %v1861_v59, %v1928_v1  ;;  %v1690_v23 = vpop.xlane.xlu1 %1689 }
 0x897   :  { %v1639_v14 = vpop.xlane.xlu0 %1638 }
 0x898   :  { %v1862_v15 = vperm.slane %v1639_v14, %v7255_v7 }
 0x89a   :  { %v1864_v2 = vsel %vm650_vm1, %v1863_v12, %v1862_v15  ;;  %v1696_v17 = vpop.xlane.xlu2 %1695 }
 0x89b   :  { %v1356_v62 = vpop.f32.mrf.mxu1  ;;  %v1930_v11 = vsel %vm11013_vm6, %v1864_v2, %v1929_v28 }
 0x89c   :  { %v1399_v30 = vsel %vm7339_vm9, %v1356_v62, 0.0  ;;  %v1699_v4 = vpop.xlane.xlu1 %1698  ;;  %v1874_v62 = vperm.slane %v8226_v37, %v7255_v7  ;;  %v1877_v37 = vperm.slane %v8237_v27, %v7255_v7  ;;  %v1890_v27 = vperm.slane %v1696_v17, %v7258_v5 }
 0x89d   :  { %vm1751_vm15 = vcmp.ne.f32.partialorder %v1399_v30, 0.0  ;;  %v1951_v36 = vadd.f32 %v1925_v34, %v1399_v30 }
 0x89e   :  { %vm1755_vm11 = vmand %vm7339_vm9, %vm1751_vm15 }
 0x89f   :  { %v1955_v52 = vmul.f32 0.17677669, %v1951_v36  ;;  %v1648_v47 = vpop.xlane.xlu0 %1647 }
 0x8a0   :  { %v1866_v8 = vperm.slane %v1648_v47, %v7258_v5 }
 0x8a1   :  { %v8266_v42 = vsel %vm1755_vm11, %v1955_v52, -1e+09  ;;  %v1879_v52 = vsel %vm650_vm1, %v1878_v50, %v1877_v37 }
 0x8a2   :  { %v1867_v54 = vsel %vm650_vm1, %v1866_v8, %v1865_v6  ;;  %v1963_v46 = vsel %vm11033_vm12, %v8266_v42, -inf  ;;  %v8283_v32 = vpop.xlane.xlu2 %1704  ;;  %v1887_v8 = vperm.slane %v1690_v23, %v7258_v5 }
 0x8a3   :  { %v1359_v24 = vpop.f32.mrf.mxu1  ;;  %v1931_v63 = vsel %vm11031_vm7, %v1867_v54, %v1930_v11  ;;  %1964 = vmax.xlane.f32.xlu1 %v1963_v46  ;;  %v1886_v54 = vperm.slane %v1687_v38, %v7255_v7  ;;  %v1892_v11 = vperm.slane %v1699_v4, %v7255_v7 }
 0x8a4   :  { %v1400_v31 = vsel %vm7378_vm13, %v1359_v24, 0.0  ;;  %v1932_v18 = vsel %vm11032_vm14, %v1870_v19, %v1931_v63  ;;  %v8285_v53 = vpop.xlane.xlu1 %1707 }
 0x8a5   :  { %vm1752_vm15 = vcmp.ne.f32.partialorder %v1400_v31, 0.0  ;;  %v1952_v49 = vadd.f32 %v1932_v18, %v1400_v31  ;;  %v1888_v31 = vsel %vm650_vm1, %v1887_v8, %v1886_v54 }
 0x8a6   :  { %vm1756_vm11 = vmand %vm7397_vm10, %vm1752_vm15 }
 0x8a7   :  { %v1956_v60 = vmul.f32 0.17677669, %v1952_v49  ;;  %v1657_v41 = vpop.xlane.xlu0 %1656 }
 0x8a8   :  { %v1871_v10 = vperm.slane %v1657_v41, %v7255_v7 }
 0x8a9   :  { %v8279_v20 = vsel %vm1756_vm11, %v1956_v60, -1e+09 }
 0x8aa   :  { %v1966_v14 = vsel %vm11033_vm12, %v8279_v20, -inf  ;;  %v1714_v61 = vpop.xlane.xlu2 %1713  ;;  %v1873_v1 = vsel %vm650_vm1, %v1872_v57, %v1871_v10 }
 0x8ab   :  { %1967 = vmax.xlane.f32.xlu0 %v1966_v14  ;;  %v1899_v57 = vperm.slane %v1714_v61, %v7258_v5 }
 0x8ac   :  { %v1717_v47 = vpop.xlane.xlu1 %1716 }
 0x8af   :  { %v1666_v3 = vpop.xlane.xlu0 %1665 }
 0x8b0   :  { %v1875_v15 = vperm.slane %v1666_v3, %v7258_v5 }
 0x8b2   :  { %v1876_v30 = vsel %vm650_vm1, %v1875_v15, %v1874_v62  ;;  %v1723_v46 = vpop.xlane.xlu2 %1722 }
 0x8b3   :  { %v1933_v35 = vsel %vm745_vm2, %v1876_v30, %v1873_v1  ;;  %v1896_v30 = vperm.slane %v8285_v53, %v7258_v5 }
 0x8b4   :  { %v1934_v55 = vsel %vm747_vm3, %v1879_v52, %v1933_v35  ;;  %v1726_v38 = vpop.xlane.xlu1 %1725 }
 0x8b7   :  { %v1675_v58 = vpop.xlane.xlu0 %1674 }
 0x8b8   :  { %v1880_v34 = vperm.slane %v1675_v58, %v7255_v7 }
 0x8ba   :  { %v1882_v2 = vsel %vm650_vm1, %v1881_v51, %v1880_v34  ;;  %v1732_v58 = vpop.xlane.xlu2 %1731  ;;  %v1901_v34 = vperm.slane %v1717_v47, %v7255_v7 }
 0x8bb   :  { %v1935_v43 = vsel %vm749_vm4, %v1882_v2, %v1934_v55  ;;  %v1908_v53 = vperm.slane %v1732_v58, %v7258_v5  ;;  %v1904_v2 = vperm.slane %v1723_v46, %v7255_v7 }
 0x8bf   :  { %v1684_v21 = vpop.xlane.xlu0 %1683 }
 0x8c0   :  { %v1884_v36 = vperm.slane %v1684_v21, %v7258_v5 }
 0x8c2   :  { %v1885_v59 = vsel %vm650_vm1, %v1884_v36, %v1883_v39  ;;  %v1741_v62 = vpop.xlane.xlu2 %1740  ;;  %v1905_v39 = vperm.slane %v1726_v38, %v7258_v5 }
 0x8c3   :  { %v1936_v24 = vsel %vm751_vm5, %v1885_v59, %v1935_v43 }
 0x8c4   :  { %v1937_v22 = vsel %vm11013_vm6, %v1888_v31, %v1936_v24 }
 0x8c7   :  { %v1693_v16 = vpop.xlane.xlu0 %1692 }
 0x8c8   :  { %v1889_v6 = vperm.slane %v1693_v16, %v7255_v7  ;;  %v1735_v16 = vpop.xlane.xlu1 %1734 }
 0x8ca   :  { %v1891_v63 = vsel %vm650_vm1, %v1890_v27, %v1889_v6  ;;  %v1906_v6 = vsel %vm650_vm1, %v1905_v39, %v1904_v2  ;;  %v1750_v55 = vpop.xlane.xlu2 %1749 }
 0x8cb   :  { %v1938_v60 = vsel %vm11031_vm7, %v1891_v63, %v1937_v22  ;;  %v6295_v22 = vpack.i.bf16 %v7719_v56, %v7808_v0 }
 0x8cf   :  { %v1702_v12 = vpop.xlane.xlu0 %1701 }
 0x8d0   :  { %v1893_v28 = vperm.slane %v1702_v12, %v7258_v5  ;;  %v1895_v12 = vperm.slane %v8283_v32, %v7255_v7  ;;  %v1910_v32 = vperm.slane %v1735_v16, %v7255_v7  ;;  %v1744_v52 = vpop.xlane.xlu1 %1743 }
 0x8d2   :  { %v1894_v18 = vsel %vm650_vm1, %v1893_v28, %v1892_v11  ;;  %v1897_v37 = vsel %vm650_vm1, %v1896_v30, %v1895_v12  ;;  %v1914_v28 = vperm.slane %v1744_v52, %v7258_v5  ;;  %v1913_v11 = vperm.slane %v1741_v62, %v7255_v7 }
 0x8d3   :  { %v1939_v14 = vsel %vm11032_vm14, %v1894_v18, %v1938_v60 }
 0x8d4   :  { %v1915_v31 = vsel %vm650_vm1, %v1914_v28, %v1913_v11  ;;  %v6090_v28 = vld [vmem:[%s10999_s4 + $0x38] sm:$0xff] }
 0x8d5   :  { %2107 = vmatpush.msra.mxu1 %v6090_v28 }
 0x8d7   :  { %v1711_v19 = vpop.xlane.xlu0 %1710 }
 0x8d8   :  { %v1898_v15 = vperm.slane %v1711_v19, %v7255_v7  ;;  %v1917_v19 = vperm.slane %v1750_v55, %v7258_v5 }
 0x8da   :  { %v1900_v50 = vsel %vm650_vm1, %v1899_v57, %v1898_v15  ;;  %v6300_v57 = vpack.i.bf16 %v7909_v26, %v7820_v44 }
 0x8db   :  { %v1393_v49 = vpop.f32.mrf.mxu2  ;;  %v1940_v35 = vsel %vm745_vm2, %v1900_v50, %v1897_v37 }
 0x8dc   :  { %v1401_v41 = vsel %vm7339_vm9, %v1393_v49, 0.0 }
 0x8dd   :  { %vm1753_vm15 = vcmp.ne.f32.partialorder %v1401_v41, 0.0  ;;  %v1953_v33 = vadd.f32 %v1939_v14, %v1401_v41 }
 0x8de   :  { %vm1757_vm11 = vmand %vm7339_vm9, %vm1753_vm15 }
 0x8df   :  { %v1957_v3 = vmul.f32 0.17677669, %v1953_v33  ;;  %v1720_v23 = vpop.xlane.xlu0 %1719 }
 0x8e0   :  { %v1902_v10 = vperm.slane %v1720_v23, %v7258_v5 }
 0x8e1   :  { %v8325_v17 = vsel %vm1757_vm11, %v1957_v3, -1e+09 }
 0x8e2   :  { %v1969_v21 = vsel %vm11033_vm12, %v8325_v17, -inf  ;;  %v1903_v36 = vsel %vm650_vm1, %v1902_v10, %v1901_v34 }
 0x8e3   :  { %1970 = vmax.xlane.f32.xlu2 %v1969_v21  ;;  %v1941_v47 = vsel %vm747_vm3, %v1903_v36, %v1940_v35  ;;  %v1396_v43 = vpop.f32.mrf.mxu2 }
 0x8e4   :  { %v1942_v27 = vsel %vm749_vm4, %v1906_v6, %v1941_v47  ;;  %v1402_v18 = vsel %vm7378_vm13, %v1396_v43, 0.0  ;;  %v6088_v43 = vld [vmem:[%s10999_s4 + $0x28] sm:$0xff] }
 0x8e5   :  { %vm1754_vm15 = vcmp.ne.f32.partialorder %v1402_v18, 0.0 }
 0x8e6   :  { %vm1758_vm11 = vmand %vm7397_vm10, %vm1754_vm15 }
 0x8e7   :  { %v1729_v4 = vpop.xlane.xlu0 %1728 }
 0x8e8   :  { %v1907_v51 = vperm.slane %v1729_v4, %v7255_v7 }
 0x8ea   :  { %v1909_v59 = vsel %vm650_vm1, %v1908_v53, %v1907_v51 }
 0x8eb   :  { %v1943_v54 = vsel %vm751_vm5, %v1909_v59, %v1942_v27  ;;  %v6089_v27 = vld [vmem:[%s10999_s4 + $0x30] sm:$0xff] }
 0x8ec   :  { %2108 = vmatpush.msra.mxu1 %v6089_v27 }
 0x8ee   :  { %2109 = vmatpush.msra.mxu1 %v6088_v43 }
 0x8ef   :  { %v1738_v1 = vpop.xlane.xlu0 %1737 }
 0x8f0   :  { %v1911_v61 = vperm.slane %v1738_v1, %v7258_v5 }
 0x8f2   :  { %v1912_v8 = vsel %vm650_vm1, %v1911_v61, %v1910_v32 }
 0x8f3   :  { %v1944_v46 = vsel %vm11013_vm6, %v1912_v8, %v1943_v54 }
 0x8f4   :  { %v1945_v60 = vsel %vm11031_vm7, %v1915_v31, %v1944_v46  ;;  %vm11034_vm7 = vmmov %vm11033_vm12 }
 0x8f5   :  { %vm11036_vm15 = vmmov %vm11034_vm7 }
 0x8f7   :  { %v1747_v24 = vpop.xlane.xlu0 %1746 }
 0x8f8   :  { %v1916_v63 = vperm.slane %v1747_v24, %v7255_v7  ;;  %v6087_v24 = vld [vmem:[%s10999_s4 + $0x20] sm:$0xff] }
 0x8f9   :  { %2110 = vmatpush.msra.mxu1 %v6087_v24 }
 0x8fa   :  { %v1918_v49 = vsel %vm650_vm1, %v1917_v19, %v1916_v63 }
 0x8fb   :  { %6296 = vrot.lane.b32.xlu2 %v6295_v22, %s6683_s27  ;;  %v1946_v41 = vsel %vm11032_vm14, %v1918_v49, %v1945_v60  ;;  %vm11035_vm14 = vmmov %vm11034_vm7  ;;  %v8403_v22 = vld [vmem:[%s11003_s8 + $0x8] sm:$0x3f] }
 0x8fc   :  { %v1954_v14 = vadd.f32 %v1946_v41, %v1402_v18  ;;  %v2082_v49 = vperm.slane %v8403_v22, 0 }
 0x8fe   :  { %v1958_v33 = vmul.f32 0.17677669, %v1954_v14 }
 0x900   :  { %v1962_v38 = vsel %vm1758_vm11, %v1958_v33, -1e+09  ;;  %vm11037_vm11 = vmmov %vm11034_vm7 }
 0x901   :  { %v1972_v3 = vsel %vm11033_vm12, %v1962_v38, -inf  ;;  %vm11038_vm12 = vmmov %vm11034_vm7 }
 0x902   :  { %1973 = vmax.xlane.f32.xlu1 %v1972_v3 }
 0x916   :  { %v1965_v23 = vpop.xlane.xlu1 %1964 }
 0x917   :  { %v1975_v56 = vsub.f32 %v8266_v42, %v1965_v23 }
 0x919   :  { %v1979_v0 = vmul.f32 1.442695, %v1975_v56 }
 0x91b   :  { %6380 = vpow2.f32 %v1979_v0 }
 0x91e   :  { %v1968_v58 = vpop.xlane.xlu0 %1967 }
 0x91f   :  { %v1976_v21 = vsub.f32 %v8279_v20, %v1968_v58 }
 0x921   :  { %v6381_v4 = vpop.eup %6380  ;;  %v1981_v16 = vmul.f32 1.442695, %v1976_v21 }
 0x922   :  { %v1987_v15 = vsel %vm11034_vm7, %v6381_v4, 0.0 }
 0x923   :  { %6382 = vpow2.f32 %v1981_v16  ;;  %1988 = vadd.xlane.f32.xlu0 %v1987_v15 }
 0x929   :  { %v6383_v62 = vpop.eup %6382 }
 0x92a   :  { %v1990_v10 = vsel %vm11035_vm14, %v6383_v62, 0.0  ;;  %vm11039_vm14 = vmmov %vm11034_vm7 }
 0x92b   :  { %1991 = vadd.xlane.f32.xlu1 %v1990_v10 }
 0x944   :  { %6301 = vrot.lane.b32.xlu1 %v6300_v57, %s6683_s27  ;;  %v11041_v57 = vld [vmem:[#allocation5_spill] sm:$0xff] }
 0x956   :  { %v1971_v42 = vpop.xlane.xlu2 %1970 }
 0x957   :  { %v1977_v30 = vsub.f32 %v8325_v17, %v1971_v42 }
 0x959   :  { %v1983_v34 = vmul.f32 1.442695, %v1977_v30 }
 0x95b   :  { %6384 = vpow2.f32 %v1983_v34 }
 0x95e   :  { %v6297_v20 = vpop.permute.xlu2 %6296 }
 0x95f   :  { %v6298_v12 = vunpack.i.l.bf16 %v6297_v20  ;;  %v6299_v36 = vunpack.i.h.bf16 %v6297_v20 }
 0x961   :  { %v6385_v50 = vpop.eup %6384  ;;  %2033 = vmatpush.msrb.mxu3 %v6298_v12 }
 0x962   :  { %v1993_v51 = vsel %vm11036_vm15, %v6385_v50, 0.0  ;;  %vm11040_vm15 = vmmov %vm11034_vm7 }
 0x963   :  { %2034 = vmatpush.msrb.mxu3 %v6299_v36  ;;  %1994 = vadd.xlane.f32.xlu0 %v1993_v51 }
 0x975   :  { %v1974_v1 = vpop.xlane.xlu1 %1973 }
 0x976   :  { %v1978_v37 = vsub.f32 %v1962_v38, %v1974_v1 }
 0x978   :  { %v1985_v39 = vmul.f32 1.442695, %v1978_v37 }
 0x97a   :  { %6386 = vpow2.f32 %v1985_v39 }
 0x980   :  { %v6387_v44 = vpop.eup %6386 }
 0x981   :  { %v1996_v26 = vsel %vm11037_vm11, %v6387_v44, 0.0 }
 0x982   :  { %1997 = vadd.xlane.f32.xlu0 %v1996_v26 }
 0x996   :  { %v1989_v17 = vpop.xlane.xlu0 %1988 }
 0x997   :  { %6388 = vrcp.f32 %v1989_v17 }
 0x99d   :  { %v6389_v61 = vpop.eup %6388 }
 0x99e   :  { %v2003_v53 = vmul.f32 %v6389_v61, %v6381_v4  ;;  %v1992_v35 = vpop.xlane.xlu1 %1991 }
 0x99f   :  { %6390 = vrcp.f32 %v1992_v35  ;;  %v6098_v35 = vld [vmem:[%s11000_s5 + $0x38] sm:$0xff] }
 0x9a0   :  { %6083 = vmatmul.msk.f32.vlgmr.msrb.gmra.mxu3 %vm11038_vm12, %v2003_v53  ;;  %2260 = vmatpush.msra.mxu2 %v6098_v35 }
 0x9a5   :  { %v6391_v2 = vpop.eup %6390 }
 0x9a6   :  { %v2004_v32 = vmul.f32 %v6391_v2, %v6383_v62  ;;  %v6097_v2 = vld [vmem:[%s11000_s5 + $0x30] sm:$0xff] }
 0x9a7   :  { %2261 = vmatpush.msra.mxu2 %v6097_v2 }
 0x9a8   :  { %6084 = vmatmul.msk.f32.gmra.mxu3 %vm11034_vm7, %v2004_v32  ;;  %v6096_v32 = vld [vmem:[%s11000_s5 + $0x28] sm:$0xff] }
 0x9a9   :  { %2262 = vmatpush.msra.mxu2 %v6096_v32 }
 0x9b6   :  { %v6302_v52 = vpop.permute.xlu1 %6301 }
 0x9b7   :  { %v6303_v47 = vunpack.i.l.bf16 %v6302_v52  ;;  %v6304_v59 = vunpack.i.h.bf16 %v6302_v52 }
 0x9b9   :  { %2068 = vmatpush.msra.mxu0 %v6303_v47  ;;  %v6095_v47 = vld [vmem:[%s11000_s5 + $0x20] sm:$0xff] }
 0x9ba   :  { %2263 = vmatpush.msra.mxu2 %v6095_v47 }
 0x9bb   :  { %2069 = vmatpush.msra.mxu0 %v6304_v59 }
 0x9d6   :  { %v1995_v6 = vpop.xlane.xlu0 %1994 }
 0x9d7   :  { %6392 = vrcp.f32 %v1995_v6 }
 0x9dd   :  { %v6393_v8 = vpop.eup %6392 }
 0x9de   :  { %v2005_v55 = vmul.f32 %v6393_v8, %v6385_v50 }
 0x9e0   :  { %6085 = vmatmul.msk.f32.vlgmr.msra.gmra.mxu0 %vm11039_vm14, %v2005_v55 }
 0x9f5   :  { %v1998_v54 = vpop.xlane.xlu0 %1997 }
 0x9f6   :  { %6394 = vrcp.f32 %v1998_v54 }
 0x9fc   :  { %v6395_v11 = vpop.eup %6394 }
 0x9fd   :  { %v2006_v46 = vmul.f32 %v6395_v11, %v6387_v44 }
 0x9ff   :  { %6086 = vmatmul.msk.f32.gmra.mxu0 %vm11040_vm15, %v2006_v46 }
 0xa23   :  { %v2036_v19 = vpop.f32.mrf.mxu3 }
 0xa24   :  { %6091 = vmatmul.msk.f32.vlgmr.msra.gmra.mxu1 %vm99_vm0, %v2036_v19 }
 0xa2b   :  { %v2039_v63 = vpop.f32.mrf.mxu3 }
 0xa2c   :  { %6092 = vmatmul.msk.f32.gmra.mxu1 %vm99_vm0, %v2039_v63 }
 0xa5d   :  { %v2071_v31 = vpop.f32.mrf.mxu0 }
 0xa5e   :  { %6093 = vmatmul.msk.f32.gmra.mxu1 %vm99_vm0, %v2071_v31  ;;  %v8445_v31 = vperm.slane %v8403_v22, 1 }
 0xa7c   :  { %v2074_v18 = vpop.f32.mrf.mxu0 }
 0xa7d   :  { %6094 = vmatmul.msk.f32.gmra.mxu1 %vm99_vm0, %v2074_v18 }
 0xaa1   :  { %v2112_v60 = vpop.f32.mrf.mxu1 }
 0xaa2   :  { %v2113_v41 = vadd.f32 %v2112_v60, %v2082_v49 }
 0xaa4   :  { %v2124_v14 = vadd.f32 %v2113_v41, %v7693_v13  ;;  %v2221_v41 = vperm.slane %v8403_v22, 2 }
 0xaa6   :  { %v2128_v33 = vsel %vm99_vm0, %v2124_v14, 0.0 }
 0xaa7   :  { %2129 = vadd.xlane.f32.xlu0 %v2128_v33 }
 0xaa9   :  { %v2115_v38 = vpop.f32.mrf.mxu1 }
 0xaaa   :  { %v2116_v3 = vadd.f32 %v2115_v38, %v2082_v49 }
 0xaac   :  { %v2125_v23 = vadd.f32 %v2116_v3, %v7698_v29 }
 0xaae   :  { %v2131_v56 = vsel %vm99_vm0, %v2125_v23, 0.0 }
 0xaaf   :  { %2132 = vadd.xlane.f32.xlu2 %v2131_v56 }
 0xadb   :  { %v2118_v0 = vpop.f32.mrf.mxu1 }
 0xadc   :  { %v2119_v58 = vadd.f32 %v2118_v0, %v2082_v49 }
 0xade   :  { %v2126_v21 = vadd.f32 %v2119_v58, %v7703_v25 }
 0xae0   :  { %v2134_v4 = vsel %vm99_vm0, %v2126_v21, 0.0 }
 0xae1   :  { %2135 = vadd.xlane.f32.xlu0 %v2134_v4 }
 0xafa   :  { %v2121_v16 = vpop.f32.mrf.mxu1 }
 0xafb   :  { %v2122_v15 = vadd.f32 %v2121_v16, %v2082_v49 }
 0xafd   :  { %v2127_v13 = vadd.f32 %v2122_v15, %v7709_v40 }
 0xaff   :  { %v2137_v62 = vsel %vm99_vm0, %v2127_v13, 0.0 }
 0xb00   :  { %2138 = vadd.xlane.f32.xlu0 %v2137_v62 }
 0xb1a   :  { %v2130_v10 = vpop.xlane.xlu0 %2129 }
 0xb1b   :  { %v2140_v29 = vmul.f32 %v2130_v10, %v11041_v57 }
 0xb1d   :  { %v2144_v42 = vsub.f32 %v2124_v14, %v2140_v29 }
 0xb1f   :  { %v2148_v30 = vmul.f32 %v2144_v42, %v2144_v42 }
 0xb21   :  { %v2152_v34 = vsel %vm99_vm0, %v2148_v30, 0.0 }
 0xb22   :  { %2153 = vadd.xlane.f32.xlu1 %v2152_v34  ;;  %v2133_v20 = vpop.xlane.xlu2 %2132 }
 0xb23   :  { %v2141_v25 = vmul.f32 %v2133_v20, %v11041_v57 }
 0xb25   :  { %v2145_v12 = vsub.f32 %v2125_v23, %v2141_v25 }
 0xb27   :  { %v2149_v50 = vmul.f32 %v2145_v12, %v2145_v12 }
 0xb29   :  { %v2155_v36 = vsel %vm99_vm0, %v2149_v50, 0.0  ;;  %v6111_v50 = vld [vmem:[%s11002_s7 + $0x78] sm:$0xff] }
 0xb2a   :  { %2156 = vadd.xlane.f32.xlu0 %v2155_v36  ;;  %v6110_v36 = vld [vmem:[%s11002_s7 + $0x70] sm:$0xff]  ;;  %2311 = vmatpush.msra.mxu3 %v6111_v50 }
 0xb2c   :  { %2312 = vmatpush.msra.mxu3 %v6110_v36 }
 0xb54   :  { %v2136_v40 = vpop.xlane.xlu0 %2135 }
 0xb55   :  { %v2142_v51 = vmul.f32 %v2136_v40, %v11041_v57  ;;  %v6109_v40 = vld [vmem:[%s11002_s7 + $0x68] sm:$0xff] }
 0xb56   :  { %2313 = vmatpush.msra.mxu3 %v6109_v40 }
 0xb57   :  { %v8419_v1 = vsub.f32 %v2126_v21, %v2142_v51 }
 0xb59   :  { %v2150_v37 = vmul.f32 %v8419_v1, %v8419_v1 }
 0xb5b   :  { %v2158_v39 = vsel %vm99_vm0, %v2150_v37, 0.0  ;;  %v6108_v37 = vld [vmem:[%s11002_s7 + $0x60] sm:$0xff] }
 0xb5c   :  { %2159 = vadd.xlane.f32.xlu0 %v2158_v39  ;;  %2314 = vmatpush.msra.mxu3 %v6108_v37 }
 0xb73   :  { %v2139_v44 = vpop.xlane.xlu0 %2138 }
 0xb74   :  { %v2143_v26 = vmul.f32 %v2139_v44, %v11041_v57  ;;  %v6107_v44 = vld [vmem:[%s11002_s7 + $0x58] sm:$0xff] }
 0xb75   :  { %2315 = vmatpush.msra.mxu3 %v6107_v44 }
 0xb76   :  { %v8425_v17 = vsub.f32 %v2127_v13, %v2143_v26 }
 0xb78   :  { %v2151_v61 = vmul.f32 %v8425_v17, %v8425_v17 }
 0xb7a   :  { %v2161_v53 = vsel %vm99_vm0, %v2151_v61, 0.0 }
 0xb7b   :  { %2162 = vadd.xlane.f32.xlu0 %v2161_v53 }
 0xb95   :  { %v2154_v52 = vpop.xlane.xlu1 %2153 }
 0xb96   :  { %v2164_v59 = vmul.f32 %v2154_v52, %v11041_v57 }
 0xb98   :  { %v2168_v6 = vadd.f32 1e-05, %v2164_v59 }
 0xb9a   :  { %6396 = vrsqrt.f32 %v2168_v6  ;;  %vm2178_vm12 = vweird.f32 %v2168_v6 }
 0xb9d   :  { %v2157_v8 = vpop.xlane.xlu0 %2156 }
 0xb9e   :  { %v2165_v55 = vmul.f32 %v2157_v8, %v11041_v57  ;;  %v6106_v8 = vld [vmem:[%s11002_s7 + $0x50] sm:$0xff] }
 0xb9f   :  { %2316 = vmatpush.msra.mxu3 %v6106_v8  ;;  %v6117_v8 = vld [vmem:[%s10997_s2 + $0x40] sm:$0xff] }
 0xba0   :  { %v6397_v28 = vpop.eup %6396  ;;  %v2169_v27 = vadd.f32 1e-05, %v2165_v55  ;;  %v6105_v55 = vld [vmem:[%s11002_s7 + $0x48] sm:$0xff] }
 0xba1   :  { %v2173_v43 = vmul.f32 %v6397_v28, %v2168_v6  ;;  %vm2179_vm11 = vweird.f32 %v6397_v28  ;;  %2317 = vmatpush.msra.mxu3 %v6105_v55 }
 0xba2   :  { %6398 = vrsqrt.f32 %v2169_v27  ;;  %vm2180_vm7 = vmor %vm2178_vm12, %vm2179_vm11  ;;  %vm2188_vm15 = vweird.f32 %v2169_v27 }
 0xba3   :  { %v2174_v54 = vmul.f32 %v6397_v28, %v2173_v43 }
 0xba5   :  { %v2175_v11 = vmul.f32 0.5, %v2174_v54 }
 0xba7   :  { %v2176_v46 = vsub.f32 1.5, %v2175_v11 }
 0xba8   :  { %v6399_v24 = vpop.eup %6398 }
 0xba9   :  { %v2177_v19 = vmul.f32 %v6397_v28, %v2176_v46  ;;  %v2183_v63 = vmul.f32 %v6399_v24, %v2169_v27  ;;  %vm2189_vm14 = vweird.f32 %v6399_v24 }
 0xbaa   :  { %vm2190_vm6 = vmor %vm2188_vm15, %vm2189_vm14 }
 0xbab   :  { %v2181_v18 = vsel %vm2180_vm7, %v6397_v28, %v2177_v19  ;;  %v2184_v49 = vmul.f32 %v6399_v24, %v2183_v63  ;;  %v6104_v28 = vld [vmem:[%s11002_s7 + $0x40] sm:$0xff] }
 0xbac   :  { %v2212_v60 = vmul.f32 %v2181_v18, %v2144_v42  ;;  %2318 = vmatpush.msra.mxu3 %v6104_v28 }
 0xbad   :  { %v2185_v14 = vmul.f32 0.5, %v2184_v49 }
 0xbae   :  { %v2217_v33 = vmul.f32 %v8445_v31, %v2212_v60 }
 0xbaf   :  { %v2186_v38 = vsub.f32 1.5, %v2185_v14 }
 0xbb0   :  { %v8449_v3 = vadd.f32 %v2221_v41, %v2217_v33 }
 0xbb1   :  { %v2187_v23 = vmul.f32 %v6399_v24, %v2186_v38 }
 0xbb2   :  { %6100 = vmatmul.msk.f32.vlgmr.msra.gmra.mxu2 %vm99_vm0, %v8449_v3 }
 0xbb3   :  { %v2191_v56 = vsel %vm2190_vm6, %v6399_v24, %v2187_v23 }
 0xbb4   :  { %v2213_v0 = vmul.f32 %v2191_v56, %v2145_v12 }
 0xbb6   :  { %v2218_v58 = vmul.f32 %v8445_v31, %v2213_v0 }
 0xbb8   :  { %v8454_v21 = vadd.f32 %v2221_v41, %v2218_v58 }
 0xbba   :  { %6101 = vmatmul.msk.f32.gmra.mxu2 %vm99_vm0, %v8454_v21 }
 0xbcf   :  { %v2160_v4 = vpop.xlane.xlu0 %2159 }
 0xbd0   :  { %v2166_v16 = vmul.f32 %v2160_v4, %v11041_v57 }
 0xbd2   :  { %v2170_v15 = vadd.f32 1e-05, %v2166_v16 }
 0xbd4   :  { %6400 = vrsqrt.f32 %v2170_v15  ;;  %vm2198_vm6 = vweird.f32 %v2170_v15 }
 0xbda   :  { %v6401_v13 = vpop.eup %6400 }
 0xbdb   :  { %v2193_v62 = vmul.f32 %v6401_v13, %v2170_v15  ;;  %vm2199_vm11 = vweird.f32 %v6401_v13 }
 0xbdc   :  { %vm2200_vm12 = vmor %vm2198_vm6, %vm2199_vm11 }
 0xbdd   :  { %v2194_v10 = vmul.f32 %v6401_v13, %v2193_v62 }
 0xbdf   :  { %v2195_v29 = vmul.f32 0.5, %v2194_v10 }
 0xbe1   :  { %v2196_v42 = vsub.f32 1.5, %v2195_v29 }
 0xbe3   :  { %v2197_v30 = vmul.f32 %v6401_v13, %v2196_v42 }
 0xbe5   :  { %v2201_v34 = vsel %vm2200_vm12, %v6401_v13, %v2197_v30 }
 0xbe6   :  { %v2214_v20 = vmul.f32 %v2201_v34, %v8419_v1 }
 0xbe8   :  { %v2219_v25 = vmul.f32 %v8445_v31, %v2214_v20 }
 0xbea   :  { %v8461_v12 = vadd.f32 %v2221_v41, %v2219_v25 }
 0xbec   :  { %6102 = vmatmul.msk.f32.gmra.mxu2 %vm99_vm0, %v8461_v12 }
 0xbee   :  { %v2163_v51 = vpop.xlane.xlu0 %2162 }
 0xbef   :  { %v2167_v1 = vmul.f32 %v2163_v51, %v11041_v57 }
 0xbf1   :  { %v2171_v39 = vadd.f32 1e-05, %v2167_v1 }
 0xbf3   :  { %6402 = vrsqrt.f32 %v2171_v39  ;;  %vm2208_vm14 = vweird.f32 %v2171_v39 }
 0xbf9   :  { %v6403_v26 = vpop.eup %6402 }
 0xbfa   :  { %v2203_v61 = vmul.f32 %v6403_v26, %v2171_v39  ;;  %vm2209_vm7 = vweird.f32 %v6403_v26 }
 0xbfb   :  { %vm2210_vm15 = vmor %vm2208_vm14, %vm2209_vm7 }
 0xbfc   :  { %v2204_v53 = vmul.f32 %v6403_v26, %v2203_v61 }
 0xbfe   :  { %v2205_v35 = vmul.f32 0.5, %v2204_v53 }
 0xc00   :  { %v2206_v2 = vsub.f32 1.5, %v2205_v35 }
 0xc02   :  { %v2207_v32 = vmul.f32 %v6403_v26, %v2206_v2 }
 0xc04   :  { %v2211_v52 = vsel %vm2210_vm15, %v6403_v26, %v2207_v32 }
 0xc05   :  { %v2215_v47 = vmul.f32 %v2211_v52, %v8425_v17  ;;  %v6338_v17 = vld [vmem:[%s11001_s6 + $0x1] ss:$0 sm:$0xff]  ;;  %v6120_v52 = vld [vmem:[%s10997_s2 + $0x58] sm:$0xff] }
 0xc06   :  { %2470 = vmatpush.msrb.mxu0 %v6120_v52 }
 0xc07   :  { %v2220_v59 = vmul.f32 %v8445_v31, %v2215_v47  ;;  %v6119_v47 = vld [vmem:[%s10997_s2 + $0x50] sm:$0xff] }
 0xc08   :  { %2471 = vmatpush.msrb.mxu0 %v6119_v47  ;;  %v8563_v47 = vld [vmem:[%s10998_s3 + $0x2] ss:$0 sm:$0xff] }
 0xc09   :  { %v2225_v6 = vadd.f32 %v2221_v41, %v2220_v59  ;;  %v2290_v41 = vperm.slane %v8403_v22, 3  ;;  %v6118_v59 = vld [vmem:[%s10997_s2 + $0x48] sm:$0xff] }
 0xc0a   :  { %2472 = vmatpush.msrb.mxu0 %v6118_v59 }
 0xc0b   :  { %6103 = vmatmul.msk.f32.gmra.mxu2 %vm99_vm0, %v2225_v6 }
 0xc0c   :  { %2473 = vmatpush.msrb.mxu0 %v6117_v8 }
 0xc35   :  { %v2265_v27 = vpop.f32.mrf.mxu2 }
 0xc36   :  { %v2266_v43 = vadd.f32 %v6338_v17, %v2265_v27 }
 0xc38   :  { %v2277_v54 = vmax.f32 %v2266_v43, 0.0 }
 0xc3a   :  { %6112 = vmatmul.msk.f32.vlgmr.msra.gmra.mxu3 %vm1128_vm8, %v2277_v54 }
 0xc3d   :  { %v2268_v11 = vpop.f32.mrf.mxu2 }
 0xc3e   :  { %v2269_v46 = vadd.f32 %v6338_v17, %v2268_v11 }
 0xc40   :  { %v2278_v24 = vmax.f32 %v2269_v46, 0.0 }
 0xc42   :  { %6113 = vmatmul.msk.f32.gmra.mxu3 %vm1128_vm8, %v2278_v24 }
 0xc6f   :  { %v2271_v19 = vpop.f32.mrf.mxu2 }
 0xc70   :  { %v2272_v63 = vadd.f32 %v6338_v17, %v2271_v19 }
 0xc72   :  { %v2279_v31 = vmax.f32 %v2272_v63, 0.0 }
 0xc74   :  { %6114 = vmatmul.msk.f32.gmra.mxu3 %vm1128_vm8, %v2279_v31 }
 0xc8e   :  { %v2274_v18 = vpop.f32.mrf.mxu2 }
 0xc8f   :  { %v2275_v49 = vadd.f32 %v6338_v17, %v2274_v18 }
 0xc91   :  { %v2280_v60 = vmax.f32 %v2275_v49, 0.0  ;;  %v2424_v49 = vperm.slane %v8403_v22, 4 }
 0xc93   :  { %6115 = vmatmul.msk.f32.gmra.mxu3 %vm1128_vm8, %v2280_v60 }
 0xcbd   :  { %v2320_v14 = vpop.f32.mrf.mxu3 }
 0xcbe   :  { %v2321_v33 = vadd.f32 %v2320_v14, %v2290_v41 }
 0xcc0   :  { %v2332_v38 = vadd.f32 %v2321_v33, %v8449_v3  ;;  %v2429_v33 = vperm.slane %v8403_v22, 5 }
 0xcc2   :  { %v2336_v23 = vsel %vm99_vm0, %v2332_v38, 0.0 }
 0xcc3   :  { %2337 = vadd.xlane.f32.xlu2 %v2336_v23 }
 0xcc5   :  { %v2323_v56 = vpop.f32.mrf.mxu3 }
 0xcc6   :  { %v2324_v0 = vadd.f32 %v2323_v56, %v2290_v41 }
 0xcc8   :  { %v2333_v58 = vadd.f32 %v2324_v0, %v8454_v21 }
 0xcca   :  { %v2339_v4 = vsel %vm99_vm0, %v2333_v58, 0.0 }
 0xccb   :  { %2340 = vadd.xlane.f32.xlu0 %v2339_v4 }
 0xcf7   :  { %v2326_v16 = vpop.f32.mrf.mxu3 }
 0xcf8   :  { %v2327_v15 = vadd.f32 %v2326_v16, %v2290_v41 }
 0xcfa   :  { %v2334_v13 = vadd.f32 %v2327_v15, %v8461_v12 }
 0xcfc   :  { %v2342_v62 = vsel %vm99_vm0, %v2334_v13, 0.0 }
 0xcfd   :  { %2343 = vadd.xlane.f32.xlu2 %v2342_v62 }
 0xd16   :  { %v2329_v10 = vpop.f32.mrf.mxu3 }
 0xd17   :  { %v2330_v29 = vadd.f32 %v2329_v10, %v2290_v41 }
 0xd19   :  { %v2335_v3 = vadd.f32 %v2330_v29, %v2225_v6 }
 0xd1b   :  { %v2345_v42 = vsel %vm99_vm0, %v2335_v3, 0.0 }
 0xd1c   :  { %2346 = vadd.xlane.f32.xlu0 %v2345_v42 }
 0xd36   :  { %v2338_v30 = vpop.xlane.xlu2 %2337 }
 0xd37   :  { %v2348_v34 = vmul.f32 %v2338_v30, %v11041_v57 }
 0xd39   :  { %v2352_v21 = vsub.f32 %v2332_v38, %v2348_v34 }
 0xd3b   :  { %v2356_v20 = vmul.f32 %v2352_v21, %v2352_v21 }
 0xd3d   :  { %v2360_v25 = vsel %vm99_vm0, %v2356_v20, 0.0 }
 0xd3e   :  { %2361 = vadd.xlane.f32.xlu1 %v2360_v25  ;;  %v2341_v50 = vpop.xlane.xlu0 %2340 }
 0xd3f   :  { %v2349_v12 = vmul.f32 %v2341_v50, %v11041_v57 }
 0xd41   :  { %v2353_v36 = vsub.f32 %v2333_v58, %v2349_v12 }
 0xd43   :  { %v2357_v40 = vmul.f32 %v2353_v36, %v2353_v36 }
 0xd45   :  { %v2363_v51 = vsel %vm99_vm0, %v2357_v40, 0.0 }
 0xd46   :  { %2364 = vadd.xlane.f32.xlu2 %v2363_v51 }
 0xd70   :  { %v2344_v1 = vpop.xlane.xlu2 %2343 }
 0xd71   :  { %v2350_v37 = vmul.f32 %v2344_v1, %v11041_v57 }
 0xd73   :  { %v8513_v39 = vsub.f32 %v2334_v13, %v2350_v37 }
 0xd75   :  { %v2358_v44 = vmul.f32 %v8513_v39, %v8513_v39 }
 0xd77   :  { %v2366_v26 = vsel %vm99_vm0, %v2358_v44, 0.0 }
 0xd78   :  { %2367 = vadd.xlane.f32.xlu0 %v2366_v26 }
 0xd8f   :  { %v2347_v61 = vpop.xlane.xlu0 %2346 }
 0xd90   :  { %v2351_v53 = vmul.f32 %v2347_v61, %v11041_v57 }
 0xd92   :  { %v8519_v35 = vsub.f32 %v2335_v3, %v2351_v53 }
 0xd94   :  { %v2359_v2 = vmul.f32 %v8519_v35, %v8519_v35 }
 0xd96   :  { %v2369_v32 = vsel %vm99_vm0, %v2359_v2, 0.0 }
 0xd97   :  { %2370 = vadd.xlane.f32.xlu1 %v2369_v32 }
 0xdb1   :  { %v2362_v6 = vpop.xlane.xlu1 %2361 }
 0xdb2   :  { %v2372_v55 = vmul.f32 %v2362_v6, %v11041_v57 }
 0xdb4   :  { %v2376_v28 = vadd.f32 1e-05, %v2372_v55 }
 0xdb6   :  { %6404 = vrsqrt.f32 %v2376_v28  ;;  %vm2386_vm6 = vweird.f32 %v2376_v28 }
 0xdb9   :  { %v2365_v17 = vpop.xlane.xlu2 %2364 }
 0xdba   :  { %v2373_v27 = vmul.f32 %v2365_v17, %v11041_v57 }
 0xdbc   :  { %v6405_v43 = vpop.eup %6404  ;;  %v2377_v54 = vadd.f32 1e-05, %v2373_v27  ;;  %v8582_v27 = vld [vmem:[%s10996_s1 + $0x8] sm:$0xff] }
 0xdbd   :  { %v2381_v11 = vmul.f32 %v6405_v43, %v2376_v28  ;;  %vm2387_vm11 = vweird.f32 %v6405_v43  ;;  %v8576_v28 = vld [vmem:[%s10996_s1] sm:$0xff] }
 0xdbe   :  { %6406 = vrsqrt.f32 %v2377_v54  ;;  %vm2388_vm12 = vmor %vm2386_vm6, %vm2387_vm11  ;;  %vm2396_vm14 = vweird.f32 %v2377_v54 }
 0xdbf   :  { %v2382_v46 = vmul.f32 %v6405_v43, %v2381_v11 }
 0xdc1   :  { %v2383_v24 = vmul.f32 0.5, %v2382_v46 }
 0xdc3   :  { %v2384_v19 = vsub.f32 1.5, %v2383_v24 }
 0xdc4   :  { %v6407_v63 = vpop.eup %6406 }
 0xdc5   :  { %v2385_v31 = vmul.f32 %v6405_v43, %v2384_v19  ;;  %v2391_v18 = vmul.f32 %v6407_v63, %v2377_v54  ;;  %vm2397_vm7 = vweird.f32 %v6407_v63  ;;  %v8590_v19 = vld [vmem:[%s10996_s1 + $0x18] sm:$0xff] }
 0xdc6   :  { %vm2398_vm15 = vmor %vm2396_vm14, %vm2397_vm7 }
 0xdc7   :  { %v2389_v60 = vsel %vm2388_vm12, %v6405_v43, %v2385_v31  ;;  %v2392_v41 = vmul.f32 %v6407_v63, %v2391_v18  ;;  %v8596_v31 = vld [vmem:[%s10996_s1 + $0x20] sm:$0xff] }
 0xdc8   :  { %v2420_v14 = vmul.f32 %v2389_v60, %v2352_v21 }
 0xdc9   :  { %v2393_v38 = vmul.f32 0.5, %v2392_v41 }
 0xdca   :  { %v2425_v23 = vmul.f32 %v2424_v49, %v2420_v14 }
 0xdcb   :  { %v2394_v56 = vsub.f32 1.5, %v2393_v38 }
 0xdcc   :  { %v8540_v0 = vadd.f32 %v2429_v33, %v2425_v23  ;;  %v8611_v23 = vld [vmem:[%s10996_s1 + $0x38] sm:$0xff] }
 0xdcd   :  { %v2395_v58 = vmul.f32 %v6407_v63, %v2394_v56 }
 0xdce   :  { %6122 = vmatmul.msk.f32.vlgmr.msrb.gmra.mxu0 %vm99_vm0, %v8540_v0 }
 0xdcf   :  { %v2399_v4 = vsel %vm2398_vm15, %v6407_v63, %v2395_v58 }
 0xdd0   :  { %v2421_v16 = vmul.f32 %v2399_v4, %v2353_v36 }
 0xdd2   :  { %v2426_v15 = vmul.f32 %v2424_v49, %v2421_v16 }
 0xdd4   :  { %v8544_v13 = vadd.f32 %v2429_v33, %v2426_v15 }
 0xdd6   :  { %6123 = vmatmul.msk.f32.gmra.mxu0 %vm99_vm0, %v8544_v13 }
 0xdeb   :  { %v2368_v22 = vpop.xlane.xlu0 %2367 }
 0xdec   :  { %v2374_v62 = vmul.f32 %v2368_v22, %v11041_v57 }
 0xdee   :  { %v2378_v10 = vadd.f32 1e-05, %v2374_v62 }
 0xdf0   :  { %6408 = vrsqrt.f32 %v2378_v10  ;;  %vm2406_vm6 = vweird.f32 %v2378_v10 }
 0xdf6   :  { %v6409_v29 = vpop.eup %6408 }
 0xdf7   :  { %v2401_v3 = vmul.f32 %v6409_v29, %v2378_v10  ;;  %vm2407_vm11 = vweird.f32 %v6409_v29  ;;  %v8621_v10 = vld [vmem:[%s10996_s1 + $0x48] sm:$0xff] }
 0xdf8   :  { %vm2408_vm12 = vmor %vm2406_vm6, %vm2407_vm11  ;;  %vm11044_vm11 = vcmask 1045509   ;;  %vm11045_vm6 = vcmask 1046534  }
 0xdf9   :  { %v2402_v42 = vmul.f32 %v6409_v29, %v2401_v3  ;;  %v8627_v3 = vld [vmem:[%s10996_s1 + $0x50] sm:$0xff] }
 0xdfb   :  { %v2403_v30 = vmul.f32 0.5, %v2402_v42 }
 0xdfd   :  { %v2404_v34 = vsub.f32 1.5, %v2403_v30 }
 0xdff   :  { %v2405_v21 = vmul.f32 %v6409_v29, %v2404_v34 }
 0xe01   :  { %v2409_v20 = vsel %vm2408_vm12, %v6409_v29, %v2405_v21  ;;  %vm11046_vm12 = vcmask 1047559  }
 0xe02   :  { %v2422_v25 = vmul.f32 %v2409_v20, %v8513_v39 }
 0xe04   :  { %v2427_v50 = vmul.f32 %v2424_v49, %v2422_v25  ;;  %v8636_v25 = vld [vmem:[%s10996_s1 + $0x68] sm:$0xff] }
 0xe06   :  { %v8550_v12 = vadd.f32 %v2429_v33, %v2427_v50 }
 0xe08   :  { %11042 = vst [vmem:[#allocation6_spill] sm:$0xff] %v8550_v12  ;;  %6124 = vmatmul.msk.f32.gmra.mxu0 %vm99_vm0, %v8550_v12 }
 0xe0a   :  { %v2371_v36 = vpop.xlane.xlu1 %2370 }
 0xe0b   :  { %v2375_v40 = vmul.f32 %v2371_v36, %v11041_v57 }
 0xe0d   :  { %v2379_v51 = vadd.f32 1e-05, %v2375_v40  ;;  %v8643_v40 = vld [vmem:[%s10996_s1 + $0x10] sm:$0xff] }
 0xe0f   :  { %6410 = vrsqrt.f32 %v2379_v51  ;;  %vm2416_vm14 = vweird.f32 %v2379_v51 }
 0xe15   :  { %v6411_v1 = vpop.eup %6410 }
 0xe16   :  { %v2411_v37 = vmul.f32 %v6411_v1, %v2379_v51  ;;  %vm2417_vm7 = vweird.f32 %v6411_v1 }
 0xe17   :  { %vm2418_vm15 = vmor %vm2416_vm14, %vm2417_vm7 }
 0xe18   :  { %v2412_v44 = vmul.f32 %v6411_v1, %v2411_v37  ;;  %v8650_v37 = vld [vmem:[%s10996_s1 + $0x28] sm:$0xff] }
 0xe1a   :  { %v2413_v26 = vmul.f32 0.5, %v2412_v44 }
 0xe1c   :  { %v2414_v61 = vsub.f32 1.5, %v2413_v26 }
 0xe1e   :  { %v2415_v53 = vmul.f32 %v6411_v1, %v2414_v61 }
 0xe20   :  { %v2419_v39 = vsel %vm2418_vm15, %v6411_v1, %v2415_v53  ;;  %vm11047_vm15 = vmmov %vm11044_vm11 }
 0xe21   :  { %v2423_v2 = vmul.f32 %v2419_v39, %v8519_v35  ;;  %v8662_v39 = vld [vmem:[%s10996_s1 + $0x40] sm:$0xff] }
 0xe23   :  { %v2428_v32 = vmul.f32 %v2424_v49, %v2423_v2 }
 0xe25   :  { %v8556_v52 = vadd.f32 %v2429_v33, %v2428_v32  ;;  %v8605_v33 = vld [vmem:[%s10996_s1 + $0x30] sm:$0xff] }
 0xe27   :  { %11043 = vst [vmem:[#allocation7_spill] sm:$0xff] %v8556_v52  ;;  %6125 = vmatmul.msk.f32.gmra.mxu0 %vm99_vm0, %v8556_v52 }
 0xe4b   :  { %v2475_v59 = vpop.f32.mrf.mxu0 }
 0xe4c   :  { %v8566_v6 = vadd.f32 %v8563_v47, %v2475_v59  ;;  %v8669_v59 = vld [vmem:[%s10996_s1 + $0x58] sm:$0xff] }
 0xe4e   :  { %2489 = vrot.lane.b32.xlu0 %v8566_v6, %s6682_s18  ;;  %v2593_v35 = vperm.slane %v8566_v6, 0  ;;  %v2565_v8 = vrot.slane %v8566_v6, 1  ;;  %v2566_v55 = vrot.slane %v8566_v6, 2  ;;  %v2567_v49 = vrot.slane %v8566_v6, 3 }
 0xe4f   :  { %v2568_v58 = vrot.slane %v8566_v6, 4  ;;  %v2569_v4 = vrot.slane %v8566_v6, 5  ;;  %v2570_v30 = vrot.slane %v8566_v6, 6 }
 0xe50   :  { %v2657_v17 = vmul.f32 %v8576_v28, %v2593_v35  ;;  %v2658_v43 = vmul.f32 %v8582_v27, %v2593_v35  ;;  %v2594_v46 = vperm.slane %v2565_v8, 0  ;;  %v2595_v24 = vperm.slane %v2566_v55, 0 }
 0xe51   :  { %v2596_v14 = vperm.slane %v2567_v49, 0  ;;  %v2597_v22 = vperm.slane %v2568_v58, 0  ;;  %v2598_v62 = vperm.slane %v2569_v4, 0  ;;  %v2599_v20 = vperm.slane %v2570_v30, 0 }
 0xe52   :  { %v2721_v54 = vsel %vm99_vm0, %v2657_v17, 0.0  ;;  %v2724_v11 = vsel %vm99_vm0, %v2658_v43, 0.0  ;;  %v2660_v63 = vmul.f32 %v8590_v19, %v2594_v46  ;;  %v2661_v18 = vmul.f32 %v8596_v31, %v2595_v24  ;;  %v8677_v43 = vld [vmem:[%s10996_s1 + $0x70] sm:$0xff] }
 0xe53   :  { %2722 = vadd.xlane.f32.xlu2 %v2721_v54  ;;  %2725 = vadd.xlane.f32.xlu1 %v2724_v11  ;;  %v2663_v38 = vmul.f32 %v8605_v33, %v2596_v14  ;;  %v2664_v56 = vmul.f32 %v8611_v23, %v2596_v14  ;;  %v2666_v29 = vmul.f32 %v8621_v10, %v2597_v22  ;;  %v2478_v26 = vpop.f32.mrf.mxu0  ;;  %v2571_v8 = vrot.slane %v8566_v6, 7  ;;  %v8701_v14 = vld [vmem:[%s10996_s1 + $0x78] sm:$0xff] }
 0xe54   :  { %v2730_v60 = vsel %vm99_vm0, %v2660_v63, 0.0  ;;  %v2733_v41 = vsel %vm99_vm0, %v2661_v18, 0.0  ;;  %v2667_v42 = vmul.f32 %v8627_v3, %v2598_v62  ;;  %v2670_v50 = vmul.f32 %v8636_v25, %v2599_v20  ;;  %v8689_v18 = vld [vmem:[%s10996_s1 + $0x60] sm:$0xff] }
 0xe55   :  { %v2739_v16 = vsel %vm99_vm0, %v2663_v38, 0.0  ;;  %v2742_v15 = vsel %vm99_vm0, %v2664_v56, 0.0  ;;  %v2748_v34 = vsel %vm99_vm0, %v2666_v29, 0.0  ;;  %v2659_v51 = vmul.f32 %v8643_v40, %v2594_v46  ;;  %v8717_v29 = vld [vmem:[%s10996_s1 + $0xa8] sm:$0xff] }
 0xe56   :  { %v2751_v21 = vsel %vm99_vm0, %v2667_v42, 0.0  ;;  %v2760_v36 = vsel %vm99_vm0, %v2670_v50, 0.0  ;;  %v2662_v44 = vmul.f32 %v8650_v37, %v2595_v24  ;;  %v8655_v53 = vadd.f32 %v8563_v47, %v2478_v26  ;;  %v8727_v50 = vld [vmem:[%s10996_s1 + $0xc0] sm:$0xff] }
 0xe57   :  { %v2727_v1 = vsel %vm99_vm0, %v2659_v51, 0.0  ;;  %v2665_v2 = vmul.f32 %v8662_v39, %v2597_v22  ;;  %v2668_v35 = vmul.f32 %v8669_v59, %v2598_v62  ;;  %v2600_v17 = vperm.slane %v2571_v8, 0 }
 0xe58   :  { %v2736_v61 = vsel %vm99_vm0, %v2662_v44, 0.0  ;;  %v2669_v49 = vmul.f32 %v8689_v18, %v2599_v20  ;;  %v2572_v56 = vrot.slane %v8655_v53, 1  ;;  %v2575_v30 = vrot.slane %v8655_v53, 4 }
 0xe59   :  { %v2745_v32 = vsel %vm99_vm0, %v2665_v2, 0.0  ;;  %v2754_v55 = vsel %vm99_vm0, %v2668_v35, 0.0  ;;  %v2671_v54 = vmul.f32 %v8677_v43, %v2600_v17  ;;  %v2672_v38 = vmul.f32 %v8701_v14, %v2600_v17  ;;  %v8744_v35 = vld [vmem:[%s10996_s1 + $0xd8] sm:$0xff] }
 0xe5a   :  { %v2602_v4 = vperm.slane %v2572_v56, 0  ;;  %v2576_v51 = vrot.slane %v8655_v53, 5 }
 0xe5b   :  { %2731 = vadd.xlane.f32.xlu2 %v2730_v60  ;;  %2734 = vadd.xlane.f32.xlu1 %v2733_v41  ;;  %v2763_v11 = vsel %vm99_vm0, %v2671_v54, 0.0  ;;  %v2757_v41 = vsel %vm99_vm0, %v2669_v49, 0.0  ;;  %v2766_v58 = vsel %vm99_vm0, %v2672_v38, 0.0  ;;  %v8752_v54 = vld [vmem:[%s10996_s1 + $0x88] sm:$0xff]  ;;  %v8761_v49 = vld [vmem:[%s10996_s1 + $0x98] sm:$0xff]  ;;  %v2574_v38 = vrot.slane %v8655_v53, 3 }
 0xe5c   :  { %v2606_v26 = vperm.slane %v2576_v51, 0  ;;  %v8787_v51 = vld [vmem:[%s10996_s1 + $0xb0] sm:$0xff] }
 0xe5e   :  { %v2684_v8 = vmul.f32 %v8744_v35, %v2606_v26 }
 0xe63   :  { %2740 = vadd.xlane.f32.xlu2 %v2739_v16  ;;  %2743 = vadd.xlane.f32.xlu1 %v2742_v15  ;;  %v2573_v15 = vrot.slane %v8655_v53, 2 }
 0xe65   :  { %v2603_v62 = vperm.slane %v2573_v15, 0 }
 0xe67   :  { %v2678_v42 = vmul.f32 %v8717_v29, %v2603_v62 }
 0xe6b   :  { %2749 = vadd.xlane.f32.xlu2 %v2748_v34  ;;  %2752 = vadd.xlane.f32.xlu1 %v2751_v21  ;;  %v2784_v34 = vsel %vm99_vm0, %v2678_v42, 0.0  ;;  %v2605_v21 = vperm.slane %v2575_v30, 0  ;;  %v2604_v42 = vperm.slane %v2574_v38, 0 }
 0xe73   :  { %2761 = vadd.xlane.f32.xlu1 %v2760_v36  ;;  %v2681_v36 = vmul.f32 %v8727_v50, %v2605_v21 }
 0xe75   :  { %v2793_v44 = vsel %vm99_vm0, %v2681_v36, 0.0 }
 0xe78   :  { %2728 = vadd.xlane.f32.xlu0 %v2727_v1  ;;  %v2601_v1 = vperm.slane %v8655_v53, 0 }
 0xe80   :  { %2737 = vadd.xlane.f32.xlu0 %v2736_v61  ;;  %v8736_v61 = vld [vmem:[%s10996_s1 + $0x80] sm:$0xff] }
 0xe81   :  { %v2673_v2 = vmul.f32 %v8736_v61, %v2601_v1 }
 0xe83   :  { %2491 = vrot.lane.b32.xlu2 %v8655_v53, %s6682_s18  ;;  %v2769_v17 = vsel %vm99_vm0, %v2673_v2, 0.0 }
 0xe85   :  { %v2481_v46 = vpop.f32.mrf.mxu0 }
 0xe86   :  { %v8693_v60 = vadd.f32 %v8563_v47, %v2481_v46  ;;  %v2802_v46 = vsel %vm99_vm0, %v2684_v8, 0.0 }
 0xe88   :  { %2746 = vadd.xlane.f32.xlu0 %v2745_v32  ;;  %v2609_v36 = vperm.slane %v8693_v60, 0  ;;  %v2580_v8 = vrot.slane %v8693_v60, 2 }
 0xe90   :  { %2755 = vadd.xlane.f32.xlu0 %v2754_v55  ;;  %v2578_v55 = vrot.slane %v8655_v53, 7 }
 0xe98   :  { %2764 = vadd.xlane.f32.xlu0 %v2763_v11  ;;  %v2674_v11 = vmul.f32 %v8752_v54, %v2601_v1  ;;  %v2679_v1 = vmul.f32 %v8787_v51, %v2604_v42 }
 0xe9a   :  { %v2772_v56 = vsel %vm99_vm0, %v2674_v11, 0.0 }
 0xea4   :  { %v2484_v24 = vpop.f32.mrf.mxu0 }
 0xea5   :  { %v8682_v63 = vadd.f32 %v8563_v47, %v2484_v24  ;;  %v8709_v47 = vld [vmem:[%s10996_s1 + $0x90] sm:$0xff]  ;;  %v8756_v24 = vperm.slane %v2578_v55, 0  ;;  %v2787_v55 = vsel %vm99_vm0, %v2679_v1, 0.0 }
 0xea6   :  { %v2675_v16 = vmul.f32 %v8709_v47, %v2602_v4 }
 0xea7   :  { %2528 = vrot.lane.b32.xlu1 %v8682_v63, %s6682_s18 }
 0xea8   :  { %v2775_v22 = vsel %vm99_vm0, %v2675_v16, 0.0  ;;  %v8771_v16 = vld [vmem:[%s10996_s1 + $0xf0] sm:$0xff] }
 0xea9   :  { %v2687_v15 = vmul.f32 %v8771_v16, %v8756_v24 }
 0xeac   :  { %2758 = vadd.xlane.f32.xlu2 %v2757_v41  ;;  %2526 = vrot.lane.b32.xlu0 %v8693_v60, %s6682_s18  ;;  %v2676_v41 = vmul.f32 %v8761_v49, %v2602_v4  ;;  %v8779_v4 = vld [vmem:[%s10996_s1 + $0xa0] sm:$0xff] }
 0xead   :  { %v2677_v30 = vmul.f32 %v8779_v4, %v2603_v62  ;;  %v2690_v62 = vmul.f32 %v8582_v27, %v2609_v36  ;;  %v8810_v27 = vld [vmem:[%s10996_s1 + $0xc8] sm:$0xff] }
 0xeae   :  { %v2682_v38 = vmul.f32 %v8810_v27, %v2605_v21  ;;  %v8825_v21 = vld [vmem:[%s10996_s1 + $0xd0] sm:$0xff] }
 0xeb0   :  { %v2796_v1 = vsel %vm99_vm0, %v2682_v38, 0.0 }
 0xeb4   :  { %2767 = vadd.xlane.f32.xlu2 %v2766_v58 }
 0xebc   :  { %2776 = vadd.xlane.f32.xlu2 %v2775_v22  ;;  %v2778_v22 = vsel %vm99_vm0, %v2676_v41, 0.0  ;;  %v8805_v41 = vperm.slane %v2580_v8, 0  ;;  %v2683_v8 = vmul.f32 %v8825_v21, %v2606_v26 }
 0xebe   :  { %v2799_v38 = vsel %vm99_vm0, %v2683_v8, 0.0 }
 0xec4   :  { %2785 = vadd.xlane.f32.xlu2 %v2784_v34  ;;  %v2811_v34 = vsel %vm99_vm0, %v2687_v15, 0.0 }
 0xec6   :  { %v8722_v20 = vpop.xlane.xlu2 %2722 }
 0xecc   :  { %2794 = vadd.xlane.f32.xlu2 %v2793_v44  ;;  %v2781_v44 = vsel %vm99_vm0, %v2677_v30, 0.0 }
 0xece   :  { %v8739_v32 = vpop.xlane.xlu2 %2731 }
 0xed1   :  { %2770 = vadd.xlane.f32.xlu1 %v2769_v17  ;;  %v8801_v17 = vld [vmem:[%s10996_s1 + $0xb8] sm:$0xff] }
 0xed2   :  { %v2680_v11 = vmul.f32 %v8801_v17, %v2604_v42  ;;  %v2693_v42 = vmul.f32 %v8596_v31, %v8805_v41 }
 0xed4   :  { %2803 = vadd.xlane.f32.xlu2 %v2802_v46  ;;  %v2820_v46 = vsel %vm99_vm0, %v2690_v62, 0.0  ;;  %v2790_v15 = vsel %vm99_vm0, %v2680_v11, 0.0  ;;  %v8820_v62 = vpop.xlane.xlu1 %2725  ;;  %v8833_v11 = vld [vmem:[%s10996_s1 + $0xe0] sm:$0xff] }
 0xed6   :  { %v8766_v58 = vpop.xlane.xlu2 %2740  ;;  %2773 = vadd.xlane.f32.xlu0 %v2772_v56  ;;  %v2577_v56 = vrot.slane %v8655_v53, 6 }
 0xed9   :  { %2779 = vadd.xlane.f32.xlu1 %v2778_v22  ;;  %v2490_v22 = vpop.permute.xlu0 %2489 }
 0xedc   :  { %2812 = vadd.xlane.f32.xlu2 %v2811_v34  ;;  %v2581_v34 = vrot.slane %v8693_v60, 3 }
 0xede   :  { %v8791_v2 = vpop.xlane.xlu2 %2749  ;;  %2782 = vadd.xlane.f32.xlu0 %v2781_v44  ;;  %v2607_v44 = vperm.slane %v2577_v56, 0  ;;  %v2612_v31 = vperm.slane %v2581_v34, 0  ;;  %v8850_v34 = vpop.xlane.xlu1 %2734 }
 0xee0   :  { %v2696_v26 = vmul.f32 %v8611_v23, %v2612_v31  ;;  %v8856_v23 = vld [vmem:[%s10996_s1 + $0xf8] sm:$0xff] }
 0xee1   :  { %2788 = vadd.xlane.f32.xlu1 %v2787_v55  ;;  %v2829_v55 = vsel %vm99_vm0, %v2693_v42, 0.0 }
 0xee4   :  { %2821 = vadd.xlane.f32.xlu2 %v2820_v46  ;;  %v2685_v46 = vmul.f32 %v8833_v11, %v2607_v44 }
 0xee6   :  { %v2492_v30 = vpop.permute.xlu2 %2491  ;;  %2791 = vadd.xlane.f32.xlu0 %v2790_v15  ;;  %v2583_v15 = vrot.slane %v8693_v60, 5  ;;  %v8874_v52 = vpop.xlane.xlu1 %2743 }
 0xee7   :  { %6126 = vmatpush.xpose.msk.msrb.mxu1 %vm99_vm0, %v2492_v30  ;;  %v8847_v30 = vld [vmem:[%s10996_s1 + $0xe8] sm:$0xff] }
 0xee8   :  { %v2686_v42 = vmul.f32 %v8847_v30, %v2607_v44  ;;  %v2614_v8 = vperm.slane %v2583_v15, 0 }
 0xee9   :  { %2797 = vadd.xlane.f32.xlu1 %v2796_v1  ;;  %v2838_v1 = vsel %vm99_vm0, %v2696_v26, 0.0  ;;  %v2584_v26 = vrot.slane %v8693_v60, 6 }
 0xeea   :  { %v2699_v44 = vmul.f32 %v8627_v3, %v2614_v8 }
 0xeeb   :  { %6127 = vmatpush.xpose.msk.msrb.mxu1 %vm99_vm0, %v2490_v22  ;;  %v8837_v56 = vpop.xlane.xlu0 %2728  ;;  %v2805_v22 = vsel %vm99_vm0, %v2685_v46, 0.0  ;;  %v2579_v46 = vrot.slane %v8693_v60, 1 }
 0xeec   :  { %2830 = vadd.xlane.f32.xlu2 %v2829_v55  ;;  %v2688_v55 = vmul.f32 %v8856_v23, %v8756_v24  ;;  %v2689_v24 = vmul.f32 %v8576_v28, %v2609_v36  ;;  %v2617_v36 = vperm.slane %v8682_v63, 0 }
 0xeee   :  { %2800 = vadd.xlane.f32.xlu0 %v2799_v38  ;;  %6128 = vmatmul.msk.f32.vlgmr.msrb.gmra.mxu1 %vm99_vm0, %v8566_v6  ;;  %v2808_v38 = vsel %vm99_vm0, %v2686_v42, 0.0  ;;  %v2847_v42 = vsel %vm99_vm0, %v2699_v44, 0.0  ;;  %v2817_v3 = vsel %vm99_vm0, %v2689_v24, 0.0  ;;  %v2582_v44 = vrot.slane %v8693_v60, 4 }
 0xeef   :  { %v2695_v24 = vmul.f32 %v8605_v33, %v2612_v31 }
 0xef1   :  { %2806 = vadd.xlane.f32.xlu1 %v2805_v22  ;;  %v2814_v22 = vsel %vm99_vm0, %v2688_v55, 0.0 }
 0xef3   :  { %v8866_v15 = vpop.xlane.xlu0 %2737 }
 0xef4   :  { %2839 = vadd.xlane.f32.xlu2 %v2838_v1  ;;  %v2610_v1 = vperm.slane %v2579_v46, 0 }
 0xef6   :  { %2809 = vadd.xlane.f32.xlu0 %v2808_v38  ;;  %6129 = vmatmul.msk.f32.gmra.mxu1 %vm99_vm0, %v8655_v53  ;;  %v2615_v38 = vperm.slane %v2584_v26, 0  ;;  %v2691_v57 = vmul.f32 %v8643_v40, %v2610_v1  ;;  %v2692_v46 = vmul.f32 %v8590_v19, %v2610_v1  ;;  %v2694_v40 = vmul.f32 %v8650_v37, %v8805_v41 }
 0xef7   :  { %v2586_v19 = vrot.slane %v8682_v63, 1 }
 0xef8   :  { %v2702_v12 = vmul.f32 %v8636_v25, %v2615_v38  ;;  %v2823_v55 = vsel %vm99_vm0, %v2691_v57, 0.0  ;;  %v2826_v26 = vsel %vm99_vm0, %v2692_v46, 0.0  ;;  %v8888_v25 = vpop.xlane.xlu1 %2752  ;;  %v2705_v57 = vmul.f32 %v8736_v61, %v2617_v36 }
 0xef9   :  { %2815 = vadd.xlane.f32.xlu1 %v2814_v22  ;;  %v2832_v1 = vsel %vm99_vm0, %v2694_v40, 0.0  ;;  %v2618_v37 = vperm.slane %v2586_v19, 0  ;;  %v2588_v46 = vrot.slane %v8682_v63, 3 }
 0xefa   :  { %v2856_v28 = vsel %vm99_vm0, %v2702_v12, 0.0  ;;  %v2613_v12 = vperm.slane %v2582_v44, 0 }
 0xefb   :  { %v8880_v22 = vpop.xlane.xlu0 %2746  ;;  %v2708_v61 = vmul.f32 %v8761_v49, %v2618_v37  ;;  %v2620_v44 = vperm.slane %v2588_v46, 0 }
 0xefc   :  { %2848 = vadd.xlane.f32.xlu2 %v2847_v42  ;;  %v2865_v42 = vsel %vm99_vm0, %v2705_v57, 0.0  ;;  %v2698_v33 = vmul.f32 %v8621_v10, %v2613_v12 }
 0xefd   :  { %v2874_v31 = vsel %vm99_vm0, %v2708_v61, 0.0  ;;  %v2711_v19 = vmul.f32 %v8787_v51, %v2620_v44 }
 0xefe   :  { %2818 = vadd.xlane.f32.xlu0 %v2817_v3  ;;  %v2697_v3 = vmul.f32 %v8662_v39, %v2613_v12  ;;  %v2700_v39 = vmul.f32 %v8669_v59, %v2614_v8  ;;  %v2844_v57 = vsel %vm99_vm0, %v2698_v33, 0.0 }
 0xeff   :  { %v2883_v59 = vsel %vm99_vm0, %v2711_v19, 0.0 }
 0xf00   :  { %v8902_v40 = vpop.xlane.xlu1 %2761 }
 0xf01   :  { %2824 = vadd.xlane.f32.xlu1 %v2823_v55  ;;  %v2835_v55 = vsel %vm99_vm0, %v2695_v24, 0.0  ;;  %v2850_v24 = vsel %vm99_vm0, %v2700_v39, 0.0  ;;  %v2587_v39 = vrot.slane %v8682_v63, 2 }
 0xf03   :  { %v8895_v41 = vpop.xlane.xlu0 %2755 }
 0xf04   :  { %2857 = vadd.xlane.f32.xlu2 %v2856_v28  ;;  %v2841_v28 = vsel %vm99_vm0, %v2697_v3, 0.0 }
 0xf06   :  { %2827 = vadd.xlane.f32.xlu0 %v2826_v26  ;;  %v2585_v26 = vrot.slane %v8693_v60, 7 }
 0xf08   :  { %v2616_v10 = vperm.slane %v2585_v26, 0 }
 0xf09   :  { %2833 = vadd.xlane.f32.xlu1 %v2832_v1  ;;  %v2589_v1 = vrot.slane %v8682_v63, 4 }
 0xf0a   :  { %v2703_v3 = vmul.f32 %v8677_v43, %v2616_v10 }
 0xf0b   :  { %v8909_v49 = vpop.xlane.xlu0 %2764  ;;  %v2621_v8 = vperm.slane %v2589_v1, 0  ;;  %v2619_v1 = vperm.slane %v2587_v39, 0 }
 0xf0c   :  { %2866 = vadd.xlane.f32.xlu2 %v2865_v42  ;;  %v2701_v42 = vmul.f32 %v8689_v18, %v2615_v38  ;;  %v2591_v18 = vrot.slane %v8682_v63, 6  ;;  %v2859_v38 = vsel %vm99_vm0, %v2703_v3, 0.0  ;;  %v2712_v3 = vmul.f32 %v8801_v17, %v2620_v44 }
 0xf0d   :  { %v2714_v46 = vmul.f32 %v8810_v27, %v2621_v8 }
 0xf0e   :  { %2836 = vadd.xlane.f32.xlu0 %v2835_v55  ;;  %v2853_v55 = vsel %vm99_vm0, %v2701_v42, 0.0  ;;  %v2623_v33 = vperm.slane %v2591_v18, 0  ;;  %v2713_v18 = vmul.f32 %v8727_v50, %v2621_v8 }
 0xf0f   :  { %v2892_v43 = vsel %vm99_vm0, %v2714_v46, 0.0  ;;  %v2886_v46 = vsel %vm99_vm0, %v2712_v3, 0.0 }
 0xf11   :  { %2842 = vadd.xlane.f32.xlu1 %v2841_v28  ;;  %v2704_v28 = vmul.f32 %v8701_v14, %v2616_v10  ;;  %v2592_v14 = vrot.slane %v8682_v63, 7  ;;  %v2709_v10 = vmul.f32 %v8779_v4, %v2619_v1 }
 0xf13   :  { %v2862_v27 = vsel %vm99_vm0, %v2704_v28, 0.0 }
 0xf14   :  { %2875 = vadd.xlane.f32.xlu2 %v2874_v31  ;;  %v2706_v31 = vmul.f32 %v8752_v54, %v2617_v36  ;;  %v2624_v36 = vperm.slane %v2592_v14, 0 }
 0xf16   :  { %2845 = vadd.xlane.f32.xlu0 %v2844_v57  ;;  %v2717_v57 = vmul.f32 %v8833_v11, %v2623_v33  ;;  %v2868_v19 = vsel %vm99_vm0, %v2706_v31, 0.0  ;;  %v2720_v42 = vmul.f32 %v8856_v23, %v2624_v36  ;;  %v2718_v31 = vmul.f32 %v8847_v30, %v2623_v33 }
 0xf17   :  { %v2988_v33 = vperm.slane %v8837_v56, %v7255_v7 }
 0xf18   :  { %v2901_v54 = vsel %vm99_vm0, %v2717_v57, 0.0 }
 0xf19   :  { %v2529_v12 = vpop.permute.xlu1 %2528  ;;  %2851 = vadd.xlane.f32.xlu1 %v2850_v24  ;;  %v2707_v24 = vmul.f32 %v8709_v47, %v2618_v37  ;;  %v2710_v47 = vmul.f32 %v8717_v29, %v2619_v1  ;;  %v2910_v37 = vsel %vm99_vm0, %v2720_v42, 0.0  ;;  %v2991_v42 = vperm.slane %v8850_v34, %v7255_v7 }
 0xf1a   :  { %6130 = vmatpush.xpose.msk.msrb.mxu2 %vm99_vm0, %v2529_v12  ;;  %v2998_v34 = vperm.slane %v8791_v2, %v7258_v5 }
 0xf1b   :  { %v2871_v12 = vsel %vm99_vm0, %v2707_v24, 0.0  ;;  %v2880_v4 = vsel %vm99_vm0, %v2710_v47, 0.0  ;;  %v2992_v24 = vperm.slane %v8866_v15, %v7258_v5  ;;  %v2997_v15 = vperm.slane %v8880_v22, %v7255_v7 }
 0xf1c   :  { %2884 = vadd.xlane.f32.xlu2 %v2883_v59  ;;  %v2877_v59 = vsel %vm99_vm0, %v2709_v10, 0.0  ;;  %v2989_v10 = vperm.slane %v8739_v32, %v7258_v5  ;;  %v3001_v32 = vperm.slane %v8895_v41, %v7258_v5  ;;  %v3004_v41 = vperm.slane %v8902_v40, %v7258_v5 }
 0xf1e   :  { %2854 = vadd.xlane.f32.xlu0 %v2853_v55  ;;  %v2527_v51 = vpop.permute.xlu0 %2526  ;;  %v2590_v55 = vrot.slane %v8682_v63, 5  ;;  %v2990_v56 = vsel %vm650_vm1, %v2989_v10, %v2988_v33 }
 0xf1f   :  { %v8919_v61 = vpop.xlane.xlu2 %2758  ;;  %6131 = vmatpush.xpose.msk.msrb.mxu2 %vm99_vm0, %v2527_v51 }
 0xf20   :  { %v2622_v23 = vperm.slane %v2590_v55, 0  ;;  %v3003_v3 = vperm.slane %v8919_v61, %v7255_v7  ;;  %v3000_v55 = vperm.slane %v8888_v25, %v7255_v7  ;;  %v3006_v61 = vperm.slane %v8909_v49, %v7255_v7 }
 0xf21   :  { %2860 = vadd.xlane.f32.xlu1 %v2859_v38  ;;  %v2889_v38 = vsel %vm99_vm0, %v2713_v18, 0.0 }
 0xf22   :  { %6132 = vmatmul.msk.f32.vlgmr.msrb.gmra.mxu2 %vm99_vm0, %v8693_v60  ;;  %v2715_v29 = vmul.f32 %v8825_v21, %v2622_v23  ;;  %v2716_v44 = vmul.f32 %v8744_v35, %v2622_v23  ;;  %v2904_v21 = vsel %vm99_vm0, %v2718_v31, 0.0  ;;  %v3005_v18 = vsel %vm650_vm1, %v3004_v41, %v3003_v3 }
 0xf24   :  { %2893 = vadd.xlane.f32.xlu2 %v2892_v43  ;;  %v2895_v17 = vsel %vm99_vm0, %v2715_v29, 0.0  ;;  %v2898_v39 = vsel %vm99_vm0, %v2716_v44, 0.0 }
 0xf26   :  { %2863 = vadd.xlane.f32.xlu0 %v2862_v27  ;;  %v2719_v27 = vmul.f32 %v8771_v16, %v2624_v36  ;;  %v2985_v16 = vperm.slane %v8722_v20, %v7255_v7  ;;  %v2986_v36 = vperm.slane %v8820_v62, %v7258_v5  ;;  %v2994_v20 = vperm.slane %v8766_v58, %v7255_v7 }
 0xf27   :  { %v8932_v26 = vpop.xlane.xlu2 %2767  ;;  %v2995_v62 = vperm.slane %v8874_v52, %v7258_v5 }
 0xf28   :  { %v2907_v14 = vsel %vm99_vm0, %v2719_v27, 0.0  ;;  %v2987_v47 = vsel %vm650_vm1, %v2986_v36, %v2985_v16  ;;  %v3007_v52 = vperm.slane %v8932_v26, %v7258_v5 }
 0xf29   :  { %2869 = vadd.xlane.f32.xlu1 %v2868_v19  ;;  %v2996_v2 = vsel %vm650_vm1, %v2995_v62, %v2994_v20 }
 0xf2a   :  { %6133 = vmatmul.msk.f32.gmra.mxu2 %vm99_vm0, %v8682_v63  ;;  %v3008_v40 = vsel %vm650_vm1, %v3007_v52, %v3006_v61 }
 0xf2c   :  { %2902 = vadd.xlane.f32.xlu2 %v2901_v54 }
 0xf2e   :  { %2872 = vadd.xlane.f32.xlu0 %v2871_v12 }
 0xf2f   :  { %v8943_v11 = vpop.xlane.xlu2 %2776 }
 0xf31   :  { %2878 = vadd.xlane.f32.xlu1 %v2877_v59  ;;  %v2993_v59 = vsel %vm650_vm1, %v2992_v24, %v2991_v42 }
 0xf34   :  { %2911 = vadd.xlane.f32.xlu2 %v2910_v37  ;;  %v3081_v37 = vsel %vm745_vm2, %v2990_v56, %v2987_v47 }
 0xf35   :  { %v3082_v58 = vsel %vm747_vm3, %v2993_v59, %v3081_v37 }
 0xf36   :  { %2881 = vadd.xlane.f32.xlu0 %v2880_v4  ;;  %v2999_v4 = vsel %vm650_vm1, %v2998_v34, %v2997_v15  ;;  %v3083_v25 = vsel %vm749_vm4, %v2996_v2, %v3082_v58 }
 0xf37   :  { %v8952_v51 = vpop.xlane.xlu2 %2785  ;;  %v3084_v26 = vsel %vm751_vm5, %v2999_v4, %v3083_v25 }
 0xf38   :  { %v3016_v33 = vperm.slane %v8952_v51, %v7258_v5 }
 0xf39   :  { %2887 = vadd.xlane.f32.xlu1 %v2886_v46  ;;  %v3002_v46 = vsel %vm650_vm1, %v3001_v32, %v3000_v55 }
 0xf3e   :  { %2890 = vadd.xlane.f32.xlu0 %v2889_v38 }
 0xf3f   :  { %v8958_v28 = vpop.xlane.xlu2 %2794 }
 0xf41   :  { %2896 = vadd.xlane.f32.xlu1 %v2895_v17  ;;  %v3085_v17 = vsel %vm11044_vm11, %v3002_v46, %v3084_v26  ;;  %vm11048_vm11 = vcmask 130048  }
 0xf42   :  { %v3086_v49 = vsel %vm11045_vm6, %v3005_v18, %v3085_v17 }
 0xf44   :  { %v8962_v43 = vpop.xlane.xlu1 %2770 }
 0xf46   :  { %2899 = vadd.xlane.f32.xlu0 %v2898_v39  ;;  %v3012_v39 = vperm.slane %v8943_v11, %v7255_v7 }
 0xf47   :  { %v8966_v50 = vpop.xlane.xlu2 %2803 }
 0xf48   :  { %v3025_v24 = vperm.slane %v8966_v50, %v7258_v5 }
 0xf49   :  { %2905 = vadd.xlane.f32.xlu1 %v2904_v21  ;;  %v2774_v8 = vpop.xlane.xlu0 %2773 }
 0xf4a   :  { %v3010_v44 = vperm.slane %v2774_v8, %v7258_v5  ;;  %v3009_v8 = vperm.slane %v8962_v43, %v7255_v7 }
 0xf4c   :  { %v2780_v57 = vpop.xlane.xlu1 %2779  ;;  %v3011_v51 = vsel %vm650_vm1, %v3010_v44, %v3009_v8 }
 0xf4d   :  { %v3013_v38 = vperm.slane %v2780_v57, %v7258_v5  ;;  %v3021_v57 = vperm.slane %v8958_v28, %v7255_v7 }
 0xf4e   :  { %2908 = vadd.xlane.f32.xlu0 %v2907_v14  ;;  %v3087_v14 = vsel %vm11046_vm12, %v3008_v40, %v3086_v49 }
 0xf4f   :  { %v8971_v35 = vpop.xlane.xlu2 %2812  ;;  %v3014_v11 = vsel %vm650_vm1, %v3013_v38, %v3012_v39 }
 0xf50   :  { %v3030_v47 = vperm.slane %v8971_v35, %v7255_v7 }
 0xf51   :  { %v2783_v19 = vpop.xlane.xlu0 %2782 }
 0xf52   :  { %v3015_v31 = vperm.slane %v2783_v19, %v7255_v7 }
 0xf54   :  { %v2789_v1 = vpop.xlane.xlu1 %2788  ;;  %v3017_v10 = vsel %vm650_vm1, %v3016_v33, %v3015_v31 }
 0xf57   :  { %v8977_v54 = vpop.xlane.xlu2 %2821 }
 0xf59   :  { %v2792_v30 = vpop.xlane.xlu0 %2791 }
 0xf5a   :  { %v3019_v21 = vperm.slane %v2792_v30, %v7258_v5  ;;  %v3018_v30 = vperm.slane %v2789_v1, %v7255_v7  ;;  %v3088_v1 = vsel %vm745_vm2, %v3014_v11, %v3011_v51 }
 0xf5b   :  { %v3089_v20 = vsel %vm747_vm3, %v3017_v10, %v3088_v1 }
 0xf5c   :  { %v2798_v12 = vpop.xlane.xlu1 %2797  ;;  %v3020_v42 = vsel %vm650_vm1, %v3019_v21, %v3018_v30 }
 0xf5d   :  { %v3022_v19 = vperm.slane %v2798_v12, %v7258_v5  ;;  %v3090_v37 = vsel %vm749_vm4, %v3020_v42, %v3089_v20 }
 0xf5f   :  { %v9017_v29 = vpop.xlane.xlu2 %2830  ;;  %v3023_v59 = vsel %vm650_vm1, %v3022_v19, %v3021_v57 }
 0xf60   :  { %v3039_v51 = vperm.slane %v9017_v29, %v7255_v7 }
 0xf61   :  { %v2801_v22 = vpop.xlane.xlu0 %2800 }
 0xf62   :  { %v3024_v16 = vperm.slane %v2801_v22, %v7255_v7  ;;  %v3091_v22 = vsel %vm751_vm5, %v3023_v59, %v3090_v37 }
 0xf64   :  { %v2807_v23 = vpop.xlane.xlu1 %2806  ;;  %v3026_v62 = vsel %vm650_vm1, %v3025_v24, %v3024_v16 }
 0xf65   :  { %v3027_v15 = vperm.slane %v2807_v23, %v7255_v7  ;;  %v3092_v35 = vsel %vm11047_vm15, %v3026_v62, %v3091_v22  ;;  %vm11049_vm15 = vmmov %vm11048_vm11 }
 0xf67   :  { %v2840_v32 = vpop.xlane.xlu2 %2839 }
 0xf69   :  { %v2810_v27 = vpop.xlane.xlu0 %2809 }
 0xf6a   :  { %v3028_v28 = vperm.slane %v2810_v27, %v7258_v5 }
 0xf6b   :  { %v2518_v36 = vpop.f32.mrf.mxu1 }
 0xf6c   :  { %v2561_v43 = vsel %vm7339_vm9, %v2518_v36, 0.0  ;;  %v2816_v12 = vpop.xlane.xlu1 %2815  ;;  %v3029_v3 = vsel %vm650_vm1, %v3028_v28, %v3027_v15 }
 0xf6d   :  { %vm2913_vm7 = vcmp.ne.f32.partialorder %v2561_v43, 0.0  ;;  %v3113_v50 = vadd.f32 %v3087_v14, %v2561_v43  ;;  %v3031_v56 = vperm.slane %v2816_v12, %v7258_v5  ;;  %v3093_v2 = vsel %vm11045_vm6, %v3029_v3, %v3092_v35 }
 0xf6e   :  { %vm2917_vm14 = vmand %vm7339_vm9, %vm2913_vm7  ;;  %v3034_v43 = vperm.slane %v8977_v54, %v7258_v5  ;;  %v3043_v12 = vperm.slane %v2840_v32, %v7258_v5 }
 0xf6f   :  { %v3117_v34 = vmul.f32 0.17677669, %v3113_v50  ;;  %v3032_v58 = vsel %vm650_vm1, %v3031_v56, %v3030_v47  ;;  %v2849_v26 = vpop.xlane.xlu2 %2848 }
 0xf70   :  { %v3094_v61 = vsel %vm11046_vm12, %v3032_v58, %v3093_v2  ;;  %v3048_v29 = vperm.slane %v2849_v26, %v7255_v7 }
 0xf71   :  { %v2819_v55 = vpop.xlane.xlu0 %2818  ;;  %v9062_v52 = vsel %vm2917_vm14, %v3117_v34, -1e+09 }
 0xf72   :  { %v3125_v41 = vsel %vm11048_vm11, %v9062_v52, -inf  ;;  %v3033_v30 = vperm.slane %v2819_v55, %v7255_v7  ;;  %vm11050_vm11 = vcmask 1045509  }
 0xf73   :  { %v2521_v4 = vpop.f32.mrf.mxu1  ;;  %3126 = vmax.xlane.f32.xlu1 %v3125_v41 }
 0xf74   :  { %v2562_v46 = vsel %vm7378_vm13, %v2521_v4, 0.0  ;;  %v2825_v23 = vpop.xlane.xlu1 %2824  ;;  %v3035_v15 = vsel %vm650_vm1, %v3034_v43, %v3033_v30 }
 0xf75   :  { %vm2914_vm7 = vcmp.ne.f32.partialorder %v2562_v46, 0.0  ;;  %v3114_v25 = vadd.f32 %v3094_v61, %v2562_v46  ;;  %v3036_v16 = vperm.slane %v2825_v23, %v7255_v7 }
 0xf76   :  { %vm2918_vm14 = vmand %vm7397_vm10, %vm2914_vm7 }
 0xf77   :  { %v3118_v18 = vmul.f32 0.17677669, %v3114_v25  ;;  %v2858_v49 = vpop.xlane.xlu2 %2857 }
 0xf78   :  { %v3052_v20 = vperm.slane %v2858_v49, %v7258_v5 }
 0xf79   :  { %v2828_v40 = vpop.xlane.xlu0 %2827  ;;  %v9073_v38 = vsel %vm2918_vm14, %v3118_v18, -1e+09 }
 0xf7a   :  { %v3128_v17 = vsel %vm11049_vm15, %v9073_v38, -inf  ;;  %v3037_v19 = vperm.slane %v2828_v40, %v7258_v5 }
 0xf7b   :  { %3129 = vmax.xlane.f32.xlu0 %v3128_v17 }
 0xf7c   :  { %v2834_v44 = vpop.xlane.xlu1 %2833  ;;  %v3038_v42 = vsel %vm650_vm1, %v3037_v19, %v3036_v16 }
 0xf7d   :  { %v3040_v11 = vperm.slane %v2834_v44, %v7258_v5  ;;  %v3095_v62 = vsel %vm745_vm2, %v3038_v42, %v3035_v15 }
 0xf7f   :  { %v9077_v14 = vpop.xlane.xlu2 %2866  ;;  %v3041_v56 = vsel %vm650_vm1, %v3040_v11, %v3039_v51 }
 0xf80   :  { %v3096_v34 = vsel %vm747_vm3, %v3041_v56, %v3095_v62 }
 0xf81   :  { %v2837_v31 = vpop.xlane.xlu0 %2836 }
 0xf82   :  { %v3042_v36 = vperm.slane %v2837_v31, %v7255_v7 }
 0xf84   :  { %v2843_v39 = vpop.xlane.xlu1 %2842  ;;  %v3044_v47 = vsel %vm650_vm1, %v3043_v12, %v3042_v36 }
 0xf85   :  { %v3045_v1 = vperm.slane %v2843_v39, %v7255_v7  ;;  %v3097_v58 = vsel %vm749_vm4, %v3044_v47, %v3096_v34 }
 0xf87   :  { %v9079_v8 = vpop.xlane.xlu2 %2875 }
 0xf88   :  { %v3061_v11 = vperm.slane %v9079_v8, %v7258_v5 }
 0xf89   :  { %v2846_v21 = vpop.xlane.xlu0 %2845 }
 0xf8a   :  { %v3046_v10 = vperm.slane %v2846_v21, %v7258_v5 }
 0xf8c   :  { %v2852_v27 = vpop.xlane.xlu1 %2851  ;;  %v3047_v32 = vsel %vm650_vm1, %v3046_v10, %v3045_v1  ;;  %v3057_v10 = vperm.slane %v9077_v14, %v7255_v7 }
 0xf8d   :  { %v3049_v50 = vperm.slane %v2852_v27, %v7258_v5  ;;  %v3098_v41 = vsel %vm751_vm5, %v3047_v32, %v3097_v58 }
 0xf8f   :  { %v3050_v37 = vsel %vm650_vm1, %v3049_v50, %v3048_v29  ;;  %v2885_v3 = vpop.xlane.xlu2 %2884 }
 0xf90   :  { %v3099_v46 = vsel %vm11050_vm11, %v3050_v37, %v3098_v41  ;;  %v3066_v43 = vperm.slane %v2885_v3, %v7255_v7 }
 0xf91   :  { %v2855_v33 = vpop.xlane.xlu0 %2854 }
 0xf92   :  { %v3051_v59 = vperm.slane %v2855_v33, %v7255_v7 }
 0xf94   :  { %v2861_v57 = vpop.xlane.xlu1 %2860  ;;  %v3053_v35 = vsel %vm650_vm1, %v3052_v20, %v3051_v59 }
 0xf95   :  { %v3054_v22 = vperm.slane %v2861_v57, %v7255_v7  ;;  %v3100_v23 = vsel %vm11045_vm6, %v3053_v35, %v3099_v46 }
 0xf97   :  { %v2894_v44 = vpop.xlane.xlu2 %2893 }
 0xf98   :  { %v3070_v8 = vperm.slane %v2894_v44, %v7258_v5 }
 0xf99   :  { %v2864_v24 = vpop.xlane.xlu0 %2863 }
 0xf9a   :  { %v3055_v54 = vperm.slane %v2864_v24, %v7258_v5 }
 0xf9c   :  { %v2870_v28 = vpop.xlane.xlu1 %2869  ;;  %v3056_v4 = vsel %vm650_vm1, %v3055_v54, %v3054_v22 }
 0xf9d   :  { %v3101_v18 = vsel %vm11046_vm12, %v3056_v4, %v3100_v23  ;;  %v3058_v30 = vperm.slane %v2870_v28, %v7258_v5  ;;  %v6305_v4 = vpack.i.bf16 %v8566_v6, %v8655_v53 }
 0xf9f   :  { %v2903_v33 = vpop.xlane.xlu2 %2902  ;;  %v3059_v1 = vsel %vm650_vm1, %v3058_v30, %v3057_v10 }
 0xfa0   :  { %v3075_v14 = vperm.slane %v2903_v33, %v7255_v7 }
 0xfa1   :  { %v2873_v55 = vpop.xlane.xlu0 %2872 }
 0xfa2   :  { %v3060_v57 = vperm.slane %v2873_v55, %v7255_v7 }
 0xfa4   :  { %v2879_v2 = vpop.xlane.xlu1 %2878  ;;  %v3062_v12 = vsel %vm650_vm1, %v3061_v11, %v3060_v57  ;;  %v6310_v57 = vpack.i.bf16 %v8693_v60, %v8682_v63 }
 0xfa5   :  { %v2555_v61 = vpop.f32.mrf.mxu2  ;;  %v3063_v36 = vperm.slane %v2879_v2, %v7255_v7  ;;  %v3102_v15 = vsel %vm745_vm2, %v3062_v12, %v3059_v1 }
 0xfa6   :  { %v2563_v25 = vsel %vm7339_vm9, %v2555_v61, 0.0 }
 0xfa7   :  { %vm2915_vm7 = vcmp.ne.f32.partialorder %v2563_v25, 0.0  ;;  %v3115_v26 = vadd.f32 %v3101_v18, %v2563_v25  ;;  %v2912_v47 = vpop.xlane.xlu2 %2911 }
 0xfa8   :  { %vm2919_vm14 = vmand %vm7339_vm9, %vm2915_vm7  ;;  %v3079_v22 = vperm.slane %v2912_v47, %v7258_v5  ;;  %v6141_v47 = vld [vmem:[%s10999_s4 + $0x58] sm:$0xff] }
 0xfa9   :  { %v3119_v40 = vmul.f32 0.17677669, %v3115_v26  ;;  %v2882_v17 = vpop.xlane.xlu0 %2881  ;;  %3269 = vmatpush.msra.mxu1 %v6141_v47 }
 0xfaa   :  { %v3064_v19 = vperm.slane %v2882_v17, %v7258_v5 }
 0xfab   :  { %v9118_v31 = vsel %vm2919_vm14, %v3119_v40, -1e+09 }
 0xfac   :  { %v2888_v49 = vpop.xlane.xlu1 %2887  ;;  %v3131_v39 = vsel %vm11049_vm15, %v9118_v31, -inf  ;;  %v3065_v28 = vsel %vm650_vm1, %v3064_v19, %v3063_v36 }
 0xfad   :  { %3132 = vmax.xlane.f32.xlu2 %v3131_v39  ;;  %v3067_v16 = vperm.slane %v2888_v49, %v7258_v5  ;;  %v3103_v20 = vsel %vm747_vm3, %v3065_v28, %v3102_v15  ;;  %v2558_v62 = vpop.f32.mrf.mxu2 }
 0xfae   :  { %v2564_v35 = vsel %vm7378_vm13, %v2558_v62, 0.0 }
 0xfaf   :  { %v3068_v59 = vsel %vm650_vm1, %v3067_v16, %v3066_v43  ;;  %vm2916_vm7 = vcmp.ne.f32.partialorder %v2564_v35, 0.0 }
 0xfb0   :  { %v3104_v34 = vsel %vm749_vm4, %v3068_v59, %v3103_v20  ;;  %vm2920_vm14 = vmand %vm7397_vm10, %vm2916_vm7  ;;  %v6139_v20 = vld [vmem:[%s10999_s4 + $0x48] sm:$0xff] }
 0xfb1   :  { %v2891_v21 = vpop.xlane.xlu0 %2890 }
 0xfb2   :  { %v3069_v51 = vperm.slane %v2891_v21, %v7255_v7 }
 0xfb4   :  { %v2897_v27 = vpop.xlane.xlu1 %2896  ;;  %v3071_v54 = vsel %vm650_vm1, %v3070_v8, %v3069_v51 }
 0xfb5   :  { %v3072_v29 = vperm.slane %v2897_v27, %v7255_v7  ;;  %v3105_v55 = vsel %vm751_vm5, %v3071_v54, %v3104_v34  ;;  %v6140_v54 = vld [vmem:[%s10999_s4 + $0x50] sm:$0xff] }
 0xfb6   :  { %3270 = vmatpush.msra.mxu1 %v6140_v54 }
 0xfb8   :  { %3271 = vmatpush.msra.mxu1 %v6139_v20 }
 0xfb9   :  { %v2900_v24 = vpop.xlane.xlu0 %2899 }
 0xfba   :  { %v3073_v42 = vperm.slane %v2900_v24, %v7258_v5 }
 0xfbc   :  { %v2906_v50 = vpop.xlane.xlu1 %2905  ;;  %v3074_v32 = vsel %vm650_vm1, %v3073_v42, %v3072_v29 }
 0xfbd   :  { %v3076_v56 = vperm.slane %v2906_v50, %v7258_v5  ;;  %v3106_v41 = vsel %vm11050_vm11, %v3074_v32, %v3105_v55  ;;  %vm11051_vm11 = vmmov %vm11049_vm15 }
 0xfbf   :  { %v3077_v37 = vsel %vm650_vm1, %v3076_v56, %v3075_v14 }
 0xfc0   :  { %v3107_v46 = vsel %vm11045_vm6, %v3077_v37, %v3106_v41  ;;  %vm11052_vm6 = vmmov %vm11051_vm11  ;;  %v6138_v37 = vld [vmem:[%s10999_s4 + $0x40] sm:$0xff] }
 0xfc1   :  { %v2909_v3 = vpop.xlane.xlu0 %2908  ;;  %vm11054_vm7 = vmmov %vm11052_vm6  ;;  %3272 = vmatpush.msra.mxu1 %v6138_v37 }
 0xfc2   :  { %v3078_v58 = vperm.slane %v2909_v3, %v7255_v7 }
 0xfc4   :  { %v3080_v2 = vsel %vm650_vm1, %v3079_v22, %v3078_v58 }
 0xfc5   :  { %6306 = vrot.lane.b32.xlu2 %v6305_v4, %s6683_s27  ;;  %v3108_v61 = vsel %vm11046_vm12, %v3080_v2, %v3107_v46  ;;  %vm11053_vm12 = vmmov %vm11052_vm6 }
 0xfc6   :  { %v3116_v23 = vadd.f32 %v3108_v61, %v2564_v35  ;;  %v9196_v35 = vld [vmem:[%s11003_s8 + $0x10] sm:$0x3f] }
 0xfc7   :  { %v3244_v41 = vperm.slane %v9196_v35, 0 }
 0xfc8   :  { %v3120_v25 = vmul.f32 0.17677669, %v3116_v23 }
 0xfca   :  { %v3124_v18 = vsel %vm2920_vm14, %v3120_v25, -1e+09  ;;  %vm11055_vm14 = vmmov %vm11052_vm6 }
 0xfcb   :  { %v3134_v26 = vsel %vm11049_vm15, %v3124_v18, -inf  ;;  %vm11056_vm15 = vmmov %vm11052_vm6 }
 0xfcc   :  { %3135 = vmax.xlane.f32.xlu1 %v3134_v26 }
 0xfe6   :  { %v3127_v40 = vpop.xlane.xlu1 %3126 }
 0xfe7   :  { %v3137_v6 = vsub.f32 %v9062_v52, %v3127_v40 }
 0xfe9   :  { %v3141_v53 = vmul.f32 1.442695, %v3137_v6 }
 0xfeb   :  { %6412 = vpow2.f32 %v3141_v53  ;;  %v11058_v53 = vld [vmem:[#allocation6_spill] sm:$0xff] }
 0xfee   :  { %v3130_v17 = vpop.xlane.xlu0 %3129 }
 0xfef   :  { %v3138_v44 = vsub.f32 %v9073_v38, %v3130_v17 }
 0xff1   :  { %v6413_v49 = vpop.eup %6412  ;;  %v3143_v39 = vmul.f32 1.442695, %v3138_v44 }
 0xff2   :  { %v3149_v21 = vsel %vm11051_vm11, %v6413_v49, 0.0  ;;  %vm11057_vm11 = vmmov %vm11052_vm6 }
 0xff3   :  { %6414 = vpow2.f32 %v3143_v39  ;;  %3150 = vadd.xlane.f32.xlu0 %v3149_v21 }
 0xff9   :  { %v6415_v27 = vpop.eup %6414 }
 0xffa   :  { %v3152_v33 = vsel %vm11052_vm6, %v6415_v27, 0.0 }
 0xffb   :  { %3153 = vadd.xlane.f32.xlu1 %v3152_v33 }
0x1014   :  { %6311 = vrot.lane.b32.xlu1 %v6310_v57, %s6683_s27  ;;  %v11060_v57 = vld [vmem:[#allocation5_spill] sm:$0xff] }
0x1020   :  { %v3133_v52 = vpop.xlane.xlu2 %3132 }
0x1021   :  { %v3139_v19 = vsub.f32 %v9118_v31, %v3133_v52 }
0x1023   :  { %v3145_v24 = vmul.f32 1.442695, %v3139_v19 }
0x1025   :  { %6416 = vpow2.f32 %v3145_v24 }
0x1028   :  { %v6307_v38 = vpop.permute.xlu2 %6306 }
0x1029   :  { %v6308_v11 = vunpack.i.l.bf16 %v6307_v38  ;;  %v6309_v16 = vunpack.i.h.bf16 %v6307_v38 }
0x102b   :  { %v6417_v30 = vpop.eup %6416  ;;  %3195 = vmatpush.msrb.mxu3 %v6308_v11 }
0x102c   :  { %v3155_v36 = vsel %vm11053_vm12, %v6417_v30, 0.0 }
0x102d   :  { %3156 = vadd.xlane.f32.xlu0 %v3155_v36  ;;  %3196 = vmatpush.msrb.mxu3 %v6309_v16 }
0x103f   :  { %v3136_v51 = vpop.xlane.xlu1 %3135 }
0x1040   :  { %v3140_v10 = vsub.f32 %v3124_v18, %v3136_v51 }
0x1042   :  { %v3147_v43 = vmul.f32 1.442695, %v3140_v10 }
0x1044   :  { %6418 = vpow2.f32 %v3147_v43 }
0x104a   :  { %v6419_v63 = vpop.eup %6418 }
0x104b   :  { %v3158_v60 = vsel %vm11054_vm7, %v6419_v63, 0.0 }
0x104c   :  { %3159 = vadd.xlane.f32.xlu0 %v3158_v60 }
0x1066   :  { %v3151_v31 = vpop.xlane.xlu0 %3150 }
0x1067   :  { %6420 = vrcp.f32 %v3151_v31 }
0x106d   :  { %v6421_v12 = vpop.eup %6420 }
0x106e   :  { %v3165_v42 = vmul.f32 %v6421_v12, %v6413_v49  ;;  %v3154_v50 = vpop.xlane.xlu1 %3153 }
0x106f   :  { %6422 = vrcp.f32 %v3154_v50 }
0x1070   :  { %6134 = vmatmul.msk.f32.vlgmr.msrb.gmra.mxu3 %vm11055_vm14, %v3165_v42 }
0x1075   :  { %v6423_v8 = vpop.eup %6422 }
0x1076   :  { %v3166_v28 = vmul.f32 %v6423_v8, %v6415_v27 }
0x1078   :  { %6135 = vmatmul.msk.f32.gmra.mxu3 %vm11056_vm15, %v3166_v28  ;;  %v6149_v28 = vld [vmem:[%s11000_s5 + $0x58] sm:$0xff] }
0x1079   :  { %3422 = vmatpush.msra.mxu2 %v6149_v28 }
0x1086   :  { %v6312_v56 = vpop.permute.xlu1 %6311 }
0x1087   :  { %v6313_v1 = vunpack.i.l.bf16 %v6312_v56  ;;  %v6314_v59 = vunpack.i.h.bf16 %v6312_v56  ;;  %v6148_v56 = vld [vmem:[%s11000_s5 + $0x50] sm:$0xff] }
0x1088   :  { %3423 = vmatpush.msra.mxu2 %v6148_v56 }
0x1089   :  { %3230 = vmatpush.msra.mxu0 %v6313_v1  ;;  %v6147_v1 = vld [vmem:[%s11000_s5 + $0x48] sm:$0xff] }
0x108a   :  { %3424 = vmatpush.msra.mxu2 %v6147_v1 }
0x108b   :  { %3231 = vmatpush.msra.mxu0 %v6314_v59 }
0x10a0   :  { %v3157_v29 = vpop.xlane.xlu0 %3156 }
0x10a1   :  { %6424 = vrcp.f32 %v3157_v29  ;;  %v6146_v29 = vld [vmem:[%s11000_s5 + $0x40] sm:$0xff] }
0x10a2   :  { %3425 = vmatpush.msra.mxu2 %v6146_v29 }
0x10a7   :  { %v6425_v14 = vpop.eup %6424 }
0x10a8   :  { %v3167_v15 = vmul.f32 %v6425_v14, %v6417_v30 }
0x10aa   :  { %6136 = vmatmul.msk.f32.vlgmr.msra.gmra.mxu0 %vm11057_vm11, %v3167_v15 }
0x10bf   :  { %v3160_v62 = vpop.xlane.xlu0 %3159 }
0x10c0   :  { %6426 = vrcp.f32 %v3160_v62 }
0x10c6   :  { %v6427_v32 = vpop.eup %6426 }
0x10c7   :  { %v3168_v34 = vmul.f32 %v6427_v32, %v6419_v63 }
0x10c9   :  { %6137 = vmatmul.msk.f32.gmra.mxu0 %vm11052_vm6, %v3168_v34 }
0x10f3   :  { %v3198_v3 = vpop.f32.mrf.mxu3 }
0x10f4   :  { %6142 = vmatmul.msk.f32.vlgmr.msra.gmra.mxu1 %vm99_vm0, %v3198_v3 }
0x10fb   :  { %v3201_v22 = vpop.f32.mrf.mxu3 }
0x10fc   :  { %6143 = vmatmul.msk.f32.gmra.mxu1 %vm99_vm0, %v3201_v22 }
0x1127   :  { %v3233_v55 = vpop.f32.mrf.mxu0 }
0x1128   :  { %6144 = vmatmul.msk.f32.gmra.mxu1 %vm99_vm0, %v3233_v55 }
0x1146   :  { %v3236_v58 = vpop.f32.mrf.mxu0 }
0x1147   :  { %6145 = vmatmul.msk.f32.gmra.mxu1 %vm99_vm0, %v3236_v58 }
0x1171   :  { %v3274_v4 = vpop.f32.mrf.mxu1 }
0x1172   :  { %v3275_v2 = vadd.f32 %v3274_v4, %v3244_v41 }
0x1174   :  { %v3286_v46 = vadd.f32 %v3275_v2, %v8540_v0  ;;  %v11059_v0 = vld [vmem:[#allocation7_spill] sm:$0xff] }
0x1176   :  { %v3290_v61 = vsel %vm99_vm0, %v3286_v46, 0.0 }
0x1177   :  { %3291 = vadd.xlane.f32.xlu0 %v3290_v61  ;;  %v3383_v61 = vperm.slane %v9196_v35, 2 }
0x1179   :  { %v3277_v23 = vpop.f32.mrf.mxu1 }
0x117a   :  { %v3278_v25 = vadd.f32 %v3277_v23, %v3244_v41 }
0x117c   :  { %v3287_v18 = vadd.f32 %v3278_v25, %v8544_v13 }
0x117e   :  { %v3293_v26 = vsel %vm99_vm0, %v3287_v18, 0.0 }
0x117f   :  { %3294 = vadd.xlane.f32.xlu2 %v3293_v26 }
0x11a5   :  { %v3280_v40 = vpop.f32.mrf.mxu1 }
0x11a6   :  { %v3281_v6 = vadd.f32 %v3280_v40, %v3244_v41 }
0x11a8   :  { %v3288_v17 = vadd.f32 %v3281_v6, %v11058_v53 }
0x11aa   :  { %v3296_v44 = vsel %vm99_vm0, %v3288_v17, 0.0 }
0x11ab   :  { %3297 = vadd.xlane.f32.xlu0 %v3296_v44 }
0x11c4   :  { %v3283_v49 = vpop.f32.mrf.mxu1 }
0x11c5   :  { %v3284_v39 = vadd.f32 %v3283_v49, %v3244_v41  ;;  %v9238_v41 = vperm.slane %v9196_v35, 1 }
0x11c7   :  { %v3289_v21 = vadd.f32 %v3284_v39, %v11059_v0 }
0x11c9   :  { %v3299_v27 = vsel %vm99_vm0, %v3289_v21, 0.0 }
0x11ca   :  { %3300 = vadd.xlane.f32.xlu0 %v3299_v27 }
0x11ea   :  { %v3292_v33 = vpop.xlane.xlu0 %3291 }
0x11eb   :  { %v3302_v13 = vmul.f32 %v3292_v33, %v11060_v57 }
0x11ed   :  { %v3306_v52 = vsub.f32 %v3286_v46, %v3302_v13 }
0x11ef   :  { %v3310_v19 = vmul.f32 %v3306_v52, %v3306_v52 }
0x11f1   :  { %v3314_v24 = vsel %vm99_vm0, %v3310_v19, 0.0 }
0x11f2   :  { %v3295_v38 = vpop.xlane.xlu2 %3294  ;;  %3315 = vadd.xlane.f32.xlu1 %v3314_v24 }
0x11f3   :  { %v3303_v11 = vmul.f32 %v3295_v38, %v11060_v57 }
0x11f5   :  { %v3307_v30 = vsub.f32 %v3287_v18, %v3303_v11 }
0x11f7   :  { %v3311_v16 = vmul.f32 %v3307_v30, %v3307_v30 }
0x11f9   :  { %v3317_v36 = vsel %vm99_vm0, %v3311_v16, 0.0  ;;  %v6162_v16 = vld [vmem:[%s11002_s7 + $0xb8] sm:$0xff] }
0x11fa   :  { %3318 = vadd.xlane.f32.xlu0 %v3317_v36  ;;  %v6161_v36 = vld [vmem:[%s11002_s7 + $0xb0] sm:$0xff]  ;;  %3473 = vmatpush.msra.mxu3 %v6162_v16 }
0x11fc   :  { %3474 = vmatpush.msra.mxu3 %v6161_v36 }
0x121e   :  { %v3298_v51 = vpop.xlane.xlu0 %3297 }
0x121f   :  { %v3304_v10 = vmul.f32 %v3298_v51, %v11060_v57  ;;  %v6160_v51 = vld [vmem:[%s11002_s7 + $0xa8] sm:$0xff] }
0x1220   :  { %3475 = vmatpush.msra.mxu3 %v6160_v51 }
0x1221   :  { %v9212_v43 = vsub.f32 %v3288_v17, %v3304_v10 }
0x1223   :  { %v3312_v63 = vmul.f32 %v9212_v43, %v9212_v43 }
0x1225   :  { %v3320_v60 = vsel %vm99_vm0, %v3312_v63, 0.0  ;;  %v6159_v63 = vld [vmem:[%s11002_s7 + $0xa0] sm:$0xff] }
0x1226   :  { %3321 = vadd.xlane.f32.xlu0 %v3320_v60  ;;  %3476 = vmatpush.msra.mxu3 %v6159_v63 }
0x123d   :  { %v3301_v31 = vpop.xlane.xlu0 %3300 }
0x123e   :  { %v3305_v12 = vmul.f32 %v3301_v31, %v11060_v57  ;;  %v6158_v31 = vld [vmem:[%s11002_s7 + $0x98] sm:$0xff] }
0x123f   :  { %3477 = vmatpush.msra.mxu3 %v6158_v31 }
0x1240   :  { %v9218_v42 = vsub.f32 %v3289_v21, %v3305_v12 }
0x1242   :  { %v3313_v50 = vmul.f32 %v9218_v42, %v9218_v42 }
0x1244   :  { %v3323_v8 = vsel %vm99_vm0, %v3313_v50, 0.0 }
0x1245   :  { %3324 = vadd.xlane.f32.xlu0 %v3323_v8 }
0x1265   :  { %v3316_v59 = vpop.xlane.xlu1 %3315 }
0x1266   :  { %v3326_v14 = vmul.f32 %v3316_v59, %v11060_v57 }
0x1268   :  { %v3330_v15 = vadd.f32 1e-05, %v3326_v14 }
0x126a   :  { %6428 = vrsqrt.f32 %v3330_v15  ;;  %vm3340_vm7 = vweird.f32 %v3330_v15 }
0x126d   :  { %v3319_v47 = vpop.xlane.xlu0 %3318 }
0x126e   :  { %v3327_v54 = vmul.f32 %v3319_v47, %v11060_v57  ;;  %v6157_v47 = vld [vmem:[%s11002_s7 + $0x90] sm:$0xff] }
0x126f   :  { %3478 = vmatpush.msra.mxu3 %v6157_v47  ;;  %v6168_v47 = vld [vmem:[%s10997_s2 + $0x60] sm:$0xff] }
0x1270   :  { %v6429_v20 = vpop.eup %6428  ;;  %v3331_v62 = vadd.f32 1e-05, %v3327_v54  ;;  %v6156_v54 = vld [vmem:[%s11002_s7 + $0x88] sm:$0xff] }
0x1271   :  { %v3335_v32 = vmul.f32 %v6429_v20, %v3330_v15  ;;  %vm3341_vm12 = vweird.f32 %v6429_v20  ;;  %3479 = vmatpush.msra.mxu3 %v6156_v54 }
0x1272   :  { %6430 = vrsqrt.f32 %v3331_v62  ;;  %vm3342_vm14 = vmor %vm3340_vm7, %vm3341_vm12  ;;  %vm3350_vm11 = vweird.f32 %v3331_v62 }
0x1273   :  { %v3336_v34 = vmul.f32 %v6429_v20, %v3335_v32 }
0x1275   :  { %v3337_v37 = vmul.f32 0.5, %v3336_v34 }
0x1277   :  { %v3338_v3 = vsub.f32 1.5, %v3337_v37 }
0x1278   :  { %v6431_v22 = vpop.eup %6430 }
0x1279   :  { %v3339_v55 = vmul.f32 %v6429_v20, %v3338_v3  ;;  %v3345_v58 = vmul.f32 %v6431_v22, %v3331_v62  ;;  %vm3351_vm15 = vweird.f32 %v6431_v22 }
0x127a   :  { %vm3352_vm6 = vmor %vm3350_vm11, %vm3351_vm15 }
0x127b   :  { %v3343_v4 = vsel %vm3342_vm14, %v6429_v20, %v3339_v55  ;;  %v3346_v2 = vmul.f32 %v6431_v22, %v3345_v58  ;;  %v6155_v20 = vld [vmem:[%s11002_s7 + $0x80] sm:$0xff] }
0x127c   :  { %v3374_v46 = vmul.f32 %v3343_v4, %v3306_v52  ;;  %3480 = vmatpush.msra.mxu3 %v6155_v20 }
0x127d   :  { %v3347_v23 = vmul.f32 0.5, %v3346_v2 }
0x127e   :  { %v3379_v25 = vmul.f32 %v9238_v41, %v3374_v46 }
0x127f   :  { %v3348_v18 = vsub.f32 1.5, %v3347_v23 }
0x1280   :  { %v9242_v26 = vadd.f32 %v3383_v61, %v3379_v25 }
0x1281   :  { %v3349_v40 = vmul.f32 %v6431_v22, %v3348_v18 }
0x1282   :  { %6151 = vmatmul.msk.f32.vlgmr.msra.gmra.mxu2 %vm99_vm0, %v9242_v26 }
0x1283   :  { %v3353_v6 = vsel %vm3352_vm6, %v6431_v22, %v3349_v40 }
0x1284   :  { %v3375_v53 = vmul.f32 %v3353_v6, %v3307_v30 }
0x1286   :  { %v3380_v17 = vmul.f32 %v9238_v41, %v3375_v53 }
0x1288   :  { %v9247_v44 = vadd.f32 %v3383_v61, %v3380_v17 }
0x128a   :  { %6152 = vmatmul.msk.f32.gmra.mxu2 %vm99_vm0, %v9247_v44 }
0x1299   :  { %v3322_v49 = vpop.xlane.xlu0 %3321 }
0x129a   :  { %v3328_v39 = vmul.f32 %v3322_v49, %v11060_v57 }
0x129c   :  { %v3332_v0 = vadd.f32 1e-05, %v3328_v39 }
0x129e   :  { %6432 = vrsqrt.f32 %v3332_v0  ;;  %vm3360_vm7 = vweird.f32 %v3332_v0 }
0x12a4   :  { %v6433_v21 = vpop.eup %6432 }
0x12a5   :  { %v3355_v27 = vmul.f32 %v6433_v21, %v3332_v0  ;;  %vm3361_vm12 = vweird.f32 %v6433_v21 }
0x12a6   :  { %vm3362_vm14 = vmor %vm3360_vm7, %vm3361_vm12 }
0x12a7   :  { %v3356_v33 = vmul.f32 %v6433_v21, %v3355_v27 }
0x12a9   :  { %v3357_v13 = vmul.f32 0.5, %v3356_v33 }
0x12ab   :  { %v3358_v52 = vsub.f32 1.5, %v3357_v13 }
0x12ad   :  { %v3359_v19 = vmul.f32 %v6433_v21, %v3358_v52 }
0x12af   :  { %v3363_v24 = vsel %vm3362_vm14, %v6433_v21, %v3359_v19 }
0x12b0   :  { %v3376_v38 = vmul.f32 %v3363_v24, %v9212_v43 }
0x12b2   :  { %v3381_v11 = vmul.f32 %v9238_v41, %v3376_v38 }
0x12b4   :  { %v9254_v30 = vadd.f32 %v3383_v61, %v3381_v11 }
0x12b6   :  { %6153 = vmatmul.msk.f32.gmra.mxu2 %vm99_vm0, %v9254_v30 }
0x12b8   :  { %v3325_v10 = vpop.xlane.xlu0 %3324 }
0x12b9   :  { %v3329_v43 = vmul.f32 %v3325_v10, %v11060_v57 }
0x12bb   :  { %v3333_v60 = vadd.f32 1e-05, %v3329_v43 }
0x12bd   :  { %6434 = vrsqrt.f32 %v3333_v60  ;;  %vm3370_vm11 = vweird.f32 %v3333_v60 }
0x12c3   :  { %v6435_v12 = vpop.eup %6434 }
0x12c4   :  { %v3365_v50 = vmul.f32 %v6435_v12, %v3333_v60  ;;  %vm3371_vm15 = vweird.f32 %v6435_v12 }
0x12c5   :  { %vm3372_vm6 = vmor %vm3370_vm11, %vm3371_vm15 }
0x12c6   :  { %v3366_v8 = vmul.f32 %v6435_v12, %v3365_v50 }
0x12c8   :  { %v3367_v28 = vmul.f32 0.5, %v3366_v8 }
0x12ca   :  { %v3368_v56 = vsub.f32 1.5, %v3367_v28 }
0x12cc   :  { %v3369_v1 = vmul.f32 %v6435_v12, %v3368_v56 }
0x12ce   :  { %v3373_v59 = vsel %vm3372_vm6, %v6435_v12, %v3369_v1 }
0x12cf   :  { %v3377_v29 = vmul.f32 %v3373_v59, %v9218_v42  ;;  %v6340_v42 = vld [vmem:[%s11001_s6 + $0x2] ss:$0 sm:$0xff]  ;;  %v6171_v59 = vld [vmem:[%s10997_s2 + $0x78] sm:$0xff] }
0x12d0   :  { %3632 = vmatpush.msrb.mxu0 %v6171_v59 }
0x12d1   :  { %v3382_v14 = vmul.f32 %v9238_v41, %v3377_v29  ;;  %v6170_v29 = vld [vmem:[%s10997_s2 + $0x70] sm:$0xff] }
0x12d2   :  { %3633 = vmatpush.msrb.mxu0 %v6170_v29  ;;  %v9356_v29 = vld [vmem:[%s10998_s3 + $0x3] ss:$0 sm:$0xff] }
0x12d3   :  { %v3387_v15 = vadd.f32 %v3383_v61, %v3382_v14  ;;  %v3452_v61 = vperm.slane %v9196_v35, 3  ;;  %v6169_v14 = vld [vmem:[%s10997_s2 + $0x68] sm:$0xff] }
0x12d4   :  { %3634 = vmatpush.msrb.mxu0 %v6169_v14 }
0x12d5   :  { %6154 = vmatmul.msk.f32.gmra.mxu2 %vm99_vm0, %v3387_v15 }
0x12d6   :  { %3635 = vmatpush.msrb.mxu0 %v6168_v47 }
0x1305   :  { %v3427_v62 = vpop.f32.mrf.mxu2 }
0x1306   :  { %v3428_v32 = vadd.f32 %v6340_v42, %v3427_v62 }
0x1308   :  { %v3439_v34 = vmax.f32 %v3428_v32, 0.0 }
0x130a   :  { %6163 = vmatmul.msk.f32.vlgmr.msra.gmra.mxu3 %vm1128_vm8, %v3439_v34 }
0x130d   :  { %v3430_v37 = vpop.f32.mrf.mxu2 }
0x130e   :  { %v3431_v3 = vadd.f32 %v6340_v42, %v3430_v37 }
0x1310   :  { %v3440_v22 = vmax.f32 %v3431_v3, 0.0 }
0x1312   :  { %6164 = vmatmul.msk.f32.gmra.mxu3 %vm1128_vm8, %v3440_v22 }
0x1339   :  { %v3433_v55 = vpop.f32.mrf.mxu2 }
0x133a   :  { %v3434_v58 = vadd.f32 %v6340_v42, %v3433_v55 }
0x133c   :  { %v3441_v41 = vmax.f32 %v3434_v58, 0.0 }
0x133e   :  { %6165 = vmatmul.msk.f32.gmra.mxu3 %vm1128_vm8, %v3441_v41 }
0x1358   :  { %v3436_v4 = vpop.f32.mrf.mxu2 }
0x1359   :  { %v3437_v2 = vadd.f32 %v6340_v42, %v3436_v4 }
0x135b   :  { %v3442_v46 = vmax.f32 %v3437_v2, 0.0  ;;  %v3586_v2 = vperm.slane %v9196_v35, 4 }
0x135d   :  { %6166 = vmatmul.msk.f32.gmra.mxu3 %vm1128_vm8, %v3442_v46 }
0x138d   :  { %v3482_v23 = vpop.f32.mrf.mxu3 }
0x138e   :  { %v3483_v25 = vadd.f32 %v3482_v23, %v3452_v61 }
0x1390   :  { %v3494_v18 = vadd.f32 %v3483_v25, %v9242_v26  ;;  %v3591_v25 = vperm.slane %v9196_v35, 5 }
0x1392   :  { %v3498_v40 = vsel %vm99_vm0, %v3494_v18, 0.0 }
0x1393   :  { %3499 = vadd.xlane.f32.xlu2 %v3498_v40 }
0x1395   :  { %v3485_v6 = vpop.f32.mrf.mxu3 }
0x1396   :  { %v3486_v53 = vadd.f32 %v3485_v6, %v3452_v61 }
0x1398   :  { %v3495_v17 = vadd.f32 %v3486_v53, %v9247_v44 }
0x139a   :  { %v3501_v49 = vsel %vm99_vm0, %v3495_v17, 0.0 }
0x139b   :  { %3502 = vadd.xlane.f32.xlu0 %v3501_v49 }
0x13c1   :  { %v3488_v39 = vpop.f32.mrf.mxu3 }
0x13c2   :  { %v3489_v0 = vadd.f32 %v3488_v39, %v3452_v61 }
0x13c4   :  { %v3496_v21 = vadd.f32 %v3489_v0, %v9254_v30 }
0x13c6   :  { %v3504_v27 = vsel %vm99_vm0, %v3496_v21, 0.0 }
0x13c7   :  { %3505 = vadd.xlane.f32.xlu2 %v3504_v27 }
0x13e0   :  { %v3491_v33 = vpop.f32.mrf.mxu3 }
0x13e1   :  { %v3492_v13 = vadd.f32 %v3491_v33, %v3452_v61 }
0x13e3   :  { %v3497_v26 = vadd.f32 %v3492_v13, %v3387_v15 }
0x13e5   :  { %v3507_v52 = vsel %vm99_vm0, %v3497_v26, 0.0 }
0x13e6   :  { %3508 = vadd.xlane.f32.xlu0 %v3507_v52 }
0x1406   :  { %v3500_v19 = vpop.xlane.xlu2 %3499 }
0x1407   :  { %v3510_v24 = vmul.f32 %v3500_v19, %v11060_v57 }
0x1409   :  { %v3514_v44 = vsub.f32 %v3494_v18, %v3510_v24 }
0x140b   :  { %v3518_v38 = vmul.f32 %v3514_v44, %v3514_v44 }
0x140d   :  { %v3522_v11 = vsel %vm99_vm0, %v3518_v38, 0.0 }
0x140e   :  { %3523 = vadd.xlane.f32.xlu2 %v3522_v11  ;;  %v3503_v16 = vpop.xlane.xlu0 %3502 }
0x140f   :  { %v3511_v30 = vmul.f32 %v3503_v16, %v11060_v57 }
0x1411   :  { %v3515_v36 = vsub.f32 %v3495_v17, %v3511_v30 }
0x1413   :  { %v3519_v51 = vmul.f32 %v3515_v36, %v3515_v36 }
0x1415   :  { %v3525_v10 = vsel %vm99_vm0, %v3519_v51, 0.0 }
0x1416   :  { %3526 = vadd.xlane.f32.xlu1 %v3525_v10 }
0x143a   :  { %v3506_v43 = vpop.xlane.xlu2 %3505 }
0x143b   :  { %v3512_v63 = vmul.f32 %v3506_v43, %v11060_v57 }
0x143d   :  { %v9306_v60 = vsub.f32 %v3496_v21, %v3512_v63 }
0x143f   :  { %v3520_v31 = vmul.f32 %v9306_v60, %v9306_v60 }
0x1441   :  { %v3528_v12 = vsel %vm99_vm0, %v3520_v31, 0.0 }
0x1442   :  { %3529 = vadd.xlane.f32.xlu0 %v3528_v12 }
0x1459   :  { %v3509_v50 = vpop.xlane.xlu0 %3508 }
0x145a   :  { %v3513_v8 = vmul.f32 %v3509_v50, %v11060_v57 }
0x145c   :  { %v9312_v28 = vsub.f32 %v3497_v26, %v3513_v8 }
0x145e   :  { %v3521_v56 = vmul.f32 %v9312_v28, %v9312_v28 }
0x1460   :  { %v3531_v1 = vsel %vm99_vm0, %v3521_v56, 0.0 }
0x1461   :  { %3532 = vadd.xlane.f32.xlu2 %v3531_v1 }
0x1481   :  { %v3524_v15 = vpop.xlane.xlu2 %3523 }
0x1482   :  { %v3534_v54 = vmul.f32 %v3524_v15, %v11060_v57 }
0x1484   :  { %v3538_v20 = vadd.f32 1e-05, %v3534_v54 }
0x1486   :  { %6436 = vrsqrt.f32 %v3538_v20  ;;  %vm3548_vm7 = vweird.f32 %v3538_v20 }
0x1489   :  { %v3527_v42 = vpop.xlane.xlu1 %3526 }
0x148a   :  { %v3535_v62 = vmul.f32 %v3527_v42, %v11060_v57 }
0x148c   :  { %v6437_v32 = vpop.eup %6436  ;;  %v3539_v34 = vadd.f32 1e-05, %v3535_v62 }
0x148d   :  { %v3543_v37 = vmul.f32 %v6437_v32, %v3538_v20  ;;  %vm3549_vm12 = vweird.f32 %v6437_v32  ;;  %v9369_v20 = vld [vmem:[%s10996_s1 + $0x8] sm:$0xff] }
0x148e   :  { %6438 = vrsqrt.f32 %v3539_v34  ;;  %vm3550_vm14 = vmor %vm3548_vm7, %vm3549_vm12  ;;  %vm3558_vm11 = vweird.f32 %v3539_v34 }
0x148f   :  { %v3544_v3 = vmul.f32 %v6437_v32, %v3543_v37 }
0x1491   :  { %v3545_v22 = vmul.f32 0.5, %v3544_v3 }
0x1493   :  { %v3546_v55 = vsub.f32 1.5, %v3545_v22 }
0x1494   :  { %v6439_v58 = vpop.eup %6438 }
0x1495   :  { %v3547_v41 = vmul.f32 %v6437_v32, %v3546_v55  ;;  %v3553_v4 = vmul.f32 %v6439_v58, %v3539_v34  ;;  %vm3559_vm15 = vweird.f32 %v6439_v58  ;;  %v9376_v34 = vld [vmem:[%s10996_s1 + $0x10] sm:$0xff]  ;;  %v9383_v55 = vld [vmem:[%s10996_s1 + $0x20] sm:$0xff] }
0x1496   :  { %vm3560_vm6 = vmor %vm3558_vm11, %vm3559_vm15 }
0x1497   :  { %v3551_v46 = vsel %vm3550_vm14, %v6437_v32, %v3547_v41  ;;  %v3554_v61 = vmul.f32 %v6439_v58, %v3553_v4  ;;  %v9390_v4 = vld [vmem:[%s10996_s1 + $0x28] sm:$0xff] }
0x1498   :  { %v3582_v23 = vmul.f32 %v3551_v46, %v3514_v44 }
0x1499   :  { %v3555_v18 = vmul.f32 0.5, %v3554_v61 }
0x149a   :  { %v3587_v40 = vmul.f32 %v3586_v2, %v3582_v23 }
0x149b   :  { %v3556_v6 = vsub.f32 1.5, %v3555_v18 }
0x149c   :  { %v9333_v53 = vadd.f32 %v3591_v25, %v3587_v40  ;;  %v9399_v40 = vld [vmem:[%s10996_s1 + $0x38] sm:$0xff] }
0x149d   :  { %v3557_v17 = vmul.f32 %v6439_v58, %v3556_v6 }
0x149e   :  { %6173 = vmatmul.msk.f32.vlgmr.msrb.gmra.mxu0 %vm99_vm0, %v9333_v53 }
0x149f   :  { %v3561_v49 = vsel %vm3560_vm6, %v6439_v58, %v3557_v17 }
0x14a0   :  { %v3583_v39 = vmul.f32 %v3561_v49, %v3515_v36  ;;  %v9406_v49 = vld [vmem:[%s10996_s1 + $0x40] sm:$0xff] }
0x14a2   :  { %v3588_v0 = vmul.f32 %v3586_v2, %v3583_v39 }
0x14a4   :  { %v9337_v21 = vadd.f32 %v3591_v25, %v3588_v0 }
0x14a6   :  { %6174 = vmatmul.msk.f32.gmra.mxu0 %vm99_vm0, %v9337_v21 }
0x14b5   :  { %v3530_v35 = vpop.xlane.xlu0 %3529 }
0x14b6   :  { %v3536_v27 = vmul.f32 %v3530_v35, %v11060_v57 }
0x14b8   :  { %v3540_v33 = vadd.f32 1e-05, %v3536_v27 }
0x14ba   :  { %6440 = vrsqrt.f32 %v3540_v33  ;;  %vm3568_vm7 = vweird.f32 %v3540_v33 }
0x14c0   :  { %v6441_v13 = vpop.eup %6440 }
0x14c1   :  { %v3563_v26 = vmul.f32 %v6441_v13, %v3540_v33  ;;  %vm3569_vm12 = vweird.f32 %v6441_v13  ;;  %v9414_v33 = vld [vmem:[%s10996_s1 + $0x50] sm:$0xff] }
0x14c2   :  { %vm3570_vm14 = vmor %vm3568_vm7, %vm3569_vm12  ;;  %vm11064_vm12 = vcmask 1045509   ;;  %vm11065_vm7 = vcmask 1046534  }
0x14c3   :  { %v3564_v52 = vmul.f32 %v6441_v13, %v3563_v26 }
0x14c5   :  { %v3565_v19 = vmul.f32 0.5, %v3564_v52  ;;  %v9421_v52 = vld [vmem:[%s10996_s1 + $0x58] sm:$0xff] }
0x14c7   :  { %v3566_v24 = vsub.f32 1.5, %v3565_v19 }
0x14c9   :  { %v3567_v44 = vmul.f32 %v6441_v13, %v3566_v24 }
0x14cb   :  { %v3571_v38 = vsel %vm3570_vm14, %v6441_v13, %v3567_v44  ;;  %vm11066_vm14 = vcmask 1047559  }
0x14cc   :  { %v3584_v11 = vmul.f32 %v3571_v38, %v9306_v60 }
0x14ce   :  { %v3589_v16 = vmul.f32 %v3586_v2, %v3584_v11  ;;  %v9429_v11 = vld [vmem:[%s10996_s1 + $0x68] sm:$0xff] }
0x14d0   :  { %v9343_v30 = vadd.f32 %v3591_v25, %v3589_v16 }
0x14d2   :  { %6175 = vmatmul.msk.f32.gmra.mxu0 %vm99_vm0, %v9343_v30 }
0x14d4   :  { %v3533_v36 = vpop.xlane.xlu2 %3532 }
0x14d5   :  { %v3537_v51 = vmul.f32 %v3533_v36, %v11060_v57 }
0x14d7   :  { %v3541_v10 = vadd.f32 1e-05, %v3537_v51  ;;  %v9436_v51 = vld [vmem:[%s10996_s1] sm:$0xff] }
0x14d9   :  { %6442 = vrsqrt.f32 %v3541_v10  ;;  %vm3578_vm11 = vweird.f32 %v3541_v10 }
0x14df   :  { %v6443_v43 = vpop.eup %6442 }
0x14e0   :  { %v3573_v63 = vmul.f32 %v6443_v43, %v3541_v10  ;;  %vm3579_vm15 = vweird.f32 %v6443_v43 }
0x14e1   :  { %vm3580_vm6 = vmor %vm3578_vm11, %vm3579_vm15 }
0x14e2   :  { %v3574_v31 = vmul.f32 %v6443_v43, %v3573_v63  ;;  %v9443_v63 = vld [vmem:[%s10996_s1 + $0x18] sm:$0xff] }
0x14e4   :  { %v3575_v12 = vmul.f32 0.5, %v3574_v31 }
0x14e6   :  { %v3576_v50 = vsub.f32 1.5, %v3575_v12 }
0x14e8   :  { %v3577_v8 = vmul.f32 %v6443_v43, %v3576_v50 }
0x14ea   :  { %v3581_v60 = vsel %vm3580_vm6, %v6443_v43, %v3577_v8  ;;  %v9450_v8 = vld [vmem:[%s10996_s1 + $0x30] sm:$0xff]  ;;  %vm11067_vm6 = vcmask 130048  }
0x14eb   :  { %v3585_v56 = vmul.f32 %v3581_v60, %v9312_v28 }
0x14ed   :  { %v3590_v1 = vmul.f32 %v3586_v2, %v3585_v56 }
0x14ef   :  { %v9349_v59 = vadd.f32 %v3591_v25, %v3590_v1 }
0x14f1   :  { %11061 = vst [vmem:[#allocation6_spill] sm:$0xff] %v9349_v59  ;;  %6176 = vmatmul.msk.f32.gmra.mxu0 %vm99_vm0, %v9349_v59 }
0x151b   :  { %v3637_v14 = vpop.f32.mrf.mxu0 }
0x151c   :  { %v9359_v15 = vadd.f32 %v9356_v29, %v3637_v14  ;;  %v9462_v14 = vld [vmem:[%s10996_s1 + $0x48] sm:$0xff] }
0x151e   :  { %3651 = vrot.lane.b32.xlu0 %v9359_v15, %s6682_s18  ;;  %v3755_v28 = vperm.slane %v9359_v15, 0  ;;  %v3727_v47 = vrot.slane %v9359_v15, 1  ;;  %v3728_v54 = vrot.slane %v9359_v15, 2  ;;  %v3729_v41 = vrot.slane %v9359_v15, 3 }
0x151f   :  { %v3730_v46 = vrot.slane %v9359_v15, 4  ;;  %v3731_v17 = vrot.slane %v9359_v15, 5  ;;  %v3732_v26 = vrot.slane %v9359_v15, 6 }
0x1520   :  { %v3820_v42 = vmul.f32 %v9369_v20, %v3755_v28  ;;  %v3756_v62 = vperm.slane %v3727_v47, 0  ;;  %v3757_v3 = vperm.slane %v3728_v54, 0  ;;  %v3758_v23 = vperm.slane %v3729_v41, 0  ;;  %v9469_v54 = vld [vmem:[%s10996_s1 + $0x60] sm:$0xff] }
0x1521   :  { %v3759_v18 = vperm.slane %v3730_v46, 0  ;;  %v3760_v35 = vperm.slane %v3731_v17, 0  ;;  %v3761_v44 = vperm.slane %v3732_v26, 0  ;;  %v3819_v10 = vmul.f32 %v9436_v51, %v3755_v28 }
0x1522   :  { %v3886_v32 = vsel %vm99_vm0, %v3820_v42, 0.0  ;;  %v3821_v37 = vmul.f32 %v9376_v34, %v3756_v62  ;;  %v3823_v58 = vmul.f32 %v9383_v55, %v3757_v3  ;;  %v3824_v2 = vmul.f32 %v9390_v4, %v3757_v3 }
0x1523   :  { %3887 = vadd.xlane.f32.xlu2 %v3886_v32  ;;  %v3826_v6 = vmul.f32 %v9399_v40, %v3758_v23  ;;  %v3827_v39 = vmul.f32 %v9406_v49, %v3759_v18  ;;  %v3829_v13 = vmul.f32 %v9414_v33, %v3760_v35  ;;  %v3830_v19 = vmul.f32 %v9421_v52, %v3760_v35  ;;  %v3640_v50 = vpop.f32.mrf.mxu0 }
0x1524   :  { %v3889_v22 = vsel %vm99_vm0, %v3821_v37, 0.0  ;;  %v3895_v61 = vsel %vm99_vm0, %v3823_v58, 0.0  ;;  %v3898_v25 = vsel %vm99_vm0, %v3824_v2, 0.0  ;;  %v3832_v16 = vmul.f32 %v9429_v11, %v3761_v44 }
0x1525   :  { %3890 = vadd.xlane.f32.xlu1 %v3889_v22  ;;  %v3904_v0 = vsel %vm99_vm0, %v3826_v6, 0.0  ;;  %v3907_v27 = vsel %vm99_vm0, %v3827_v39, 0.0  ;;  %v3913_v24 = vsel %vm99_vm0, %v3829_v13, 0.0  ;;  %v3916_v38 = vsel %vm99_vm0, %v3830_v19, 0.0  ;;  %v9477_v22 = vld [vmem:[%s10996_s1 + $0x78] sm:$0xff] }
0x1526   :  { %v3922_v36 = vsel %vm99_vm0, %v3832_v16, 0.0  ;;  %v3883_v43 = vsel %vm99_vm0, %v3819_v10, 0.0  ;;  %v3822_v31 = vmul.f32 %v9443_v63, %v3756_v62  ;;  %v3825_v60 = vmul.f32 %v9450_v8, %v3758_v23 }
0x1527   :  { %v9454_v56 = vadd.f32 %v9356_v29, %v3640_v50  ;;  %v3828_v28 = vmul.f32 %v9462_v14, %v3759_v18  ;;  %v3831_v42 = vmul.f32 %v9469_v54, %v3761_v44  ;;  %v3733_v62 = vrot.slane %v9359_v15, 7 }
0x1528   :  { %v3892_v12 = vsel %vm99_vm0, %v3822_v31, 0.0  ;;  %v3901_v1 = vsel %vm99_vm0, %v3825_v60, 0.0  ;;  %v9526_v31 = vld [vmem:[%s10996_s1 + $0xd8] sm:$0xff] }
0x1529   :  { %v3910_v47 = vsel %vm99_vm0, %v3828_v28, 0.0  ;;  %v3919_v37 = vsel %vm99_vm0, %v3831_v42, 0.0  ;;  %v3762_v3 = vperm.slane %v3733_v62, 0  ;;  %v3734_v41 = vrot.slane %v9454_v56, 1  ;;  %v9541_v42 = vld [vmem:[%s10996_s1 + $0xf0] sm:$0xff] }
0x152a   :  { %v3735_v6 = vrot.slane %v9454_v56, 2  ;;  %v3737_v26 = vrot.slane %v9454_v56, 4  ;;  %v3740_v50 = vrot.slane %v9454_v56, 7  ;;  %v3763_v28 = vperm.slane %v9454_v56, 0 }
0x152b   :  { %3896 = vadd.xlane.f32.xlu2 %v3895_v61  ;;  %v3834_v58 = vmul.f32 %v9477_v22, %v3762_v3  ;;  %v3764_v23 = vperm.slane %v3734_v41, 0 }
0x152c   :  { %v9495_v39 = vperm.slane %v3735_v6, 0  ;;  %v3767_v44 = vperm.slane %v3737_v26, 0 }
0x152d   :  { %3899 = vadd.xlane.f32.xlu1 %v3898_v25  ;;  %v3928_v61 = vsel %vm99_vm0, %v3834_v58, 0.0  ;;  %v9490_v25 = vld [vmem:[%s10996_s1 + $0x90] sm:$0xff] }
0x152e   :  { %v3837_v18 = vmul.f32 %v9490_v25, %v3764_v23 }
0x1530   :  { %v3937_v17 = vsel %vm99_vm0, %v3837_v18, 0.0  ;;  %v9567_v18 = vld [vmem:[%s10996_s1 + $0x98] sm:$0xff] }
0x1531   :  { %v3838_v6 = vmul.f32 %v9567_v18, %v3764_v23 }
0x1533   :  { %3905 = vadd.xlane.f32.xlu2 %v3904_v0  ;;  %v9500_v0 = vld [vmem:[%s10996_s1 + $0x70] sm:$0xff]  ;;  %v3940_v26 = vsel %vm99_vm0, %v3838_v6, 0.0 }
0x1534   :  { %v3833_v35 = vmul.f32 %v9500_v0, %v3762_v3 }
0x1535   :  { %3908 = vadd.xlane.f32.xlu1 %v3907_v27  ;;  %v9506_v27 = vld [vmem:[%s10996_s1 + $0xa8] sm:$0xff] }
0x1536   :  { %v3840_v13 = vmul.f32 %v9506_v27, %v9495_v39  ;;  %v3925_v19 = vsel %vm99_vm0, %v3833_v35, 0.0 }
0x153b   :  { %3914 = vadd.xlane.f32.xlu2 %v3913_v24  ;;  %v3946_v24 = vsel %vm99_vm0, %v3840_v13, 0.0 }
0x153d   :  { %3917 = vadd.xlane.f32.xlu1 %v3916_v38  ;;  %v9516_v38 = vld [vmem:[%s10996_s1 + $0xc0] sm:$0xff] }
0x153e   :  { %v3843_v16 = vmul.f32 %v9516_v38, %v3767_v44 }
0x1540   :  { %v3955_v10 = vsel %vm99_vm0, %v3843_v16, 0.0 }
0x1543   :  { %3923 = vadd.xlane.f32.xlu2 %v3922_v36  ;;  %v3738_v36 = vrot.slane %v9454_v56, 5 }
0x1548   :  { %3884 = vadd.xlane.f32.xlu0 %v3883_v43  ;;  %v9521_v43 = vperm.slane %v3738_v36, 0  ;;  %v9587_v36 = vld [vmem:[%s10996_s1 + $0xb0] sm:$0xff] }
0x154f   :  { %v3643_v32 = vpop.f32.mrf.mxu0 }
0x1550   :  { %3893 = vadd.xlane.f32.xlu0 %v3892_v12  ;;  %v3846_v12 = vmul.f32 %v9526_v31, %v9521_v43 }
0x1552   :  { %v3964_v60 = vsel %vm99_vm0, %v3846_v12, 0.0 }
0x1556   :  { %3653 = vrot.lane.b32.xlu1 %v9454_v56, %s6682_s18 }
0x1558   :  { %3902 = vadd.xlane.f32.xlu0 %v3901_v1  ;;  %v9532_v1 = vperm.slane %v3740_v50, 0 }
0x155a   :  { %v3849_v62 = vmul.f32 %v9541_v42, %v9532_v1 }
0x1560   :  { %3911 = vadd.xlane.f32.xlu0 %v3910_v47  ;;  %v9536_v47 = vadd.f32 %v9356_v29, %v3643_v32 }
0x1562   :  { %v11017_v32 = vperm.slane %v9536_v47, 0  ;;  %v3743_v16 = vrot.slane %v9536_v47, 3 }
0x1564   :  { %v9592_v50 = vperm.slane %v3743_v16, 0 }
0x1568   :  { %3920 = vadd.xlane.f32.xlu0 %v3919_v37  ;;  %v9548_v37 = vld [vmem:[%s10996_s1 + $0x80] sm:$0xff] }
0x1569   :  { %v3835_v3 = vmul.f32 %v9548_v37, %v3763_v28 }
0x156b   :  { %v3931_v58 = vsel %vm99_vm0, %v3835_v3, 0.0 }
0x156e   :  { %v3646_v2 = vpop.f32.mrf.mxu0 }
0x156f   :  { %v9482_v46 = vadd.f32 %v9356_v29, %v3646_v2  ;;  %v3973_v29 = vsel %vm99_vm0, %v3849_v62, 0.0  ;;  %v3852_v2 = vmul.f32 %v9369_v20, %v11017_v32  ;;  %v3745_v62 = vrot.slane %v9536_v47, 5 }
0x1570   :  { %3929 = vadd.xlane.f32.xlu0 %v3928_v61  ;;  %v3742_v61 = vrot.slane %v9536_v47, 2 }
0x1571   :  { %3690 = vrot.lane.b32.xlu2 %v9482_v46, %s6682_s18  ;;  %v3982_v35 = vsel %vm99_vm0, %v3852_v2, 0.0  ;;  %v3739_v2 = vrot.slane %v9454_v56, 6 }
0x1572   :  { %v9572_v13 = vperm.slane %v3742_v61, 0 }
0x1578   :  { %3938 = vadd.xlane.f32.xlu0 %v3937_v17  ;;  %v3736_v17 = vrot.slane %v9454_v56, 3 }
0x1580   :  { %3926 = vadd.xlane.f32.xlu1 %v3925_v19  ;;  %3947 = vadd.xlane.f32.xlu0 %v3946_v24  ;;  %v9575_v19 = vperm.slane %v3736_v17, 0  ;;  %v3855_v24 = vmul.f32 %v9383_v55, %v9572_v13  ;;  %v3858_v55 = vmul.f32 %v9399_v40, %v9592_v50  ;;  %v9610_v17 = vperm.slane %v3745_v62, 0 }
0x1582   :  { %v3991_v12 = vsel %vm99_vm0, %v3855_v24, 0.0  ;;  %v4000_v6 = vsel %vm99_vm0, %v3858_v55, 0.0  ;;  %v3746_v24 = vrot.slane %v9536_v47, 6 }
0x1588   :  { %3956 = vadd.xlane.f32.xlu0 %v3955_v10  ;;  %v3841_v10 = vmul.f32 %v9587_v36, %v9575_v19 }
0x1590   :  { %3965 = vadd.xlane.f32.xlu0 %v3964_v60  ;;  %v3949_v60 = vsel %vm99_vm0, %v3841_v10, 0.0  ;;  %v3652_v59 = vpop.permute.xlu0 %3651 }
0x1596   :  { %v9558_v41 = vpop.xlane.xlu2 %3887 }
0x1598   :  { %3974 = vadd.xlane.f32.xlu0 %v3973_v29  ;;  %v9577_v20 = vpop.xlane.xlu1 %3890  ;;  %v9603_v29 = vld [vmem:[%s10996_s1 + $0xc8] sm:$0xff] }
0x1599   :  { %3688 = vrot.lane.b32.xlu1 %v9536_v47, %s6682_s18 }
0x159a   :  { %3932 = vadd.xlane.f32.xlu2 %v3931_v58  ;;  %v3844_v58 = vmul.f32 %v9603_v29, %v3767_v44  ;;  %v9621_v44 = vld [vmem:[%s10996_s1 + $0xe0] sm:$0xff] }
0x159c   :  { %v3958_v40 = vsel %vm99_vm0, %v3844_v58, 0.0  ;;  %v9638_v58 = vld [vmem:[%s10996_s1 + $0xf8] sm:$0xff] }
0x159e   :  { %v9582_v23 = vpop.xlane.xlu2 %3896 }
0x15a0   :  { %3983 = vadd.xlane.f32.xlu0 %v3982_v35  ;;  %v9598_v3 = vpop.xlane.xlu1 %3899  ;;  %v9613_v35 = vperm.slane %v3739_v2, 0  ;;  %v3850_v2 = vmul.f32 %v9638_v58, %v9532_v1 }
0x15a2   :  { %3941 = vadd.xlane.f32.xlu2 %v3940_v26  ;;  %v3861_v26 = vmul.f32 %v9414_v33, %v9610_v17  ;;  %v3847_v16 = vmul.f32 %v9621_v44, %v9613_v35  ;;  %v3976_v1 = vsel %vm99_vm0, %v3850_v2, 0.0  ;;  %v9670_v2 = vld [vmem:[%s10996_s1 + $0xa0] sm:$0xff] }
0x15a4   :  { %v3967_v33 = vsel %vm99_vm0, %v3847_v16, 0.0 }
0x15a6   :  { %v9607_v61 = vpop.xlane.xlu2 %3905 }
0x15a8   :  { %3992 = vadd.xlane.f32.xlu0 %v3991_v12  ;;  %v9625_v10 = vpop.xlane.xlu1 %3908  ;;  %v4009_v12 = vsel %vm99_vm0, %v3861_v26, 0.0 }
0x15aa   :  { %3950 = vadd.xlane.f32.xlu2 %v3949_v60  ;;  %v9628_v60 = vperm.slane %v3746_v24, 0  ;;  %v11019_v24 = vperm.slane %v9482_v46, 0 }
0x15ac   :  { %v3864_v62 = vmul.f32 %v9429_v11, %v9628_v60 }
0x15ae   :  { %v9630_v55 = vpop.xlane.xlu2 %3914  ;;  %v4018_v11 = vsel %vm99_vm0, %v3864_v62, 0.0  ;;  %v3748_v62 = vrot.slane %v9482_v46, 1 }
0x15b0   :  { %4001 = vadd.xlane.f32.xlu0 %v4000_v6  ;;  %v3741_v6 = vrot.slane %v9536_v47, 1  ;;  %v9653_v16 = vpop.xlane.xlu1 %3917 }
0x15b2   :  { %3959 = vadd.xlane.f32.xlu2 %v3958_v40  ;;  %v9646_v40 = vld [vmem:[%s10996_s1 + $0x88] sm:$0xff] }
0x15b3   :  { %v3836_v26 = vmul.f32 %v9646_v40, %v3763_v28  ;;  %v3867_v28 = vmul.f32 %v9548_v37, %v11019_v24 }
0x15b6   :  { %v9659_v32 = vpop.xlane.xlu2 %3923 }
0x15b8   :  { %4010 = vadd.xlane.f32.xlu0 %v4009_v12  ;;  %v9656_v12 = vperm.slane %v3741_v6, 0  ;;  %v3839_v6 = vmul.f32 %v9670_v2, %v9495_v39  ;;  %v3750_v39 = vrot.slane %v9482_v46, 3 }
0x15ba   :  { %3968 = vadd.xlane.f32.xlu2 %v3967_v33  ;;  %v3934_v33 = vsel %vm99_vm0, %v3836_v26, 0.0  ;;  %v3853_v57 = vmul.f32 %v9376_v34, %v9656_v12  ;;  %v4027_v26 = vsel %vm99_vm0, %v3867_v28, 0.0  ;;  %v3943_v34 = vsel %vm99_vm0, %v3839_v6, 0.0 }
0x15bb   :  { %v3856_v28 = vmul.f32 %v9390_v4, %v9572_v13 }
0x15bc   :  { %v3985_v37 = vsel %vm99_vm0, %v3853_v57, 0.0  ;;  %v3744_v57 = vrot.slane %v9536_v47, 4 }
0x15be   :  { %v9701_v4 = vperm.slane %v3744_v57, 0 }
0x15c0   :  { %4019 = vadd.xlane.f32.xlu0 %v4018_v11  ;;  %v9675_v11 = vperm.slane %v3748_v62, 0  ;;  %v9691_v62 = vld [vmem:[%s10996_s1 + $0xb8] sm:$0xff] }
0x15c2   :  { %3977 = vadd.xlane.f32.xlu2 %v3976_v1  ;;  %v3870_v24 = vmul.f32 %v9567_v18, %v9675_v11  ;;  %v3842_v18 = vmul.f32 %v9691_v62, %v9575_v19  ;;  %v3751_v19 = vrot.slane %v9482_v46, 4 }
0x15c3   :  { %3935 = vadd.xlane.f32.xlu1 %v3934_v33 }
0x15c4   :  { %v4036_v6 = vsel %vm99_vm0, %v3870_v24, 0.0  ;;  %v3952_v13 = vsel %vm99_vm0, %v3842_v18, 0.0  ;;  %v3859_v24 = vmul.f32 %v9406_v49, %v9701_v4  ;;  %v3862_v18 = vmul.f32 %v9421_v52, %v9610_v17 }
0x15c5   :  { %v3754_v17 = vrot.slane %v9482_v46, 7 }
0x15c8   :  { %v3654_v1 = vpop.permute.xlu1 %3653  ;;  %4028 = vadd.xlane.f32.xlu0 %v4027_v26  ;;  %v9696_v26 = vperm.slane %v3750_v39, 0  ;;  %v9717_v39 = vperm.slane %v3751_v19, 0 }
0x15c9   :  { %6177 = vmatpush.xpose.msk.msrb.mxu1 %vm99_vm0, %v3654_v1 }
0x15ca   :  { %3986 = vadd.xlane.f32.xlu2 %v3985_v37  ;;  %v3873_v1 = vmul.f32 %v9587_v36, %v9696_v26  ;;  %v9712_v37 = vld [vmem:[%s10996_s1 + $0xd0] sm:$0xff]  ;;  %v4003_v36 = vsel %vm99_vm0, %v3859_v24, 0.0  ;;  %v3876_v57 = vmul.f32 %v9603_v29, %v9717_v39  ;;  %v4012_v24 = vsel %vm99_vm0, %v3862_v18, 0.0 }
0x15cb   :  { %v3691_v33 = vpop.permute.xlu2 %3690  ;;  %3944 = vadd.xlane.f32.xlu1 %v3943_v34  ;;  %v3845_v34 = vmul.f32 %v9712_v37, %v9521_v43  ;;  %v3753_v43 = vrot.slane %v9482_v46, 6 }
0x15cc   :  { %6181 = vmatpush.xpose.msk.msrb.mxu2 %vm99_vm0, %v3691_v33  ;;  %v4045_v33 = vsel %vm99_vm0, %v3873_v1, 0.0  ;;  %v4054_v1 = vsel %vm99_vm0, %v3876_v57, 0.0 }
0x15cd   :  { %6178 = vmatpush.xpose.msk.msrb.mxu1 %vm99_vm0, %v3652_v59  ;;  %v3994_v59 = vsel %vm99_vm0, %v3856_v28, 0.0  ;;  %v9722_v28 = vpop.xlane.xlu0 %3884  ;;  %v3961_v49 = vsel %vm99_vm0, %v3845_v34, 0.0  ;;  %v3785_v19 = vperm.slane %v3753_v43, 0  ;;  %v9747_v43 = vperm.slane %v3754_v17, 0 }
0x15cf   :  { %v3879_v52 = vmul.f32 %v9621_v44, %v3785_v19 }
0x15d0   :  { %4037 = vadd.xlane.f32.xlu0 %v4036_v6  ;;  %6179 = vmatmul.msk.f32.vlgmr.msrb.gmra.mxu1 %vm99_vm0, %v9359_v15  ;;  %v3747_v6 = vrot.slane %v9536_v47, 7 }
0x15d1   :  { %v4063_v57 = vsel %vm99_vm0, %v3879_v52, 0.0 }
0x15d2   :  { %3995 = vadd.xlane.f32.xlu2 %v3994_v59  ;;  %v6623_v59 = vld [vmem:[%s10996_s1 + $0xe8] sm:$0xff]  ;;  %v3778_v29 = vperm.slane %v3747_v6, 0  ;;  %v3882_v6 = vmul.f32 %v9638_v58, %v9747_v43 }
0x15d3   :  { %3953 = vadd.xlane.f32.xlu1 %v3952_v13  ;;  %v3848_v13 = vmul.f32 %v6623_v59, %v9613_v35  ;;  %v11062_v35 = vperm.slane %v9536_v47, 0 }
0x15d5   :  { %v3970_v34 = vsel %vm99_vm0, %v3848_v13, 0.0 }
0x15d8   :  { %4046 = vadd.xlane.f32.xlu0 %v4045_v33  ;;  %6180 = vmatmul.msk.f32.gmra.mxu1 %vm99_vm0, %v9454_v56  ;;  %v9740_v33 = vpop.xlane.xlu0 %3893 }
0x15da   :  { %4004 = vadd.xlane.f32.xlu2 %v4003_v36  ;;  %v3865_v36 = vmul.f32 %v9500_v0, %v3778_v29  ;;  %v11063_v0 = vperm.slane %v9482_v46, 0 }
0x15db   :  { %3962 = vadd.xlane.f32.xlu1 %v3961_v49  ;;  %v3851_v49 = vmul.f32 %v9436_v51, %v11062_v35  ;;  %v3749_v51 = vrot.slane %v9482_v46, 2 }
0x15dc   :  { %v4021_v18 = vsel %vm99_vm0, %v3865_v36, 0.0  ;;  %v3868_v13 = vmul.f32 %v9646_v40, %v11063_v0  ;;  %v3857_v40 = vmul.f32 %v9450_v8, %v9592_v50 }
0x15dd   :  { %v3979_v44 = vsel %vm99_vm0, %v3851_v49, 0.0  ;;  %v3781_v17 = vperm.slane %v3749_v51, 0  ;;  %v3880_v51 = vmul.f32 %v6623_v59, %v3785_v19 }
0x15de   :  { %v4030_v52 = vsel %vm99_vm0, %v3868_v13, 0.0 }
0x15df   :  { %v3871_v36 = vmul.f32 %v9670_v2, %v3781_v17  ;;  %v3872_v19 = vmul.f32 %v9506_v27, %v3781_v17 }
0x15e0   :  { %4055 = vadd.xlane.f32.xlu0 %v4054_v1  ;;  %v9757_v1 = vpop.xlane.xlu0 %3902 }
0x15e1   :  { %v4039_v49 = vsel %vm99_vm0, %v3871_v36, 0.0  ;;  %v3875_v36 = vmul.f32 %v9516_v38, %v9717_v39  ;;  %v3881_v38 = vmul.f32 %v9541_v42, %v9747_v43  ;;  %v4148_v42 = vperm.slane %v9558_v41, %v7258_v5 }
0x15e2   :  { %4013 = vadd.xlane.f32.xlu2 %v4012_v24  ;;  %v3854_v24 = vmul.f32 %v9443_v63, %v9656_v12  ;;  %v3997_v63 = vsel %vm99_vm0, %v3857_v40, 0.0  ;;  %v3874_v12 = vmul.f32 %v9691_v62, %v9696_v26  ;;  %v3863_v62 = vmul.f32 %v9469_v54, %v9628_v60 }
0x15e3   :  { %3971 = vadd.xlane.f32.xlu1 %v3970_v34  ;;  %v4072_v34 = vsel %vm99_vm0, %v3882_v6, 0.0  ;;  %v4069_v39 = vsel %vm99_vm0, %v3881_v38, 0.0  ;;  %v4159_v41 = vperm.slane %v9625_v10, %v7255_v7 }
0x15e4   :  { %v3988_v58 = vsel %vm99_vm0, %v3854_v24, 0.0  ;;  %v4048_v2 = vsel %vm99_vm0, %v3874_v12, 0.0  ;;  %v3866_v24 = vmul.f32 %v9477_v22, %v3778_v29 }
0x15e6   :  { %v4024_v54 = vsel %vm99_vm0, %v3866_v24, 0.0 }
0x15e8   :  { %4064 = vadd.xlane.f32.xlu0 %v4063_v57  ;;  %v9767_v35 = vpop.xlane.xlu0 %3911  ;;  %v3752_v57 = vrot.slane %v9482_v46, 5 }
0x15ea   :  { %4022 = vadd.xlane.f32.xlu2 %v4021_v18  ;;  %v3860_v18 = vmul.f32 %v9462_v14, %v9701_v4  ;;  %v4015_v14 = vsel %vm99_vm0, %v3863_v62, 0.0 }
0x15eb   :  { %3980 = vadd.xlane.f32.xlu1 %v3979_v44  ;;  %v3784_v44 = vperm.slane %v3752_v57, 0 }
0x15ec   :  { %v4006_v50 = vsel %vm99_vm0, %v3860_v18, 0.0  ;;  %v4151_v18 = vperm.slane %v9740_v33, %v7258_v5  ;;  %v4154_v33 = vperm.slane %v9598_v3, %v7258_v5 }
0x15ed   :  { %v3877_v0 = vmul.f32 %v9712_v37, %v3784_v44  ;;  %v4066_v37 = vsel %vm99_vm0, %v3880_v51, 0.0  ;;  %v4163_v51 = vperm.slane %v9653_v16, %v7258_v5 }
0x15ef   :  { %v4057_v26 = vsel %vm99_vm0, %v3877_v0, 0.0  ;;  %v4156_v0 = vperm.slane %v9757_v1, %v7255_v7 }
0x15f0   :  { %4073 = vadd.xlane.f32.xlu0 %v4072_v34  ;;  %v9777_v8 = vpop.xlane.xlu0 %3920 }
0x15f2   :  { %4031 = vadd.xlane.f32.xlu2 %v4030_v52  ;;  %v3869_v52 = vmul.f32 %v9490_v25, %v9675_v11  ;;  %v4051_v11 = vsel %vm99_vm0, %v3875_v36, 0.0 }
0x15f3   :  { %3989 = vadd.xlane.f32.xlu1 %v3988_v58  ;;  %v9780_v6 = vpop.xlane.xlu1 %3926  ;;  %v4042_v58 = vsel %vm99_vm0, %v3872_v19, 0.0 }
0x15f4   :  { %v4033_v22 = vsel %vm99_vm0, %v3869_v52, 0.0  ;;  %v4168_v10 = vperm.slane %v9780_v6, %v7255_v7  ;;  %v4162_v52 = vperm.slane %v9630_v55, %v7255_v7 }
0x15f6   :  { %v4164_v6 = vsel %vm650_vm1, %v4163_v51, %v4162_v52 }
0x15f8   :  { %v9787_v13 = vpop.xlane.xlu0 %3929 }
0x15fa   :  { %4040 = vadd.xlane.f32.xlu2 %v4039_v49  ;;  %v3878_v49 = vmul.f32 %v9526_v31, %v3784_v44  ;;  %v4150_v31 = vperm.slane %v9577_v20, %v7255_v7  ;;  %v4160_v20 = vperm.slane %v9767_v35, %v7258_v5  ;;  %v4165_v35 = vperm.slane %v9777_v8, %v7255_v7 }
0x15fb   :  { %3998 = vadd.xlane.f32.xlu1 %v3997_v63 }
0x15fc   :  { %v4060_v27 = vsel %vm99_vm0, %v3878_v49, 0.0  ;;  %v4152_v43 = vsel %vm650_vm1, %v4151_v18, %v4150_v31 }
0x1600   :  { %v9797_v34 = vpop.xlane.xlu0 %3938 }
0x1602   :  { %4049 = vadd.xlane.f32.xlu2 %v4048_v2  ;;  %v4147_v2 = vperm.slane %v9722_v28, %v7255_v7  ;;  %v4157_v28 = vperm.slane %v9607_v61, %v7258_v5 }
0x1603   :  { %4007 = vadd.xlane.f32.xlu1 %v4006_v50 }
0x1604   :  { %v4149_v62 = vsel %vm650_vm1, %v4148_v42, %v4147_v2  ;;  %v4158_v1 = vsel %vm650_vm1, %v4157_v28, %v4156_v0  ;;  %v4174_v42 = vperm.slane %v9797_v34, %v7255_v7 }
0x1608   :  { %v9807_v29 = vpop.xlane.xlu0 %3947 }
0x160a   :  { %4058 = vadd.xlane.f32.xlu2 %v4057_v26  ;;  %v4153_v26 = vperm.slane %v9582_v23, %v7255_v7 }
0x160b   :  { %v3689_v4 = vpop.permute.xlu1 %3688  ;;  %4016 = vadd.xlane.f32.xlu1 %v4015_v14  ;;  %v4243_v14 = vsel %vm745_vm2, %v4152_v43, %v4149_v62 }
0x160c   :  { %6182 = vmatpush.xpose.msk.msrb.mxu2 %vm99_vm0, %v3689_v4  ;;  %v4155_v3 = vsel %vm650_vm1, %v4154_v33, %v4153_v26  ;;  %v4161_v4 = vsel %vm650_vm1, %v4160_v20, %v4159_v41 }
0x160d   :  { %v9795_v60 = vpop.xlane.xlu2 %3932  ;;  %v4244_v23 = vsel %vm747_vm3, %v4155_v3, %v4243_v14 }
0x160f   :  { %6183 = vmatmul.msk.f32.vlgmr.msrb.gmra.mxu2 %vm99_vm0, %v9536_v47 }
0x1610   :  { %v9814_v25 = vpop.xlane.xlu0 %3956 }
0x1612   :  { %4067 = vadd.xlane.f32.xlu2 %v4066_v37  ;;  %v4166_v37 = vperm.slane %v9659_v32, %v7258_v5 }
0x1613   :  { %4025 = vadd.xlane.f32.xlu1 %v4024_v54  ;;  %v4245_v54 = vsel %vm749_vm4, %v4158_v1, %v4244_v23  ;;  %v4183_v1 = vperm.slane %v9814_v25, %v7255_v7 }
0x1614   :  { %v4246_v8 = vsel %vm751_vm5, %v4161_v4, %v4245_v54  ;;  %v4167_v19 = vsel %vm650_vm1, %v4166_v37, %v4165_v35 }
0x1615   :  { %v9804_v59 = vpop.xlane.xlu2 %3941  ;;  %v4247_v32 = vsel %vm11064_vm12, %v4164_v6, %v4246_v8 }
0x1616   :  { %v4175_v38 = vperm.slane %v9804_v59, %v7258_v5 }
0x1617   :  { %6184 = vmatmul.msk.f32.gmra.mxu2 %vm99_vm0, %v9482_v46 }
0x1618   :  { %v9821_v17 = vpop.xlane.xlu0 %3965  ;;  %v4176_v33 = vsel %vm650_vm1, %v4175_v38, %v4174_v42 }
0x1619   :  { %v4187_v26 = vperm.slane %v9821_v17, %v7258_v5 }
0x161b   :  { %4034 = vadd.xlane.f32.xlu1 %v4033_v22  ;;  %v4169_v22 = vperm.slane %v9787_v13, %v7258_v5  ;;  %v4171_v13 = vperm.slane %v9795_v60, %v7255_v7 }
0x161d   :  { %v9812_v40 = vpop.xlane.xlu2 %3950 }
0x161e   :  { %v4180_v60 = vperm.slane %v9812_v40, %v7255_v7 }
0x1620   :  { %v9834_v44 = vpop.xlane.xlu0 %3974 }
0x1621   :  { %v4192_v25 = vperm.slane %v9834_v44, %v7255_v7 }
0x1623   :  { %4043 = vadd.xlane.f32.xlu1 %v4042_v58  ;;  %v4170_v58 = vsel %vm650_vm1, %v4169_v22, %v4168_v10 }
0x1625   :  { %v9818_v63 = vpop.xlane.xlu2 %3959 }
0x1626   :  { %v4184_v34 = vperm.slane %v9818_v63, %v7258_v5 }
0x1628   :  { %v9873_v16 = vpop.xlane.xlu0 %3983  ;;  %v4185_v17 = vsel %vm650_vm1, %v4184_v34, %v4183_v1 }
0x162b   :  { %4052 = vadd.xlane.f32.xlu1 %v4051_v11  ;;  %v4248_v11 = vsel %vm11065_vm7, %v4167_v19, %v4247_v32 }
0x162d   :  { %v9826_v57 = vpop.xlane.xlu2 %3968 }
0x162e   :  { %v4189_v23 = vperm.slane %v9826_v57, %v7255_v7 }
0x1630   :  { %v9901_v20 = vpop.xlane.xlu0 %3992 }
0x1633   :  { %4061 = vadd.xlane.f32.xlu1 %v4060_v27  ;;  %v4249_v27 = vsel %vm11066_vm14, %v4170_v58, %v4248_v11 }
0x1635   :  { %v9858_v61 = vpop.xlane.xlu2 %3977 }
0x1636   :  { %v3936_v12 = vpop.xlane.xlu1 %3935  ;;  %v4193_v63 = vperm.slane %v9858_v61, %v7258_v5 }
0x1637   :  { %v4172_v36 = vperm.slane %v3936_v12, %v7258_v5  ;;  %v4178_v12 = vperm.slane %v9807_v29, %v7258_v5 }
0x1638   :  { %v4194_v8 = vsel %vm650_vm1, %v4193_v63, %v4192_v25  ;;  %v4002_v19 = vpop.xlane.xlu0 %4001 }
0x1639   :  { %v4173_v59 = vsel %vm650_vm1, %v4172_v36, %v4171_v13 }
0x163a   :  { %v4250_v40 = vsel %vm745_vm2, %v4176_v33, %v4173_v59 }
0x163b   :  { %4070 = vadd.xlane.f32.xlu1 %v4069_v39 }
0x163d   :  { %v9892_v2 = vpop.xlane.xlu2 %3986 }
0x163e   :  { %v3945_v50 = vpop.xlane.xlu1 %3944 }
0x163f   :  { %v4177_v55 = vperm.slane %v3945_v50, %v7255_v7 }
0x1641   :  { %v4179_v43 = vsel %vm650_vm1, %v4178_v12, %v4177_v55  ;;  %v4011_v55 = vpop.xlane.xlu0 %4010 }
0x1642   :  { %v4251_v41 = vsel %vm747_vm3, %v4179_v43, %v4250_v40  ;;  %v4210_v25 = vperm.slane %v4011_v55, %v7255_v7 }
0x1645   :  { %v3996_v37 = vpop.xlane.xlu2 %3995 }
0x1646   :  { %v3954_v24 = vpop.xlane.xlu1 %3953  ;;  %v4202_v34 = vperm.slane %v3996_v37, %v7258_v5 }
0x1647   :  { %v4181_v39 = vperm.slane %v3954_v24, %v7258_v5 }
0x1649   :  { %v4182_v29 = vsel %vm650_vm1, %v4181_v39, %v4180_v60  ;;  %v4020_v38 = vpop.xlane.xlu0 %4019  ;;  %v4198_v60 = vperm.slane %v9892_v2, %v7255_v7  ;;  %v4201_v2 = vperm.slane %v9901_v20, %v7255_v7 }
0x164a   :  { %v4252_v3 = vsel %vm749_vm4, %v4182_v29, %v4251_v41  ;;  %v4214_v20 = vperm.slane %v4020_v38, %v7258_v5 }
0x164b   :  { %v4253_v24 = vsel %vm751_vm5, %v4185_v17, %v4252_v3  ;;  %v4203_v3 = vsel %vm650_vm1, %v4202_v34, %v4201_v2 }
0x164d   :  { %v3680_v49 = vpop.f32.mrf.mxu1  ;;  %v4005_v11 = vpop.xlane.xlu2 %4004 }
0x164e   :  { %v3723_v18 = vsel %vm7339_vm9, %v3680_v49, 0.0  ;;  %v3963_v31 = vpop.xlane.xlu1 %3962 }
0x164f   :  { %vm4075_vm15 = vcmp.ne.f32.partialorder %v3723_v18, 0.0  ;;  %v4275_v50 = vadd.f32 %v4249_v27, %v3723_v18  ;;  %v4186_v28 = vperm.slane %v3963_v31, %v7255_v7 }
0x1650   :  { %vm4079_vm11 = vmand %vm7339_vm9, %vm4075_vm15 }
0x1651   :  { %v4279_v0 = vmul.f32 0.17677669, %v4275_v50  ;;  %v4188_v4 = vsel %vm650_vm1, %v4187_v26, %v4186_v28  ;;  %v9943_v31 = vpop.xlane.xlu0 %4028  ;;  %v4205_v26 = vperm.slane %v4002_v19, %v7258_v5 }
0x1652   :  { %v4254_v54 = vsel %vm11064_vm12, %v4188_v4, %v4253_v24 }
0x1653   :  { %v9910_v62 = vsel %vm4079_vm11, %v4279_v0, -1e+09  ;;  %v4196_v0 = vperm.slane %v9873_v16, %v7258_v5 }
0x1654   :  { %v4287_v14 = vsel %vm11067_vm6, %v9910_v62, -inf }
0x1655   :  { %4288 = vmax.xlane.f32.xlu2 %v4287_v14  ;;  %v3683_v35 = vpop.f32.mrf.mxu1  ;;  %v4014_v27 = vpop.xlane.xlu2 %4013  ;;  %v4207_v14 = vperm.slane %v4005_v11, %v7255_v7 }
0x1656   :  { %v3972_v51 = vpop.xlane.xlu1 %3971  ;;  %v3724_v61 = vsel %vm7378_vm13, %v3683_v35, 0.0 }
0x1657   :  { %v4190_v10 = vperm.slane %v3972_v51, %v7258_v5  ;;  %vm4076_vm15 = vcmp.ne.f32.partialorder %v3724_v61, 0.0  ;;  %v4211_v51 = vperm.slane %v4014_v27, %v7258_v5 }
0x1658   :  { %vm4080_vm11 = vmand %vm7397_vm10, %vm4076_vm15 }
0x1659   :  { %v4191_v52 = vsel %vm650_vm1, %v4190_v10, %v4189_v23  ;;  %v4038_v59 = vpop.xlane.xlu0 %4037 }
0x165a   :  { %v4255_v22 = vsel %vm11065_vm7, %v4191_v52, %v4254_v54 }
0x165b   :  { %v4256_v57 = vsel %vm11066_vm14, %v4194_v8, %v4255_v22  ;;  %v4212_v8 = vsel %vm650_vm1, %v4211_v51, %v4210_v25 }
0x165c   :  { %v4276_v6 = vadd.f32 %v4256_v57, %v3724_v61 }
0x165d   :  { %v4023_v18 = vpop.xlane.xlu2 %4022 }
0x165e   :  { %v3981_v44 = vpop.xlane.xlu1 %3980  ;;  %v4280_v58 = vmul.f32 0.17677669, %v4276_v6  ;;  %v4216_v37 = vperm.slane %v4023_v18, %v7255_v7 }
0x165f   :  { %v4195_v43 = vperm.slane %v3981_v44, %v7255_v7 }
0x1660   :  { %v9939_v32 = vsel %vm4080_vm11, %v4280_v58, -1e+09 }
0x1661   :  { %v4290_v36 = vsel %vm11067_vm6, %v9939_v32, -inf  ;;  %v4197_v41 = vsel %vm650_vm1, %v4196_v0, %v4195_v43  ;;  %v4047_v24 = vpop.xlane.xlu0 %4046  ;;  %v4223_v43 = vperm.slane %v4038_v59, %v7258_v5 }
0x1662   :  { %4291 = vmax.xlane.f32.xlu1 %v4290_v36 }
0x1665   :  { %v9945_v50 = vpop.xlane.xlu2 %4031 }
0x1666   :  { %v3990_v49 = vpop.xlane.xlu1 %3989  ;;  %v4220_v0 = vperm.slane %v9945_v50, %v7258_v5 }
0x1667   :  { %v4199_v42 = vperm.slane %v3990_v49, %v7258_v5 }
0x1669   :  { %v4200_v33 = vsel %vm650_vm1, %v4199_v42, %v4198_v60  ;;  %v4056_v27 = vpop.xlane.xlu0 %4055 }
0x166a   :  { %v4257_v16 = vsel %vm745_vm2, %v4200_v33, %v4197_v41  ;;  %v4232_v50 = vperm.slane %v4056_v27, %v7258_v5 }
0x166b   :  { %v4258_v17 = vsel %vm747_vm3, %v4203_v3, %v4257_v16  ;;  %v4228_v16 = vperm.slane %v4047_v24, %v7255_v7 }
0x166d   :  { %v4041_v63 = vpop.xlane.xlu2 %4040 }
0x166e   :  { %v3999_v13 = vpop.xlane.xlu1 %3998  ;;  %v4225_v33 = vperm.slane %v4041_v63, %v7255_v7 }
0x166f   :  { %v4204_v29 = vperm.slane %v3999_v13, %v7255_v7 }
0x1671   :  { %v4206_v1 = vsel %vm650_vm1, %v4205_v26, %v4204_v29  ;;  %v4065_v42 = vpop.xlane.xlu0 %4064  ;;  %v4219_v29 = vperm.slane %v9943_v31, %v7255_v7 }
0x1672   :  { %v4259_v10 = vsel %vm749_vm4, %v4206_v1, %v4258_v17  ;;  %v4237_v24 = vperm.slane %v4065_v42, %v7255_v7 }
0x1673   :  { %v4221_v41 = vsel %vm650_vm1, %v4220_v0, %v4219_v29 }
0x1675   :  { %v4050_v11 = vpop.xlane.xlu2 %4049 }
0x1676   :  { %v4008_v39 = vpop.xlane.xlu1 %4007  ;;  %v4229_v2 = vperm.slane %v4050_v11, %v7258_v5 }
0x1677   :  { %v4208_v40 = vperm.slane %v4008_v39, %v7258_v5 }
0x1679   :  { %v4209_v4 = vsel %vm650_vm1, %v4208_v40, %v4207_v14  ;;  %v4074_v51 = vpop.xlane.xlu0 %4073 }
0x167a   :  { %v4260_v54 = vsel %vm751_vm5, %v4209_v4, %v4259_v10  ;;  %v4230_v4 = vsel %vm650_vm1, %v4229_v2, %v4228_v16 }
0x167b   :  { %v4261_v57 = vsel %vm11064_vm12, %v4212_v8, %v4260_v54 }
0x167d   :  { %v4059_v18 = vpop.xlane.xlu2 %4058 }
0x167e   :  { %v4017_v12 = vpop.xlane.xlu1 %4016  ;;  %v4234_v31 = vperm.slane %v4059_v18, %v7255_v7 }
0x167f   :  { %v4213_v35 = vperm.slane %v4017_v12, %v7255_v7 }
0x1681   :  { %v4215_v52 = vsel %vm650_vm1, %v4214_v20, %v4213_v35  ;;  %v6315_v20 = vpack.i.bf16 %v9359_v15, %v9454_v56 }
0x1682   :  { %v4262_v6 = vsel %vm11065_vm7, %v4215_v52, %v4261_v57 }
0x1685   :  { %v4068_v1 = vpop.xlane.xlu2 %4067 }
0x1686   :  { %v4026_v28 = vpop.xlane.xlu1 %4025  ;;  %v4238_v17 = vperm.slane %v4068_v1, %v7258_v5 }
0x1687   :  { %v4217_v23 = vperm.slane %v4026_v28, %v7258_v5 }
0x1688   :  { %v4239_v8 = vsel %vm650_vm1, %v4238_v17, %v4237_v24  ;;  %v6191_v17 = vld [vmem:[%s10999_s4 + $0x70] sm:$0xff]  ;;  %v6189_v24 = vld [vmem:[%s10999_s4 + $0x60] sm:$0xff] }
0x1689   :  { %v4218_v22 = vsel %vm650_vm1, %v4217_v23, %v4216_v37 }
0x168a   :  { %v4263_v58 = vsel %vm11066_vm14, %v4218_v22, %v4262_v6 }
0x168e   :  { %v4035_v61 = vpop.xlane.xlu1 %4034 }
0x168f   :  { %v4222_v12 = vperm.slane %v4035_v61, %v7255_v7  ;;  %v4241_v61 = vperm.slane %v4074_v51, %v7258_v5  ;;  %v6192_v51 = vld [vmem:[%s10999_s4 + $0x78] sm:$0xff] }
0x1690   :  { %4431 = vmatpush.msra.mxu1 %v6192_v51 }
0x1691   :  { %v4224_v28 = vsel %vm650_vm1, %v4223_v43, %v4222_v12 }
0x1692   :  { %v3717_v19 = vpop.f32.mrf.mxu2  ;;  %v4264_v14 = vsel %vm745_vm2, %v4224_v28, %v4221_v41  ;;  %4432 = vmatpush.msra.mxu1 %v6191_v17 }
0x1693   :  { %v3725_v44 = vsel %vm7339_vm9, %v3717_v19, 0.0 }
0x1694   :  { %vm4077_vm15 = vcmp.ne.f32.partialorder %v3725_v44, 0.0  ;;  %v4277_v36 = vadd.f32 %v4263_v58, %v3725_v44 }
0x1695   :  { %vm4081_vm11 = vmand %vm7339_vm9, %vm4077_vm15 }
0x1696   :  { %v4281_v55 = vmul.f32 0.17677669, %v4277_v36  ;;  %v4044_v49 = vpop.xlane.xlu1 %4043 }
0x1697   :  { %v4226_v60 = vperm.slane %v4044_v49, %v7258_v5 }
0x1698   :  { %v9985_v13 = vsel %vm4081_vm11, %v4281_v55, -1e+09 }
0x1699   :  { %v4293_v38 = vsel %vm11067_vm6, %v9985_v13, -inf  ;;  %v4227_v34 = vsel %vm650_vm1, %v4226_v60, %v4225_v33  ;;  %v6320_v60 = vpack.i.bf16 %v9536_v47, %v9482_v46 }
0x169a   :  { %4294 = vmax.xlane.f32.xlu0 %v4293_v38  ;;  %v4265_v3 = vsel %vm747_vm3, %v4227_v34, %v4264_v14  ;;  %v3720_v10 = vpop.f32.mrf.mxu2 }
0x169b   :  { %v4266_v23 = vsel %vm749_vm4, %v4230_v4, %v4265_v3  ;;  %v3726_v22 = vsel %vm7378_vm13, %v3720_v10, 0.0 }
0x169c   :  { %vm4078_vm15 = vcmp.ne.f32.partialorder %v3726_v22, 0.0 }
0x169d   :  { %vm4082_vm11 = vmand %vm7397_vm10, %vm4078_vm15 }
0x169e   :  { %v4053_v39 = vpop.xlane.xlu1 %4052  ;;  %vm11071_vm15 = vmmov %vm11067_vm6 }
0x169f   :  { %v4231_v40 = vperm.slane %v4053_v39, %v7255_v7 }
0x16a1   :  { %v4233_v63 = vsel %vm650_vm1, %v4232_v50, %v4231_v40 }
0x16a2   :  { %v4267_v25 = vsel %vm751_vm5, %v4233_v63, %v4266_v23  ;;  %v6190_v23 = vld [vmem:[%s10999_s4 + $0x68] sm:$0xff] }
0x16a3   :  { %4433 = vmatpush.msra.mxu1 %v6190_v23 }
0x16a5   :  { %4434 = vmatpush.msra.mxu1 %v6189_v24 }
0x16a6   :  { %v4062_v26 = vpop.xlane.xlu1 %4061 }
0x16a7   :  { %v4235_v59 = vperm.slane %v4062_v26, %v7258_v5 }
0x16a9   :  { %v4236_v35 = vsel %vm650_vm1, %v4235_v59, %v4234_v31 }
0x16aa   :  { %v4268_v37 = vsel %vm11064_vm12, %v4236_v35, %v4267_v25  ;;  %vm11068_vm12 = vmmov %vm11067_vm6 }
0x16ab   :  { %v4269_v56 = vsel %vm11065_vm7, %v4239_v8, %v4268_v37  ;;  %vm11069_vm7 = vmmov %vm11067_vm6  ;;  %v10063_v8 = vld [vmem:[%s11003_s8 + $0x18] sm:$0x3f] }
0x16ae   :  { %v4071_v54 = vpop.xlane.xlu1 %4070  ;;  %6316 = vrot.lane.b32.xlu0 %v6315_v20, %s6683_s27 }
0x16af   :  { %v4240_v52 = vperm.slane %v4071_v54, %v7255_v7 }
0x16b1   :  { %v4242_v15 = vsel %vm650_vm1, %v4241_v61, %v4240_v52 }
0x16b2   :  { %v4270_v57 = vsel %vm11066_vm14, %v4242_v15, %v4269_v56  ;;  %vm11070_vm14 = vmmov %vm11067_vm6 }
0x16b3   :  { %v4278_v19 = vadd.f32 %v4270_v57, %v3726_v22  ;;  %v4406_v22 = vperm.slane %v10063_v8, 0 }
0x16b5   :  { %v4282_v6 = vmul.f32 0.17677669, %v4278_v19 }
0x16b7   :  { %v4286_v44 = vsel %vm4082_vm11, %v4282_v6, -1e+09  ;;  %vm11072_vm11 = vmmov %vm11067_vm6 }
0x16b8   :  { %v4296_v58 = vsel %vm11067_vm6, %v4286_v44, -inf }
0x16b9   :  { %4297 = vmax.xlane.f32.xlu2 %v4296_v58 }
0x16c8   :  { %v4289_v36 = vpop.xlane.xlu2 %4288 }
0x16c9   :  { %v4299_v11 = vsub.f32 %v9910_v62, %v4289_v36 }
0x16cb   :  { %v4303_v55 = vmul.f32 1.442695, %v4299_v11 }
0x16cd   :  { %6444 = vpow2.f32 %v4303_v55 }
0x16d3   :  { %v6445_v49 = vpop.eup %6444 }
0x16d4   :  { %v4311_v27 = vsel %vm11068_vm12, %v6445_v49, 0.0  ;;  %vm11073_vm12 = vmmov %vm11067_vm6 }
0x16d5   :  { %4312 = vadd.xlane.f32.xlu1 %v4311_v27  ;;  %v4292_v38 = vpop.xlane.xlu1 %4291 }
0x16d6   :  { %v4300_v39 = vsub.f32 %v9939_v32, %v4292_v38 }
0x16d8   :  { %v4305_v18 = vmul.f32 1.442695, %v4300_v39 }
0x16da   :  { %6446 = vpow2.f32 %v4305_v18 }
0x16e0   :  { %v6447_v12 = vpop.eup %6446 }
0x16e1   :  { %v4314_v42 = vsel %vm11069_vm7, %v6447_v12, 0.0  ;;  %vm11074_vm7 = vmmov %vm11067_vm6 }
0x16e2   :  { %4315 = vadd.xlane.f32.xlu2 %v4314_v42 }
0x16fa   :  { %6321 = vrot.lane.b32.xlu2 %v6320_v60, %s6683_s27  ;;  %v11076_v60 = vld [vmem:[#allocation5_spill] sm:$0xff] }
0x170d   :  { %v4295_v62 = vpop.xlane.xlu0 %4294 }
0x170e   :  { %v4301_v43 = vsub.f32 %v9985_v13, %v4295_v62 }
0x1710   :  { %v4307_v0 = vmul.f32 1.442695, %v4301_v43 }
0x1712   :  { %6448 = vpow2.f32 %v4307_v0 }
0x1718   :  { %v6449_v33 = vpop.eup %6448 }
0x1719   :  { %v4317_v29 = vsel %vm11070_vm14, %v6449_v33, 0.0 }
0x171a   :  { %4318 = vadd.xlane.f32.xlu1 %v4317_v29 }
0x1720   :  { %v6317_v32 = vpop.permute.xlu0 %6316 }
0x1721   :  { %v6318_v28 = vunpack.i.l.bf16 %v6317_v32  ;;  %v6319_v34 = vunpack.i.h.bf16 %v6317_v32 }
0x1723   :  { %4357 = vmatpush.msrb.mxu3 %v6318_v28 }
0x1725   :  { %4358 = vmatpush.msrb.mxu3 %v6319_v34 }
0x172c   :  { %v4298_v40 = vpop.xlane.xlu2 %4297 }
0x172d   :  { %v4302_v26 = vsub.f32 %v4286_v44, %v4298_v40 }
0x172f   :  { %v4309_v41 = vmul.f32 1.442695, %v4302_v26 }
0x1731   :  { %6450 = vpow2.f32 %v4309_v41 }
0x1737   :  { %v6451_v46 = vpop.eup %6450 }
0x1738   :  { %v4320_v47 = vsel %vm11071_vm15, %v6451_v46, 0.0 }
0x1739   :  { %4321 = vadd.xlane.f32.xlu1 %v4320_v47 }
0x1748   :  { %v4313_v13 = vpop.xlane.xlu1 %4312 }
0x1749   :  { %6452 = vrcp.f32 %v4313_v13 }
0x174f   :  { %v6453_v2 = vpop.eup %6452 }
0x1750   :  { %v4327_v59 = vmul.f32 %v6453_v2, %v6445_v49 }
0x1752   :  { %6185 = vmatmul.msk.f32.vlgmr.msrb.gmra.mxu3 %vm11072_vm11, %v4327_v59 }
0x1755   :  { %v4316_v50 = vpop.xlane.xlu2 %4315 }
0x1756   :  { %6454 = vrcp.f32 %v4316_v50 }
0x175c   :  { %v6455_v14 = vpop.eup %6454 }
0x175d   :  { %v6322_v16 = vpop.permute.xlu2 %6321  ;;  %v4328_v31 = vmul.f32 %v6455_v14, %v6447_v12 }
0x175e   :  { %v6323_v1 = vunpack.i.l.bf16 %v6322_v16  ;;  %v6324_v3 = vunpack.i.h.bf16 %v6322_v16 }
0x175f   :  { %6186 = vmatmul.msk.f32.gmra.mxu3 %vm11067_vm6, %v4328_v31 }
0x1760   :  { %4392 = vmatpush.msra.mxu0 %v6323_v1  ;;  %v6200_v1 = vld [vmem:[%s11000_s5 + $0x78] sm:$0xff] }
0x1761   :  { %4584 = vmatpush.msra.mxu2 %v6200_v1 }
0x1762   :  { %4393 = vmatpush.msra.mxu0 %v6324_v3  ;;  %v6199_v3 = vld [vmem:[%s11000_s5 + $0x70] sm:$0xff] }
0x1763   :  { %4585 = vmatpush.msra.mxu2 %v6199_v3 }
0x178d   :  { %v4319_v63 = vpop.xlane.xlu1 %4318 }
0x178e   :  { %6456 = vrcp.f32 %v4319_v63  ;;  %v6198_v63 = vld [vmem:[%s11000_s5 + $0x68] sm:$0xff] }
0x178f   :  { %4586 = vmatpush.msra.mxu2 %v6198_v63 }
0x1794   :  { %v6457_v4 = vpop.eup %6456 }
0x1795   :  { %v4329_v35 = vmul.f32 %v6457_v4, %v6449_v33  ;;  %v6197_v4 = vld [vmem:[%s11000_s5 + $0x60] sm:$0xff] }
0x1796   :  { %4587 = vmatpush.msra.mxu2 %v6197_v4 }
0x1797   :  { %6187 = vmatmul.msk.f32.vlgmr.msra.gmra.mxu0 %vm11073_vm12, %v4329_v35 }
0x17ac   :  { %v4322_v20 = vpop.xlane.xlu1 %4321 }
0x17ad   :  { %6458 = vrcp.f32 %v4322_v20 }
0x17b3   :  { %v6459_v10 = vpop.eup %6458 }
0x17b4   :  { %v4330_v25 = vmul.f32 %v6459_v10, %v6451_v46 }
0x17b6   :  { %6188 = vmatmul.msk.f32.gmra.mxu0 %vm11074_vm7, %v4330_v25 }
0x17d5   :  { %v4360_v37 = vpop.f32.mrf.mxu3 }
0x17d6   :  { %6193 = vmatmul.msk.f32.vlgmr.msra.gmra.mxu1 %vm99_vm0, %v4360_v37 }
0x17e2   :  { %v4363_v54 = vpop.f32.mrf.mxu3 }
0x17e3   :  { %6194 = vmatmul.msk.f32.gmra.mxu1 %vm99_vm0, %v4363_v54  ;;  %v10105_v54 = vperm.slane %v10063_v8, 1 }
0x1814   :  { %v4395_v61 = vpop.f32.mrf.mxu0 }
0x1815   :  { %6195 = vmatmul.msk.f32.gmra.mxu1 %vm99_vm0, %v4395_v61 }
0x1833   :  { %v4398_v52 = vpop.f32.mrf.mxu0 }
0x1834   :  { %6196 = vmatmul.msk.f32.gmra.mxu1 %vm99_vm0, %v4398_v52 }
0x1853   :  { %v4436_v15 = vpop.f32.mrf.mxu1 }
0x1854   :  { %v4437_v56 = vadd.f32 %v4436_v15, %v4406_v22 }
0x1856   :  { %v4448_v57 = vadd.f32 %v4437_v56, %v9333_v53  ;;  %v11075_v53 = vld [vmem:[#allocation6_spill] sm:$0xff] }
0x1858   :  { %v4452_v19 = vsel %vm99_vm0, %v4448_v57, 0.0 }
0x1859   :  { %4453 = vadd.xlane.f32.xlu0 %v4452_v19 }
0x1860   :  { %v4439_v6 = vpop.f32.mrf.mxu1 }
0x1861   :  { %v4440_v44 = vadd.f32 %v4439_v6, %v4406_v22 }
0x1863   :  { %v4449_v58 = vadd.f32 %v4440_v44, %v9337_v21 }
0x1865   :  { %v4455_v36 = vsel %vm99_vm0, %v4449_v58, 0.0 }
0x1866   :  { %4456 = vadd.xlane.f32.xlu1 %v4455_v36 }
0x1892   :  { %v4442_v11 = vpop.f32.mrf.mxu1 }
0x1893   :  { %v4443_v55 = vadd.f32 %v4442_v11, %v4406_v22 }
0x1895   :  { %v4450_v49 = vadd.f32 %v4443_v55, %v9343_v30 }
0x1897   :  { %v4458_v27 = vsel %vm99_vm0, %v4450_v49, 0.0 }
0x1898   :  { %4459 = vadd.xlane.f32.xlu1 %v4458_v27 }
0x18b1   :  { %v4445_v38 = vpop.f32.mrf.mxu1 }
0x18b2   :  { %v4446_v39 = vadd.f32 %v4445_v38, %v4406_v22  ;;  %v4545_v22 = vperm.slane %v10063_v8, 2 }
0x18b4   :  { %v4451_v18 = vadd.f32 %v4446_v39, %v11075_v53 }
0x18b6   :  { %v4461_v12 = vsel %vm99_vm0, %v4451_v18, 0.0 }
0x18b7   :  { %4462 = vadd.xlane.f32.xlu2 %v4461_v12 }
0x18cc   :  { %v4454_v42 = vpop.xlane.xlu0 %4453 }
0x18cd   :  { %v4464_v21 = vmul.f32 %v4454_v42, %v11076_v60 }
0x18cf   :  { %v4468_v62 = vsub.f32 %v4448_v57, %v4464_v21 }
0x18d1   :  { %v4472_v43 = vmul.f32 %v4468_v62, %v4468_v62 }
0x18d3   :  { %v4476_v0 = vsel %vm99_vm0, %v4472_v43, 0.0 }
0x18d4   :  { %4477 = vadd.xlane.f32.xlu1 %v4476_v0 }
0x18d9   :  { %v4457_v33 = vpop.xlane.xlu1 %4456 }
0x18da   :  { %v4465_v30 = vmul.f32 %v4457_v33, %v11076_v60 }
0x18dc   :  { %v4469_v29 = vsub.f32 %v4449_v58, %v4465_v30 }
0x18de   :  { %v4473_v32 = vmul.f32 %v4469_v29, %v4469_v29 }
0x18e0   :  { %v4479_v28 = vsel %vm99_vm0, %v4473_v32, 0.0  ;;  %v6213_v32 = vld [vmem:[%s11002_s7 + $0xf8] sm:$0xff] }
0x18e1   :  { %4480 = vadd.xlane.f32.xlu1 %v4479_v28  ;;  %v6212_v28 = vld [vmem:[%s11002_s7 + $0xf0] sm:$0xff]  ;;  %4635 = vmatpush.msra.mxu3 %v6213_v32 }
0x18e3   :  { %4636 = vmatpush.msra.mxu3 %v6212_v28 }
0x190b   :  { %v4460_v34 = vpop.xlane.xlu1 %4459 }
0x190c   :  { %v4466_v40 = vmul.f32 %v4460_v34, %v11076_v60  ;;  %v6211_v34 = vld [vmem:[%s11002_s7 + $0xe8] sm:$0xff] }
0x190d   :  { %4637 = vmatpush.msra.mxu3 %v6211_v34 }
0x190e   :  { %v10079_v26 = vsub.f32 %v4450_v49, %v4466_v40 }
0x1910   :  { %v4474_v41 = vmul.f32 %v10079_v26, %v10079_v26 }
0x1912   :  { %v4482_v46 = vsel %vm99_vm0, %v4474_v41, 0.0  ;;  %v6210_v41 = vld [vmem:[%s11002_s7 + $0xe0] sm:$0xff] }
0x1913   :  { %4483 = vadd.xlane.f32.xlu1 %v4482_v46  ;;  %4638 = vmatpush.msra.mxu3 %v6210_v41 }
0x192a   :  { %v4463_v47 = vpop.xlane.xlu2 %4462 }
0x192b   :  { %v4467_v13 = vmul.f32 %v4463_v47, %v11076_v60  ;;  %v6209_v47 = vld [vmem:[%s11002_s7 + $0xd8] sm:$0xff] }
0x192c   :  { %4639 = vmatpush.msra.mxu3 %v6209_v47 }
0x192d   :  { %v10085_v2 = vsub.f32 %v4451_v18, %v4467_v13 }
0x192f   :  { %v4475_v59 = vmul.f32 %v10085_v2, %v10085_v2 }
0x1931   :  { %v4485_v50 = vsel %vm99_vm0, %v4475_v59, 0.0 }
0x1932   :  { %4486 = vadd.xlane.f32.xlu0 %v4485_v50 }
0x1947   :  { %v4478_v14 = vpop.xlane.xlu1 %4477 }
0x1948   :  { %v4488_v16 = vmul.f32 %v4478_v14, %v11076_v60 }
0x194a   :  { %v4492_v31 = vadd.f32 1e-05, %v4488_v16 }
0x194c   :  { %6460 = vrsqrt.f32 %v4492_v31  ;;  %vm4502_vm15 = vweird.f32 %v4492_v31 }
0x1952   :  { %v6461_v35 = vpop.eup %6460 }
0x1953   :  { %v4497_v51 = vmul.f32 %v6461_v35, %v4492_v31  ;;  %vm4503_vm14 = vweird.f32 %v6461_v35 }
0x1954   :  { %v4481_v17 = vpop.xlane.xlu1 %4480  ;;  %vm4504_vm11 = vmor %vm4502_vm15, %vm4503_vm14 }
0x1955   :  { %v4498_v23 = vmul.f32 %v6461_v35, %v4497_v51  ;;  %v4489_v20 = vmul.f32 %v4481_v17, %v11076_v60  ;;  %v6207_v51 = vld [vmem:[%s11002_s7 + $0xc8] sm:$0xff]  ;;  %v6206_v17 = vld [vmem:[%s11002_s7 + $0xc0] sm:$0xff] }
0x1957   :  { %v4499_v10 = vmul.f32 0.5, %v4498_v23  ;;  %v4493_v25 = vadd.f32 1e-05, %v4489_v20 }
0x1959   :  { %v4500_v24 = vsub.f32 1.5, %v4499_v10  ;;  %6462 = vrsqrt.f32 %v4493_v25  ;;  %vm4512_vm12 = vweird.f32 %v4493_v25 }
0x195b   :  { %v4501_v37 = vmul.f32 %v6461_v35, %v4500_v24 }
0x195d   :  { %v4505_v61 = vsel %vm4504_vm11, %v6461_v35, %v4501_v37  ;;  %v6208_v35 = vld [vmem:[%s11002_s7 + $0xd0] sm:$0xff] }
0x195e   :  { %v4536_v52 = vmul.f32 %v4505_v61, %v4468_v62  ;;  %4640 = vmatpush.msra.mxu3 %v6208_v35  ;;  %v6221_v35 = vld [vmem:[%s10997_s2 + $0x90] sm:$0xff] }
0x195f   :  { %v6463_v15 = vpop.eup %6462 }
0x1960   :  { %v4541_v56 = vmul.f32 %v10105_v54, %v4536_v52  ;;  %v4507_v57 = vmul.f32 %v6463_v15, %v4493_v25  ;;  %vm4513_vm6 = vweird.f32 %v6463_v15  ;;  %4641 = vmatpush.msra.mxu3 %v6207_v51  ;;  %v6220_v51 = vld [vmem:[%s10997_s2 + $0x88] sm:$0xff] }
0x1961   :  { %vm4514_vm7 = vmor %vm4512_vm12, %vm4513_vm6 }
0x1962   :  { %v4508_v19 = vmul.f32 %v6463_v15, %v4507_v57  ;;  %v10109_v6 = vadd.f32 %v4545_v22, %v4541_v56  ;;  %4642 = vmatpush.msra.mxu3 %v6206_v17  ;;  %v4614_v57 = vperm.slane %v10063_v8, 3  ;;  %v6219_v17 = vld [vmem:[%s10997_s2 + $0x80] sm:$0xff] }
0x1964   :  { %v4509_v44 = vmul.f32 0.5, %v4508_v19  ;;  %6202 = vmatmul.msk.f32.vlgmr.msra.gmra.mxu2 %vm99_vm0, %v10109_v6 }
0x1966   :  { %v4510_v58 = vsub.f32 1.5, %v4509_v44 }
0x1968   :  { %v4511_v36 = vmul.f32 %v6463_v15, %v4510_v58 }
0x196a   :  { %v4515_v11 = vsel %vm4514_vm7, %v6463_v15, %v4511_v36 }
0x196b   :  { %v4537_v55 = vmul.f32 %v4515_v11, %v4469_v29 }
0x196d   :  { %v4542_v49 = vmul.f32 %v10105_v54, %v4537_v55 }
0x196f   :  { %v10114_v27 = vadd.f32 %v4545_v22, %v4542_v49 }
0x1971   :  { %6203 = vmatmul.msk.f32.gmra.mxu2 %vm99_vm0, %v10114_v27 }
0x1986   :  { %v4484_v38 = vpop.xlane.xlu1 %4483 }
0x1987   :  { %v4490_v39 = vmul.f32 %v4484_v38, %v11076_v60 }
0x1989   :  { %v4494_v53 = vadd.f32 1e-05, %v4490_v39 }
0x198b   :  { %6464 = vrsqrt.f32 %v4494_v53  ;;  %vm4522_vm15 = vweird.f32 %v4494_v53 }
0x1991   :  { %v6465_v18 = vpop.eup %6464 }
0x1992   :  { %v4517_v12 = vmul.f32 %v6465_v18, %v4494_v53  ;;  %vm4523_vm14 = vweird.f32 %v6465_v18 }
0x1993   :  { %vm4524_vm11 = vmor %vm4522_vm15, %vm4523_vm14 }
0x1994   :  { %v4518_v42 = vmul.f32 %v6465_v18, %v4517_v12 }
0x1996   :  { %v4519_v21 = vmul.f32 0.5, %v4518_v42 }
0x1998   :  { %v4520_v62 = vsub.f32 1.5, %v4519_v21 }
0x199a   :  { %v4521_v43 = vmul.f32 %v6465_v18, %v4520_v62 }
0x199c   :  { %v4525_v0 = vsel %vm4524_vm11, %v6465_v18, %v4521_v43 }
0x199d   :  { %v4538_v33 = vmul.f32 %v4525_v0, %v10079_v26 }
0x199f   :  { %v4543_v30 = vmul.f32 %v10105_v54, %v4538_v33 }
0x19a1   :  { %v10121_v29 = vadd.f32 %v4545_v22, %v4543_v30 }
0x19a3   :  { %6204 = vmatmul.msk.f32.gmra.mxu2 %vm99_vm0, %v10121_v29 }
0x19a5   :  { %v4487_v40 = vpop.xlane.xlu0 %4486 }
0x19a6   :  { %v4491_v26 = vmul.f32 %v4487_v40, %v11076_v60 }
0x19a8   :  { %v4495_v46 = vadd.f32 1e-05, %v4491_v26 }
0x19aa   :  { %6466 = vrsqrt.f32 %v4495_v46  ;;  %vm4532_vm12 = vweird.f32 %v4495_v46 }
0x19b0   :  { %v6467_v13 = vpop.eup %6466 }
0x19b1   :  { %v4527_v59 = vmul.f32 %v6467_v13, %v4495_v46  ;;  %vm4533_vm6 = vweird.f32 %v6467_v13 }
0x19b2   :  { %vm4534_vm7 = vmor %vm4532_vm12, %vm4533_vm6 }
0x19b3   :  { %v4528_v50 = vmul.f32 %v6467_v13, %v4527_v59 }
0x19b5   :  { %v4529_v14 = vmul.f32 0.5, %v4528_v50 }
0x19b7   :  { %v4530_v16 = vsub.f32 1.5, %v4529_v14 }
0x19b9   :  { %v4531_v31 = vmul.f32 %v6467_v13, %v4530_v16 }
0x19bb   :  { %v4535_v1 = vsel %vm4534_vm7, %v6467_v13, %v4531_v31 }
0x19bc   :  { %v4539_v3 = vmul.f32 %v4535_v1, %v10085_v2  ;;  %v6342_v2 = vld [vmem:[%s11001_s6 + $0x3] ss:$0 sm:$0xff] }
0x19be   :  { %v4544_v63 = vmul.f32 %v10105_v54, %v4539_v3 }
0x19c0   :  { %v4549_v4 = vadd.f32 %v4545_v22, %v4544_v63 }
0x19c2   :  { %6205 = vmatmul.msk.f32.gmra.mxu2 %vm99_vm0, %v4549_v4 }
0x19e7   :  { %v4589_v23 = vpop.f32.mrf.mxu2 }
0x19e8   :  { %v4590_v20 = vadd.f32 %v6342_v2, %v4589_v23 }
0x19ea   :  { %v4601_v10 = vmax.f32 %v4590_v20, 0.0 }
0x19ec   :  { %6214 = vmatmul.msk.f32.vlgmr.msra.gmra.mxu3 %vm1128_vm8, %v4601_v10 }
0x19f4   :  { %v4592_v25 = vpop.f32.mrf.mxu2 }
0x19f5   :  { %v4593_v24 = vadd.f32 %v6342_v2, %v4592_v25 }
0x19f7   :  { %v4602_v37 = vmax.f32 %v4593_v24, 0.0 }
0x19f9   :  { %6215 = vmatmul.msk.f32.gmra.mxu3 %vm1128_vm8, %v4602_v37 }
0x1a26   :  { %v4595_v54 = vpop.f32.mrf.mxu2 }
0x1a27   :  { %v4596_v61 = vadd.f32 %v6342_v2, %v4595_v54 }
0x1a29   :  { %v4603_v52 = vmax.f32 %v4596_v61, 0.0 }
0x1a2b   :  { %6216 = vmatmul.msk.f32.gmra.mxu3 %vm1128_vm8, %v4603_v52  ;;  %v4748_v52 = vperm.slane %v10063_v8, 4 }
0x1a45   :  { %v4598_v22 = vpop.f32.mrf.mxu2 }
0x1a46   :  { %v4599_v15 = vadd.f32 %v6342_v2, %v4598_v22 }
0x1a48   :  { %v4604_v56 = vmax.f32 %v4599_v15, 0.0 }
0x1a4a   :  { %6217 = vmatmul.msk.f32.gmra.mxu3 %vm1128_vm8, %v4604_v56  ;;  %v4753_v56 = vperm.slane %v10063_v8, 5 }
0x1a6f   :  { %v4644_v19 = vpop.f32.mrf.mxu3 }
0x1a70   :  { %v4645_v44 = vadd.f32 %v4644_v19, %v4614_v57 }
0x1a72   :  { %v4656_v58 = vadd.f32 %v4645_v44, %v10109_v6 }
0x1a74   :  { %v4660_v36 = vsel %vm99_vm0, %v4656_v58, 0.0 }
0x1a75   :  { %4661 = vadd.xlane.f32.xlu1 %v4660_v36 }
0x1a7c   :  { %v4647_v11 = vpop.f32.mrf.mxu3 }
0x1a7d   :  { %v4648_v55 = vadd.f32 %v4647_v11, %v4614_v57 }
0x1a7f   :  { %v4657_v49 = vadd.f32 %v4648_v55, %v10114_v27 }
0x1a81   :  { %v4663_v38 = vsel %vm99_vm0, %v4657_v49, 0.0 }
0x1a82   :  { %4664 = vadd.xlane.f32.xlu0 %v4663_v38 }
0x1aae   :  { %v4650_v39 = vpop.f32.mrf.mxu3 }
0x1aaf   :  { %v4651_v53 = vadd.f32 %v4650_v39, %v4614_v57 }
0x1ab1   :  { %v4658_v18 = vadd.f32 %v4651_v53, %v10121_v29 }
0x1ab3   :  { %v4666_v12 = vsel %vm99_vm0, %v4658_v18, 0.0 }
0x1ab4   :  { %4667 = vadd.xlane.f32.xlu1 %v4666_v12 }
0x1acd   :  { %v4653_v42 = vpop.f32.mrf.mxu3 }
0x1ace   :  { %v4654_v21 = vadd.f32 %v4653_v42, %v4614_v57 }
0x1ad0   :  { %v4659_v6 = vadd.f32 %v4654_v21, %v4549_v4  ;;  %v6222_v4 = vld [vmem:[%s10997_s2 + $0x98] sm:$0xff]  ;;  %s6686_s2 = smov 128  }
0x1ad1   :  { %4794 = vmatpush.msrb.mxu0 %v6222_v4 }
0x1ad2   :  { %v4669_v62 = vsel %vm99_vm0, %v4659_v6, 0.0 }
0x1ad3   :  { %4670 = vadd.xlane.f32.xlu2 %v4669_v62  ;;  %4795 = vmatpush.msrb.mxu0 %v6221_v35 }
0x1ad5   :  { %4796 = vmatpush.msrb.mxu0 %v6220_v51  ;;  %v10235_v51 = vld [vmem:[%s10996_s1] sm:$0xff] }
0x1ad7   :  { %4797 = vmatpush.msrb.mxu0 %v6219_v17 }
0x1ae8   :  { %v4662_v43 = vpop.xlane.xlu1 %4661 }
0x1ae9   :  { %v4672_v0 = vmul.f32 %v4662_v43, %v11076_v60 }
0x1aeb   :  { %v4676_v27 = vsub.f32 %v4656_v58, %v4672_v0 }
0x1aed   :  { %v4680_v33 = vmul.f32 %v4676_v27, %v4676_v27 }
0x1aef   :  { %v4684_v30 = vsel %vm99_vm0, %v4680_v33, 0.0 }
0x1af0   :  { %4685 = vadd.xlane.f32.xlu0 %v4684_v30 }
0x1af5   :  { %v4665_v32 = vpop.xlane.xlu0 %4664 }
0x1af6   :  { %v4673_v29 = vmul.f32 %v4665_v32, %v11076_v60 }
0x1af8   :  { %v4677_v28 = vsub.f32 %v4657_v49, %v4673_v29 }
0x1afa   :  { %v4681_v34 = vmul.f32 %v4677_v28, %v4677_v28 }
0x1afc   :  { %v4687_v40 = vsel %vm99_vm0, %v4681_v34, 0.0 }
0x1afd   :  { %4688 = vadd.xlane.f32.xlu1 %v4687_v40 }
0x1b27   :  { %v4668_v26 = vpop.xlane.xlu1 %4667 }
0x1b28   :  { %v4674_v41 = vmul.f32 %v4668_v26, %v11076_v60 }
0x1b2a   :  { %v10173_v46 = vsub.f32 %v4658_v18, %v4674_v41 }
0x1b2c   :  { %v4682_v47 = vmul.f32 %v10173_v46, %v10173_v46 }
0x1b2e   :  { %v4690_v13 = vsel %vm99_vm0, %v4682_v47, 0.0 }
0x1b2f   :  { %4691 = vadd.xlane.f32.xlu2 %v4690_v13 }
0x1b46   :  { %v4671_v59 = vpop.xlane.xlu2 %4670 }
0x1b47   :  { %v4675_v50 = vmul.f32 %v4671_v59, %v11076_v60 }
0x1b49   :  { %v10179_v14 = vsub.f32 %v4659_v6, %v4675_v50 }
0x1b4b   :  { %v4683_v16 = vmul.f32 %v10179_v14, %v10179_v14 }
0x1b4d   :  { %v4693_v31 = vsel %vm99_vm0, %v4683_v16, 0.0 }
0x1b4e   :  { %4694 = vadd.xlane.f32.xlu0 %v4693_v31 }
0x1b63   :  { %v4686_v1 = vpop.xlane.xlu0 %4685 }
0x1b64   :  { %v4696_v3 = vmul.f32 %v4686_v1, %v11076_v60 }
0x1b66   :  { %v4700_v63 = vadd.f32 1e-05, %v4696_v3  ;;  %v10223_v3 = vld [vmem:[%s10998_s3 + $0x4] ss:$0 sm:$0xff] }
0x1b68   :  { %6468 = vrsqrt.f32 %v4700_v63  ;;  %vm4710_vm15 = vweird.f32 %v4700_v63 }
0x1b6e   :  { %v6469_v2 = vpop.eup %6468 }
0x1b6f   :  { %v4705_v23 = vmul.f32 %v6469_v2, %v4700_v63  ;;  %vm4711_vm14 = vweird.f32 %v6469_v2 }
0x1b70   :  { %v4689_v20 = vpop.xlane.xlu1 %4688  ;;  %vm4712_vm11 = vmor %vm4710_vm15, %vm4711_vm14 }
0x1b71   :  { %v4706_v10 = vmul.f32 %v6469_v2, %v4705_v23  ;;  %v4697_v25 = vmul.f32 %v4689_v20, %v11076_v60 }
0x1b73   :  { %v4707_v24 = vmul.f32 0.5, %v4706_v10  ;;  %v4701_v37 = vadd.f32 1e-05, %v4697_v25  ;;  %v10243_v10 = vld [vmem:[%s10996_s1 + $0x10] sm:$0xff] }
0x1b75   :  { %v4708_v54 = vsub.f32 1.5, %v4707_v24  ;;  %6470 = vrsqrt.f32 %v4701_v37  ;;  %vm4720_vm12 = vweird.f32 %v4701_v37 }
0x1b77   :  { %v4709_v61 = vmul.f32 %v6469_v2, %v4708_v54  ;;  %v10250_v54 = vld [vmem:[%s10996_s1 + $0x18] sm:$0xff] }
0x1b79   :  { %v4713_v22 = vsel %vm4712_vm11, %v6469_v2, %v4709_v61 }
0x1b7a   :  { %v4744_v15 = vmul.f32 %v4713_v22, %v4676_v27  ;;  %v10257_v22 = vld [vmem:[%s10996_s1 + $0x28] sm:$0xff] }
0x1b7b   :  { %v6471_v57 = vpop.eup %6470 }
0x1b7c   :  { %v4749_v19 = vmul.f32 %v4748_v52, %v4744_v15  ;;  %v4715_v44 = vmul.f32 %v6471_v57, %v4701_v37  ;;  %vm4721_vm6 = vweird.f32 %v6471_v57 }
0x1b7d   :  { %vm4722_vm7 = vmor %vm4720_vm12, %vm4721_vm6 }
0x1b7e   :  { %v4716_v58 = vmul.f32 %v6471_v57, %v4715_v44  ;;  %v10200_v36 = vadd.f32 %v4753_v56, %v4749_v19 }
0x1b80   :  { %v4717_v11 = vmul.f32 0.5, %v4716_v58  ;;  %6224 = vmatmul.msk.f32.vlgmr.msrb.gmra.mxu0 %vm99_vm0, %v10200_v36 }
0x1b82   :  { %v4718_v55 = vsub.f32 1.5, %v4717_v11  ;;  %v10266_v11 = vld [vmem:[%s10996_s1 + $0x30] sm:$0xff] }
0x1b84   :  { %v4719_v49 = vmul.f32 %v6471_v57, %v4718_v55 }
0x1b86   :  { %v4723_v38 = vsel %vm4722_vm7, %v6471_v57, %v4719_v49  ;;  %v10272_v49 = vld [vmem:[%s10996_s1 + $0x40] sm:$0xff] }
0x1b87   :  { %v4745_v39 = vmul.f32 %v4723_v38, %v4677_v28 }
0x1b89   :  { %v4750_v53 = vmul.f32 %v4748_v52, %v4745_v39 }
0x1b8b   :  { %v10204_v18 = vadd.f32 %v4753_v56, %v4750_v53 }
0x1b8d   :  { %6225 = vmatmul.msk.f32.gmra.mxu0 %vm99_vm0, %v10204_v18 }
0x1ba2   :  { %v4692_v8 = vpop.xlane.xlu2 %4691 }
0x1ba3   :  { %v4698_v12 = vmul.f32 %v4692_v8, %v11076_v60 }
0x1ba5   :  { %v4702_v42 = vadd.f32 1e-05, %v4698_v12 }
0x1ba7   :  { %6472 = vrsqrt.f32 %v4702_v42  ;;  %vm4730_vm15 = vweird.f32 %v4702_v42 }
0x1bad   :  { %v6473_v21 = vpop.eup %6472 }
0x1bae   :  { %v4725_v6 = vmul.f32 %v6473_v21, %v4702_v42  ;;  %vm4731_vm14 = vweird.f32 %v6473_v21  ;;  %v10281_v42 = vld [vmem:[%s10996_s1 + $0x48] sm:$0xff] }
0x1baf   :  { %vm4732_vm11 = vmor %vm4730_vm15, %vm4731_vm14  ;;  %vm11077_vm14 = vcmask 1045509   ;;  %vm11078_vm15 = vcmask 1046534  }
0x1bb0   :  { %v4726_v62 = vmul.f32 %v6473_v21, %v4725_v6 }
0x1bb2   :  { %v4727_v43 = vmul.f32 0.5, %v4726_v62  ;;  %v10288_v62 = vld [vmem:[%s10996_s1 + $0x58] sm:$0xff] }
0x1bb4   :  { %v4728_v0 = vsub.f32 1.5, %v4727_v43 }
0x1bb6   :  { %v4729_v27 = vmul.f32 %v6473_v21, %v4728_v0 }
0x1bb8   :  { %v4733_v33 = vsel %vm4732_vm11, %v6473_v21, %v4729_v27  ;;  %vm11080_vm11 = vcmask 1047559  }
0x1bb9   :  { %v4746_v30 = vmul.f32 %v4733_v33, %v10173_v46 }
0x1bbb   :  { %v4751_v32 = vmul.f32 %v4748_v52, %v4746_v30  ;;  %v10296_v30 = vld [vmem:[%s10996_s1 + $0x60] sm:$0xff] }
0x1bbd   :  { %v10210_v29 = vadd.f32 %v4753_v56, %v4751_v32 }
0x1bbf   :  { %6226 = vmatmul.msk.f32.gmra.mxu0 %vm99_vm0, %v10210_v29 }
0x1bc1   :  { %v4695_v28 = vpop.xlane.xlu0 %4694 }
0x1bc2   :  { %v4699_v34 = vmul.f32 %v4695_v28, %v11076_v60 }
0x1bc4   :  { %v4703_v40 = vadd.f32 1e-05, %v4699_v34  ;;  %v10303_v34 = vld [vmem:[%s10996_s1 + $0x8] sm:$0xff] }
0x1bc6   :  { %6474 = vrsqrt.f32 %v4703_v40  ;;  %vm4740_vm12 = vweird.f32 %v4703_v40 }
0x1bcc   :  { %v6475_v26 = vpop.eup %6474 }
0x1bcd   :  { %v4735_v41 = vmul.f32 %v6475_v26, %v4703_v40  ;;  %vm4741_vm6 = vweird.f32 %v6475_v26 }
0x1bce   :  { %vm4742_vm7 = vmor %vm4740_vm12, %vm4741_vm6 }
0x1bcf   :  { %v4736_v47 = vmul.f32 %v6475_v26, %v4735_v41  ;;  %v10310_v41 = vld [vmem:[%s10996_s1 + $0x20] sm:$0xff] }
0x1bd1   :  { %v4737_v13 = vmul.f32 0.5, %v4736_v47 }
0x1bd3   :  { %v4738_v59 = vsub.f32 1.5, %v4737_v13 }
0x1bd5   :  { %v4739_v50 = vmul.f32 %v6475_v26, %v4738_v59 }
0x1bd7   :  { %v4743_v46 = vsel %vm4742_vm7, %v6475_v26, %v4739_v50  ;;  %v10317_v50 = vld [vmem:[%s10996_s1 + $0x38] sm:$0xff]  ;;  %vm11081_vm7 = vcmask 130048  }
0x1bd8   :  { %v4747_v16 = vmul.f32 %v4743_v46, %v10179_v14 }
0x1bda   :  { %v4752_v31 = vmul.f32 %v4748_v52, %v4747_v16 }
0x1bdc   :  { %v10216_v1 = vadd.f32 %v4753_v56, %v4752_v31 }
0x1bde   :  { %6227 = vmatmul.msk.f32.gmra.mxu0 %vm99_vm0, %v10216_v1 }
0x1bfd   :  { %v4799_v63 = vpop.f32.mrf.mxu0 }
0x1bfe   :  { %v10226_v4 = vadd.f32 %v10223_v3, %v4799_v63  ;;  %v10329_v63 = vld [vmem:[%s10996_s1 + $0x50] sm:$0xff] }
0x1c00   :  { %4813 = vrot.lane.b32.xlu2 %v10226_v4, %s6682_s18  ;;  %v4917_v14 = vperm.slane %v10226_v4, 0  ;;  %v4889_v35 = vrot.slane %v10226_v4, 1  ;;  %v4890_v23 = vrot.slane %v10226_v4, 2  ;;  %v4891_v52 = vrot.slane %v10226_v4, 3 }
0x1c01   :  { %v4892_v56 = vrot.slane %v10226_v4, 4  ;;  %v4893_v39 = vrot.slane %v10226_v4, 5  ;;  %v4894_v6 = vrot.slane %v10226_v4, 6 }
0x1c02   :  { %v4981_v17 = vmul.f32 %v10235_v51, %v4917_v14  ;;  %v4918_v2 = vperm.slane %v4889_v35, 0  ;;  %v4919_v37 = vperm.slane %v4890_v23, 0  ;;  %v4920_v19 = vperm.slane %v4891_v52, 0 }
0x1c03   :  { %v4921_v58 = vperm.slane %v4892_v56, 0  ;;  %v4922_v12 = vperm.slane %v4893_v39, 0  ;;  %v4923_v27 = vperm.slane %v4894_v6, 0  ;;  %v4982_v40 = vmul.f32 %v10303_v34, %v4917_v14  ;;  %v10356_v56 = vld [vmem:[%s10996_s1 + $0x98] sm:$0xff]  ;;  %v10379_v6 = vld [vmem:[%s10996_s1 + $0x70] sm:$0xff] }
0x1c04   :  { %v5045_v20 = vsel %vm99_vm0, %v4981_v17, 0.0  ;;  %v4983_v25 = vmul.f32 %v10243_v10, %v4918_v2  ;;  %v4984_v61 = vmul.f32 %v10250_v54, %v4918_v2  ;;  %v4986_v15 = vmul.f32 %v10257_v22, %v4919_v37  ;;  %v10336_v17 = vld [vmem:[%s10996_s1 + $0x68] sm:$0xff] }
0x1c05   :  { %5046 = vadd.xlane.f32.xlu0 %v5045_v20  ;;  %v4987_v55 = vmul.f32 %v10266_v11, %v4920_v19  ;;  %v4989_v38 = vmul.f32 %v10272_v49, %v4921_v58  ;;  %v4990_v21 = vmul.f32 %v10281_v42, %v4921_v58  ;;  %v4992_v43 = vmul.f32 %v10288_v62, %v4922_v12 }
0x1c06   :  { %v5051_v24 = vsel %vm99_vm0, %v4983_v25, 0.0  ;;  %v5054_v57 = vsel %vm99_vm0, %v4984_v61, 0.0  ;;  %v5060_v44 = vsel %vm99_vm0, %v4986_v15, 0.0  ;;  %v4993_v32 = vmul.f32 %v10296_v30, %v4923_v27  ;;  %v10344_v25 = vld [vmem:[%s10996_s1 + $0x80] sm:$0xff] }
0x1c07   :  { %5052 = vadd.xlane.f32.xlu1 %v5051_v24  ;;  %v5063_v53 = vsel %vm99_vm0, %v4987_v55, 0.0  ;;  %v5069_v8 = vsel %vm99_vm0, %v4989_v38, 0.0  ;;  %v5072_v0 = vsel %vm99_vm0, %v4990_v21, 0.0  ;;  %v5078_v33 = vsel %vm99_vm0, %v4992_v43, 0.0 }
0x1c08   :  { %v5081_v28 = vsel %vm99_vm0, %v4993_v32, 0.0  ;;  %v5048_v26 = vsel %vm99_vm0, %v4982_v40, 0.0  ;;  %v4985_v47 = vmul.f32 %v10310_v41, %v4919_v37  ;;  %v4988_v46 = vmul.f32 %v10317_v50, %v4920_v19  ;;  %v10391_v32 = vld [vmem:[%s10996_s1 + $0xc8] sm:$0xff] }
0x1c09   :  { %v4991_v14 = vmul.f32 %v10329_v63, %v4922_v12  ;;  %v4994_v2 = vmul.f32 %v10336_v17, %v4923_v27 }
0x1c0a   :  { %v5057_v13 = vsel %vm99_vm0, %v4985_v47, 0.0  ;;  %v4802_v59 = vpop.f32.mrf.mxu0  ;;  %v5066_v31 = vsel %vm99_vm0, %v4988_v46, 0.0 }
0x1c0b   :  { %v10321_v16 = vadd.f32 %v10223_v3, %v4802_v59  ;;  %v5075_v35 = vsel %vm99_vm0, %v4991_v14, 0.0  ;;  %v5084_v23 = vsel %vm99_vm0, %v4994_v2, 0.0  ;;  %v10416_v2 = vld [vmem:[%s10996_s1 + $0xf8] sm:$0xff] }
0x1c0d   :  { %5055 = vadd.xlane.f32.xlu0 %v5054_v57  ;;  %v4925_v20 = vperm.slane %v10321_v16, 0  ;;  %v4896_v37 = vrot.slane %v10321_v16, 1  ;;  %v4898_v19 = vrot.slane %v10321_v16, 3  ;;  %v4899_v21 = vrot.slane %v10321_v16, 4 }
0x1c0e   :  { %v4901_v40 = vrot.slane %v10321_v16, 6  ;;  %v4902_v46 = vrot.slane %v10321_v16, 7 }
0x1c0f   :  { %5061 = vadd.xlane.f32.xlu1 %v5060_v44  ;;  %v4997_v24 = vmul.f32 %v10344_v25, %v4925_v20  ;;  %v10351_v52 = vperm.slane %v4896_v37, 0  ;;  %v4895_v44 = vrot.slane %v10226_v4, 7  ;;  %v10363_v55 = vperm.slane %v4898_v19, 0 }
0x1c10   :  { %v10385_v27 = vperm.slane %v4899_v21, 0  ;;  %v10397_v47 = vperm.slane %v4901_v40, 0 }
0x1c11   :  { %v5093_v61 = vsel %vm99_vm0, %v4997_v24, 0.0  ;;  %v5000_v57 = vmul.f32 %v10356_v56, %v10351_v52  ;;  %v4924_v38 = vperm.slane %v4895_v44, 0 }
0x1c13   :  { %v5102_v58 = vsel %vm99_vm0, %v5000_v57, 0.0  ;;  %v4995_v43 = vmul.f32 %v10379_v6, %v4924_v38 }
0x1c15   :  { %5064 = vadd.xlane.f32.xlu0 %v5063_v53 }
0x1c17   :  { %5070 = vadd.xlane.f32.xlu1 %v5069_v8  ;;  %v10371_v8 = vld [vmem:[%s10996_s1 + $0xb0] sm:$0xff] }
0x1c18   :  { %v5003_v12 = vmul.f32 %v10371_v8, %v10363_v55 }
0x1c1d   :  { %5073 = vadd.xlane.f32.xlu0 %v5072_v0  ;;  %v5111_v0 = vsel %vm99_vm0, %v5003_v12, 0.0 }
0x1c1f   :  { %5079 = vadd.xlane.f32.xlu1 %v5078_v33  ;;  %v5087_v33 = vsel %vm99_vm0, %v4995_v43, 0.0 }
0x1c25   :  { %5082 = vadd.xlane.f32.xlu0 %v5081_v28  ;;  %v5006_v28 = vmul.f32 %v10391_v32, %v10385_v27 }
0x1c29   :  { %5049 = vadd.xlane.f32.xlu2 %v5048_v26  ;;  %v5120_v26 = vsel %vm99_vm0, %v5006_v28, 0.0 }
0x1c31   :  { %5058 = vadd.xlane.f32.xlu2 %v5057_v13  ;;  %v10402_v13 = vld [vmem:[%s10996_s1 + $0xe0] sm:$0xff] }
0x1c32   :  { %v5009_v59 = vmul.f32 %v10402_v13, %v10397_v47 }
0x1c34   :  { %v5129_v14 = vsel %vm99_vm0, %v5009_v59, 0.0 }
0x1c38   :  { %4815 = vrot.lane.b32.xlu1 %v10321_v16, %s6682_s18 }
0x1c39   :  { %5067 = vadd.xlane.f32.xlu2 %v5066_v31 }
0x1c3c   :  { %v4805_v15 = vpop.f32.mrf.mxu0 }
0x1c3d   :  { %v10408_v31 = vadd.f32 %v10223_v3, %v4805_v15 }
0x1c3f   :  { %v4903_v24 = vrot.slane %v10408_v31, 1  ;;  %v4904_v19 = vrot.slane %v10408_v31, 2  ;;  %v4906_v40 = vrot.slane %v10408_v31, 4 }
0x1c41   :  { %5076 = vadd.xlane.f32.xlu2 %v5075_v35  ;;  %v10411_v35 = vperm.slane %v4902_v46, 0 }
0x1c49   :  { %5085 = vadd.xlane.f32.xlu2 %v5084_v23  ;;  %v5012_v23 = vmul.f32 %v10416_v2, %v10411_v35 }
0x1c51   :  { %5094 = vadd.xlane.f32.xlu2 %v5093_v61  ;;  %v5138_v61 = vsel %vm99_vm0, %v5012_v23, 0.0  ;;  %v4897_v23 = vrot.slane %v10321_v16, 2 }
0x1c59   :  { %5103 = vadd.xlane.f32.xlu2 %v5102_v58 }
0x1c5b   :  { %v4808_v39 = vpop.f32.mrf.mxu0 }
0x1c5c   :  { %v10366_v53 = vadd.f32 %v10223_v3, %v4808_v39  ;;  %v10422_v3 = vperm.slane %v4903_v24, 0  ;;  %v10430_v39 = vperm.slane %v4904_v19, 0  ;;  %v4927_v19 = vperm.slane %v4897_v23, 0 }
0x1c5e   :  { %4852 = vrot.lane.b32.xlu0 %v10366_v53, %s6682_s18  ;;  %v5015_v57 = vmul.f32 %v10243_v10, %v10422_v3  ;;  %v5018_v28 = vmul.f32 %v10257_v22, %v10430_v39 }
0x1c60   :  { %v5147_v58 = vsel %vm99_vm0, %v5015_v57, 0.0  ;;  %v5156_v46 = vsel %vm99_vm0, %v5018_v28, 0.0 }
0x1c61   :  { %5112 = vadd.xlane.f32.xlu2 %v5111_v0  ;;  %v10438_v0 = vld [vmem:[%s10996_s1 + $0x78] sm:$0xff] }
0x1c62   :  { %5088 = vadd.xlane.f32.xlu1 %v5087_v33  ;;  %v4996_v10 = vmul.f32 %v10438_v0, %v4924_v38  ;;  %v10455_v38 = vld [vmem:[%s10996_s1 + $0x90] sm:$0xff] }
0x1c63   :  { %v4999_v22 = vmul.f32 %v10455_v38, %v10351_v52 }
0x1c65   :  { %v5099_v57 = vsel %vm99_vm0, %v4999_v22, 0.0 }
0x1c69   :  { %5121 = vadd.xlane.f32.xlu2 %v5120_v26  ;;  %v5090_v26 = vsel %vm99_vm0, %v4996_v10, 0.0 }
0x1c71   :  { %5130 = vadd.xlane.f32.xlu2 %v5129_v14  ;;  %v10450_v14 = vperm.slane %v4906_v40, 0  ;;  %v4814_v40 = vpop.permute.xlu2 %4813 }
0x1c73   :  { %v5021_v24 = vmul.f32 %v10272_v49, %v10450_v14  ;;  %v10475_v49 = vld [vmem:[%s10996_s1 + $0xa8] sm:$0xff] }
0x1c74   :  { %v5002_v28 = vmul.f32 %v10475_v49, %v4927_v19 }
0x1c76   :  { %v5108_v22 = vsel %vm99_vm0, %v5002_v28, 0.0 }
0x1c78   :  { %v5047_v37 = vpop.xlane.xlu0 %5046 }
0x1c79   :  { %5139 = vadd.xlane.f32.xlu2 %v5138_v61  ;;  %v4907_v61 = vrot.slane %v10408_v31, 5 }
0x1c7a   :  { %v5053_v15 = vpop.xlane.xlu1 %5052 }
0x1c7b   :  { %4850 = vrot.lane.b32.xlu1 %v10408_v31, %s6682_s18  ;;  %v5312_v12 = vperm.slane %v5053_v15, %v7255_v7 }
0x1c80   :  { %v5056_v44 = vpop.xlane.xlu0 %5055 }
0x1c81   :  { %v5313_v21 = vperm.slane %v5056_v44, %v7258_v5  ;;  %5148 = vadd.xlane.f32.xlu2 %v5147_v58  ;;  %v5165_v58 = vsel %vm99_vm0, %v5021_v24, 0.0 }
0x1c82   :  { %v10441_v33 = vpop.xlane.xlu1 %5061 }
0x1c83   :  { %v5314_v43 = vsel %vm650_vm1, %v5313_v21, %v5312_v12  ;;  %v10465_v12 = vperm.slane %v4907_v61, 0  ;;  %v10488_v61 = vld [vmem:[%s10996_s1 + $0xc0] sm:$0xff] }
0x1c88   :  { %v10447_v59 = vpop.xlane.xlu0 %5064  ;;  %5091 = vadd.xlane.f32.xlu0 %v5090_v26  ;;  %v5024_v26 = vmul.f32 %v10288_v62, %v10465_v12  ;;  %v4900_v62 = vrot.slane %v10321_v16, 5 }
0x1c89   :  { %5157 = vadd.xlane.f32.xlu2 %v5156_v46  ;;  %v4909_v46 = vrot.slane %v10408_v31, 7 }
0x1c8a   :  { %v5071_v15 = vpop.xlane.xlu1 %5070  ;;  %v5174_v23 = vsel %vm99_vm0, %v5024_v26, 0.0  ;;  %v10499_v26 = vperm.slane %v4900_v62, 0 }
0x1c8b   :  { %v5321_v21 = vperm.slane %v5071_v15, %v7255_v7  ;;  %v10483_v24 = vperm.slane %v4909_v46, 0  ;;  %v5005_v15 = vmul.f32 %v10488_v61, %v10385_v27 }
0x1c8d   :  { %v5117_v28 = vsel %vm99_vm0, %v5005_v15, 0.0  ;;  %v10512_v15 = vld [vmem:[%s10996_s1 + $0xd8] sm:$0xff] }
0x1c90   :  { %v5074_v44 = vpop.xlane.xlu0 %5073  ;;  %5100 = vadd.xlane.f32.xlu0 %v5099_v57 }
0x1c91   :  { %v5322_v52 = vperm.slane %v5074_v44, %v7258_v5  ;;  %5166 = vadd.xlane.f32.xlu2 %v5165_v58  ;;  %v5027_v44 = vmul.f32 %v10379_v6, %v10483_v24  ;;  %v5309_v58 = vperm.slane %v5047_v37, %v7255_v7  ;;  %v11021_v37 = vperm.slane %v10366_v53, 0 }
0x1c93   :  { %v10470_v10 = vsel %vm650_vm1, %v5322_v52, %v5321_v21  ;;  %v5183_v27 = vsel %vm99_vm0, %v5027_v44, 0.0 }
0x1c98   :  { %5109 = vadd.xlane.f32.xlu0 %v5108_v22  ;;  %v6649_v22 = vld [vmem:[%s10996_s1 + $0x88] sm:$0xff] }
0x1c99   :  { %5175 = vadd.xlane.f32.xlu2 %v5174_v23  ;;  %v4998_v6 = vmul.f32 %v6649_v22, %v4925_v20  ;;  %v5080_v23 = vpop.xlane.xlu1 %5079  ;;  %v5030_v44 = vmul.f32 %v6649_v22, %v11021_v37  ;;  %v4911_v20 = vrot.slane %v10366_v53, 2  ;;  %v6651_v22 = vld [vmem:[%s10996_s1 + $0xa0] sm:$0xff] }
0x1c9a   :  { %v5001_v37 = vmul.f32 %v6651_v22, %v4927_v19  ;;  %v4912_v19 = vrot.slane %v10366_v53, 3 }
0x1c9b   :  { %v10530_v60 = vperm.slane %v4911_v20, 0  ;;  %v5318_v20 = vperm.slane %v10447_v59, %v7255_v7  ;;  %v6653_v59 = vld [vmem:[%s10996_s1 + $0xb8] sm:$0xff] }
0x1c9c   :  { %v5050_v57 = vpop.xlane.xlu2 %5049 }
0x1c9d   :  { %v5310_v21 = vperm.slane %v5050_v57, %v7258_v5  ;;  %v5096_v57 = vsel %vm99_vm0, %v4998_v6, 0.0  ;;  %v5192_v6 = vsel %vm99_vm0, %v5030_v44, 0.0  ;;  %v5033_v44 = vmul.f32 %v6651_v22, %v10530_v60 }
0x1c9e   :  { %v10556_v22 = vperm.slane %v4912_v19, 0 }
0x1c9f   :  { %v5311_v52 = vsel %vm650_vm1, %v5310_v21, %v5309_v58  ;;  %v5316_v58 = vperm.slane %v10441_v33, %v7258_v5 }
0x1ca0   :  { %v5405_v46 = vsel %vm745_vm2, %v5314_v43, %v5311_v52  ;;  %5118 = vadd.xlane.f32.xlu0 %v5117_v28  ;;  %v5008_v43 = vmul.f32 %v10512_v15, %v10499_v26 }
0x1ca1   :  { %5184 = vadd.xlane.f32.xlu2 %v5183_v27 }
0x1ca2   :  { %v5126_v28 = vsel %vm99_vm0, %v5008_v43, 0.0  ;;  %v10536_v43 = vld [vmem:[%s10996_s1 + $0xf0] sm:$0xff] }
0x1ca4   :  { %v5059_v62 = vpop.xlane.xlu2 %5058 }
0x1ca5   :  { %v5315_v21 = vperm.slane %v5059_v62, %v7255_v7  ;;  %5097 = vadd.xlane.f32.xlu1 %v5096_v57  ;;  %v5105_v57 = vsel %vm99_vm0, %v5001_v37, 0.0 }
0x1ca7   :  { %v5317_v52 = vsel %vm650_vm1, %v5316_v58, %v5315_v21 }
0x1ca8   :  { %v5406_v27 = vsel %vm747_vm3, %v5317_v52, %v5405_v46  ;;  %5127 = vadd.xlane.f32.xlu0 %v5126_v28  ;;  %v5011_v46 = vmul.f32 %v10536_v43, %v10411_v35  ;;  %v4933_v35 = vperm.slane %v10408_v31, 0  ;;  %v5201_v28 = vsel %vm99_vm0, %v5033_v44, 0.0 }
0x1ca9   :  { %5193 = vadd.xlane.f32.xlu2 %v5192_v6  ;;  %v5004_v6 = vmul.f32 %v6653_v59, %v10363_v55  ;;  %v5325_v55 = vperm.slane %v5080_v23, %v7258_v5 }
0x1caa   :  { %v4816_v33 = vpop.permute.xlu1 %4815  ;;  %v5135_v52 = vsel %vm99_vm0, %v5011_v46, 0.0 }
0x1cab   :  { %6228 = vmatpush.xpose.msk.msrb.mxu1 %vm99_vm0, %v4816_v33  ;;  %v5114_v46 = vsel %vm99_vm0, %v5004_v6, 0.0 }
0x1cac   :  { %v5068_v62 = vpop.xlane.xlu2 %5067 }
0x1cad   :  { %v5319_v58 = vperm.slane %v5068_v62, %v7258_v5  ;;  %5106 = vadd.xlane.f32.xlu1 %v5105_v57  ;;  %v5036_v62 = vmul.f32 %v6653_v59, %v10556_v22  ;;  %v4914_v57 = vrot.slane %v10366_v53, 5 }
0x1caf   :  { %v5320_v21 = vsel %vm650_vm1, %v5319_v58, %v5318_v20  ;;  %6229 = vmatpush.xpose.msk.msrb.mxu1 %vm99_vm0, %v4814_v40  ;;  %v5210_v20 = vsel %vm99_vm0, %v5036_v62, 0.0 }
0x1cb0   :  { %v5407_v37 = vsel %vm749_vm4, %v5320_v21, %v5406_v27  ;;  %5136 = vadd.xlane.f32.xlu0 %v5135_v52  ;;  %v5014_v27 = vmul.f32 %v10303_v34, %v4933_v35  ;;  %v6654_v34 = vld [vmem:[%s10996_s1 + $0xd0] sm:$0xff]  ;;  %v10575_v21 = vperm.slane %v4914_v57, 0  ;;  %v5083_v52 = vpop.xlane.xlu0 %5082 }
0x1cb1   :  { %5202 = vadd.xlane.f32.xlu2 %v5201_v28  ;;  %v5408_v40 = vsel %vm751_vm5, %v10470_v10, %v5407_v37  ;;  %v5007_v58 = vmul.f32 %v6654_v34, %v10499_v26  ;;  %v5017_v37 = vmul.f32 %v10310_v41, %v10430_v39  ;;  %v4905_v28 = vrot.slane %v10408_v31, 3  ;;  %v6655_v39 = vld [vmem:[%s10996_s1 + $0xe8] sm:$0xff] }
0x1cb2   :  { %6230 = vmatmul.msk.f32.vlgmr.msrb.gmra.mxu1 %vm99_vm0, %v10226_v4  ;;  %v5144_v10 = vsel %vm99_vm0, %v5014_v27, 0.0  ;;  %v5039_v27 = vmul.f32 %v6654_v34, %v10575_v21  ;;  %v4915_v26 = vrot.slane %v10366_v53, 6 }
0x1cb3   :  { %v5123_v6 = vsel %vm99_vm0, %v5007_v58, 0.0  ;;  %v5153_v62 = vsel %vm99_vm0, %v5017_v37, 0.0  ;;  %v4936_v57 = vperm.slane %v4905_v28, 0  ;;  %v4908_v37 = vrot.slane %v10408_v31, 6 }
0x1cb4   :  { %v5077_v33 = vpop.xlane.xlu2 %5076  ;;  %v5219_v41 = vsel %vm99_vm0, %v5039_v27, 0.0  ;;  %v5016_v27 = vmul.f32 %v10250_v54, %v10422_v3 }
0x1cb5   :  { %v5324_v44 = vperm.slane %v5077_v33, %v7255_v7  ;;  %5115 = vadd.xlane.f32.xlu1 %v5114_v46  ;;  %v5327_v33 = vperm.slane %v5083_v52, %v7255_v7 }
0x1cb7   :  { %v5326_v19 = vsel %vm650_vm1, %v5325_v55, %v5324_v44  ;;  %v5010_v55 = vmul.f32 %v6655_v39, %v10397_v47  ;;  %v10595_v44 = vperm.slane %v4915_v26, 0  ;;  %v5013_v47 = vmul.f32 %v10235_v51, %v4933_v35 }
0x1cb8   :  { %5145 = vadd.xlane.f32.xlu0 %v5144_v10  ;;  %v5409_v23 = vsel %vm11077_vm14, %v5326_v19, %v5408_v40  ;;  %v5020_v10 = vmul.f32 %v10317_v50, %v4936_v57  ;;  %v5150_v35 = vsel %vm99_vm0, %v5016_v27, 0.0  ;;  %v11079_v26 = vperm.slane %v10366_v53, 0 }
0x1cb9   :  { %5211 = vadd.xlane.f32.xlu2 %v5210_v20  ;;  %v5132_v20 = vsel %vm99_vm0, %v5010_v55, 0.0  ;;  %v5042_v34 = vmul.f32 %v6655_v39, %v10595_v44  ;;  %v5141_v50 = vsel %vm99_vm0, %v5013_v47, 0.0  ;;  %v5035_v39 = vmul.f32 %v10371_v8, %v10556_v22 }
0x1cba   :  { %6231 = vmatmul.msk.f32.gmra.mxu1 %vm99_vm0, %v10321_v16  ;;  %v5162_v58 = vsel %vm99_vm0, %v5020_v10, 0.0  ;;  %v4913_v55 = vrot.slane %v10366_v53, 4 }
0x1cbb   :  { %v5228_v52 = vsel %vm99_vm0, %v5042_v34, 0.0 }
0x1cbc   :  { %v5086_v59 = vpop.xlane.xlu2 %5085 }
0x1cbd   :  { %v5328_v40 = vperm.slane %v5086_v59, %v7258_v5  ;;  %5124 = vadd.xlane.f32.xlu1 %v5123_v6  ;;  %v4939_v59 = vperm.slane %v4908_v37, 0 }
0x1cbf   :  { %v5329_v46 = vsel %vm650_vm1, %v5328_v40, %v5327_v33  ;;  %v5026_v51 = vmul.f32 %v10336_v17, %v4939_v59  ;;  %v5029_v33 = vmul.f32 %v10344_v25, %v11079_v26  ;;  %v4910_v40 = vrot.slane %v10366_v53, 1 }
0x1cc0   :  { %5154 = vadd.xlane.f32.xlu0 %v5153_v62  ;;  %v10598_v19 = vsel %vm11078_vm15, %v5329_v46, %v5409_v23  ;;  %v5023_v23 = vmul.f32 %v10329_v63, %v10465_v12  ;;  %v5019_v12 = vmul.f32 %v10266_v11, %v4936_v57  ;;  %v5022_v46 = vmul.f32 %v10281_v42, %v10450_v14 }
0x1cc1   :  { %5220 = vadd.xlane.f32.xlu2 %v5219_v41  ;;  %v5180_v63 = vsel %vm99_vm0, %v5026_v51, 0.0  ;;  %v5189_v3 = vsel %vm99_vm0, %v5029_v33, 0.0  ;;  %v4942_v17 = vperm.slane %v4910_v40, 0  ;;  %v5025_v41 = vmul.f32 %v10296_v30, %v4939_v59 }
0x1cc2   :  { %v5171_v28 = vsel %vm99_vm0, %v5023_v23, 0.0  ;;  %v5159_v54 = vsel %vm99_vm0, %v5019_v12, 0.0  ;;  %v5168_v11 = vsel %vm99_vm0, %v5022_v46, 0.0  ;;  %v4945_v14 = vperm.slane %v4913_v55, 0 }
0x1cc3   :  { %v5032_v62 = vmul.f32 %v10356_v56, %v4942_v17  ;;  %v5177_v10 = vsel %vm99_vm0, %v5025_v41, 0.0  ;;  %v5207_v56 = vsel %vm99_vm0, %v5035_v39, 0.0 }
0x1cc4   :  { %v5038_v30 = vmul.f32 %v10391_v32, %v4945_v14  ;;  %v5095_v22 = vpop.xlane.xlu2 %5094 }
0x1cc5   :  { %5133 = vadd.xlane.f32.xlu1 %v5132_v20  ;;  %v5198_v25 = vsel %vm99_vm0, %v5032_v62, 0.0  ;;  %v5028_v20 = vmul.f32 %v10438_v0, %v10483_v24  ;;  %v5041_v0 = vmul.f32 %v10402_v13, %v10595_v44  ;;  %v4916_v24 = vrot.slane %v10366_v53, 7 }
0x1cc6   :  { %v5216_v34 = vsel %vm99_vm0, %v5038_v30, 0.0  ;;  %v5034_v13 = vmul.f32 %v10475_v49, %v10530_v60  ;;  %v5040_v60 = vmul.f32 %v10512_v15, %v10575_v21  ;;  %v5333_v41 = vperm.slane %v5095_v22, %v7255_v7 }
0x1cc7   :  { %v5186_v8 = vsel %vm99_vm0, %v5028_v20, 0.0 }
0x1cc8   :  { %5163 = vadd.xlane.f32.xlu0 %v5162_v58  ;;  %v5031_v58 = vmul.f32 %v10455_v38, %v4942_v17  ;;  %v5225_v38 = vsel %vm99_vm0, %v5041_v0, 0.0  ;;  %v5204_v27 = vsel %vm99_vm0, %v5034_v13, 0.0  ;;  %v5222_v26 = vsel %vm99_vm0, %v5040_v60, 0.0 }
0x1cc9   :  { %5229 = vadd.xlane.f32.xlu2 %v5228_v52 }
0x1cca   :  { %v5195_v23 = vsel %vm99_vm0, %v5031_v58, 0.0 }
0x1ccc   :  { %v5104_v44 = vpop.xlane.xlu2 %5103 }
0x1ccd   :  { %5142 = vadd.xlane.f32.xlu1 %v5141_v50  ;;  %v4948_v50 = vperm.slane %v4916_v24, 0 }
0x1ccf   :  { %v5043_v40 = vmul.f32 %v10536_v43, %v4948_v50 }
0x1cd0   :  { %v4853_v6 = vpop.permute.xlu0 %4852  ;;  %5172 = vadd.xlane.f32.xlu0 %v5171_v28 }
0x1cd1   :  { %6232 = vmatpush.xpose.msk.msrb.mxu2 %vm99_vm0, %v4853_v6  ;;  %v5044_v6 = vmul.f32 %v10416_v2, %v4948_v50 }
0x1cd3   :  { %v5234_v51 = vsel %vm99_vm0, %v5044_v6, 0.0 }
0x1cd5   :  { %5151 = vadd.xlane.f32.xlu1 %v5150_v35  ;;  %v5089_v57 = vpop.xlane.xlu1 %5088  ;;  %v5037_v35 = vmul.f32 %v10488_v61, %v4945_v14  ;;  %v5337_v14 = vperm.slane %v5104_v44, %v7258_v5 }
0x1cd6   :  { %v5330_v32 = vperm.slane %v5089_v57, %v7255_v7 }
0x1cd8   :  { %5181 = vadd.xlane.f32.xlu0 %v5180_v63  ;;  %v5113_v63 = vpop.xlane.xlu2 %5112 }
0x1cd9   :  { %v5342_v20 = vperm.slane %v5113_v63, %v7255_v7 }
0x1cdd   :  { %5160 = vadd.xlane.f32.xlu1 %v5159_v54 }
0x1ce0   :  { %5190 = vadd.xlane.f32.xlu0 %v5189_v3  ;;  %v5122_v2 = vpop.xlane.xlu2 %5121  ;;  %v5231_v3 = vsel %vm99_vm0, %v5043_v40, 0.0 }
0x1ce5   :  { %5169 = vadd.xlane.f32.xlu1 %v5168_v11 }
0x1ce8   :  { %5199 = vadd.xlane.f32.xlu0 %v5198_v25  ;;  %v5131_v61 = vpop.xlane.xlu2 %5130 }
0x1ced   :  { %5178 = vadd.xlane.f32.xlu1 %v5177_v10  ;;  %v4851_v42 = vpop.permute.xlu1 %4850 }
0x1cee   :  { %6233 = vmatpush.xpose.msk.msrb.mxu2 %vm99_vm0, %v4851_v42 }
0x1cf0   :  { %5208 = vadd.xlane.f32.xlu0 %v5207_v56  ;;  %v5140_v11 = vpop.xlane.xlu2 %5139 }
0x1cf1   :  { %6234 = vmatmul.msk.f32.vlgmr.msrb.gmra.mxu2 %vm99_vm0, %v10408_v31 }
0x1cf5   :  { %5187 = vadd.xlane.f32.xlu1 %v5186_v8 }
0x1cf8   :  { %5217 = vadd.xlane.f32.xlu0 %v5216_v34  ;;  %v5149_v8 = vpop.xlane.xlu2 %5148 }
0x1cf9   :  { %6235 = vmatmul.msk.f32.gmra.mxu2 %vm99_vm0, %v10366_v53 }
0x1cfb   :  { %v5092_v52 = vpop.xlane.xlu0 %5091 }
0x1cfc   :  { %v5331_v47 = vperm.slane %v5092_v52, %v7258_v5 }
0x1cfd   :  { %5196 = vadd.xlane.f32.xlu1 %v5195_v23 }
0x1cfe   :  { %v5332_v37 = vsel %vm650_vm1, %v5331_v47, %v5330_v32 }
0x1cff   :  { %v5411_v28 = vsel %vm11080_vm11, %v5332_v37, %v10598_v19  ;;  %v5213_v19 = vsel %vm99_vm0, %v5037_v35, 0.0 }
0x1d00   :  { %5226 = vadd.xlane.f32.xlu0 %v5225_v38  ;;  %v5158_v40 = vpop.xlane.xlu2 %5157 }
0x1d03   :  { %v5101_v59 = vpop.xlane.xlu0 %5100 }
0x1d04   :  { %v5336_v43 = vperm.slane %v5101_v59, %v7255_v7 }
0x1d05   :  { %5205 = vadd.xlane.f32.xlu1 %v5204_v27 }
0x1d06   :  { %v5338_v58 = vsel %vm650_vm1, %v5337_v14, %v5336_v43 }
0x1d08   :  { %5235 = vadd.xlane.f32.xlu0 %v5234_v51  ;;  %v5351_v51 = vperm.slane %v5131_v61, %v7255_v7 }
0x1d0b   :  { %v5110_v12 = vpop.xlane.xlu0 %5109 }
0x1d0c   :  { %v5340_v42 = vperm.slane %v5110_v12, %v7258_v5  ;;  %v5355_v12 = vperm.slane %v5140_v11, %v7258_v5 }
0x1d0d   :  { %5214 = vadd.xlane.f32.xlu1 %v5213_v19 }
0x1d13   :  { %v5119_v49 = vpop.xlane.xlu0 %5118 }
0x1d14   :  { %v5345_v32 = vperm.slane %v5119_v49, %v7255_v7 }
0x1d15   :  { %5223 = vadd.xlane.f32.xlu1 %v5222_v26 }
0x1d18   :  { %v5098_v33 = vpop.xlane.xlu1 %5097 }
0x1d19   :  { %v5334_v15 = vperm.slane %v5098_v33, %v7258_v5 }
0x1d1b   :  { %v5128_v54 = vpop.xlane.xlu0 %5127  ;;  %v5335_v30 = vsel %vm650_vm1, %v5334_v15, %v5333_v41  ;;  %v5167_v15 = vpop.xlane.xlu2 %5166 }
0x1d1c   :  { %v5412_v47 = vsel %vm745_vm2, %v5338_v58, %v5335_v30  ;;  %v5349_v37 = vperm.slane %v5128_v54, %v7258_v5  ;;  %v5360_v30 = vperm.slane %v5149_v8, %v7255_v7 }
0x1d1d   :  { %5232 = vadd.xlane.f32.xlu1 %v5231_v3 }
0x1d20   :  { %v5107_v17 = vpop.xlane.xlu1 %5106 }
0x1d21   :  { %v5339_v21 = vperm.slane %v5107_v17, %v7255_v7 }
0x1d23   :  { %v5137_v46 = vpop.xlane.xlu0 %5136  ;;  %v5341_v22 = vsel %vm650_vm1, %v5340_v42, %v5339_v21  ;;  %v5176_v43 = vpop.xlane.xlu2 %5175 }
0x1d24   :  { %v5413_v38 = vsel %vm747_vm3, %v5341_v22, %v5412_v47  ;;  %v5354_v44 = vperm.slane %v5137_v46, %v7255_v7 }
0x1d28   :  { %v5116_v62 = vpop.xlane.xlu1 %5115 }
0x1d29   :  { %v5343_v39 = vperm.slane %v5116_v62, %v7258_v5 }
0x1d2b   :  { %v10668_v57 = vpop.xlane.xlu0 %5145  ;;  %v5344_v52 = vsel %vm650_vm1, %v5343_v39, %v5342_v20 }
0x1d2c   :  { %v5414_v13 = vsel %vm749_vm4, %v5344_v52, %v5413_v38  ;;  %v5358_v58 = vperm.slane %v10668_v57, %v7258_v5 }
0x1d2f   :  { %v4842_v25 = vpop.f32.mrf.mxu1 }
0x1d30   :  { %v4885_v55 = vsel %vm7339_vm9, %v4842_v25, 0.0  ;;  %v5125_v10 = vpop.xlane.xlu1 %5124 }
0x1d31   :  { %vm5237_vm6 = vcmp.ne.f32.partialorder %v4885_v55, 0.0  ;;  %v5437_v56 = vadd.f32 %v5411_v28, %v4885_v55  ;;  %v5348_v0 = vperm.slane %v5125_v10, %v7255_v7  ;;  %v5346_v28 = vperm.slane %v5122_v2, %v7258_v5  ;;  %v5185_v10 = vpop.xlane.xlu2 %5184 }
0x1d32   :  { %vm5241_vm12 = vmand %vm7339_vm9, %vm5237_vm6  ;;  %v5356_v2 = vsel %vm650_vm1, %v5355_v12, %v5354_v44 }
0x1d33   :  { %v5441_v34 = vmul.f32 0.17677669, %v5437_v56  ;;  %v10687_v24 = vpop.xlane.xlu0 %5154  ;;  %v5350_v59 = vsel %vm650_vm1, %v5349_v37, %v5348_v0  ;;  %v5347_v35 = vsel %vm650_vm1, %v5346_v28, %v5345_v32  ;;  %v5369_v28 = vperm.slane %v5167_v15, %v7255_v7 }
0x1d34   :  { %v5415_v19 = vsel %vm751_vm5, %v5347_v35, %v5414_v13  ;;  %v5363_v47 = vperm.slane %v10687_v24, %v7255_v7 }
0x1d35   :  { %v10691_v23 = vsel %vm5241_vm12, %v5441_v34, -1e+09  ;;  %v5416_v60 = vsel %vm11077_vm14, %v5350_v59, %v5415_v19  ;;  %v5373_v19 = vperm.slane %v5176_v43, %v7258_v5 }
0x1d36   :  { %v5449_v50 = vsel %vm11081_vm7, %v10691_v23, -inf }
0x1d37   :  { %5450 = vmax.xlane.f32.xlu2 %v5449_v50  ;;  %v4845_v6 = vpop.f32.mrf.mxu1  ;;  %v5364_v50 = vperm.slane %v5158_v40, %v7258_v5 }
0x1d38   :  { %v5134_v27 = vpop.xlane.xlu1 %5133  ;;  %v4886_v49 = vsel %vm7378_vm13, %v4845_v6, 0.0 }
0x1d39   :  { %v5352_v63 = vperm.slane %v5134_v27, %v7258_v5  ;;  %vm5238_vm6 = vcmp.ne.f32.partialorder %v4886_v49, 0.0  ;;  %v10722_v20 = vpop.xlane.xlu2 %5193  ;;  %v5365_v44 = vsel %vm650_vm1, %v5364_v50, %v5363_v47 }
0x1d3a   :  { %vm5242_vm12 = vmand %vm7397_vm10, %vm5238_vm6 }
0x1d3b   :  { %v5353_v26 = vsel %vm650_vm1, %v5352_v63, %v5351_v51  ;;  %v5164_v3 = vpop.xlane.xlu0 %5163 }
0x1d3c   :  { %v5417_v33 = vsel %vm11078_vm15, %v5353_v26, %v5416_v60  ;;  %v5367_v38 = vperm.slane %v5164_v3, %v7258_v5  ;;  %v5378_v60 = vperm.slane %v5185_v10, %v7255_v7 }
0x1d3d   :  { %v5418_v54 = vsel %vm11080_vm11, %v5356_v2, %v5417_v33 }
0x1d3e   :  { %v5438_v61 = vadd.f32 %v5418_v54, %v4886_v49 }
0x1d40   :  { %v5143_v17 = vpop.xlane.xlu1 %5142  ;;  %v5442_v46 = vmul.f32 0.17677669, %v5438_v61 }
0x1d41   :  { %v5357_v22 = vperm.slane %v5143_v17, %v7255_v7  ;;  %v5203_v35 = vpop.xlane.xlu2 %5202 }
0x1d42   :  { %v10715_v62 = vsel %vm5242_vm12, %v5442_v46, -1e+09 }
0x1d43   :  { %v5452_v11 = vsel %vm11081_vm7, %v10715_v62, -inf  ;;  %v5173_v21 = vpop.xlane.xlu0 %5172  ;;  %v5359_v8 = vsel %vm650_vm1, %v5358_v58, %v5357_v22 }
0x1d44   :  { %5453 = vmax.xlane.f32.xlu1 %v5452_v11  ;;  %v5372_v6 = vperm.slane %v5173_v21, %v7255_v7 }
0x1d46   :  { %v5374_v40 = vsel %vm650_vm1, %v5373_v19, %v5372_v6 }
0x1d48   :  { %v5152_v25 = vpop.xlane.xlu1 %5151 }
0x1d49   :  { %v5361_v14 = vperm.slane %v5152_v25, %v7258_v5 }
0x1d4b   :  { %v5182_v39 = vpop.xlane.xlu0 %5181  ;;  %v5362_v52 = vsel %vm650_vm1, %v5361_v14, %v5360_v30 }
0x1d4c   :  { %v5419_v57 = vsel %vm745_vm2, %v5362_v52, %v5359_v8  ;;  %v5376_v63 = vperm.slane %v5182_v39, %v7258_v5  ;;  %v5387_v52 = vperm.slane %v5203_v35, %v7255_v7 }
0x1d4d   :  { %v5420_v27 = vsel %vm747_vm3, %v5365_v44, %v5419_v57 }
0x1d50   :  { %v5161_v41 = vpop.xlane.xlu1 %5160 }
0x1d51   :  { %v5366_v0 = vperm.slane %v5161_v41, %v7255_v7  ;;  %v5212_v41 = vpop.xlane.xlu2 %5211 }
0x1d52   :  { %v5391_v57 = vperm.slane %v5212_v41, %v7258_v5 }
0x1d53   :  { %v10719_v42 = vpop.xlane.xlu0 %5190  ;;  %v5368_v13 = vsel %vm650_vm1, %v5367_v38, %v5366_v0  ;;  %v5382_v0 = vperm.slane %v10722_v20, %v7258_v5 }
0x1d54   :  { %v5421_v12 = vsel %vm749_vm4, %v5368_v13, %v5420_v27  ;;  %v5381_v58 = vperm.slane %v10719_v42, %v7255_v7 }
0x1d56   :  { %v5383_v8 = vsel %vm650_vm1, %v5382_v0, %v5381_v58 }
0x1d58   :  { %v5170_v55 = vpop.xlane.xlu1 %5169 }
0x1d59   :  { %v5370_v37 = vperm.slane %v5170_v55, %v7258_v5 }
0x1d5b   :  { %v5200_v34 = vpop.xlane.xlu0 %5199  ;;  %v5371_v59 = vsel %vm650_vm1, %v5370_v37, %v5369_v28 }
0x1d5c   :  { %v5422_v49 = vsel %vm751_vm5, %v5371_v59, %v5421_v12  ;;  %v5385_v45 = vperm.slane %v5200_v34, %v7258_v5 }
0x1d5d   :  { %v5423_v3 = vsel %vm11077_vm14, %v5374_v40, %v5422_v49 }
0x1d60   :  { %v5179_v56 = vpop.xlane.xlu1 %5178 }
0x1d61   :  { %v5375_v24 = vperm.slane %v5179_v56, %v7255_v7  ;;  %v5221_v56 = vpop.xlane.xlu2 %5220 }
0x1d62   :  { %v5396_v20 = vperm.slane %v5221_v56, %v7255_v7 }
0x1d63   :  { %v5209_v26 = vpop.xlane.xlu0 %5208  ;;  %v5377_v33 = vsel %vm650_vm1, %v5376_v63, %v5375_v24  ;;  %v6325_v63 = vpack.i.bf16 %v10226_v4, %v10321_v16 }
0x1d64   :  { %v5424_v17 = vsel %vm11078_vm15, %v5377_v33, %v5423_v3  ;;  %v5390_v50 = vperm.slane %v5209_v26, %v7255_v7 }
0x1d66   :  { %v5392_v24 = vsel %vm650_vm1, %v5391_v57, %v5390_v50 }
0x1d68   :  { %v5188_v32 = vpop.xlane.xlu1 %5187 }
0x1d69   :  { %v5379_v51 = vperm.slane %v5188_v32, %v7258_v5  ;;  %v5230_v59 = vpop.xlane.xlu2 %5229 }
0x1d6b   :  { %v5380_v54 = vsel %vm650_vm1, %v5379_v51, %v5378_v60  ;;  %v5218_v43 = vpop.xlane.xlu0 %5217  ;;  %v5400_v60 = vperm.slane %v5230_v59, %v7258_v5  ;;  %v6242_v59 = vld [vmem:[%s10999_s4 + $0x90] sm:$0xff] }
0x1d6c   :  { %v5425_v11 = vsel %vm11080_vm11, %v5380_v54, %v5424_v17  ;;  %v5394_v34 = vperm.slane %v5218_v43, %v7258_v5 }
0x1d70   :  { %v5197_v2 = vpop.xlane.xlu1 %5196 }
0x1d71   :  { %v5384_v14 = vperm.slane %v5197_v2, %v7255_v7 }
0x1d73   :  { %v5227_v30 = vpop.xlane.xlu0 %5226  ;;  %v5386_v32 = vsel %vm650_vm1, %v5385_v45, %v5384_v14 }
0x1d74   :  { %v4879_v61 = vpop.f32.mrf.mxu2  ;;  %v5426_v28 = vsel %vm745_vm2, %v5386_v32, %v5383_v8  ;;  %v5399_v27 = vperm.slane %v5227_v30, %v7255_v7  ;;  %vm11082_vm2 = vmmov %vm11077_vm14 }
0x1d75   :  { %v4887_v46 = vsel %vm7339_vm9, %v4879_v61, 0.0  ;;  %vm11085_vm14 = vmmov %vm11081_vm7 }
0x1d76   :  { %vm5239_vm6 = vcmp.ne.f32.partialorder %v4887_v46, 0.0  ;;  %v5439_v15 = vadd.f32 %v5425_v11, %v4887_v46  ;;  %v5401_v40 = vsel %vm650_vm1, %v5400_v60, %v5399_v27 }
0x1d77   :  { %vm5243_vm12 = vmand %vm7339_vm9, %vm5239_vm6 }
0x1d78   :  { %v5443_v21 = vmul.f32 0.17677669, %v5439_v15  ;;  %v5206_v25 = vpop.xlane.xlu1 %5205 }
0x1d79   :  { %v5388_v22 = vperm.slane %v5206_v25, %v7258_v5 }
0x1d7a   :  { %v10760_v39 = vsel %vm5243_vm12, %v5443_v21, -1e+09 }
0x1d7b   :  { %v5455_v55 = vsel %vm11081_vm7, %v10760_v39, -inf  ;;  %v5389_v47 = vsel %vm650_vm1, %v5388_v22, %v5387_v52  ;;  %v5236_v51 = vpop.xlane.xlu0 %5235 }
0x1d7c   :  { %5456 = vmax.xlane.f32.xlu0 %v5455_v55  ;;  %v5427_v13 = vsel %vm747_vm3, %v5389_v47, %v5426_v28  ;;  %v4882_v12 = vpop.f32.mrf.mxu2  ;;  %v5403_v2 = vperm.slane %v5236_v51, %v7258_v5  ;;  %vm11083_vm3 = vmmov %vm11078_vm15 }
0x1d7d   :  { %v5428_v35 = vsel %vm749_vm4, %v5392_v24, %v5427_v13  ;;  %v4888_v54 = vsel %vm7378_vm13, %v4882_v12, 0.0  ;;  %vm11084_vm4 = vmmov %vm11080_vm11  ;;  %v6241_v24 = vld [vmem:[%s10999_s4 + $0x88] sm:$0xff] }
0x1d80   :  { %v5215_v10 = vpop.xlane.xlu1 %5214 }
0x1d81   :  { %v5393_v37 = vperm.slane %v5215_v10, %v7255_v7  ;;  %v6330_v10 = vpack.i.bf16 %v10408_v31, %v10366_v53 }
0x1d83   :  { %v5395_v44 = vsel %vm650_vm1, %v5394_v34, %v5393_v37 }
0x1d84   :  { %v5429_v19 = vsel %vm751_vm5, %v5395_v44, %v5428_v35  ;;  %vm5240_vm5 = vcmp.ne.f32.partialorder %v4888_v54, 0.0  ;;  %v6243_v44 = vld [vmem:[%s10999_s4 + $0x98] sm:$0xff]  ;;  %v6240_v35 = vld [vmem:[%s10999_s4 + $0x80] sm:$0xff] }
0x1d85   :  { %vm5244_vm9 = vmand %vm7397_vm10, %vm5240_vm5  ;;  %5593 = vmatpush.msra.mxu1 %v6243_v44 }
0x1d87   :  { %5594 = vmatpush.msra.mxu1 %v6242_v59 }
0x1d88   :  { %v5224_v38 = vpop.xlane.xlu1 %5223 }
0x1d89   :  { %v5397_v42 = vperm.slane %v5224_v38, %v7258_v5  ;;  %5595 = vmatpush.msra.mxu1 %v6241_v24 }
0x1d8b   :  { %v5398_v6 = vsel %vm650_vm1, %v5397_v42, %v5396_v20  ;;  %5596 = vmatpush.msra.mxu1 %v6240_v35 }
0x1d8c   :  { %v5430_v49 = vsel %vm11082_vm2, %v5398_v6, %v5429_v19 }
0x1d8d   :  { %v5431_v16 = vsel %vm11083_vm3, %v5401_v40, %v5430_v49  ;;  %v10838_v49 = vld [vmem:[%s11003_s8 + $0x20] sm:$0x3f] }
0x1d8e   :  { %v10880_v24 = vperm.slane %v10838_v49, 1 }
0x1d90   :  { %6326 = vrot.lane.b32.xlu0 %v6325_v63, %s6683_s27  ;;  %v5233_v26 = vpop.xlane.xlu1 %5232 }
0x1d91   :  { %v5402_v33 = vperm.slane %v5233_v26, %v7255_v7  ;;  %v5568_v26 = vperm.slane %v10838_v49, 0 }
0x1d93   :  { %v5404_v4 = vsel %vm650_vm1, %v5403_v2, %v5402_v33  ;;  %vm11086_vm1 = vmmov %vm11081_vm7 }
0x1d94   :  { %v5432_v3 = vsel %vm11084_vm4, %v5404_v4, %v5431_v16  ;;  %vm11087_vm13 = vmmov %vm11086_vm1 }
0x1d95   :  { %v5440_v61 = vadd.f32 %v5432_v3, %v4888_v54  ;;  %vm11088_vm10 = vmmov %vm11086_vm1 }
0x1d96   :  { %vm11089_vm15 = vmmov %vm11086_vm1 }
0x1d97   :  { %v5444_v17 = vmul.f32 0.17677669, %v5440_v61  ;;  %vm11090_vm11 = vmmov %vm11086_vm1 }
0x1d98   :  { %vm11091_vm6 = vmmov %vm11086_vm1 }
0x1d99   :  { %v5448_v5 = vsel %vm5244_vm9, %v5444_v17, -1e+09  ;;  %vm11092_vm12 = vmmov %vm11086_vm1 }
0x1d9a   :  { %v5458_v7 = vsel %vm11085_vm14, %v5448_v5, -inf  ;;  %vm11093_vm7 = vmmov %vm11086_vm1 }
0x1d9b   :  { %5459 = vmax.xlane.f32.xlu2 %v5458_v7 }
0x1daa   :  { %v5451_v46 = vpop.xlane.xlu2 %5450 }
0x1dab   :  { %v5461_v48 = vsub.f32 %v10691_v23, %v5451_v46 }
0x1dad   :  { %v5465_v11 = vmul.f32 1.442695, %v5461_v48 }
0x1daf   :  { %6476 = vpow2.f32 %v5465_v11 }
0x1db5   :  { %v6477_v15 = vpop.eup %6476 }
0x1db6   :  { %v5473_v21 = vsel %vm11086_vm1, %v6477_v15, 0.0 }
0x1db7   :  { %5474 = vadd.xlane.f32.xlu1 %v5473_v21  ;;  %v5454_v25 = vpop.xlane.xlu1 %5453 }
0x1db8   :  { %v5462_v41 = vsub.f32 %v10715_v62, %v5454_v25  ;;  %v11094_v25 = vld [vmem:[#allocation5_spill] sm:$0xff] }
0x1dba   :  { %v5467_v43 = vmul.f32 1.442695, %v5462_v41 }
0x1dbc   :  { %6478 = vpow2.f32 %v5467_v43 }
0x1dc2   :  { %v6479_v9 = vpop.eup %6478 }
0x1dc3   :  { %v5476_v55 = vsel %vm11087_vm13, %v6479_v9, 0.0 }
0x1dc4   :  { %5477 = vadd.xlane.f32.xlu2 %v5476_v55 }
0x1ddc   :  { %6331 = vrot.lane.b32.xlu2 %v6330_v10, %s6683_s27 }
0x1def   :  { %v5457_v23 = vpop.xlane.xlu0 %5456 }
0x1df0   :  { %v5463_v56 = vsub.f32 %v10760_v39, %v5457_v23 }
0x1df2   :  { %v5469_v14 = vmul.f32 1.442695, %v5463_v56 }
0x1df4   :  { %6480 = vpow2.f32 %v5469_v14 }
0x1dfa   :  { %v6481_v30 = vpop.eup %6480 }
0x1dfb   :  { %v5479_v22 = vsel %vm11088_vm10, %v6481_v30, 0.0 }
0x1dfc   :  { %5480 = vadd.xlane.f32.xlu1 %v5479_v22 }
0x1e02   :  { %v6327_v62 = vpop.permute.xlu0 %6326 }
0x1e03   :  { %v6328_v58 = vunpack.i.l.bf16 %v6327_v62  ;;  %v6329_v45 = vunpack.i.h.bf16 %v6327_v62 }
0x1e05   :  { %5519 = vmatpush.msrb.mxu3 %v6328_v58 }
0x1e07   :  { %5520 = vmatpush.msrb.mxu3 %v6329_v45 }
0x1e0e   :  { %v5460_v52 = vpop.xlane.xlu2 %5459 }
0x1e0f   :  { %v5464_v0 = vsub.f32 %v5448_v5, %v5460_v52 }
0x1e11   :  { %v5471_v32 = vmul.f32 1.442695, %v5464_v0 }
0x1e13   :  { %6482 = vpow2.f32 %v5471_v32 }
0x1e19   :  { %v6483_v53 = vpop.eup %6482 }
0x1e1a   :  { %v5482_v31 = vsel %vm11089_vm15, %v6483_v53, 0.0 }
0x1e1b   :  { %5483 = vadd.xlane.f32.xlu1 %v5482_v31 }
0x1e2a   :  { %v5475_v39 = vpop.xlane.xlu1 %5474 }
0x1e2b   :  { %6484 = vrcp.f32 %v5475_v39 }
0x1e31   :  { %v6485_v47 = vpop.eup %6484 }
0x1e32   :  { %v5489_v37 = vmul.f32 %v6485_v47, %v6477_v15  ;;  %v6251_v47 = vld [vmem:[%s11000_s5 + $0x98] sm:$0xff] }
0x1e33   :  { %5746 = vmatpush.msra.mxu2 %v6251_v47  ;;  %v6258_v47 = vld [vmem:[%s11002_s7 + $0x108] sm:$0xff] }
0x1e34   :  { %6236 = vmatmul.msk.f32.vlgmr.msrb.gmra.mxu3 %vm11090_vm11, %v5489_v37  ;;  %v6250_v37 = vld [vmem:[%s11000_s5 + $0x90] sm:$0xff] }
0x1e35   :  { %5747 = vmatpush.msra.mxu2 %v6250_v37  ;;  %v6257_v37 = vld [vmem:[%s11002_s7 + $0x100] sm:$0xff] }
0x1e37   :  { %v5478_v38 = vpop.xlane.xlu2 %5477 }
0x1e38   :  { %6486 = vrcp.f32 %v5478_v38  ;;  %v6249_v38 = vld [vmem:[%s11000_s5 + $0x88] sm:$0xff] }
0x1e39   :  { %5748 = vmatpush.msra.mxu2 %v6249_v38 }
0x1e3e   :  { %v6487_v8 = vpop.eup %6486 }
0x1e3f   :  { %v6332_v50 = vpop.permute.xlu2 %6331  ;;  %v5490_v42 = vmul.f32 %v6487_v8, %v6479_v9  ;;  %v6248_v8 = vld [vmem:[%s11000_s5 + $0x80] sm:$0xff] }
0x1e40   :  { %v6333_v34 = vunpack.i.l.bf16 %v6332_v50  ;;  %v6334_v28 = vunpack.i.h.bf16 %v6332_v50  ;;  %5749 = vmatpush.msra.mxu2 %v6248_v8 }
0x1e41   :  { %6237 = vmatmul.msk.f32.gmra.mxu3 %vm11091_vm6, %v5490_v42 }
0x1e42   :  { %5554 = vmatpush.msra.mxu0 %v6333_v34 }
0x1e44   :  { %5555 = vmatpush.msra.mxu0 %v6334_v28 }
0x1e6f   :  { %v5481_v57 = vpop.xlane.xlu1 %5480 }
0x1e70   :  { %6488 = vrcp.f32 %v5481_v57 }
0x1e76   :  { %v6489_v20 = vpop.eup %6488 }
0x1e77   :  { %v5491_v13 = vmul.f32 %v6489_v20, %v6481_v30 }
0x1e79   :  { %6238 = vmatmul.msk.f32.vlgmr.msra.gmra.mxu0 %vm11092_vm12, %v5491_v13 }
0x1e8e   :  { %v5484_v6 = vpop.xlane.xlu1 %5483 }
0x1e8f   :  { %6490 = vrcp.f32 %v5484_v6 }
0x1e95   :  { %v6491_v27 = vpop.eup %6490 }
0x1e96   :  { %v5492_v51 = vmul.f32 %v6491_v27, %v6483_v53  ;;  %v10883_v27 = vperm.slane %v10838_v49, 2 }
0x1e98   :  { %6239 = vmatmul.msk.f32.gmra.mxu0 %vm11093_vm7, %v5492_v51 }
0x1eb7   :  { %v5522_v63 = vpop.f32.mrf.mxu3 }
0x1eb8   :  { %6244 = vmatmul.msk.f32.vlgmr.msra.gmra.mxu1 %vm99_vm0, %v5522_v63 }
0x1ec4   :  { %v5525_v12 = vpop.f32.mrf.mxu3 }
0x1ec5   :  { %6245 = vmatmul.msk.f32.gmra.mxu1 %vm99_vm0, %v5525_v12 }
0x1ef6   :  { %v5557_v19 = vpop.f32.mrf.mxu0 }
0x1ef7   :  { %6246 = vmatmul.msk.f32.gmra.mxu1 %vm99_vm0, %v5557_v19 }
0x1f15   :  { %v5560_v60 = vpop.f32.mrf.mxu0 }
0x1f16   :  { %6247 = vmatmul.msk.f32.gmra.mxu1 %vm99_vm0, %v5560_v60 }
0x1f35   :  { %v5598_v2 = vpop.f32.mrf.mxu1 }
0x1f36   :  { %v5599_v33 = vadd.f32 %v5598_v2, %v5568_v26 }
0x1f38   :  { %v5610_v40 = vadd.f32 %v5599_v33, %v10200_v36 }
0x1f3a   :  { %v5614_v54 = vsel %vm99_vm0, %v5610_v40, 0.0 }
0x1f3b   :  { %5615 = vadd.xlane.f32.xlu0 %v5614_v54 }
0x1f42   :  { %v5601_v4 = vpop.f32.mrf.mxu1 }
0x1f43   :  { %v5602_v16 = vadd.f32 %v5601_v4, %v5568_v26 }
0x1f45   :  { %v5611_v3 = vadd.f32 %v5602_v16, %v10204_v18 }
0x1f47   :  { %v5617_v61 = vsel %vm99_vm0, %v5611_v3, 0.0 }
0x1f48   :  { %5618 = vadd.xlane.f32.xlu1 %v5617_v61 }
0x1f74   :  { %v5604_v17 = vpop.f32.mrf.mxu1 }
0x1f75   :  { %v5605_v5 = vadd.f32 %v5604_v17, %v5568_v26 }
0x1f77   :  { %v5612_v7 = vadd.f32 %v5605_v5, %v10210_v29 }
0x1f79   :  { %v5620_v46 = vsel %vm99_vm0, %v5612_v7, 0.0 }
0x1f7a   :  { %5621 = vadd.xlane.f32.xlu1 %v5620_v46 }
0x1f93   :  { %v5607_v48 = vpop.f32.mrf.mxu1 }
0x1f94   :  { %v5608_v11 = vadd.f32 %v5607_v48, %v5568_v26 }
0x1f96   :  { %v5613_v36 = vadd.f32 %v5608_v11, %v10216_v1 }
0x1f98   :  { %v5623_v15 = vsel %vm99_vm0, %v5613_v36, 0.0 }
0x1f99   :  { %5624 = vadd.xlane.f32.xlu2 %v5623_v15 }
0x1fae   :  { %v5616_v21 = vpop.xlane.xlu0 %5615 }
0x1faf   :  { %v5626_v18 = vmul.f32 %v5616_v21, %v11094_v25 }
0x1fb1   :  { %v5630_v41 = vsub.f32 %v5610_v40, %v5626_v18 }
0x1fb3   :  { %v5634_v43 = vmul.f32 %v5630_v41, %v5630_v41 }
0x1fb5   :  { %v5638_v9 = vsel %vm99_vm0, %v5634_v43, 0.0  ;;  %v6264_v43 = vld [vmem:[%s11002_s7 + $0x138] sm:$0xff] }
0x1fb6   :  { %5639 = vadd.xlane.f32.xlu1 %v5638_v9  ;;  %v6263_v9 = vld [vmem:[%s11002_s7 + $0x130] sm:$0xff]  ;;  %5797 = vmatpush.msra.mxu3 %v6264_v43 }
0x1fb8   :  { %5798 = vmatpush.msra.mxu3 %v6263_v9 }
0x1fbb   :  { %v5619_v55 = vpop.xlane.xlu1 %5618 }
0x1fbc   :  { %v5627_v29 = vmul.f32 %v5619_v55, %v11094_v25  ;;  %v6262_v55 = vld [vmem:[%s11002_s7 + $0x128] sm:$0xff] }
0x1fbd   :  { %5799 = vmatpush.msra.mxu3 %v6262_v55 }
0x1fbe   :  { %v5631_v10 = vsub.f32 %v5611_v3, %v5627_v29 }
0x1fc0   :  { %v5635_v23 = vmul.f32 %v5631_v10, %v5631_v10 }
0x1fc2   :  { %v5641_v56 = vsel %vm99_vm0, %v5635_v23, 0.0  ;;  %v6261_v23 = vld [vmem:[%s11002_s7 + $0x120] sm:$0xff] }
0x1fc3   :  { %5642 = vadd.xlane.f32.xlu1 %v5641_v56  ;;  %5800 = vmatpush.msra.mxu3 %v6261_v23 }
0x1fed   :  { %v5622_v1 = vpop.xlane.xlu1 %5621 }
0x1fee   :  { %v5628_v14 = vmul.f32 %v5622_v1, %v11094_v25  ;;  %v6260_v1 = vld [vmem:[%s11002_s7 + $0x118] sm:$0xff] }
0x1fef   :  { %5801 = vmatpush.msra.mxu3 %v6260_v1 }
0x1ff0   :  { %v10854_v30 = vsub.f32 %v5612_v7, %v5628_v14 }
0x1ff2   :  { %v5636_v22 = vmul.f32 %v10854_v30, %v10854_v30 }
0x1ff4   :  { %v5644_v62 = vsel %vm99_vm0, %v5636_v22, 0.0 }
0x1ff5   :  { %5645 = vadd.xlane.f32.xlu1 %v5644_v62 }
0x200c   :  { %v5625_v58 = vpop.xlane.xlu2 %5624 }
0x200d   :  { %v5629_v45 = vmul.f32 %v5625_v58, %v11094_v25 }
0x200f   :  { %v10860_v52 = vsub.f32 %v5613_v36, %v5629_v45 }
0x2011   :  { %v5637_v0 = vmul.f32 %v10860_v52, %v10860_v52 }
0x2013   :  { %v5647_v32 = vsel %vm99_vm0, %v5637_v0, 0.0 }
0x2014   :  { %5648 = vadd.xlane.f32.xlu0 %v5647_v32 }
0x2029   :  { %v5640_v53 = vpop.xlane.xlu1 %5639 }
0x202a   :  { %v5650_v31 = vmul.f32 %v5640_v53, %v11094_v25 }
0x202c   :  { %v5654_v39 = vadd.f32 1e-05, %v5650_v31 }
0x202e   :  { %6492 = vrsqrt.f32 %v5654_v39  ;;  %vm5664_vm3 = vweird.f32 %v5654_v39 }
0x2034   :  { %v6493_v50 = vpop.eup %6492 }
0x2035   :  { %v5659_v42 = vmul.f32 %v6493_v50, %v5654_v39  ;;  %vm5665_vm2 = vweird.f32 %v6493_v50  ;;  %v6259_v39 = vld [vmem:[%s11002_s7 + $0x110] sm:$0xff] }
0x2036   :  { %v5643_v34 = vpop.xlane.xlu1 %5642  ;;  %vm5666_vm4 = vmor %vm5664_vm3, %vm5665_vm2  ;;  %5802 = vmatpush.msra.mxu3 %v6259_v39 }
0x2037   :  { %v5660_v28 = vmul.f32 %v6493_v50, %v5659_v42  ;;  %v5651_v57 = vmul.f32 %v5643_v34, %v11094_v25 }
0x2038   :  { %5803 = vmatpush.msra.mxu3 %v6258_v47 }
0x2039   :  { %v5661_v20 = vmul.f32 0.5, %v5660_v28  ;;  %v5655_v13 = vadd.f32 1e-05, %v5651_v57 }
0x203a   :  { %5804 = vmatpush.msra.mxu3 %v6257_v37 }
0x203b   :  { %v5662_v44 = vsub.f32 1.5, %v5661_v20  ;;  %6494 = vrsqrt.f32 %v5655_v13  ;;  %vm5674_vm9 = vweird.f32 %v5655_v13 }
0x203d   :  { %v5663_v59 = vmul.f32 %v6493_v50, %v5662_v44 }
0x203f   :  { %v5667_v6 = vsel %vm5666_vm4, %v6493_v50, %v5663_v59 }
0x2040   :  { %v5698_v51 = vmul.f32 %v5667_v6, %v5630_v41  ;;  %v5776_v6 = vperm.slane %v10838_v49, 3 }
0x2041   :  { %v6495_v35 = vpop.eup %6494 }
0x2042   :  { %v5703_v63 = vmul.f32 %v10880_v24, %v5698_v51  ;;  %v5669_v12 = vmul.f32 %v6495_v35, %v5655_v13  ;;  %vm5675_vm5 = vweird.f32 %v6495_v35 }
0x2043   :  { %vm5676_vm14 = vmor %vm5674_vm9, %vm5675_vm5 }
0x2044   :  { %v10887_v19 = vadd.f32 %v10883_v27, %v5703_v63  ;;  %v5670_v60 = vmul.f32 %v6495_v35, %v5669_v12 }
0x2046   :  { %v5671_v26 = vmul.f32 0.5, %v5670_v60  ;;  %6253 = vmatmul.msk.f32.vlgmr.msra.gmra.mxu2 %vm99_vm0, %v10887_v19 }
0x2048   :  { %v5672_v2 = vsub.f32 1.5, %v5671_v26 }
0x204a   :  { %v5673_v33 = vmul.f32 %v6495_v35, %v5672_v2 }
0x204c   :  { %v5677_v40 = vsel %vm5676_vm14, %v6495_v35, %v5673_v33 }
0x204d   :  { %v5699_v54 = vmul.f32 %v5677_v40, %v5631_v10 }
0x204f   :  { %v5704_v4 = vmul.f32 %v10880_v24, %v5699_v54 }
0x2051   :  { %v10893_v16 = vadd.f32 %v10883_v27, %v5704_v4 }
0x2053   :  { %6254 = vmatmul.msk.f32.gmra.mxu2 %vm99_vm0, %v10893_v16 }
0x2068   :  { %v5646_v3 = vpop.xlane.xlu1 %5645 }
0x2069   :  { %v5652_v61 = vmul.f32 %v5646_v3, %v11094_v25 }
0x206b   :  { %v5656_v17 = vadd.f32 1e-05, %v5652_v61 }
0x206d   :  { %6496 = vrsqrt.f32 %v5656_v17  ;;  %vm5684_vm13 = vweird.f32 %v5656_v17 }
0x2073   :  { %v6497_v5 = vpop.eup %6496 }
0x2074   :  { %v5679_v7 = vmul.f32 %v6497_v5, %v5656_v17  ;;  %vm5685_vm1 = vweird.f32 %v6497_v5 }
0x2075   :  { %vm5686_vm10 = vmor %vm5684_vm13, %vm5685_vm1 }
0x2076   :  { %v5680_v46 = vmul.f32 %v6497_v5, %v5679_v7 }
0x2078   :  { %v5681_v48 = vmul.f32 0.5, %v5680_v46 }
0x207a   :  { %v5682_v11 = vsub.f32 1.5, %v5681_v48 }
0x207c   :  { %v5683_v36 = vmul.f32 %v6497_v5, %v5682_v11 }
0x207e   :  { %v5687_v15 = vsel %vm5686_vm10, %v6497_v5, %v5683_v36 }
0x207f   :  { %v5700_v21 = vmul.f32 %v5687_v15, %v10854_v30 }
0x2081   :  { %v5705_v18 = vmul.f32 %v10880_v24, %v5700_v21 }
0x2083   :  { %v10901_v41 = vadd.f32 %v10883_v27, %v5705_v18 }
0x2085   :  { %6255 = vmatmul.msk.f32.gmra.mxu2 %vm99_vm0, %v10901_v41 }
0x2087   :  { %v5649_v29 = vpop.xlane.xlu0 %5648 }
0x2088   :  { %v5653_v10 = vmul.f32 %v5649_v29, %v11094_v25 }
0x208a   :  { %v5657_v56 = vadd.f32 1e-05, %v5653_v10 }
0x208c   :  { %6498 = vrsqrt.f32 %v5657_v56  ;;  %vm5694_vm11 = vweird.f32 %v5657_v56 }
0x2092   :  { %v6499_v14 = vpop.eup %6498 }
0x2093   :  { %v5689_v30 = vmul.f32 %v6499_v14, %v5657_v56  ;;  %vm5695_vm15 = vweird.f32 %v6499_v14 }
0x2094   :  { %vm5696_vm6 = vmor %vm5694_vm11, %vm5695_vm15 }
0x2095   :  { %v5690_v22 = vmul.f32 %v6499_v14, %v5689_v30 }
0x2097   :  { %v5691_v62 = vmul.f32 0.5, %v5690_v22 }
0x2099   :  { %v5692_v58 = vsub.f32 1.5, %v5691_v62 }
0x209b   :  { %v5693_v45 = vmul.f32 %v6499_v14, %v5692_v58  ;;  %v5923_v58 = vld [vmem:[%s11004_s9 + $0x18] sm:$0xff] }
0x209c   :  { %5952 = vmatpush.msrb.mxu0 %v5923_v58 }
0x209d   :  { %v5697_v0 = vsel %vm5696_vm6, %v6499_v14, %v5693_v45  ;;  %v5922_v45 = vld [vmem:[%s11004_s9 + $0x10] sm:$0xff] }
0x209e   :  { %v5701_v32 = vmul.f32 %v5697_v0, %v10860_v52  ;;  %v6344_v52 = vld [vmem:[%s11001_s6 + $0x4] ss:$0 sm:$0xff]  ;;  %v5921_v0 = vld [vmem:[%s11004_s9 + $0x8] sm:$0xff]  ;;  %5953 = vmatpush.msrb.mxu0 %v5922_v45 }
0x20a0   :  { %v5706_v53 = vmul.f32 %v10880_v24, %v5701_v32  ;;  %v5920_v32 = vld [vmem:[%s11004_s9] sm:$0xff]  ;;  %5954 = vmatpush.msrb.mxu0 %v5921_v0 }
0x20a2   :  { %v5711_v31 = vadd.f32 %v10883_v27, %v5706_v53  ;;  %5955 = vmatpush.msrb.mxu0 %v5920_v32 }
0x20a4   :  { %6256 = vmatmul.msk.f32.gmra.mxu2 %vm99_vm0, %v5711_v31 }
0x20c9   :  { %v5751_v38 = vpop.f32.mrf.mxu2 }
0x20ca   :  { %v5752_v8 = vadd.f32 %v6344_v52, %v5751_v38 }
0x20cc   :  { %v5763_v50 = vmax.f32 %v5752_v8, 0.0 }
0x20ce   :  { %6265 = vmatmul.msk.f32.vlgmr.msra.gmra.mxu3 %vm1128_vm8, %v5763_v50 }
0x20d6   :  { %v5754_v42 = vpop.f32.mrf.mxu2 }
0x20d7   :  { %v5755_v34 = vadd.f32 %v6344_v52, %v5754_v42  ;;  %v5910_v42 = vperm.slane %v10838_v49, 4 }
0x20d9   :  { %v5764_v28 = vmax.f32 %v5755_v34, 0.0 }
0x20db   :  { %6266 = vmatmul.msk.f32.gmra.mxu3 %vm1128_vm8, %v5764_v28  ;;  %v5915_v28 = vperm.slane %v10838_v49, 5 }
0x2108   :  { %v5757_v57 = vpop.f32.mrf.mxu2 }
0x2109   :  { %v5758_v20 = vadd.f32 %v6344_v52, %v5757_v57 }
0x210b   :  { %v5765_v13 = vmax.f32 %v5758_v20, 0.0 }
0x210d   :  { %6267 = vmatmul.msk.f32.gmra.mxu3 %vm1128_vm8, %v5765_v13 }
0x2127   :  { %v5760_v44 = vpop.f32.mrf.mxu2 }
0x2128   :  { %v5761_v59 = vadd.f32 %v6344_v52, %v5760_v44 }
0x212a   :  { %v5766_v24 = vmax.f32 %v5761_v59, 0.0 }
0x212c   :  { %6268 = vmatmul.msk.f32.gmra.mxu3 %vm1128_vm8, %v5766_v24 }
0x2151   :  { %v5806_v27 = vpop.f32.mrf.mxu3 }
0x2152   :  { %v5807_v51 = vadd.f32 %v5806_v27, %v5776_v6 }
0x2154   :  { %v5818_v35 = vadd.f32 %v5807_v51, %v10887_v19 }
0x2156   :  { %v5822_v63 = vsel %vm99_vm0, %v5818_v35, 0.0 }
0x2157   :  { %5823 = vadd.xlane.f32.xlu1 %v5822_v63 }
0x215e   :  { %v5809_v12 = vpop.f32.mrf.mxu3 }
0x215f   :  { %v5810_v60 = vadd.f32 %v5809_v12, %v5776_v6 }
0x2161   :  { %v5819_v26 = vadd.f32 %v5810_v60, %v10893_v16 }
0x2163   :  { %v5825_v2 = vsel %vm99_vm0, %v5819_v26, 0.0 }
0x2164   :  { %5826 = vadd.xlane.f32.xlu0 %v5825_v2 }
0x2190   :  { %v5812_v33 = vpop.f32.mrf.mxu3 }
0x2191   :  { %v5813_v40 = vadd.f32 %v5812_v33, %v5776_v6 }
0x2193   :  { %v5820_v54 = vadd.f32 %v5813_v40, %v10901_v41 }
0x2195   :  { %v5828_v4 = vsel %vm99_vm0, %v5820_v54, 0.0 }
0x2196   :  { %5829 = vadd.xlane.f32.xlu1 %v5828_v4 }
0x21af   :  { %v5815_v3 = vpop.f32.mrf.mxu3 }
0x21b0   :  { %v5816_v61 = vadd.f32 %v5815_v3, %v5776_v6 }
0x21b2   :  { %v5821_v19 = vadd.f32 %v5816_v61, %v5711_v31 }
0x21b4   :  { %v5831_v17 = vsel %vm99_vm0, %v5821_v19, 0.0 }
0x21b5   :  { %5832 = vadd.xlane.f32.xlu2 %v5831_v17 }
0x21ca   :  { %v5824_v5 = vpop.xlane.xlu1 %5823 }
0x21cb   :  { %v5834_v7 = vmul.f32 %v5824_v5, %v11094_v25 }
0x21cd   :  { %v5838_v16 = vsub.f32 %v5818_v35, %v5834_v7 }
0x21cf   :  { %v5842_v46 = vmul.f32 %v5838_v16, %v5838_v16 }
0x21d1   :  { %v5846_v48 = vsel %vm99_vm0, %v5842_v46, 0.0 }
0x21d2   :  { %5847 = vadd.xlane.f32.xlu0 %v5846_v48 }
0x21d7   :  { %v5827_v11 = vpop.xlane.xlu0 %5826 }
0x21d8   :  { %v5835_v36 = vmul.f32 %v5827_v11, %v11094_v25 }
0x21da   :  { %v5839_v15 = vsub.f32 %v5819_v26, %v5835_v36 }
0x21dc   :  { %v5843_v21 = vmul.f32 %v5839_v15, %v5839_v15 }
0x21de   :  { %v5849_v18 = vsel %vm99_vm0, %v5843_v21, 0.0 }
0x21df   :  { %5850 = vadd.xlane.f32.xlu1 %v5849_v18 }
0x2209   :  { %v5830_v41 = vpop.xlane.xlu1 %5829 }
0x220a   :  { %v5836_v43 = vmul.f32 %v5830_v41, %v11094_v25 }
0x220c   :  { %v10954_v9 = vsub.f32 %v5820_v54, %v5836_v43 }
0x220e   :  { %v5844_v55 = vmul.f32 %v10954_v9, %v10954_v9 }
0x2210   :  { %v5852_v29 = vsel %vm99_vm0, %v5844_v55, 0.0 }
0x2211   :  { %5853 = vadd.xlane.f32.xlu2 %v5852_v29 }
0x2228   :  { %v5833_v10 = vpop.xlane.xlu2 %5832 }
0x2229   :  { %v5837_v23 = vmul.f32 %v5833_v10, %v11094_v25 }
0x222b   :  { %v10960_v56 = vsub.f32 %v5821_v19, %v5837_v23 }
0x222d   :  { %v5845_v1 = vmul.f32 %v10960_v56, %v10960_v56 }
0x222f   :  { %v5855_v14 = vsel %vm99_vm0, %v5845_v1, 0.0 }
0x2230   :  { %5856 = vadd.xlane.f32.xlu0 %v5855_v14 }
0x2245   :  { %v5848_v30 = vpop.xlane.xlu0 %5847 }
0x2246   :  { %v5858_v22 = vmul.f32 %v5848_v30, %v11094_v25 }
0x2248   :  { %v5862_v62 = vadd.f32 1e-05, %v5858_v22 }
0x224a   :  { %6500 = vrsqrt.f32 %v5862_v62  ;;  %vm5872_vm12 = vweird.f32 %v5862_v62 }
0x2250   :  { %v6501_v53 = vpop.eup %6500 }
0x2251   :  { %v5867_v31 = vmul.f32 %v6501_v53, %v5862_v62  ;;  %vm5873_vm8 = vweird.f32 %v6501_v53 }
0x2252   :  { %v5851_v39 = vpop.xlane.xlu1 %5850  ;;  %vm5874_vm7 = vmor %vm5872_vm12, %vm5873_vm8 }
0x2253   :  { %v5868_v47 = vmul.f32 %v6501_v53, %v5867_v31  ;;  %v5859_v37 = vmul.f32 %v5851_v39, %v11094_v25 }
0x2255   :  { %v5869_v52 = vmul.f32 0.5, %v5868_v47  ;;  %v5863_v38 = vadd.f32 1e-05, %v5859_v37 }
0x2257   :  { %v5870_v8 = vsub.f32 1.5, %v5869_v52  ;;  %6502 = vrsqrt.f32 %v5863_v38  ;;  %vm5882_vm3 = vweird.f32 %v5863_v38 }
0x2259   :  { %v5871_v50 = vmul.f32 %v6501_v53, %v5870_v8 }
0x225b   :  { %v5875_v34 = vsel %vm5874_vm7, %v6501_v53, %v5871_v50 }
0x225c   :  { %v5906_v57 = vmul.f32 %v5875_v34, %v5838_v16 }
0x225d   :  { %v6503_v20 = vpop.eup %6502 }
0x225e   :  { %v5911_v13 = vmul.f32 %v5910_v42, %v5906_v57  ;;  %v5877_v44 = vmul.f32 %v6503_v20, %v5863_v38  ;;  %vm5883_vm2 = vweird.f32 %v6503_v20 }
0x225f   :  { %vm5884_vm4 = vmor %vm5882_vm3, %vm5883_vm2 }
0x2260   :  { %v5916_v59 = vadd.f32 %v5915_v28, %v5911_v13  ;;  %v5878_v24 = vmul.f32 %v6503_v20, %v5877_v44 }
0x2262   :  { %v5879_v6 = vmul.f32 0.5, %v5878_v24  ;;  %6269 = vmatmul.msk.f32.vlgmr.msrb.gmra.mxu0 %vm99_vm0, %v5916_v59 }
0x2264   :  { %v5880_v27 = vsub.f32 1.5, %v5879_v6 }
0x2266   :  { %v5881_v51 = vmul.f32 %v6503_v20, %v5880_v27 }
0x2268   :  { %v5885_v35 = vsel %vm5884_vm4, %v6503_v20, %v5881_v51 }
0x2269   :  { %v5907_v63 = vmul.f32 %v5885_v35, %v5839_v15 }
0x226b   :  { %v5912_v12 = vmul.f32 %v5910_v42, %v5907_v63 }
0x226d   :  { %v5917_v60 = vadd.f32 %v5915_v28, %v5912_v12 }
0x226f   :  { %6270 = vmatmul.msk.f32.gmra.mxu0 %vm99_vm0, %v5917_v60 }
0x2284   :  { %v5854_v49 = vpop.xlane.xlu2 %5853 }
0x2285   :  { %v5860_v26 = vmul.f32 %v5854_v49, %v11094_v25 }
0x2287   :  { %v5864_v2 = vadd.f32 1e-05, %v5860_v26 }
0x2289   :  { %6504 = vrsqrt.f32 %v5864_v2  ;;  %vm5892_vm9 = vweird.f32 %v5864_v2 }
0x228f   :  { %v6505_v33 = vpop.eup %6504 }
0x2290   :  { %v5887_v40 = vmul.f32 %v6505_v33, %v5864_v2  ;;  %vm5893_vm5 = vweird.f32 %v6505_v33 }
0x2291   :  { %vm5894_vm14 = vmor %vm5892_vm9, %vm5893_vm5 }
0x2292   :  { %v5888_v54 = vmul.f32 %v6505_v33, %v5887_v40 }
0x2294   :  { %v5889_v4 = vmul.f32 0.5, %v5888_v54 }
0x2296   :  { %v5890_v3 = vsub.f32 1.5, %v5889_v4 }
0x2298   :  { %v5891_v61 = vmul.f32 %v6505_v33, %v5890_v3 }
0x229a   :  { %v5895_v19 = vsel %vm5894_vm14, %v6505_v33, %v5891_v61 }
0x229b   :  { %v5908_v17 = vmul.f32 %v5895_v19, %v10954_v9 }
0x229d   :  { %v5913_v5 = vmul.f32 %v5910_v42, %v5908_v17 }
0x229f   :  { %v5918_v7 = vadd.f32 %v5915_v28, %v5913_v5 }
0x22a1   :  { %6271 = vmatmul.msk.f32.gmra.mxu0 %vm99_vm0, %v5918_v7 }
0x22a3   :  { %v5857_v16 = vpop.xlane.xlu0 %5856 }
0x22a4   :  { %v5861_v46 = vmul.f32 %v5857_v16, %v11094_v25  ;;  %v6345_v25 = vld [vmem:[%s11005_s10] ss:$0 sm:$0xff]  ;;  %s6685_s10 = smov [#allocation2]  }
0x22a5   :  { %s6021_s29 = sshll.u32 %s6685_s10, 4  ;;  %s6022_s29 = int_to_ptr.vmem [resolvable:$true] %s6021_s29 }
0x22a6   :  { %v5865_v48 = vadd.f32 1e-05, %v5861_v46 }
0x22a8   :  { %6506 = vrsqrt.f32 %v5865_v48  ;;  %vm5902_vm13 = vweird.f32 %v5865_v48 }
0x22ae   :  { %v6507_v11 = vpop.eup %6506 }
0x22af   :  { %v5897_v36 = vmul.f32 %v6507_v11, %v5865_v48  ;;  %vm5903_vm1 = vweird.f32 %v6507_v11 }
0x22b0   :  { %vm5904_vm10 = vmor %vm5902_vm13, %vm5903_vm1 }
0x22b1   :  { %v5898_v15 = vmul.f32 %v6507_v11, %v5897_v36 }
0x22b3   :  { %v5899_v21 = vmul.f32 0.5, %v5898_v15 }
0x22b5   :  { %v5900_v18 = vsub.f32 1.5, %v5899_v21 }
0x22b7   :  { %v5901_v41 = vmul.f32 %v6507_v11, %v5900_v18 }
0x22b9   :  { %v5905_v43 = vsel %vm5904_vm10, %v6507_v11, %v5901_v41 }
0x22ba   :  { %v5909_v9 = vmul.f32 %v5905_v43, %v10960_v56 }
0x22bc   :  { %v5914_v55 = vmul.f32 %v5910_v42, %v5909_v9 }
0x22be   :  { %v5919_v29 = vadd.f32 %v5915_v28, %v5914_v55 }
0x22c0   :  { %6272 = vmatmul.msk.f32.gmra.mxu0 %vm99_vm0, %v5919_v29 }
0x22df   :  { %v5957_v10 = vpop.f32.mrf.mxu0 }
0x22e0   :  { %v5958_v23 = vadd.f32 %v6345_v25, %v5957_v10 }
0x22e2   :  { %5969 = vmax.xlane.f32.xlu1 %v5958_v23 }
0x22ec   :  { %v5960_v1 = vpop.f32.mrf.mxu0 }
0x22ed   :  { %v5961_v14 = vadd.f32 %v6345_v25, %v5960_v1 }
0x22ef   :  { %5971 = vmax.xlane.f32.xlu2 %v5961_v14 }
0x231e   :  { %v5963_v30 = vpop.f32.mrf.mxu0 }
0x231f   :  { %v5964_v22 = vadd.f32 %v6345_v25, %v5963_v30 }
0x2321   :  { %5973 = vmax.xlane.f32.xlu0 %v5964_v22 }
0x233d   :  { %v5966_v62 = vpop.f32.mrf.mxu0 }
0x233e   :  { %v5967_v58 = vadd.f32 %v6345_v25, %v5966_v62 }
0x2340   :  { %5975 = vmax.xlane.f32.xlu1 %v5967_v58 }
0x2355   :  { %v5970_v56 = vpop.xlane.xlu1 %5969 }
0x2356   :  { %v5977_v45 = vsub.f32 %v5958_v23, %v5970_v56 }
0x2358   :  { %v5981_v0 = vmul.f32 1.442695, %v5977_v45 }
0x235a   :  { %6508 = vpow2.f32 %v5981_v0 }
0x2360   :  { %v6509_v32 = vpop.eup %6508 }
0x2361   :  { %5989 = vadd.xlane.f32.xlu2 %v6509_v32 }
0x2362   :  { %v5972_v53 = vpop.xlane.xlu2 %5971 }
0x2363   :  { %v5978_v31 = vsub.f32 %v5961_v14, %v5972_v53 }
0x2365   :  { %v5983_v39 = vmul.f32 1.442695, %v5978_v31 }
0x2367   :  { %6510 = vpow2.f32 %v5983_v39 }
0x236d   :  { %v6511_v47 = vpop.eup %6510 }
0x236e   :  { %5991 = vadd.xlane.f32.xlu0 %v6511_v47 }
0x2394   :  { %v5974_v37 = vpop.xlane.xlu0 %5973 }
0x2395   :  { %v5979_v52 = vsub.f32 %v5964_v22, %v5974_v37 }
0x2397   :  { %v5985_v38 = vmul.f32 1.442695, %v5979_v52 }
0x2399   :  { %6512 = vpow2.f32 %v5985_v38 }
0x239f   :  { %v6513_v8 = vpop.eup %6512 }
0x23a0   :  { %5993 = vadd.xlane.f32.xlu1 %v6513_v8 }
0x23b3   :  { %v5976_v50 = vpop.xlane.xlu1 %5975 }
0x23b4   :  { %v5980_v42 = vsub.f32 %v5967_v58, %v5976_v50 }
0x23b6   :  { %v5987_v34 = vmul.f32 1.442695, %v5980_v42 }
0x23b8   :  { %6514 = vpow2.f32 %v5987_v34 }
0x23be   :  { %v6515_v28 = vpop.eup %6514 }
0x23bf   :  { %5995 = vadd.xlane.f32.xlu2 %v6515_v28 }
0x23d4   :  { %v5990_v57 = vpop.xlane.xlu2 %5989 }
0x23d5   :  { %6516 = vlog2.f32 %v5990_v57 }
0x23db   :  { %v6517_v20 = vpop.eup %6516 }
0x23dc   :  { %v5998_v13 = vmul.f32 0.6931472, %v6517_v20 }
0x23de   :  { %v6005_v44 = vadd.f32 %v5998_v13, %v5970_v56 }
0x23e0   :  { %v6009_v59 = vsub.f32 %v5958_v23, %v6005_v44 }
0x23e1   :  { %v5992_v24 = vpop.xlane.xlu0 %5991 }
0x23e2   :  { %6013 = vst [vmem:[#allocation2] sm:$0xff] %v6009_v59  ;;  %6518 = vlog2.f32 %v5992_v24 }
0x23e8   :  { %v6519_v6 = vpop.eup %6518 }
0x23e9   :  { %v6000_v27 = vmul.f32 0.6931472, %v6519_v6 }
0x23eb   :  { %v6006_v51 = vadd.f32 %v6000_v27, %v5972_v53 }
0x23ed   :  { %v6010_v35 = vsub.f32 %v5961_v14, %v6006_v51 }
0x23ef   :  { %6014 = vst [vmem:[#allocation2 + $0x8] sm:$0xff] %v6010_v35 }
0x2413   :  { %v5994_v63 = vpop.xlane.xlu1 %5993 }
0x2414   :  { %6520 = vlog2.f32 %v5994_v63 }
0x241a   :  { %v6521_v12 = vpop.eup %6520 }
0x241b   :  { %v6002_v60 = vmul.f32 0.6931472, %v6521_v12 }
0x241d   :  { %v6007_v49 = vadd.f32 %v6002_v60, %v5974_v37 }
0x241f   :  { %v6011_v26 = vsub.f32 %v5964_v22, %v6007_v49 }
0x2421   :  { %6015 = vst [vmem:[#allocation2 + $0x10] sm:$0xff] %v6011_v26 }
0x2432   :  { %v5996_v2 = vpop.xlane.xlu2 %5995 }
0x2433   :  { %6522 = vlog2.f32 %v5996_v2 }
0x2439   :  { %v6523_v33 = vpop.eup %6522 }
0x243a   :  { %v6004_v40 = vmul.f32 0.6931472, %v6523_v33 }
0x243c   :  { %v6008_v54 = vadd.f32 %v6004_v40, %v5976_v50 }
0x243e   :  { %v6012_v4 = vsub.f32 %v5967_v58, %v6008_v54 }
0x2440   :  { %6016 = vst [vmem:[#allocation2 + $0x18] sm:$0xff] %v6012_v4 }
0x2441   :  { %6029 = dma.vmem_to_hbm [thread:$0]  %s6022_s29, 512, %s6024_s12, [#allocation3], %s6686_s2, %s6686_s2, %s6687_s13  }
0x2442   :  { %6680 = dma.done.wait [#allocation3], 512  }
0x2443   :  { %6681 = vsyncadd [#allocation3], 4294966784 }
0x2444   :  { %6034 = vsyncpa [#allocation3], 1 }

</bundles_post_ra>
